<compile_context>
chip_gen: v6e
topology: v6e:2x2x1
jax: 0.10.0
libtpu: 0.0.40
codegen_flags: <defaults>
</compile_context>

<pallas_src>
import functools

import numpy as np
import jax
import jax.numpy as jnp
from jax.experimental import pallas as pl
from jax.experimental.pallas import tpu as pltpu

INPUT_SIZE = (32, 32)          # (H, W) of input image
CHANNELS = (8, 16)             # per-scale feature channels (fine -> coarse)
SCALE_FACTORS = (4, 8)         # per-scale downsampling factors (must differ by 2x)
FLOW_STEPS = 2                 # coupling blocks per stage (alternating 3x3 / 1x1 subnets)
AFFINE_CLAMP = 2.0
SUBNET_CHANNELS_RATIO = 1.0

F32 = jnp.float32


# ----------------------------------------------------------------------------- in-kernel helpers
def _conv_same_k3(x4, w, b, pad_ref, *, relu):
    """'same' 3x3 conv via im2col single matmul.

    x4: (B, H, W, Cin) value, w: (9*Cin, Cout), b: (1, Cout),
    pad_ref: VMEM scratch (B, H+2, W+2, Cin). Returns (B*H*W, Cout).
    """
    B, H, W, cin = x4.shape
    pad_ref[...] = jnp.zeros(pad_ref.shape, F32)
    pad_ref[:, 1:H + 1, 1:W + 1, :] = x4
    cols = [pad_ref[:, dy:dy + H, dx:dx + W, :] for dy in range(3) for dx in range(3)]
    patches = jnp.concatenate(cols, axis=-1).reshape(B * H * W, 9 * cin)
    y = jnp.dot(patches, w, preferred_element_type=F32) + b
    return jnp.maximum(y, 0.0) if relu else y


# ----------------------------------------------------------------------------- kernels
def _feature_kernel(p1_ref, p2_ref, w1_ref, b1_ref, w2_ref, b2_ref,
                    f1_ref, f2_ref, pad1_ref, pad2_ref):
    """Synthetic feature extractor: 3x3 conv + ReLU per scale (both scales fused)."""
    f1_ref[...] = _conv_same_k3(p1_ref[...], w1_ref[...], b1_ref[...], pad1_ref, relu=True)
    f2_ref[...] = _conv_same_k3(p2_ref[...], w2_ref[...], b2_ref[...], pad2_ref, relu=True)


def _block_kernel(x_ref, w1_ref, b1_ref, w2_ref, b2_ref, gs_ref, go_ref, wp_ref,
                  y_ref, jac_ref, *pad_refs, B, H, W, K, s1, s2, clamp):
    """Fused FrEIA AllInOneBlock forward (rev=False, permute_soft=False, no condition).

    x_ref/y_ref: (B*H*W, C) activations (batch folded into the matmul M dim).
    jac_ref: (B, 128) lane-broadcast per-batch coupling log-jacobian.
    """
    x = x_ref[...]                                  # (M, C)
    x1 = x[:, :s1]
    x2 = x[:, s1:]

    # AffineCouplingSubnet: conv(K,'same') -> ReLU -> conv(K,'same')
    if K == 3:
        h = _conv_same_k3(x1.reshape(B, H, W, s1), w1_ref[...], b1_ref[...],
                          pad_refs[0], relu=True)
        mid = h.shape[-1]
        a = _conv_same_k3(h.reshape(B, H, W, mid), w2_ref[...], b2_ref[...],
                          pad_refs[1], relu=False)
    else:                                           # 1x1 conv == per-pixel matmul
        h = jnp.maximum(jnp.dot(x1, w1_ref[...], preferred_element_type=F32)
                        + b1_ref[...], 0.0)
        a = jnp.dot(h, w2_ref[...], preferred_element_type=F32) + b2_ref[...]

    # FrEIA _affine (rev=False): a *= 0.1; s = clamp*tanh(a[:ch]); y = x*exp(s) + a[ch:]
    a = a * 0.1
    s = clamp * jnp.tanh(a[:, :s2])
    t = a[:, s2:]
    y2 = x2 * jnp.exp(s) + t

    # concat -> global affine -> hard-permutation 1x1 conv (kept in-kernel on the MXU)
    xcat = jnp.concatenate([x1, y2], axis=-1)       # (M, C)
    xg = xcat * gs_ref[...] + go_ref[...]
    y_ref[...] = jnp.dot(xg, wp_ref[...], preferred_element_type=F32)

    # per-batch coupling log-jacobian: sum of s over (H, W, channels)
    s3 = s.reshape(B, H * W, s2)
    jac = jnp.sum(jnp.sum(s3, axis=2, keepdims=True), axis=1, keepdims=True)  # (B,1,1)
    jac_ref[...] = jnp.broadcast_to(jac.reshape(B, 1), (B, 128))


def _tail_kernel(z1_ref, z2_ref, wh1_ref, wwt1_ref, wh2_ref, wwt2_ref,
                 amap_ref, score_ref, *, B):
    """Likelihood exp(-mean_c(z^2)/2) per scale + bilinear resize (two matmuls) +
    1 - mean over scales + spatial max, all fused."""
    wh1, wwt1 = wh1_ref[...], wwt1_ref[...]
    wh2, wwt2 = wh2_ref[...], wwt2_ref[...]
    for b in range(B):                              # static unroll, B is tiny
        z1 = z1_ref[b]
        p1 = jnp.exp(-0.5 * jnp.mean(z1 * z1, axis=-1))              # (H1, W1)
        r1 = jnp.dot(jnp.dot(wh1, p1, preferred_element_type=F32), wwt1,
                     preferred_element_type=F32)                      # (Hout, Wout)
        z2 = z2_ref[b]
        p2 = jnp.exp(-0.5 * jnp.mean(z2 * z2, axis=-1))
        r2 = jnp.dot(jnp.dot(wh2, p2, preferred_element_type=F32), wwt2,
                     preferred_element_type=F32)
        amap = 1.0 - 0.5 * (r1 + r2)                                  # 1 - mean over scales
        amap_ref[b] = amap
        m = jnp.max(jnp.max(amap, axis=1, keepdims=True), axis=0, keepdims=True)  # (1,1)
        score_ref[b] = jnp.broadcast_to(m, (1, 128))


# ----------------------------------------------------------------------------- wrappers
def _fullspec(shape):
    return pl.BlockSpec(shape, lambda i: (0,) * len(shape))


def extract_features(image_nhwc, fe_params):
    """Avg-pool per scale (JAX) + one fused Pallas kernel doing both 3x3 convs."""
    B, H, W, Cin = image_nhwc.shape
    pooled, dims = [], []
    for s in SCALE_FACTORS:
        Hs, Ws = H // s, W // s
        pooled.append(image_nhwc.reshape(B, Hs, s, Ws, s, Cin).mean(axis=(2, 4)))
        dims.append((Hs, Ws))
    in_arrays = (pooled[0], pooled[1], fe_params[0]["w"], fe_params[0]["b"],
                 fe_params[1]["w"], fe_params[1]["b"])
    out_shape = tuple(jax.ShapeDtypeStruct((B * Hs * Ws, c), F32)
                      for (Hs, Ws), c in zip(dims, CHANNELS))
    f1, f2 = pl.pallas_call(
        _feature_kernel,
        out_shape=out_shape,
        grid_spec=pltpu.PrefetchScalarGridSpec(
            num_scalar_prefetch=0, grid=(1,),
            in_specs=[_fullspec(a.shape) for a in in_arrays],
            out_specs=tuple(_fullspec(o.shape) for o in out_shape),
            scratch_shapes=[pltpu.VMEM((B, dims[0][0] + 2, dims[0][1] + 2, Cin), F32),
                            pltpu.VMEM((B, dims[1][0] + 2, dims[1][1] + 2, Cin), F32)]),
        compiler_params=pltpu.CompilerParams(dimension_semantics=("arbitrary",)),
    )(*in_arrays)
    return [f1, f2]


def all_in_one_block(x2d, p, *, B, H, W, C, K, clamp):
    """One fused AllInOneBlock. x2d: (B*H*W, C) -> (B*H*W, C), per-batch log-jac."""
    s1 = C - C // 2
    s2 = C // 2
    mid = p["w1"].shape[-1]
    M = B * H * W
    # global affine scale: 0.1 * Softplus(beta=0.5)(global_scale)
    scale = 0.2 * jnp.log1p(jnp.exp(0.5 * p["global_scale"]))

    kern = functools.partial(_block_kernel, B=B, H=H, W=W, K=K, s1=s1, s2=s2, clamp=clamp)
    scratch = []
    if K == 3:
        scratch = [pltpu.VMEM((B, H + 2, W + 2, s1), F32),
                   pltpu.VMEM((B, H + 2, W + 2, mid), F32)]
    in_arrays = (x2d, p["w1"], p["b1"], p["w2"], p["b2"],
                 scale.reshape(1, C), p["global_offset"].reshape(1, C), p["w_perm_t"])
    y, jac = pl.pallas_call(
        kern,
        out_shape=(jax.ShapeDtypeStruct((M, C), F32),
                   jax.ShapeDtypeStruct((B, 128), F32)),
        grid_spec=pltpu.PrefetchScalarGridSpec(
            num_scalar_prefetch=0, grid=(1,),
            in_specs=[_fullspec(a.shape) for a in in_arrays],
            out_specs=(_fullspec((M, C)), _fullspec((B, 128))),
            scratch_shapes=scratch),
        compiler_params=pltpu.CompilerParams(dimension_semantics=("arbitrary",)),
    )(*in_arrays)
    ljd = jac[:, 0] + (H * W) * jnp.sum(jnp.log(scale))
    return y, ljd


def anomaly_tail(z1, z2):
    """Fused AnomalyMapGenerator tail: likelihoods, resizes, combine, pred_score."""
    B, H1, W1, _ = z1.shape
    _, H2, W2, _ = z2.shape
    Hout, Wout = INPUT_SIZE
    wh1 = bilinear_matrix(Hout, H1)
    wwt1 = bilinear_matrix(Wout, W1).T
    wh2 = bilinear_matrix(Hout, H2)
    wwt2 = bilinear_matrix(Wout, W2).T
    in_arrays = (z1, z2, wh1, wwt1, wh2, wwt2)
    kern = functools.partial(_tail_kernel, B=B)
    amap, score = pl.pallas_call(
        kern,
        out_shape=(jax.ShapeDtypeStruct((B, Hout, Wout), F32),
                   jax.ShapeDtypeStruct((B, 1, 128), F32)),
        grid_spec=pltpu.PrefetchScalarGridSpec(
            num_scalar_prefetch=0, grid=(1,),
            in_specs=[_fullspec(a.shape) for a in in_arrays],
            out_specs=(_fullspec((B, Hout, Wout)), _fullspec((B, 1, 128)))),
        compiler_params=pltpu.CompilerParams(dimension_semantics=("arbitrary",)),
    )(*in_arrays)
    return amap, score[:, 0, 0:1]


# ----------------------------------------------------------------------------- glue
def bilinear_matrix(out_size, in_size):
    """Row-interpolation matrix matching torch F.interpolate(bilinear, align_corners=False)."""
    m = np.zeros((out_size, in_size), np.float32)
    scale = in_size / out_size
    for o in range(out_size):
        src = max(0.0, (o + 0.5) * scale - 0.5)
        x0 = min(int(np.floor(src)), in_size - 1)
        x1 = min(x0 + 1, in_size - 1)
        l1 = src - x0
        m[o, x0] += 1.0 - l1
        m[o, x1] += l1
    return jnp.asarray(m, jnp.float32)


def irevnet_upsample(x):
    """fm.IRevNetUpsampling forward: (B,h,w,4c) -> (B,2h,2w,c), pixel-shuffle ordering (NHWC)."""
    # TODO(synk): FrEIA legacy_backend=True uses a different channel-to-spatial interleave order.
    B, h, w, c4 = x.shape
    c = c4 // 4
    x = x.reshape(B, h, w, c, 2, 2)
    x = jnp.transpose(x, (0, 1, 4, 2, 5, 3))   # B, h, by, w, bx, c
    return x.reshape(B, 2 * h, 2 * w, c)


def _conv_init(key, K, cin, cout):
    """Torch Conv2d default init; weight stored in im2col layout (K*K*cin, cout)."""
    fan_in = cin * K * K
    bound = 1.0 / np.sqrt(fan_in)
    kw, kb = jax.random.split(key)
    w = jax.random.uniform(kw, (K, K, cin, cout), F32, -bound, bound)
    b = jax.random.uniform(kb, (cout,), F32, -bound, bound)
    return w.reshape(K * K * cin, cout), b.reshape(1, cout)


def make_block_params(key, C, K):
    s1 = C - C // 2
    s2 = C // 2
    mid = int(s1 * SUBNET_CHANNELS_RATIO)
    k1, k2, k3 = jax.random.split(key, 3)
    w1, b1 = _conv_init(k1, K, s1, mid)
    w2, b2 = _conv_init(k2, K, mid, 2 * s2)
    perm = jax.random.permutation(k3, C)
    w_perm = jnp.zeros((C, C), F32).at[jnp.arange(C), perm].set(1.0)
    gs_init = 2.0 * np.log(np.exp(0.5 * 10.0 * 1.0) - 1.0)   # SOFTPLUS global_affine_init=1.0
    return dict(w1=w1, b1=b1, w2=w2, b2=b2,
                w_perm_t=w_perm.T,
                global_scale=jnp.full((C,), gs_init, F32),
                global_offset=jnp.zeros((C,), F32))


def init_params(key):
    keys = jax.random.split(key, 2 + 2 * FLOW_STEPS)
    fe = []
    for i, c in enumerate(CHANNELS):
        w, b = _conv_init(keys[i], 3, 3, c)
        fe.append(dict(w=w, b=b))
    c_coarse = CHANNELS[-1]
    stage_coarse, stage_fine = [], []
    c_fine = CHANNELS[0] + (c_coarse // 8 * 4) // 4
    for step in range(FLOW_STEPS):
        K = 3 if step % 2 == 0 else 1
        stage_coarse.append(make_block_params(keys[2 + step], c_coarse, K))
        stage_fine.append(make_block_params(keys[2 + FLOW_STEPS + step], c_fine, K))
    return dict(fe=fe, stage_coarse=stage_coarse, stage_fine=stage_fine)


def uflow_forward(params, image_nchw):
    """UflowModel.forward in eval mode: features -> U-flow encode -> anomaly map + score."""
    B = image_nchw.shape[0]
    Hin, Win = INPUT_SIZE
    x = jnp.transpose(image_nchw, (0, 2, 3, 1)).astype(F32)   # NCHW -> NHWC

    feats = extract_features(x, params["fe"])                 # [(B*H1*W1,C1), (B*H2*W2,C2)]
    H1, W1 = Hin // SCALE_FACTORS[0], Win // SCALE_FACTORS[0]
    H2, W2 = Hin // SCALE_FACTORS[1], Win // SCALE_FACTORS[1]
    C2 = CHANNELS[1]

    ljd = jnp.zeros((B,), F32)

    # coarse flow stage (activations kept as (B*H*W, C) slabs between fused blocks)
    h = feats[1]
    for step, bp in enumerate(params["stage_coarse"]):
        K = 3 if step % 2 == 0 else 1
        h, j = all_in_one_block(h, bp, B=B, H=H2, W=W2, C=C2, K=K, clamp=AFFINE_CLAMP)
        ljd = ljd + j
    h4 = h.reshape(B, H2, W2, C2)
    n0 = C2 // 8 * 4
    z_scale2 = h4[..., n0:]                              # fm.Split out1 -> output_scale_2
    up = irevnet_upsample(h4[..., :n0])                  # fm.IRevNetUpsampling on out0
    f1_4 = feats[0].reshape(B, H1, W1, CHANNELS[0])
    hf = jnp.concatenate([f1_4, up], axis=-1)            # fm.Concat(dim=channel)
    C_fine = hf.shape[-1]
    h = hf.reshape(B * H1 * W1, C_fine)

    # fine flow stage
    for step, bp in enumerate(params["stage_fine"]):
        K = 3 if step % 2 == 0 else 1
        h, j = all_in_one_block(h, bp, B=B, H=H1, W=W1, C=C_fine, K=K, clamp=AFFINE_CLAMP)
        ljd = ljd + j
    z_scale1 = h.reshape(B, H1, W1, C_fine)

    # AnomalyMapGenerator: 1 - mean_s( upsample( exp(-mean_c(z^2)/2) ) ); score = spatial amax
    amap, pred_score = anomaly_tail(z_scale1, z_scale2)
    anomaly_map = amap[:, None, :, :]                    # NCHW parity: (B, 1, H, W)

    return {"pred_score": pred_score, "anomaly_map": anomaly_map,
            "z": [z_scale1, z_scale2], "ljd": ljd}


if __name__ == "__main__":
    key = jax.random.PRNGKey(0)
    kp, kx = jax.random.split(key)
    params = init_params(kp)
    image = jax.random.normal(kx, (2, 3, INPUT_SIZE[0], INPUT_SIZE[1]), F32)  # NCHW
    fwd = jax.jit(uflow_forward)
    out = fwd(params, image)
    out = jax.tree_util.tree_map(jax.block_until_ready, out)
    assert out["anomaly_map"].shape == (2, 1, INPUT_SIZE[0], INPUT_SIZE[1])
    assert out["pred_score"].shape == (2, 1)
    assert out["ljd"].shape == (2,)
    print("KERNEL_OK")
</pallas_src>

<mosaic_0001>
module attributes {stable_mosaic.version = 11 : i64} {
  func.func @_feature_kernel(%arg0: i32, %arg1: memref<2x8x8x3xf32, #tpu.memory_space<vmem>>, %arg2: memref<2x4x4x3xf32, #tpu.memory_space<vmem>>, %arg3: memref<27x8xf32, #tpu.memory_space<vmem>>, %arg4: memref<1x8xf32, #tpu.memory_space<vmem>>, %arg5: memref<27x16xf32, #tpu.memory_space<vmem>>, %arg6: memref<1x16xf32, #tpu.memory_space<vmem>>, %arg7: memref<128x8xf32, #tpu.memory_space<vmem>>, %arg8: memref<32x16xf32, #tpu.memory_space<vmem>>, %arg9: memref<2x10x10x3xf32, #tpu.memory_space<vmem>>, %arg10: memref<2x6x6x3xf32, #tpu.memory_space<vmem>>) attributes {dimension_semantics = [#tpu.dimension_semantics<arbitrary>], iteration_bounds = array<i64: 1>, scalar_prefetch = 0 : i64, scratch_operands = 2 : i64, tpu.core_type = #tpu.core_type<tc>, window_params = [{pipeline_mode = #tpu.pipeline_mode<synchronous>, transform_indices = @transform_0, window_bounds = array<i64: 2, 8, 8, 3>}, {pipeline_mode = #tpu.pipeline_mode<synchronous>, transform_indices = @transform_1, window_bounds = array<i64: 2, 4, 4, 3>}, {pipeline_mode = #tpu.pipeline_mode<synchronous>, transform_indices = @transform_2, window_bounds = array<i64: 27, 8>}, {pipeline_mode = #tpu.pipeline_mode<synchronous>, transform_indices = @transform_3, window_bounds = array<i64: 1, 8>}, {pipeline_mode = #tpu.pipeline_mode<synchronous>, transform_indices = @transform_4, window_bounds = array<i64: 27, 16>}, {pipeline_mode = #tpu.pipeline_mode<synchronous>, transform_indices = @transform_5, window_bounds = array<i64: 1, 16>}, {pipeline_mode = #tpu.pipeline_mode<synchronous>, transform_indices = @transform_6, window_bounds = array<i64: 128, 8>}, {pipeline_mode = #tpu.pipeline_mode<synchronous>, transform_indices = @transform_7, window_bounds = array<i64: 32, 16>}]} {
    %c0 = arith.constant 0 : index
    %c0_0 = arith.constant 0 : index
    %c0_1 = arith.constant 0 : index
    %c0_2 = arith.constant 0 : index
    %0 = vector.load %arg1[%c0, %c0_0, %c0_1, %c0_2] : memref<2x8x8x3xf32, #tpu.memory_space<vmem>>, vector<2x8x8x3xf32>
    %c0_3 = arith.constant 0 : index
    %c0_4 = arith.constant 0 : index
    %1 = vector.load %arg3[%c0_3, %c0_4] : memref<27x8xf32, #tpu.memory_space<vmem>>, vector<27x8xf32>
    %c0_5 = arith.constant 0 : index
    %c0_6 = arith.constant 0 : index
    %2 = vector.load %arg4[%c0_5, %c0_6] : memref<1x8xf32, #tpu.memory_space<vmem>>, vector<1x8xf32>
    %cst = arith.constant 0.000000e+00 : f32
    %3 = vector.broadcast %cst : f32 to vector<2x10x10x3xf32>
    %c0_7 = arith.constant 0 : index
    %c0_8 = arith.constant 0 : index
    %c0_9 = arith.constant 0 : index
    %c0_10 = arith.constant 0 : index
    %4 = vector.load %arg9[%c0_7, %c0_8, %c0_9, %c0_10] : memref<2x10x10x3xf32, #tpu.memory_space<vmem>>, vector<2x10x10x3xf32>
    tpu.vector_store %arg9[%c0_7, %c0_8, %c0_9, %c0_10], %3 {strides = array<i32>} : memref<2x10x10x3xf32, #tpu.memory_space<vmem>>, vector<2x10x10x3xf32>,
    %c0_11 = arith.constant 0 : index
    %c1 = arith.constant 1 : index
    %c1_12 = arith.constant 1 : index
    %c0_13 = arith.constant 0 : index
    %5 = vector.load %arg9[%c0_11, %c1, %c1_12, %c0_13] : memref<2x10x10x3xf32, #tpu.memory_space<vmem>>, vector<2x8x8x3xf32>
    tpu.vector_store %arg9[%c0_11, %c1, %c1_12, %c0_13], %0 {strides = array<i32>} : memref<2x10x10x3xf32, #tpu.memory_space<vmem>>, vector<2x8x8x3xf32>,
    %c0_14 = arith.constant 0 : index
    %c0_15 = arith.constant 0 : index
    %c0_16 = arith.constant 0 : index
    %c0_17 = arith.constant 0 : index
    %6 = vector.load %arg9[%c0_14, %c0_15, %c0_16, %c0_17] : memref<2x10x10x3xf32, #tpu.memory_space<vmem>>, vector<2x8x8x3xf32>
    %c0_18 = arith.constant 0 : index
    %c0_19 = arith.constant 0 : index
    %c1_20 = arith.constant 1 : index
    %c0_21 = arith.constant 0 : index
    %7 = vector.load %arg9[%c0_18, %c0_19, %c1_20, %c0_21] : memref<2x10x10x3xf32, #tpu.memory_space<vmem>>, vector<2x8x8x3xf32>
    %c0_22 = arith.constant 0 : index
    %c0_23 = arith.constant 0 : index
    %c2 = arith.constant 2 : index
    %c0_24 = arith.constant 0 : index
    %8 = vector.load %arg9[%c0_22, %c0_23, %c2, %c0_24] : memref<2x10x10x3xf32, #tpu.memory_space<vmem>>, vector<2x8x8x3xf32>
    %c0_25 = arith.constant 0 : index
    %c1_26 = arith.constant 1 : index
    %c0_27 = arith.constant 0 : index
    %c0_28 = arith.constant 0 : index
    %9 = vector.load %arg9[%c0_25, %c1_26, %c0_27, %c0_28] : memref<2x10x10x3xf32, #tpu.memory_space<vmem>>, vector<2x8x8x3xf32>
    %c0_29 = arith.constant 0 : index
    %c1_30 = arith.constant 1 : index
    %c1_31 = arith.constant 1 : index
    %c0_32 = arith.constant 0 : index
    %10 = vector.load %arg9[%c0_29, %c1_30, %c1_31, %c0_32] : memref<2x10x10x3xf32, #tpu.memory_space<vmem>>, vector<2x8x8x3xf32>
    %c0_33 = arith.constant 0 : index
    %c1_34 = arith.constant 1 : index
    %c2_35 = arith.constant 2 : index
    %c0_36 = arith.constant 0 : index
    %11 = vector.load %arg9[%c0_33, %c1_34, %c2_35, %c0_36] : memref<2x10x10x3xf32, #tpu.memory_space<vmem>>, vector<2x8x8x3xf32>
    %c0_37 = arith.constant 0 : index
    %c2_38 = arith.constant 2 : index
    %c0_39 = arith.constant 0 : index
    %c0_40 = arith.constant 0 : index
    %12 = vector.load %arg9[%c0_37, %c2_38, %c0_39, %c0_40] : memref<2x10x10x3xf32, #tpu.memory_space<vmem>>, vector<2x8x8x3xf32>
    %c0_41 = arith.constant 0 : index
    %c2_42 = arith.constant 2 : index
    %c1_43 = arith.constant 1 : index
    %c0_44 = arith.constant 0 : index
    %13 = vector.load %arg9[%c0_41, %c2_42, %c1_43, %c0_44] : memref<2x10x10x3xf32, #tpu.memory_space<vmem>>, vector<2x8x8x3xf32>
    %c0_45 = arith.constant 0 : index
    %c2_46 = arith.constant 2 : index
    %c2_47 = arith.constant 2 : index
    %c0_48 = arith.constant 0 : index
    %14 = vector.load %arg9[%c0_45, %c2_46, %c2_47, %c0_48] : memref<2x10x10x3xf32, #tpu.memory_space<vmem>>, vector<2x8x8x3xf32>
    %15 = tpu.concatenate %6, %7, %8, %9, %10, %11, %12, %13, %14 in 3 : vector<2x8x8x3xf32>, vector<2x8x8x3xf32>, vector<2x8x8x3xf32>, vector<2x8x8x3xf32>, vector<2x8x8x3xf32>, vector<2x8x8x3xf32>, vector<2x8x8x3xf32>, vector<2x8x8x3xf32>, vector<2x8x8x3xf32> -> vector<2x8x8x27xf32>
    %16 = vector.shape_cast %15 : vector<2x8x8x27xf32> to vector<128x27xf32>
    %cst_49 = arith.constant dense<0.000000e+00> : vector<128x8xf32>
    %17 = tpu.matmul %16, %1, %cst_49 {dimension_numbers = #tpu.dot_dimension_numbers<[1], [0], [0], [1], [0, 0, 1, 1], [], []>} : vector<128x27xf32>, vector<27x8xf32>, vector<128x8xf32> -> vector<128x8xf32>
    %18 = vector.broadcast %2 : vector<1x8xf32> to vector<128x8xf32>
    %19 = arith.addf %17, %18 : vector<128x8xf32>
    %cst_50 = arith.constant 0.000000e+00 : f32
    %20 = vector.broadcast %cst_50 : f32 to vector<128x8xf32>
    %21 = arith.maximumf %19, %20 : vector<128x8xf32>
    %c0_51 = arith.constant 0 : index
    %c0_52 = arith.constant 0 : index
    %22 = vector.load %arg7[%c0_51, %c0_52] : memref<128x8xf32, #tpu.memory_space<vmem>>, vector<128x8xf32>
    tpu.vector_store %arg7[%c0_51, %c0_52], %21 {strides = array<i32>} : memref<128x8xf32, #tpu.memory_space<vmem>>, vector<128x8xf32>,
    %c0_53 = arith.constant 0 : index
    %c0_54 = arith.constant 0 : index
    %c0_55 = arith.constant 0 : index
    %c0_56 = arith.constant 0 : index
    %23 = vector.load %arg2[%c0_53, %c0_54, %c0_55, %c0_56] : memref<2x4x4x3xf32, #tpu.memory_space<vmem>>, vector<2x4x4x3xf32>
    %c0_57 = arith.constant 0 : index
    %c0_58 = arith.constant 0 : index
    %24 = vector.load %arg5[%c0_57, %c0_58] : memref<27x16xf32, #tpu.memory_space<vmem>>, vector<27x16xf32>
    %c0_59 = arith.constant 0 : index
    %c0_60 = arith.constant 0 : index
    %25 = vector.load %arg6[%c0_59, %c0_60] : memref<1x16xf32, #tpu.memory_space<vmem>>, vector<1x16xf32>
    %cst_61 = arith.constant 0.000000e+00 : f32
    %26 = vector.broadcast %cst_61 : f32 to vector<2x6x6x3xf32>
    %c0_62 = arith.constant 0 : index
    %c0_63 = arith.constant 0 : index
    %c0_64 = arith.constant 0 : index
    %c0_65 = arith.constant 0 : index
    %27 = vector.load %arg10[%c0_62, %c0_63, %c0_64, %c0_65] : memref<2x6x6x3xf32, #tpu.memory_space<vmem>>, vector<2x6x6x3xf32>
    tpu.vector_store %arg10[%c0_62, %c0_63, %c0_64, %c0_65], %26 {strides = array<i32>} : memref<2x6x6x3xf32, #tpu.memory_space<vmem>>, vector<2x6x6x3xf32>,
    %c0_66 = arith.constant 0 : index
    %c1_67 = arith.constant 1 : index
    %c1_68 = arith.constant 1 : index
    %c0_69 = arith.constant 0 : index
    %28 = vector.load %arg10[%c0_66, %c1_67, %c1_68, %c0_69] : memref<2x6x6x3xf32, #tpu.memory_space<vmem>>, vector<2x4x4x3xf32>
    tpu.vector_store %arg10[%c0_66, %c1_67, %c1_68, %c0_69], %23 {strides = array<i32>} : memref<2x6x6x3xf32, #tpu.memory_space<vmem>>, vector<2x4x4x3xf32>,
    %c0_70 = arith.constant 0 : index
    %c0_71 = arith.constant 0 : index
    %c0_72 = arith.constant 0 : index
    %c0_73 = arith.constant 0 : index
    %29 = vector.load %arg10[%c0_70, %c0_71, %c0_72, %c0_73] : memref<2x6x6x3xf32, #tpu.memory_space<vmem>>, vector<2x4x4x3xf32>
    %c0_74 = arith.constant 0 : index
    %c0_75 = arith.constant 0 : index
    %c1_76 = arith.constant 1 : index
    %c0_77 = arith.constant 0 : index
    %30 = vector.load %arg10[%c0_74, %c0_75, %c1_76, %c0_77] : memref<2x6x6x3xf32, #tpu.memory_space<vmem>>, vector<2x4x4x3xf32>
    %c0_78 = arith.constant 0 : index
    %c0_79 = arith.constant 0 : index
    %c2_80 = arith.constant 2 : index
    %c0_81 = arith.constant 0 : index
    %31 = vector.load %arg10[%c0_78, %c0_79, %c2_80, %c0_81] : memref<2x6x6x3xf32, #tpu.memory_space<vmem>>, vector<2x4x4x3xf32>
    %c0_82 = arith.constant 0 : index
    %c1_83 = arith.constant 1 : index
    %c0_84 = arith.constant 0 : index
    %c0_85 = arith.constant 0 : index
    %32 = vector.load %arg10[%c0_82, %c1_83, %c0_84, %c0_85] : memref<2x6x6x3xf32, #tpu.memory_space<vmem>>, vector<2x4x4x3xf32>
    %c0_86 = arith.constant 0 : index
    %c1_87 = arith.constant 1 : index
    %c1_88 = arith.constant 1 : index
    %c0_89 = arith.constant 0 : index
    %33 = vector.load %arg10[%c0_86, %c1_87, %c1_88, %c0_89] : memref<2x6x6x3xf32, #tpu.memory_space<vmem>>, vector<2x4x4x3xf32>
    %c0_90 = arith.constant 0 : index
    %c1_91 = arith.constant 1 : index
    %c2_92 = arith.constant 2 : index
    %c0_93 = arith.constant 0 : index
    %34 = vector.load %arg10[%c0_90, %c1_91, %c2_92, %c0_93] : memref<2x6x6x3xf32, #tpu.memory_space<vmem>>, vector<2x4x4x3xf32>
    %c0_94 = arith.constant 0 : index
    %c2_95 = arith.constant 2 : index
    %c0_96 = arith.constant 0 : index
    %c0_97 = arith.constant 0 : index
    %35 = vector.load %arg10[%c0_94, %c2_95, %c0_96, %c0_97] : memref<2x6x6x3xf32, #tpu.memory_space<vmem>>, vector<2x4x4x3xf32>
    %c0_98 = arith.constant 0 : index
    %c2_99 = arith.constant 2 : index
    %c1_100 = arith.constant 1 : index
    %c0_101 = arith.constant 0 : index
    %36 = vector.load %arg10[%c0_98, %c2_99, %c1_100, %c0_101] : memref<2x6x6x3xf32, #tpu.memory_space<vmem>>, vector<2x4x4x3xf32>
    %c0_102 = arith.constant 0 : index
    %c2_103 = arith.constant 2 : index
    %c2_104 = arith.constant 2 : index
    %c0_105 = arith.constant 0 : index
    %37 = vector.load %arg10[%c0_102, %c2_103, %c2_104, %c0_105] : memref<2x6x6x3xf32, #tpu.memory_space<vmem>>, vector<2x4x4x3xf32>
    %38 = tpu.concatenate %29, %30, %31, %32, %33, %34, %35, %36, %37 in 3 : vector<2x4x4x3xf32>, vector<2x4x4x3xf32>, vector<2x4x4x3xf32>, vector<2x4x4x3xf32>, vector<2x4x4x3xf32>, vector<2x4x4x3xf32>, vector<2x4x4x3xf32>, vector<2x4x4x3xf32>, vector<2x4x4x3xf32> -> vector<2x4x4x27xf32>
    %39 = vector.shape_cast %38 : vector<2x4x4x27xf32> to vector<32x27xf32>
    %cst_106 = arith.constant dense<0.000000e+00> : vector<32x16xf32>
    %40 = tpu.matmul %39, %24, %cst_106 {dimension_numbers = #tpu.dot_dimension_numbers<[1], [0], [0], [1], [0, 0, 1, 1], [], []>} : vector<32x27xf32>, vector<27x16xf32>, vector<32x16xf32> -> vector<32x16xf32>
    %41 = vector.broadcast %25 : vector<1x16xf32> to vector<32x16xf32>
    %42 = arith.addf %40, %41 : vector<32x16xf32>
    %cst_107 = arith.constant 0.000000e+00 : f32
    %43 = vector.broadcast %cst_107 : f32 to vector<32x16xf32>
    %44 = arith.maximumf %42, %43 : vector<32x16xf32>
    %c0_108 = arith.constant 0 : index
    %c0_109 = arith.constant 0 : index
    %45 = vector.load %arg8[%c0_108, %c0_109] : memref<32x16xf32, #tpu.memory_space<vmem>>, vector<32x16xf32>
    tpu.vector_store %arg8[%c0_108, %c0_109], %44 {strides = array<i32>} : memref<32x16xf32, #tpu.memory_space<vmem>>, vector<32x16xf32>,
    return
  }
  func.func @transform_0(%arg0: i32) -> (i32, i32, i32, i32) {
    %c0_i32 = arith.constant 0 : i32
    %c0_i32_0 = arith.constant 0 : i32
    %c0_i32_1 = arith.constant 0 : i32
    %c0_i32_2 = arith.constant 0 : i32
    %c0_i32_3 = arith.constant 0 : i32
    return %c0_i32, %c0_i32_0, %c0_i32_1, %c0_i32_2 : i32, i32, i32, i32
  }
  func.func @transform_1(%arg0: i32) -> (i32, i32, i32, i32) {
    %c0_i32 = arith.constant 0 : i32
    %c0_i32_0 = arith.constant 0 : i32
    %c0_i32_1 = arith.constant 0 : i32
    %c0_i32_2 = arith.constant 0 : i32
    %c0_i32_3 = arith.constant 0 : i32
    return %c0_i32, %c0_i32_0, %c0_i32_1, %c0_i32_2 : i32, i32, i32, i32
  }
  func.func @transform_2(%arg0: i32) -> (i32, i32) {
    %c0_i32 = arith.constant 0 : i32
    %c0_i32_0 = arith.constant 0 : i32
    %c0_i32_1 = arith.constant 0 : i32
    return %c0_i32, %c0_i32_0 : i32, i32
  }
  func.func @transform_3(%arg0: i32) -> (i32, i32) {
    %c0_i32 = arith.constant 0 : i32
    %c0_i32_0 = arith.constant 0 : i32
    %c0_i32_1 = arith.constant 0 : i32
    return %c0_i32, %c0_i32_0 : i32, i32
  }
  func.func @transform_4(%arg0: i32) -> (i32, i32) {
    %c0_i32 = arith.constant 0 : i32
    %c0_i32_0 = arith.constant 0 : i32
    %c0_i32_1 = arith.constant 0 : i32
    return %c0_i32, %c0_i32_0 : i32, i32
  }
  func.func @transform_5(%arg0: i32) -> (i32, i32) {
    %c0_i32 = arith.constant 0 : i32
    %c0_i32_0 = arith.constant 0 : i32
    %c0_i32_1 = arith.constant 0 : i32
    return %c0_i32, %c0_i32_0 : i32, i32
  }
  func.func @transform_6(%arg0: i32) -> (i32, i32) {
    %c0_i32 = arith.constant 0 : i32
    %c0_i32_0 = arith.constant 0 : i32
    %c0_i32_1 = arith.constant 0 : i32
    return %c0_i32, %c0_i32_0 : i32, i32
  }
  func.func @transform_7(%arg0: i32) -> (i32, i32) {
    %c0_i32 = arith.constant 0 : i32
    %c0_i32_0 = arith.constant 0 : i32
    %c0_i32_1 = arith.constant 0 : i32
    return %c0_i32, %c0_i32_0 : i32, i32
  }
}

module attributes {stable_mosaic.version = 11 : i64} {
  func.func @_block_kernel(%arg0: i32, %arg1: memref<32x16xf32, #tpu.memory_space<vmem>>, %arg2: memref<8x8xf32, #tpu.memory_space<vmem>>, %arg3: memref<1x8xf32, #tpu.memory_space<vmem>>, %arg4: memref<8x16xf32, #tpu.memory_space<vmem>>, %arg5: memref<1x16xf32, #tpu.memory_space<vmem>>, %arg6: memref<1x16xf32, #tpu.memory_space<vmem>>, %arg7: memref<1x16xf32, #tpu.memory_space<vmem>>, %arg8: memref<16x16xf32, #tpu.memory_space<vmem>>, %arg9: memref<32x16xf32, #tpu.memory_space<vmem>>, %arg10: memref<2x128xf32, #tpu.memory_space<vmem>>) attributes {dimension_semantics = [#tpu.dimension_semantics<arbitrary>], iteration_bounds = array<i64: 1>, scalar_prefetch = 0 : i64, scratch_operands = 0 : i64, tpu.core_type = #tpu.core_type<tc>, window_params = [{pipeline_mode = #tpu.pipeline_mode<synchronous>, transform_indices = @transform_0, window_bounds = array<i64: 32, 16>}, {pipeline_mode = #tpu.pipeline_mode<synchronous>, transform_indices = @transform_1, window_bounds = array<i64: 8, 8>}, {pipeline_mode = #tpu.pipeline_mode<synchronous>, transform_indices = @transform_2, window_bounds = array<i64: 1, 8>}, {pipeline_mode = #tpu.pipeline_mode<synchronous>, transform_indices = @transform_3, window_bounds = array<i64: 8, 16>}, {pipeline_mode = #tpu.pipeline_mode<synchronous>, transform_indices = @transform_4, window_bounds = array<i64: 1, 16>}, {pipeline_mode = #tpu.pipeline_mode<synchronous>, transform_indices = @transform_5, window_bounds = array<i64: 1, 16>}, {pipeline_mode = #tpu.pipeline_mode<synchronous>, transform_indices = @transform_6, window_bounds = array<i64: 1, 16>}, {pipeline_mode = #tpu.pipeline_mode<synchronous>, transform_indices = @transform_7, window_bounds = array<i64: 16, 16>}, {pipeline_mode = #tpu.pipeline_mode<synchronous>, transform_indices = @transform_8, window_bounds = array<i64: 32, 16>}, {pipeline_mode = #tpu.pipeline_mode<synchronous>, transform_indices = @transform_9, window_bounds = array<i64: 2, 128>}]} {
    %c0 = arith.constant 0 : index
    %c0_0 = arith.constant 0 : index
    %0 = vector.load %arg1[%c0, %c0_0] : memref<32x16xf32, #tpu.memory_space<vmem>>, vector<32x16xf32>
    %1 = vector.extract_strided_slice %0 {offsets = [0, 0], sizes = [32, 8], strides = [1, 1]} : vector<32x16xf32> to vector<32x8xf32>
    %2 = vector.extract_strided_slice %0 {offsets = [0, 8], sizes = [32, 8], strides = [1, 1]} : vector<32x16xf32> to vector<32x8xf32>
    %c0_1 = arith.constant 0 : index
    %c0_2 = arith.constant 0 : index
    %3 = vector.load %arg2[%c0_1, %c0_2] : memref<8x8xf32, #tpu.memory_space<vmem>>, vector<8x8xf32>
    %cst = arith.constant dense<0.000000e+00> : vector<32x8xf32>
    %4 = tpu.matmul %1, %3, %cst {dimension_numbers = #tpu.dot_dimension_numbers<[1], [0], [0], [1], [0, 0, 1, 1], [], []>} : vector<32x8xf32>, vector<8x8xf32>, vector<32x8xf32> -> vector<32x8xf32>
    %c0_3 = arith.constant 0 : index
    %c0_4 = arith.constant 0 : index
    %5 = vector.load %arg3[%c0_3, %c0_4] : memref<1x8xf32, #tpu.memory_space<vmem>>, vector<1x8xf32>
    %6 = vector.broadcast %5 : vector<1x8xf32> to vector<32x8xf32>
    %7 = arith.addf %4, %6 : vector<32x8xf32>
    %cst_5 = arith.constant 0.000000e+00 : f32
    %8 = vector.broadcast %cst_5 : f32 to vector<32x8xf32>
    %9 = arith.maximumf %7, %8 : vector<32x8xf32>
    %c0_6 = arith.constant 0 : index
    %c0_7 = arith.constant 0 : index
    %10 = vector.load %arg4[%c0_6, %c0_7] : memref<8x16xf32, #tpu.memory_space<vmem>>, vector<8x16xf32>
    %cst_8 = arith.constant dense<0.000000e+00> : vector<32x16xf32>
    %11 = tpu.matmul %9, %10, %cst_8 {dimension_numbers = #tpu.dot_dimension_numbers<[1], [0], [0], [1], [0, 0, 1, 1], [], []>} : vector<32x8xf32>, vector<8x16xf32>, vector<32x16xf32> -> vector<32x16xf32>
    %c0_9 = arith.constant 0 : index
    %c0_10 = arith.constant 0 : index
    %12 = vector.load %arg5[%c0_9, %c0_10] : memref<1x16xf32, #tpu.memory_space<vmem>>, vector<1x16xf32>
    %13 = vector.broadcast %12 : vector<1x16xf32> to vector<32x16xf32>
    %14 = arith.addf %11, %13 : vector<32x16xf32>
    %cst_11 = arith.constant 1.000000e-01 : f32
    %15 = vector.broadcast %cst_11 : f32 to vector<32x16xf32>
    %16 = arith.mulf %14, %15 : vector<32x16xf32>
    %17 = vector.extract_strided_slice %16 {offsets = [0, 0], sizes = [32, 8], strides = [1, 1]} : vector<32x16xf32> to vector<32x8xf32>
    %18 = math.tanh %17 : vector<32x8xf32>
    %cst_12 = arith.constant 2.000000e+00 : f32
    %19 = vector.broadcast %cst_12 : f32 to vector<32x8xf32>
    %20 = arith.mulf %19, %18 : vector<32x8xf32>
    %21 = vector.extract_strided_slice %16 {offsets = [0, 8], sizes = [32, 8], strides = [1, 1]} : vector<32x16xf32> to vector<32x8xf32>
    %22 = math.exp %20 : vector<32x8xf32>
    %23 = arith.mulf %2, %22 : vector<32x8xf32>
    %24 = arith.addf %23, %21 : vector<32x8xf32>
    %25 = tpu.concatenate %1, %24 in 1 : vector<32x8xf32>, vector<32x8xf32> -> vector<32x16xf32>
    %c0_13 = arith.constant 0 : index
    %c0_14 = arith.constant 0 : index
    %26 = vector.load %arg6[%c0_13, %c0_14] : memref<1x16xf32, #tpu.memory_space<vmem>>, vector<1x16xf32>
    %27 = vector.broadcast %26 : vector<1x16xf32> to vector<32x16xf32>
    %28 = arith.mulf %25, %27 : vector<32x16xf32>
    %c0_15 = arith.constant 0 : index
    %c0_16 = arith.constant 0 : index
    %29 = vector.load %arg7[%c0_15, %c0_16] : memref<1x16xf32, #tpu.memory_space<vmem>>, vector<1x16xf32>
    %30 = vector.broadcast %29 : vector<1x16xf32> to vector<32x16xf32>
    %31 = arith.addf %28, %30 : vector<32x16xf32>
    %c0_17 = arith.constant 0 : index
    %c0_18 = arith.constant 0 : index
    %32 = vector.load %arg8[%c0_17, %c0_18] : memref<16x16xf32, #tpu.memory_space<vmem>>, vector<16x16xf32>
    %cst_19 = arith.constant dense<0.000000e+00> : vector<32x16xf32>
    %33 = tpu.matmul %31, %32, %cst_19 {dimension_numbers = #tpu.dot_dimension_numbers<[1], [0], [0], [1], [0, 0, 1, 1], [], []>} : vector<32x16xf32>, vector<16x16xf32>, vector<32x16xf32> -> vector<32x16xf32>
    %c0_20 = arith.constant 0 : index
    %c0_21 = arith.constant 0 : index
    %34 = vector.load %arg9[%c0_20, %c0_21] : memref<32x16xf32, #tpu.memory_space<vmem>>, vector<32x16xf32>
    tpu.vector_store %arg9[%c0_20, %c0_21], %33 {strides = array<i32>} : memref<32x16xf32, #tpu.memory_space<vmem>>, vector<32x16xf32>,
    %35 = vector.shape_cast %20 : vector<32x8xf32> to vector<2x16x8xf32>
    %cst_22 = arith.constant dense<0.000000e+00> : vector<2x16xf32>
    %36 = vector.multi_reduction <add>, %35, %cst_22 [2] : vector<2x16x8xf32> to vector<2x16xf32>
    %37 = vector.shape_cast %36 : vector<2x16xf32> to vector<2x16x1xf32>
    %cst_23 = arith.constant dense<0.000000e+00> : vector<2x1xf32>
    %38 = vector.multi_reduction <add>, %37, %cst_23 [1] : vector<2x16x1xf32> to vector<2x1xf32>
    %39 = vector.shape_cast %38 : vector<2x1xf32> to vector<2x1x1xf32>
    %40 = vector.shape_cast %39 : vector<2x1x1xf32> to vector<2x1xf32>
    %41 = vector.shape_cast %40 : vector<2x1xf32> to vector<2x1xf32>
    %42 = vector.broadcast %41 : vector<2x1xf32> to vector<2x128xf32>
    %c0_24 = arith.constant 0 : index
    %c0_25 = arith.constant 0 : index
    %43 = vector.load %arg10[%c0_24, %c0_25] : memref<2x128xf32, #tpu.memory_space<vmem>>, vector<2x128xf32>
    tpu.vector_store %arg10[%c0_24, %c0_25], %42 {strides = array<i32>} : memref<2x128xf32, #tpu.memory_space<vmem>>, vector<2x128xf32>,
    return
  }
  func.func @transform_0(%arg0: i32) -> (i32, i32) {
    %c0_i32 = arith.constant 0 : i32
    %c0_i32_0 = arith.constant 0 : i32
    %c0_i32_1 = arith.constant 0 : i32
    return %c0_i32, %c0_i32_0 : i32, i32
  }
  func.func @transform_1(%arg0: i32) -> (i32, i32) {
    %c0_i32 = arith.constant 0 : i32
    %c0_i32_0 = arith.constant 0 : i32
    %c0_i32_1 = arith.constant 0 : i32
    return %c0_i32, %c0_i32_0 : i32, i32
  }
  func.func @transform_2(%arg0: i32) -> (i32, i32) {
    %c0_i32 = arith.constant 0 : i32
    %c0_i32_0 = arith.constant 0 : i32
    %c0_i32_1 = arith.constant 0 : i32
    return %c0_i32, %c0_i32_0 : i32, i32
  }
  func.func @transform_3(%arg0: i32) -> (i32, i32) {
    %c0_i32 = arith.constant 0 : i32
    %c0_i32_0 = arith.constant 0 : i32
    %c0_i32_1 = arith.constant 0 : i32
    return %c0_i32, %c0_i32_0 : i32, i32
  }
  func.func @transform_4(%arg0: i32) -> (i32, i32) {
    %c0_i32 = arith.constant 0 : i32
    %c0_i32_0 = arith.constant 0 : i32
    %c0_i32_1 = arith.constant 0 : i32
    return %c0_i32, %c0_i32_0 : i32, i32
  }
  func.func @transform_5(%arg0: i32) -> (i32, i32) {
    %c0_i32 = arith.constant 0 : i32
    %c0_i32_0 = arith.constant 0 : i32
    %c0_i32_1 = arith.constant 0 : i32
    return %c0_i32, %c0_i32_0 : i32, i32
  }
  func.func @transform_6(%arg0: i32) -> (i32, i32) {
    %c0_i32 = arith.constant 0 : i32
    %c0_i32_0 = arith.constant 0 : i32
    %c0_i32_1 = arith.constant 0 : i32
    return %c0_i32, %c0_i32_0 : i32, i32
  }
  func.func @transform_7(%arg0: i32) -> (i32, i32) {
    %c0_i32 = arith.constant 0 : i32
    %c0_i32_0 = arith.constant 0 : i32
    %c0_i32_1 = arith.constant 0 : i32
    return %c0_i32, %c0_i32_0 : i32, i32
  }
  func.func @transform_8(%arg0: i32) -> (i32, i32) {
    %c0_i32 = arith.constant 0 : i32
    %c0_i32_0 = arith.constant 0 : i32
    %c0_i32_1 = arith.constant 0 : i32
    return %c0_i32, %c0_i32_0 : i32, i32
  }
  func.func @transform_9(%arg0: i32) -> (i32, i32) {
    %c0_i32 = arith.constant 0 : i32
    %c0_i32_0 = arith.constant 0 : i32
    %c0_i32_1 = arith.constant 0 : i32
    return %c0_i32, %c0_i32_0 : i32, i32
  }
}

module attributes {stable_mosaic.version = 11 : i64} {
  func.func @_block_kernel(%arg0: i32, %arg1: memref<32x16xf32, #tpu.memory_space<vmem>>, %arg2: memref<72x8xf32, #tpu.memory_space<vmem>>, %arg3: memref<1x8xf32, #tpu.memory_space<vmem>>, %arg4: memref<72x16xf32, #tpu.memory_space<vmem>>, %arg5: memref<1x16xf32, #tpu.memory_space<vmem>>, %arg6: memref<1x16xf32, #tpu.memory_space<vmem>>, %arg7: memref<1x16xf32, #tpu.memory_space<vmem>>, %arg8: memref<16x16xf32, #tpu.memory_space<vmem>>, %arg9: memref<32x16xf32, #tpu.memory_space<vmem>>, %arg10: memref<2x128xf32, #tpu.memory_space<vmem>>, %arg11: memref<2x6x6x8xf32, #tpu.memory_space<vmem>>, %arg12: memref<2x6x6x8xf32, #tpu.memory_space<vmem>>) attributes {dimension_semantics = [#tpu.dimension_semantics<arbitrary>], iteration_bounds = array<i64: 1>, scalar_prefetch = 0 : i64, scratch_operands = 2 : i64, tpu.core_type = #tpu.core_type<tc>, window_params = [{pipeline_mode = #tpu.pipeline_mode<synchronous>, transform_indices = @transform_0, window_bounds = array<i64: 32, 16>}, {pipeline_mode = #tpu.pipeline_mode<synchronous>, transform_indices = @transform_1, window_bounds = array<i64: 72, 8>}, {pipeline_mode = #tpu.pipeline_mode<synchronous>, transform_indices = @transform_2, window_bounds = array<i64: 1, 8>}, {pipeline_mode = #tpu.pipeline_mode<synchronous>, transform_indices = @transform_3, window_bounds = array<i64: 72, 16>}, {pipeline_mode = #tpu.pipeline_mode<synchronous>, transform_indices = @transform_4, window_bounds = array<i64: 1, 16>}, {pipeline_mode = #tpu.pipeline_mode<synchronous>, transform_indices = @transform_5, window_bounds = array<i64: 1, 16>}, {pipeline_mode = #tpu.pipeline_mode<synchronous>, transform_indices = @transform_6, window_bounds = array<i64: 1, 16>}, {pipeline_mode = #tpu.pipeline_mode<synchronous>, transform_indices = @transform_7, window_bounds = array<i64: 16, 16>}, {pipeline_mode = #tpu.pipeline_mode<synchronous>, transform_indices = @transform_8, window_bounds = array<i64: 32, 16>}, {pipeline_mode = #tpu.pipeline_mode<synchronous>, transform_indices = @transform_9, window_bounds = array<i64: 2, 128>}]} {
    %c0 = arith.constant 0 : index
    %c0_0 = arith.constant 0 : index
    %0 = vector.load %arg1[%c0, %c0_0] : memref<32x16xf32, #tpu.memory_space<vmem>>, vector<32x16xf32>
    %1 = vector.extract_strided_slice %0 {offsets = [0, 0], sizes = [32, 8], strides = [1, 1]} : vector<32x16xf32> to vector<32x8xf32>
    %2 = vector.extract_strided_slice %0 {offsets = [0, 8], sizes = [32, 8], strides = [1, 1]} : vector<32x16xf32> to vector<32x8xf32>
    %3 = vector.shape_cast %1 : vector<32x8xf32> to vector<2x4x4x8xf32>
    %c0_1 = arith.constant 0 : index
    %c0_2 = arith.constant 0 : index
    %4 = vector.load %arg2[%c0_1, %c0_2] : memref<72x8xf32, #tpu.memory_space<vmem>>, vector<72x8xf32>
    %c0_3 = arith.constant 0 : index
    %c0_4 = arith.constant 0 : index
    %5 = vector.load %arg3[%c0_3, %c0_4] : memref<1x8xf32, #tpu.memory_space<vmem>>, vector<1x8xf32>
    %cst = arith.constant 0.000000e+00 : f32
    %6 = vector.broadcast %cst : f32 to vector<2x6x6x8xf32>
    %c0_5 = arith.constant 0 : index
    %c0_6 = arith.constant 0 : index
    %c0_7 = arith.constant 0 : index
    %c0_8 = arith.constant 0 : index
    %7 = vector.load %arg11[%c0_5, %c0_6, %c0_7, %c0_8] : memref<2x6x6x8xf32, #tpu.memory_space<vmem>>, vector<2x6x6x8xf32>
    tpu.vector_store %arg11[%c0_5, %c0_6, %c0_7, %c0_8], %6 {strides = array<i32>} : memref<2x6x6x8xf32, #tpu.memory_space<vmem>>, vector<2x6x6x8xf32>,
    %c0_9 = arith.constant 0 : index
    %c1 = arith.constant 1 : index
    %c1_10 = arith.constant 1 : index
    %c0_11 = arith.constant 0 : index
    %8 = vector.load %arg11[%c0_9, %c1, %c1_10, %c0_11] : memref<2x6x6x8xf32, #tpu.memory_space<vmem>>, vector<2x4x4x8xf32>
    tpu.vector_store %arg11[%c0_9, %c1, %c1_10, %c0_11], %3 {strides = array<i32>} : memref<2x6x6x8xf32, #tpu.memory_space<vmem>>, vector<2x4x4x8xf32>,
    %c0_12 = arith.constant 0 : index
    %c0_13 = arith.constant 0 : index
    %c0_14 = arith.constant 0 : index
    %c0_15 = arith.constant 0 : index
    %9 = vector.load %arg11[%c0_12, %c0_13, %c0_14, %c0_15] : memref<2x6x6x8xf32, #tpu.memory_space<vmem>>, vector<2x4x4x8xf32>
    %c0_16 = arith.constant 0 : index
    %c0_17 = arith.constant 0 : index
    %c1_18 = arith.constant 1 : index
    %c0_19 = arith.constant 0 : index
    %10 = vector.load %arg11[%c0_16, %c0_17, %c1_18, %c0_19] : memref<2x6x6x8xf32, #tpu.memory_space<vmem>>, vector<2x4x4x8xf32>
    %c0_20 = arith.constant 0 : index
    %c0_21 = arith.constant 0 : index
    %c2 = arith.constant 2 : index
    %c0_22 = arith.constant 0 : index
    %11 = vector.load %arg11[%c0_20, %c0_21, %c2, %c0_22] : memref<2x6x6x8xf32, #tpu.memory_space<vmem>>, vector<2x4x4x8xf32>
    %c0_23 = arith.constant 0 : index
    %c1_24 = arith.constant 1 : index
    %c0_25 = arith.constant 0 : index
    %c0_26 = arith.constant 0 : index
    %12 = vector.load %arg11[%c0_23, %c1_24, %c0_25, %c0_26] : memref<2x6x6x8xf32, #tpu.memory_space<vmem>>, vector<2x4x4x8xf32>
    %c0_27 = arith.constant 0 : index
    %c1_28 = arith.constant 1 : index
    %c1_29 = arith.constant 1 : index
    %c0_30 = arith.constant 0 : index
    %13 = vector.load %arg11[%c0_27, %c1_28, %c1_29, %c0_30] : memref<2x6x6x8xf32, #tpu.memory_space<vmem>>, vector<2x4x4x8xf32>
    %c0_31 = arith.constant 0 : index
    %c1_32 = arith.constant 1 : index
    %c2_33 = arith.constant 2 : index
    %c0_34 = arith.constant 0 : index
    %14 = vector.load %arg11[%c0_31, %c1_32, %c2_33, %c0_34] : memref<2x6x6x8xf32, #tpu.memory_space<vmem>>, vector<2x4x4x8xf32>
    %c0_35 = arith.constant 0 : index
    %c2_36 = arith.constant 2 : index
    %c0_37 = arith.constant 0 : index
    %c0_38 = arith.constant 0 : index
    %15 = vector.load %arg11[%c0_35, %c2_36, %c0_37, %c0_38] : memref<2x6x6x8xf32, #tpu.memory_space<vmem>>, vector<2x4x4x8xf32>
    %c0_39 = arith.constant 0 : index
    %c2_40 = arith.constant 2 : index
    %c1_41 = arith.constant 1 : index
    %c0_42 = arith.constant 0 : index
    %16 = vector.load %arg11[%c0_39, %c2_40, %c1_41, %c0_42] : memref<2x6x6x8xf32, #tpu.memory_space<vmem>>, vector<2x4x4x8xf32>
    %c0_43 = arith.constant 0 : index
    %c2_44 = arith.constant 2 : index
    %c2_45 = arith.constant 2 : index
    %c0_46 = arith.constant 0 : index
    %17 = vector.load %arg11[%c0_43, %c2_44, %c2_45, %c0_46] : memref<2x6x6x8xf32, #tpu.memory_space<vmem>>, vector<2x4x4x8xf32>
    %18 = tpu.concatenate %9, %10, %11, %12, %13, %14, %15, %16, %17 in 3 : vector<2x4x4x8xf32>, vector<2x4x4x8xf32>, vector<2x4x4x8xf32>, vector<2x4x4x8xf32>, vector<2x4x4x8xf32>, vector<2x4x4x8xf32>, vector<2x4x4x8xf32>, vector<2x4x4x8xf32>, vector<2x4x4x8xf32> -> vector<2x4x4x72xf32>
    %19 = vector.shape_cast %18 : vector<2x4x4x72xf32> to vector<32x72xf32>
    %cst_47 = arith.constant dense<0.000000e+00> : vector<32x8xf32>
    %20 = tpu.matmul %19, %4, %cst_47 {dimension_numbers = #tpu.dot_dimension_numbers<[1], [0], [0], [1], [0, 0, 1, 1], [], []>} : vector<32x72xf32>, vector<72x8xf32>, vector<32x8xf32> -> vector<32x8xf32>
    %21 = vector.broadcast %5 : vector<1x8xf32> to vector<32x8xf32>
    %22 = arith.addf %20, %21 : vector<32x8xf32>
    %cst_48 = arith.constant 0.000000e+00 : f32
    %23 = vector.broadcast %cst_48 : f32 to vector<32x8xf32>
    %24 = arith.maximumf %22, %23 : vector<32x8xf32>
    %25 = vector.shape_cast %24 : vector<32x8xf32> to vector<2x4x4x8xf32>
    %c0_49 = arith.constant 0 : index
    %c0_50 = arith.constant 0 : index
    %26 = vector.load %arg4[%c0_49, %c0_50] : memref<72x16xf32, #tpu.memory_space<vmem>>, vector<72x16xf32>
    %c0_51 = arith.constant 0 : index
    %c0_52 = arith.constant 0 : index
    %27 = vector.load %arg5[%c0_51, %c0_52] : memref<1x16xf32, #tpu.memory_space<vmem>>, vector<1x16xf32>
    %cst_53 = arith.constant 0.000000e+00 : f32
    %28 = vector.broadcast %cst_53 : f32 to vector<2x6x6x8xf32>
    %c0_54 = arith.constant 0 : index
    %c0_55 = arith.constant 0 : index
    %c0_56 = arith.constant 0 : index
    %c0_57 = arith.constant 0 : index
    %29 = vector.load %arg12[%c0_54, %c0_55, %c0_56, %c0_57] : memref<2x6x6x8xf32, #tpu.memory_space<vmem>>, vector<2x6x6x8xf32>
    tpu.vector_store %arg12[%c0_54, %c0_55, %c0_56, %c0_57], %28 {strides = array<i32>} : memref<2x6x6x8xf32, #tpu.memory_space<vmem>>, vector<2x6x6x8xf32>,
    %c0_58 = arith.constant 0 : index
    %c1_59 = arith.constant 1 : index
    %c1_60 = arith.constant 1 : index
    %c0_61 = arith.constant 0 : index
    %30 = vector.load %arg12[%c0_58, %c1_59, %c1_60, %c0_61] : memref<2x6x6x8xf32, #tpu.memory_space<vmem>>, vector<2x4x4x8xf32>
    tpu.vector_store %arg12[%c0_58, %c1_59, %c1_60, %c0_61], %25 {strides = array<i32>} : memref<2x6x6x8xf32, #tpu.memory_space<vmem>>, vector<2x4x4x8xf32>,
    %c0_62 = arith.constant 0 : index
    %c0_63 = arith.constant 0 : index
    %c0_64 = arith.constant 0 : index
    %c0_65 = arith.constant 0 : index
    %31 = vector.load %arg12[%c0_62, %c0_63, %c0_64, %c0_65] : memref<2x6x6x8xf32, #tpu.memory_space<vmem>>, vector<2x4x4x8xf32>
    %c0_66 = arith.constant 0 : index
    %c0_67 = arith.constant 0 : index
    %c1_68 = arith.constant 1 : index
    %c0_69 = arith.constant 0 : index
    %32 = vector.load %arg12[%c0_66, %c0_67, %c1_68, %c0_69] : memref<2x6x6x8xf32, #tpu.memory_space<vmem>>, vector<2x4x4x8xf32>
    %c0_70 = arith.constant 0 : index
    %c0_71 = arith.constant 0 : index
    %c2_72 = arith.constant 2 : index
    %c0_73 = arith.constant 0 : index
    %33 = vector.load %arg12[%c0_70, %c0_71, %c2_72, %c0_73] : memref<2x6x6x8xf32, #tpu.memory_space<vmem>>, vector<2x4x4x8xf32>
    %c0_74 = arith.constant 0 : index
    %c1_75 = arith.constant 1 : index
    %c0_76 = arith.constant 0 : index
    %c0_77 = arith.constant 0 : index
    %34 = vector.load %arg12[%c0_74, %c1_75, %c0_76, %c0_77] : memref<2x6x6x8xf32, #tpu.memory_space<vmem>>, vector<2x4x4x8xf32>
    %c0_78 = arith.constant 0 : index
    %c1_79 = arith.constant 1 : index
    %c1_80 = arith.constant 1 : index
    %c0_81 = arith.constant 0 : index
    %35 = vector.load %arg12[%c0_78, %c1_79, %c1_80, %c0_81] : memref<2x6x6x8xf32, #tpu.memory_space<vmem>>, vector<2x4x4x8xf32>
    %c0_82 = arith.constant 0 : index
    %c1_83 = arith.constant 1 : index
    %c2_84 = arith.constant 2 : index
    %c0_85 = arith.constant 0 : index
    %36 = vector.load %arg12[%c0_82, %c1_83, %c2_84, %c0_85] : memref<2x6x6x8xf32, #tpu.memory_space<vmem>>, vector<2x4x4x8xf32>
    %c0_86 = arith.constant 0 : index
    %c2_87 = arith.constant 2 : index
    %c0_88 = arith.constant 0 : index
    %c0_89 = arith.constant 0 : index
    %37 = vector.load %arg12[%c0_86, %c2_87, %c0_88, %c0_89] : memref<2x6x6x8xf32, #tpu.memory_space<vmem>>, vector<2x4x4x8xf32>
    %c0_90 = arith.constant 0 : index
    %c2_91 = arith.constant 2 : index
    %c1_92 = arith.constant 1 : index
    %c0_93 = arith.constant 0 : index
    %38 = vector.load %arg12[%c0_90, %c2_91, %c1_92, %c0_93] : memref<2x6x6x8xf32, #tpu.memory_space<vmem>>, vector<2x4x4x8xf32>
    %c0_94 = arith.constant 0 : index
    %c2_95 = arith.constant 2 : index
    %c2_96 = arith.constant 2 : index
    %c0_97 = arith.constant 0 : index
    %39 = vector.load %arg12[%c0_94, %c2_95, %c2_96, %c0_97] : memref<2x6x6x8xf32, #tpu.memory_space<vmem>>, vector<2x4x4x8xf32>
    %40 = tpu.concatenate %31, %32, %33, %34, %35, %36, %37, %38, %39 in 3 : vector<2x4x4x8xf32>, vector<2x4x4x8xf32>, vector<2x4x4x8xf32>, vector<2x4x4x8xf32>, vector<2x4x4x8xf32>, vector<2x4x4x8xf32>, vector<2x4x4x8xf32>, vector<2x4x4x8xf32>, vector<2x4x4x8xf32> -> vector<2x4x4x72xf32>
    %41 = vector.shape_cast %40 : vector<2x4x4x72xf32> to vector<32x72xf32>
    %cst_98 = arith.constant dense<0.000000e+00> : vector<32x16xf32>
    %42 = tpu.matmul %41, %26, %cst_98 {dimension_numbers = #tpu.dot_dimension_numbers<[1], [0], [0], [1], [0, 0, 1, 1], [], []>} : vector<32x72xf32>, vector<72x16xf32>, vector<32x16xf32> -> vector<32x16xf32>
    %43 = vector.broadcast %27 : vector<1x16xf32> to vector<32x16xf32>
    %44 = arith.addf %42, %43 : vector<32x16xf32>
    %cst_99 = arith.constant 1.000000e-01 : f32
    %45 = vector.broadcast %cst_99 : f32 to vector<32x16xf32>
    %46 = arith.mulf %44, %45 : vector<32x16xf32>
    %47 = vector.extract_strided_slice %46 {offsets = [0, 0], sizes = [32, 8], strides = [1, 1]} : vector<32x16xf32> to vector<32x8xf32>
    %48 = math.tanh %47 : vector<32x8xf32>
    %cst_100 = arith.constant 2.000000e+00 : f32
    %49 = vector.broadcast %cst_100 : f32 to vector<32x8xf32>
    %50 = arith.mulf %49, %48 : vector<32x8xf32>
    %51 = vector.extract_strided_slice %46 {offsets = [0, 8], sizes = [32, 8], strides = [1, 1]} : vector<32x16xf32> to vector<32x8xf32>
    %52 = math.exp %50 : vector<32x8xf32>
    %53 = arith.mulf %2, %52 : vector<32x8xf32>
    %54 = arith.addf %53, %51 : vector<32x8xf32>
    %55 = tpu.concatenate %1, %54 in 1 : vector<32x8xf32>, vector<32x8xf32> -> vector<32x16xf32>
    %c0_101 = arith.constant 0 : index
    %c0_102 = arith.constant 0 : index
    %56 = vector.load %arg6[%c0_101, %c0_102] : memref<1x16xf32, #tpu.memory_space<vmem>>, vector<1x16xf32>
    %57 = vector.broadcast %56 : vector<1x16xf32> to vector<32x16xf32>
    %58 = arith.mulf %55, %57 : vector<32x16xf32>
    %c0_103 = arith.constant 0 : index
    %c0_104 = arith.constant 0 : index
    %59 = vector.load %arg7[%c0_103, %c0_104] : memref<1x16xf32, #tpu.memory_space<vmem>>, vector<1x16xf32>
    %60 = vector.broadcast %59 : vector<1x16xf32> to vector<32x16xf32>
    %61 = arith.addf %58, %60 : vector<32x16xf32>
    %c0_105 = arith.constant 0 : index
    %c0_106 = arith.constant 0 : index
    %62 = vector.load %arg8[%c0_105, %c0_106] : memref<16x16xf32, #tpu.memory_space<vmem>>, vector<16x16xf32>
    %cst_107 = arith.constant dense<0.000000e+00> : vector<32x16xf32>
    %63 = tpu.matmul %61, %62, %cst_107 {dimension_numbers = #tpu.dot_dimension_numbers<[1], [0], [0], [1], [0, 0, 1, 1], [], []>} : vector<32x16xf32>, vector<16x16xf32>, vector<32x16xf32> -> vector<32x16xf32>
    %c0_108 = arith.constant 0 : index
    %c0_109 = arith.constant 0 : index
    %64 = vector.load %arg9[%c0_108, %c0_109] : memref<32x16xf32, #tpu.memory_space<vmem>>, vector<32x16xf32>
    tpu.vector_store %arg9[%c0_108, %c0_109], %63 {strides = array<i32>} : memref<32x16xf32, #tpu.memory_space<vmem>>, vector<32x16xf32>,
    %65 = vector.shape_cast %50 : vector<32x8xf32> to vector<2x16x8xf32>
    %cst_110 = arith.constant dense<0.000000e+00> : vector<2x16xf32>
    %66 = vector.multi_reduction <add>, %65, %cst_110 [2] : vector<2x16x8xf32> to vector<2x16xf32>
    %67 = vector.shape_cast %66 : vector<2x16xf32> to vector<2x16x1xf32>
    %cst_111 = arith.constant dense<0.000000e+00> : vector<2x1xf32>
    %68 = vector.multi_reduction <add>, %67, %cst_111 [1] : vector<2x16x1xf32> to vector<2x1xf32>
    %69 = vector.shape_cast %68 : vector<2x1xf32> to vector<2x1x1xf32>
    %70 = vector.shape_cast %69 : vector<2x1x1xf32> to vector<2x1xf32>
    %71 = vector.shape_cast %70 : vector<2x1xf32> to vector<2x1xf32>
    %72 = vector.broadcast %71 : vector<2x1xf32> to vector<2x128xf32>
    %c0_112 = arith.constant 0 : index
    %c0_113 = arith.constant 0 : index
    %73 = vector.load %arg10[%c0_112, %c0_113] : memref<2x128xf32, #tpu.memory_space<vmem>>, vector<2x128xf32>
    tpu.vector_store %arg10[%c0_112, %c0_113], %72 {strides = array<i32>} : memref<2x128xf32, #tpu.memory_space<vmem>>, vector<2x128xf32>,
    return
  }
  func.func @transform_0(%arg0: i32) -> (i32, i32) {
    %c0_i32 = arith.constant 0 : i32
    %c0_i32_0 = arith.constant 0 : i32
    %c0_i32_1 = arith.constant 0 : i32
    return %c0_i32, %c0_i32_0 : i32, i32
  }
  func.func @transform_1(%arg0: i32) -> (i32, i32) {
    %c0_i32 = arith.constant 0 : i32
    %c0_i32_0 = arith.constant 0 : i32
    %c0_i32_1 = arith.constant 0 : i32
    return %c0_i32, %c0_i32_0 : i32, i32
  }
  func.func @transform_2(%arg0: i32) -> (i32, i32) {
    %c0_i32 = arith.constant 0 : i32
    %c0_i32_0 = arith.constant 0 : i32
    %c0_i32_1 = arith.constant 0 : i32
    return %c0_i32, %c0_i32_0 : i32, i32
  }
  func.func @transform_3(%arg0: i32) -> (i32, i32) {
    %c0_i32 = arith.constant 0 : i32
    %c0_i32_0 = arith.constant 0 : i32
    %c0_i32_1 = arith.constant 0 : i32
    return %c0_i32, %c0_i32_0 : i32, i32
  }
  func.func @transform_4(%arg0: i32) -> (i32, i32) {
    %c0_i32 = arith.constant 0 : i32
    %c0_i32_0 = arith.constant 0 : i32
    %c0_i32_1 = arith.constant 0 : i32
    return %c0_i32, %c0_i32_0 : i32, i32
  }
  func.func @transform_5(%arg0: i32) -> (i32, i32) {
    %c0_i32 = arith.constant 0 : i32
    %c0_i32_0 = arith.constant 0 : i32
    %c0_i32_1 = arith.constant 0 : i32
    return %c0_i32, %c0_i32_0 : i32, i32
  }
  func.func @transform_6(%arg0: i32) -> (i32, i32) {
    %c0_i32 = arith.constant 0 : i32
    %c0_i32_0 = arith.constant 0 : i32
    %c0_i32_1 = arith.constant 0 : i32
    return %c0_i32, %c0_i32_0 : i32, i32
  }
  func.func @transform_7(%arg0: i32) -> (i32, i32) {
    %c0_i32 = arith.constant 0 : i32
    %c0_i32_0 = arith.constant 0 : i32
    %c0_i32_1 = arith.constant 0 : i32
    return %c0_i32, %c0_i32_0 : i32, i32
  }
  func.func @transform_8(%arg0: i32) -> (i32, i32) {
    %c0_i32 = arith.constant 0 : i32
    %c0_i32_0 = arith.constant 0 : i32
    %c0_i32_1 = arith.constant 0 : i32
    return %c0_i32, %c0_i32_0 : i32, i32
  }
  func.func @transform_9(%arg0: i32) -> (i32, i32) {
    %c0_i32 = arith.constant 0 : i32
    %c0_i32_0 = arith.constant 0 : i32
    %c0_i32_1 = arith.constant 0 : i32
    return %c0_i32, %c0_i32_0 : i32, i32
  }
}

module attributes {stable_mosaic.version = 11 : i64} {
  func.func @_block_kernel(%arg0: i32, %arg1: memref<128x10xf32, #tpu.memory_space<vmem>>, %arg2: memref<45x5xf32, #tpu.memory_space<vmem>>, %arg3: memref<1x5xf32, #tpu.memory_space<vmem>>, %arg4: memref<45x10xf32, #tpu.memory_space<vmem>>, %arg5: memref<1x10xf32, #tpu.memory_space<vmem>>, %arg6: memref<1x10xf32, #tpu.memory_space<vmem>>, %arg7: memref<1x10xf32, #tpu.memory_space<vmem>>, %arg8: memref<10x10xf32, #tpu.memory_space<vmem>>, %arg9: memref<128x10xf32, #tpu.memory_space<vmem>>, %arg10: memref<2x128xf32, #tpu.memory_space<vmem>>, %arg11: memref<2x10x10x5xf32, #tpu.memory_space<vmem>>, %arg12: memref<2x10x10x5xf32, #tpu.memory_space<vmem>>) attributes {dimension_semantics = [#tpu.dimension_semantics<arbitrary>], iteration_bounds = array<i64: 1>, scalar_prefetch = 0 : i64, scratch_operands = 2 : i64, tpu.core_type = #tpu.core_type<tc>, window_params = [{pipeline_mode = #tpu.pipeline_mode<synchronous>, transform_indices = @transform_0, window_bounds = array<i64: 128, 10>}, {pipeline_mode = #tpu.pipeline_mode<synchronous>, transform_indices = @transform_1, window_bounds = array<i64: 45, 5>}, {pipeline_mode = #tpu.pipeline_mode<synchronous>, transform_indices = @transform_2, window_bounds = array<i64: 1, 5>}, {pipeline_mode = #tpu.pipeline_mode<synchronous>, transform_indices = @transform_3, window_bounds = array<i64: 45, 10>}, {pipeline_mode = #tpu.pipeline_mode<synchronous>, transform_indices = @transform_4, window_bounds = array<i64: 1, 10>}, {pipeline_mode = #tpu.pipeline_mode<synchronous>, transform_indices = @transform_5, window_bounds = array<i64: 1, 10>}, {pipeline_mode = #tpu.pipeline_mode<synchronous>, transform_indices = @transform_6, window_bounds = array<i64: 1, 10>}, {pipeline_mode = #tpu.pipeline_mode<synchronous>, transform_indices = @transform_7, window_bounds = array<i64: 10, 10>}, {pipeline_mode = #tpu.pipeline_mode<synchronous>, transform_indices = @transform_8, window_bounds = array<i64: 128, 10>}, {pipeline_mode = #tpu.pipeline_mode<synchronous>, transform_indices = @transform_9, window_bounds = array<i64: 2, 128>}]} {
    %c0 = arith.constant 0 : index
    %c0_0 = arith.constant 0 : index
    %0 = vector.load %arg1[%c0, %c0_0] : memref<128x10xf32, #tpu.memory_space<vmem>>, vector<128x10xf32>
    %1 = vector.extract_strided_slice %0 {offsets = [0, 0], sizes = [128, 5], strides = [1, 1]} : vector<128x10xf32> to vector<128x5xf32>
    %2 = vector.extract_strided_slice %0 {offsets = [0, 5], sizes = [128, 5], strides = [1, 1]} : vector<128x10xf32> to vector<128x5xf32>
    %3 = vector.shape_cast %1 : vector<128x5xf32> to vector<2x8x8x5xf32>
    %c0_1 = arith.constant 0 : index
    %c0_2 = arith.constant 0 : index
    %4 = vector.load %arg2[%c0_1, %c0_2] : memref<45x5xf32, #tpu.memory_space<vmem>>, vector<45x5xf32>
    %c0_3 = arith.constant 0 : index
    %c0_4 = arith.constant 0 : index
    %5 = vector.load %arg3[%c0_3, %c0_4] : memref<1x5xf32, #tpu.memory_space<vmem>>, vector<1x5xf32>
    %cst = arith.constant 0.000000e+00 : f32
    %6 = vector.broadcast %cst : f32 to vector<2x10x10x5xf32>
    %c0_5 = arith.constant 0 : index
    %c0_6 = arith.constant 0 : index
    %c0_7 = arith.constant 0 : index
    %c0_8 = arith.constant 0 : index
    %7 = vector.load %arg11[%c0_5, %c0_6, %c0_7, %c0_8] : memref<2x10x10x5xf32, #tpu.memory_space<vmem>>, vector<2x10x10x5xf32>
    tpu.vector_store %arg11[%c0_5, %c0_6, %c0_7, %c0_8], %6 {strides = array<i32>} : memref<2x10x10x5xf32, #tpu.memory_space<vmem>>, vector<2x10x10x5xf32>,
    %c0_9 = arith.constant 0 : index
    %c1 = arith.constant 1 : index
    %c1_10 = arith.constant 1 : index
    %c0_11 = arith.constant 0 : index
    %8 = vector.load %arg11[%c0_9, %c1, %c1_10, %c0_11] : memref<2x10x10x5xf32, #tpu.memory_space<vmem>>, vector<2x8x8x5xf32>
    tpu.vector_store %arg11[%c0_9, %c1, %c1_10, %c0_11], %3 {strides = array<i32>} : memref<2x10x10x5xf32, #tpu.memory_space<vmem>>, vector<2x8x8x5xf32>,
    %c0_12 = arith.constant 0 : index
    %c0_13 = arith.constant 0 : index
    %c0_14 = arith.constant 0 : index
    %c0_15 = arith.constant 0 : index
    %9 = vector.load %arg11[%c0_12, %c0_13, %c0_14, %c0_15] : memref<2x10x10x5xf32, #tpu.memory_space<vmem>>, vector<2x8x8x5xf32>
    %c0_16 = arith.constant 0 : index
    %c0_17 = arith.constant 0 : index
    %c1_18 = arith.constant 1 : index
    %c0_19 = arith.constant 0 : index
    %10 = vector.load %arg11[%c0_16, %c0_17, %c1_18, %c0_19] : memref<2x10x10x5xf32, #tpu.memory_space<vmem>>, vector<2x8x8x5xf32>
    %c0_20 = arith.constant 0 : index
    %c0_21 = arith.constant 0 : index
    %c2 = arith.constant 2 : index
    %c0_22 = arith.constant 0 : index
    %11 = vector.load %arg11[%c0_20, %c0_21, %c2, %c0_22] : memref<2x10x10x5xf32, #tpu.memory_space<vmem>>, vector<2x8x8x5xf32>
    %c0_23 = arith.constant 0 : index
    %c1_24 = arith.constant 1 : index
    %c0_25 = arith.constant 0 : index
    %c0_26 = arith.constant 0 : index
    %12 = vector.load %arg11[%c0_23, %c1_24, %c0_25, %c0_26] : memref<2x10x10x5xf32, #tpu.memory_space<vmem>>, vector<2x8x8x5xf32>
    %c0_27 = arith.constant 0 : index
    %c1_28 = arith.constant 1 : index
    %c1_29 = arith.constant 1 : index
    %c0_30 = arith.constant 0 : index
    %13 = vector.load %arg11[%c0_27, %c1_28, %c1_29, %c0_30] : memref<2x10x10x5xf32, #tpu.memory_space<vmem>>, vector<2x8x8x5xf32>
    %c0_31 = arith.constant 0 : index
    %c1_32 = arith.constant 1 : index
    %c2_33 = arith.constant 2 : index
    %c0_34 = arith.constant 0 : index
    %14 = vector.load %arg11[%c0_31, %c1_32, %c2_33, %c0_34] : memref<2x10x10x5xf32, #tpu.memory_space<vmem>>, vector<2x8x8x5xf32>
    %c0_35 = arith.constant 0 : index
    %c2_36 = arith.constant 2 : index
    %c0_37 = arith.constant 0 : index
    %c0_38 = arith.constant 0 : index
    %15 = vector.load %arg11[%c0_35, %c2_36, %c0_37, %c0_38] : memref<2x10x10x5xf32, #tpu.memory_space<vmem>>, vector<2x8x8x5xf32>
    %c0_39 = arith.constant 0 : index
    %c2_40 = arith.constant 2 : index
    %c1_41 = arith.constant 1 : index
    %c0_42 = arith.constant 0 : index
    %16 = vector.load %arg11[%c0_39, %c2_40, %c1_41, %c0_42] : memref<2x10x10x5xf32, #tpu.memory_space<vmem>>, vector<2x8x8x5xf32>
    %c0_43 = arith.constant 0 : index
    %c2_44 = arith.constant 2 : index
    %c2_45 = arith.constant 2 : index
    %c0_46 = arith.constant 0 : index
    %17 = vector.load %arg11[%c0_43, %c2_44, %c2_45, %c0_46] : memref<2x10x10x5xf32, #tpu.memory_space<vmem>>, vector<2x8x8x5xf32>
    %18 = tpu.concatenate %9, %10, %11, %12, %13, %14, %15, %16, %17 in 3 : vector<2x8x8x5xf32>, vector<2x8x8x5xf32>, vector<2x8x8x5xf32>, vector<2x8x8x5xf32>, vector<2x8x8x5xf32>, vector<2x8x8x5xf32>, vector<2x8x8x5xf32>, vector<2x8x8x5xf32>, vector<2x8x8x5xf32> -> vector<2x8x8x45xf32>
    %19 = vector.shape_cast %18 : vector<2x8x8x45xf32> to vector<128x45xf32>
    %cst_47 = arith.constant dense<0.000000e+00> : vector<128x5xf32>
    %20 = tpu.matmul %19, %4, %cst_47 {dimension_numbers = #tpu.dot_dimension_numbers<[1], [0], [0], [1], [0, 0, 1, 1], [], []>} : vector<128x45xf32>, vector<45x5xf32>, vector<128x5xf32> -> vector<128x5xf32>
    %21 = vector.broadcast %5 : vector<1x5xf32> to vector<128x5xf32>
    %22 = arith.addf %20, %21 : vector<128x5xf32>
    %cst_48 = arith.constant 0.000000e+00 : f32
    %23 = vector.broadcast %cst_48 : f32 to vector<128x5xf32>
    %24 = arith.maximumf %22, %23 : vector<128x5xf32>
    %25 = vector.shape_cast %24 : vector<128x5xf32> to vector<2x8x8x5xf32>
    %c0_49 = arith.constant 0 : index
    %c0_50 = arith.constant 0 : index
    %26 = vector.load %arg4[%c0_49, %c0_50] : memref<45x10xf32, #tpu.memory_space<vmem>>, vector<45x10xf32>
    %c0_51 = arith.constant 0 : index
    %c0_52 = arith.constant 0 : index
    %27 = vector.load %arg5[%c0_51, %c0_52] : memref<1x10xf32, #tpu.memory_space<vmem>>, vector<1x10xf32>
    %cst_53 = arith.constant 0.000000e+00 : f32
    %28 = vector.broadcast %cst_53 : f32 to vector<2x10x10x5xf32>
    %c0_54 = arith.constant 0 : index
    %c0_55 = arith.constant 0 : index
    %c0_56 = arith.constant 0 : index
    %c0_57 = arith.constant 0 : index
    %29 = vector.load %arg12[%c0_54, %c0_55, %c0_56, %c0_57] : memref<2x10x10x5xf32, #tpu.memory_space<vmem>>, vector<2x10x10x5xf32>
    tpu.vector_store %arg12[%c0_54, %c0_55, %c0_56, %c0_57], %28 {strides = array<i32>} : memref<2x10x10x5xf32, #tpu.memory_space<vmem>>, vector<2x10x10x5xf32>,
    %c0_58 = arith.constant 0 : index
    %c1_59 = arith.constant 1 : index
    %c1_60 = arith.constant 1 : index
    %c0_61 = arith.constant 0 : index
    %30 = vector.load %arg12[%c0_58, %c1_59, %c1_60, %c0_61] : memref<2x10x10x5xf32, #tpu.memory_space<vmem>>, vector<2x8x8x5xf32>
    tpu.vector_store %arg12[%c0_58, %c1_59, %c1_60, %c0_61], %25 {strides = array<i32>} : memref<2x10x10x5xf32, #tpu.memory_space<vmem>>, vector<2x8x8x5xf32>,
    %c0_62 = arith.constant 0 : index
    %c0_63 = arith.constant 0 : index
    %c0_64 = arith.constant 0 : index
    %c0_65 = arith.constant 0 : index
    %31 = vector.load %arg12[%c0_62, %c0_63, %c0_64, %c0_65] : memref<2x10x10x5xf32, #tpu.memory_space<vmem>>, vector<2x8x8x5xf32>
    %c0_66 = arith.constant 0 : index
    %c0_67 = arith.constant 0 : index
    %c1_68 = arith.constant 1 : index
    %c0_69 = arith.constant 0 : index
    %32 = vector.load %arg12[%c0_66, %c0_67, %c1_68, %c0_69] : memref<2x10x10x5xf32, #tpu.memory_space<vmem>>, vector<2x8x8x5xf32>
    %c0_70 = arith.constant 0 : index
    %c0_71 = arith.constant 0 : index
    %c2_72 = arith.constant 2 : index
    %c0_73 = arith.constant 0 : index
    %33 = vector.load %arg12[%c0_70, %c0_71, %c2_72, %c0_73] : memref<2x10x10x5xf32, #tpu.memory_space<vmem>>, vector<2x8x8x5xf32>
    %c0_74 = arith.constant 0 : index
    %c1_75 = arith.constant 1 : index
    %c0_76 = arith.constant 0 : index
    %c0_77 = arith.constant 0 : index
    %34 = vector.load %arg12[%c0_74, %c1_75, %c0_76, %c0_77] : memref<2x10x10x5xf32, #tpu.memory_space<vmem>>, vector<2x8x8x5xf32>
    %c0_78 = arith.constant 0 : index
    %c1_79 = arith.constant 1 : index
    %c1_80 = arith.constant 1 : index
    %c0_81 = arith.constant 0 : index
    %35 = vector.load %arg12[%c0_78, %c1_79, %c1_80, %c0_81] : memref<2x10x10x5xf32, #tpu.memory_space<vmem>>, vector<2x8x8x5xf32>
    %c0_82 = arith.constant 0 : index
    %c1_83 = arith.constant 1 : index
    %c2_84 = arith.constant 2 : index
    %c0_85 = arith.constant 0 : index
    %36 = vector.load %arg12[%c0_82, %c1_83, %c2_84, %c0_85] : memref<2x10x10x5xf32, #tpu.memory_space<vmem>>, vector<2x8x8x5xf32>
    %c0_86 = arith.constant 0 : index
    %c2_87 = arith.constant 2 : index
    %c0_88 = arith.constant 0 : index
    %c0_89 = arith.constant 0 : index
    %37 = vector.load %arg12[%c0_86, %c2_87, %c0_88, %c0_89] : memref<2x10x10x5xf32, #tpu.memory_space<vmem>>, vector<2x8x8x5xf32>
    %c0_90 = arith.constant 0 : index
    %c2_91 = arith.constant 2 : index
    %c1_92 = arith.constant 1 : index
    %c0_93 = arith.constant 0 : index
    %38 = vector.load %arg12[%c0_90, %c2_91, %c1_92, %c0_93] : memref<2x10x10x5xf32, #tpu.memory_space<vmem>>, vector<2x8x8x5xf32>
    %c0_94 = arith.constant 0 : index
    %c2_95 = arith.constant 2 : index
    %c2_96 = arith.constant 2 : index
    %c0_97 = arith.constant 0 : index
    %39 = vector.load %arg12[%c0_94, %c2_95, %c2_96, %c0_97] : memref<2x10x10x5xf32, #tpu.memory_space<vmem>>, vector<2x8x8x5xf32>
    %40 = tpu.concatenate %31, %32, %33, %34, %35, %36, %37, %38, %39 in 3 : vector<2x8x8x5xf32>, vector<2x8x8x5xf32>, vector<2x8x8x5xf32>, vector<2x8x8x5xf32>, vector<2x8x8x5xf32>, vector<2x8x8x5xf32>, vector<2x8x8x5xf32>, vector<2x8x8x5xf32>, vector<2x8x8x5xf32> -> vector<2x8x8x45xf32>
    %41 = vector.shape_cast %40 : vector<2x8x8x45xf32> to vector<128x45xf32>
    %cst_98 = arith.constant dense<0.000000e+00> : vector<128x10xf32>
    %42 = tpu.matmul %41, %26, %cst_98 {dimension_numbers = #tpu.dot_dimension_numbers<[1], [0], [0], [1], [0, 0, 1, 1], [], []>} : vector<128x45xf32>, vector<45x10xf32>, vector<128x10xf32> -> vector<128x10xf32>
    %43 = vector.broadcast %27 : vector<1x10xf32> to vector<128x10xf32>
    %44 = arith.addf %42, %43 : vector<128x10xf32>
    %cst_99 = arith.constant 1.000000e-01 : f32
    %45 = vector.broadcast %cst_99 : f32 to vector<128x10xf32>
    %46 = arith.mulf %44, %45 : vector<128x10xf32>
    %47 = vector.extract_strided_slice %46 {offsets = [0, 0], sizes = [128, 5], strides = [1, 1]} : vector<128x10xf32> to vector<128x5xf32>
    %48 = math.tanh %47 : vector<128x5xf32>
    %cst_100 = arith.constant 2.000000e+00 : f32
    %49 = vector.broadcast %cst_100 : f32 to vector<128x5xf32>
    %50 = arith.mulf %49, %48 : vector<128x5xf32>
    %51 = vector.extract_strided_slice %46 {offsets = [0, 5], sizes = [128, 5], strides = [1, 1]} : vector<128x10xf32> to vector<128x5xf32>
    %52 = math.exp %50 : vector<128x5xf32>
    %53 = arith.mulf %2, %52 : vector<128x5xf32>
    %54 = arith.addf %53, %51 : vector<128x5xf32>
    %55 = tpu.concatenate %1, %54 in 1 : vector<128x5xf32>, vector<128x5xf32> -> vector<128x10xf32>
    %c0_101 = arith.constant 0 : index
    %c0_102 = arith.constant 0 : index
    %56 = vector.load %arg6[%c0_101, %c0_102] : memref<1x10xf32, #tpu.memory_space<vmem>>, vector<1x10xf32>
    %57 = vector.broadcast %56 : vector<1x10xf32> to vector<128x10xf32>
    %58 = arith.mulf %55, %57 : vector<128x10xf32>
    %c0_103 = arith.constant 0 : index
    %c0_104 = arith.constant 0 : index
    %59 = vector.load %arg7[%c0_103, %c0_104] : memref<1x10xf32, #tpu.memory_space<vmem>>, vector<1x10xf32>
    %60 = vector.broadcast %59 : vector<1x10xf32> to vector<128x10xf32>
    %61 = arith.addf %58, %60 : vector<128x10xf32>
    %c0_105 = arith.constant 0 : index
    %c0_106 = arith.constant 0 : index
    %62 = vector.load %arg8[%c0_105, %c0_106] : memref<10x10xf32, #tpu.memory_space<vmem>>, vector<10x10xf32>
    %cst_107 = arith.constant dense<0.000000e+00> : vector<128x10xf32>
    %63 = tpu.matmul %61, %62, %cst_107 {dimension_numbers = #tpu.dot_dimension_numbers<[1], [0], [0], [1], [0, 0, 1, 1], [], []>} : vector<128x10xf32>, vector<10x10xf32>, vector<128x10xf32> -> vector<128x10xf32>
    %c0_108 = arith.constant 0 : index
    %c0_109 = arith.constant 0 : index
    %64 = vector.load %arg9[%c0_108, %c0_109] : memref<128x10xf32, #tpu.memory_space<vmem>>, vector<128x10xf32>
    tpu.vector_store %arg9[%c0_108, %c0_109], %63 {strides = array<i32>} : memref<128x10xf32, #tpu.memory_space<vmem>>, vector<128x10xf32>,
    %65 = vector.shape_cast %50 : vector<128x5xf32> to vector<2x64x5xf32>
    %cst_110 = arith.constant dense<0.000000e+00> : vector<2x64xf32>
    %66 = vector.multi_reduction <add>, %65, %cst_110 [2] : vector<2x64x5xf32> to vector<2x64xf32>
    %67 = vector.shape_cast %66 : vector<2x64xf32> to vector<2x64x1xf32>
    %cst_111 = arith.constant dense<0.000000e+00> : vector<2x1xf32>
    %68 = vector.multi_reduction <add>, %67, %cst_111 [1] : vector<2x64x1xf32> to vector<2x1xf32>
    %69 = vector.shape_cast %68 : vector<2x1xf32> to vector<2x1x1xf32>
    %70 = vector.shape_cast %69 : vector<2x1x1xf32> to vector<2x1xf32>
    %71 = vector.shape_cast %70 : vector<2x1xf32> to vector<2x1xf32>
    %72 = vector.broadcast %71 : vector<2x1xf32> to vector<2x128xf32>
    %c0_112 = arith.constant 0 : index
    %c0_113 = arith.constant 0 : index
    %73 = vector.load %arg10[%c0_112, %c0_113] : memref<2x128xf32, #tpu.memory_space<vmem>>, vector<2x128xf32>
    tpu.vector_store %arg10[%c0_112, %c0_113], %72 {strides = array<i32>} : memref<2x128xf32, #tpu.memory_space<vmem>>, vector<2x128xf32>,
    return
  }
  func.func @transform_0(%arg0: i32) -> (i32, i32) {
    %c0_i32 = arith.constant 0 : i32
    %c0_i32_0 = arith.constant 0 : i32
    %c0_i32_1 = arith.constant 0 : i32
    return %c0_i32, %c0_i32_0 : i32, i32
  }
  func.func @transform_1(%arg0: i32) -> (i32, i32) {
    %c0_i32 = arith.constant 0 : i32
    %c0_i32_0 = arith.constant 0 : i32
    %c0_i32_1 = arith.constant 0 : i32
    return %c0_i32, %c0_i32_0 : i32, i32
  }
  func.func @transform_2(%arg0: i32) -> (i32, i32) {
    %c0_i32 = arith.constant 0 : i32
    %c0_i32_0 = arith.constant 0 : i32
    %c0_i32_1 = arith.constant 0 : i32
    return %c0_i32, %c0_i32_0 : i32, i32
  }
  func.func @transform_3(%arg0: i32) -> (i32, i32) {
    %c0_i32 = arith.constant 0 : i32
    %c0_i32_0 = arith.constant 0 : i32
    %c0_i32_1 = arith.constant 0 : i32
    return %c0_i32, %c0_i32_0 : i32, i32
  }
  func.func @transform_4(%arg0: i32) -> (i32, i32) {
    %c0_i32 = arith.constant 0 : i32
    %c0_i32_0 = arith.constant 0 : i32
    %c0_i32_1 = arith.constant 0 : i32
    return %c0_i32, %c0_i32_0 : i32, i32
  }
  func.func @transform_5(%arg0: i32) -> (i32, i32) {
    %c0_i32 = arith.constant 0 : i32
    %c0_i32_0 = arith.constant 0 : i32
    %c0_i32_1 = arith.constant 0 : i32
    return %c0_i32, %c0_i32_0 : i32, i32
  }
  func.func @transform_6(%arg0: i32) -> (i32, i32) {
    %c0_i32 = arith.constant 0 : i32
    %c0_i32_0 = arith.constant 0 : i32
    %c0_i32_1 = arith.constant 0 : i32
    return %c0_i32, %c0_i32_0 : i32, i32
  }
  func.func @transform_7(%arg0: i32) -> (i32, i32) {
    %c0_i32 = arith.constant 0 : i32
    %c0_i32_0 = arith.constant 0 : i32
    %c0_i32_1 = arith.constant 0 : i32
    return %c0_i32, %c0_i32_0 : i32, i32
  }
  func.func @transform_8(%arg0: i32) -> (i32, i32) {
    %c0_i32 = arith.constant 0 : i32
    %c0_i32_0 = arith.constant 0 : i32
    %c0_i32_1 = arith.constant 0 : i32
    return %c0_i32, %c0_i32_0 : i32, i32
  }
  func.func @transform_9(%arg0: i32) -> (i32, i32) {
    %c0_i32 = arith.constant 0 : i32
    %c0_i32_0 = arith.constant 0 : i32
    %c0_i32_1 = arith.constant 0 : i32
    return %c0_i32, %c0_i32_0 : i32, i32
  }
}

module attributes {stable_mosaic.version = 11 : i64} {
  func.func @_block_kernel(%arg0: i32, %arg1: memref<128x10xf32, #tpu.memory_space<vmem>>, %arg2: memref<5x5xf32, #tpu.memory_space<vmem>>, %arg3: memref<1x5xf32, #tpu.memory_space<vmem>>, %arg4: memref<5x10xf32, #tpu.memory_space<vmem>>, %arg5: memref<1x10xf32, #tpu.memory_space<vmem>>, %arg6: memref<1x10xf32, #tpu.memory_space<vmem>>, %arg7: memref<1x10xf32, #tpu.memory_space<vmem>>, %arg8: memref<10x10xf32, #tpu.memory_space<vmem>>, %arg9: memref<128x10xf32, #tpu.memory_space<vmem>>, %arg10: memref<2x128xf32, #tpu.memory_space<vmem>>) attributes {dimension_semantics = [#tpu.dimension_semantics<arbitrary>], iteration_bounds = array<i64: 1>, scalar_prefetch = 0 : i64, scratch_operands = 0 : i64, tpu.core_type = #tpu.core_type<tc>, window_params = [{pipeline_mode = #tpu.pipeline_mode<synchronous>, transform_indices = @transform_0, window_bounds = array<i64: 128, 10>}, {pipeline_mode = #tpu.pipeline_mode<synchronous>, transform_indices = @transform_1, window_bounds = array<i64: 5, 5>}, {pipeline_mode = #tpu.pipeline_mode<synchronous>, transform_indices = @transform_2, window_bounds = array<i64: 1, 5>}, {pipeline_mode = #tpu.pipeline_mode<synchronous>, transform_indices = @transform_3, window_bounds = array<i64: 5, 10>}, {pipeline_mode = #tpu.pipeline_mode<synchronous>, transform_indices = @transform_4, window_bounds = array<i64: 1, 10>}, {pipeline_mode = #tpu.pipeline_mode<synchronous>, transform_indices = @transform_5, window_bounds = array<i64: 1, 10>}, {pipeline_mode = #tpu.pipeline_mode<synchronous>, transform_indices = @transform_6, window_bounds = array<i64: 1, 10>}, {pipeline_mode = #tpu.pipeline_mode<synchronous>, transform_indices = @transform_7, window_bounds = array<i64: 10, 10>}, {pipeline_mode = #tpu.pipeline_mode<synchronous>, transform_indices = @transform_8, window_bounds = array<i64: 128, 10>}, {pipeline_mode = #tpu.pipeline_mode<synchronous>, transform_indices = @transform_9, window_bounds = array<i64: 2, 128>}]} {
    %c0 = arith.constant 0 : index
    %c0_0 = arith.constant 0 : index
    %0 = vector.load %arg1[%c0, %c0_0] : memref<128x10xf32, #tpu.memory_space<vmem>>, vector<128x10xf32>
    %1 = vector.extract_strided_slice %0 {offsets = [0, 0], sizes = [128, 5], strides = [1, 1]} : vector<128x10xf32> to vector<128x5xf32>
    %2 = vector.extract_strided_slice %0 {offsets = [0, 5], sizes = [128, 5], strides = [1, 1]} : vector<128x10xf32> to vector<128x5xf32>
    %c0_1 = arith.constant 0 : index
    %c0_2 = arith.constant 0 : index
    %3 = vector.load %arg2[%c0_1, %c0_2] : memref<5x5xf32, #tpu.memory_space<vmem>>, vector<5x5xf32>
    %cst = arith.constant dense<0.000000e+00> : vector<128x5xf32>
    %4 = tpu.matmul %1, %3, %cst {dimension_numbers = #tpu.dot_dimension_numbers<[1], [0], [0], [1], [0, 0, 1, 1], [], []>} : vector<128x5xf32>, vector<5x5xf32>, vector<128x5xf32> -> vector<128x5xf32>
    %c0_3 = arith.constant 0 : index
    %c0_4 = arith.constant 0 : index
    %5 = vector.load %arg3[%c0_3, %c0_4] : memref<1x5xf32, #tpu.memory_space<vmem>>, vector<1x5xf32>
    %6 = vector.broadcast %5 : vector<1x5xf32> to vector<128x5xf32>
    %7 = arith.addf %4, %6 : vector<128x5xf32>
    %cst_5 = arith.constant 0.000000e+00 : f32
    %8 = vector.broadcast %cst_5 : f32 to vector<128x5xf32>
    %9 = arith.maximumf %7, %8 : vector<128x5xf32>
    %c0_6 = arith.constant 0 : index
    %c0_7 = arith.constant 0 : index
    %10 = vector.load %arg4[%c0_6, %c0_7] : memref<5x10xf32, #tpu.memory_space<vmem>>, vector<5x10xf32>
    %cst_8 = arith.constant dense<0.000000e+00> : vector<128x10xf32>
    %11 = tpu.matmul %9, %10, %cst_8 {dimension_numbers = #tpu.dot_dimension_numbers<[1], [0], [0], [1], [0, 0, 1, 1], [], []>} : vector<128x5xf32>, vector<5x10xf32>, vector<128x10xf32> -> vector<128x10xf32>
    %c0_9 = arith.constant 0 : index
    %c0_10 = arith.constant 0 : index
    %12 = vector.load %arg5[%c0_9, %c0_10] : memref<1x10xf32, #tpu.memory_space<vmem>>, vector<1x10xf32>
    %13 = vector.broadcast %12 : vector<1x10xf32> to vector<128x10xf32>
    %14 = arith.addf %11, %13 : vector<128x10xf32>
    %cst_11 = arith.constant 1.000000e-01 : f32
    %15 = vector.broadcast %cst_11 : f32 to vector<128x10xf32>
    %16 = arith.mulf %14, %15 : vector<128x10xf32>
    %17 = vector.extract_strided_slice %16 {offsets = [0, 0], sizes = [128, 5], strides = [1, 1]} : vector<128x10xf32> to vector<128x5xf32>
    %18 = math.tanh %17 : vector<128x5xf32>
    %cst_12 = arith.constant 2.000000e+00 : f32
    %19 = vector.broadcast %cst_12 : f32 to vector<128x5xf32>
    %20 = arith.mulf %19, %18 : vector<128x5xf32>
    %21 = vector.extract_strided_slice %16 {offsets = [0, 5], sizes = [128, 5], strides = [1, 1]} : vector<128x10xf32> to vector<128x5xf32>
    %22 = math.exp %20 : vector<128x5xf32>
    %23 = arith.mulf %2, %22 : vector<128x5xf32>
    %24 = arith.addf %23, %21 : vector<128x5xf32>
    %25 = tpu.concatenate %1, %24 in 1 : vector<128x5xf32>, vector<128x5xf32> -> vector<128x10xf32>
    %c0_13 = arith.constant 0 : index
    %c0_14 = arith.constant 0 : index
    %26 = vector.load %arg6[%c0_13, %c0_14] : memref<1x10xf32, #tpu.memory_space<vmem>>, vector<1x10xf32>
    %27 = vector.broadcast %26 : vector<1x10xf32> to vector<128x10xf32>
    %28 = arith.mulf %25, %27 : vector<128x10xf32>
    %c0_15 = arith.constant 0 : index
    %c0_16 = arith.constant 0 : index
    %29 = vector.load %arg7[%c0_15, %c0_16] : memref<1x10xf32, #tpu.memory_space<vmem>>, vector<1x10xf32>
    %30 = vector.broadcast %29 : vector<1x10xf32> to vector<128x10xf32>
    %31 = arith.addf %28, %30 : vector<128x10xf32>
    %c0_17 = arith.constant 0 : index
    %c0_18 = arith.constant 0 : index
    %32 = vector.load %arg8[%c0_17, %c0_18] : memref<10x10xf32, #tpu.memory_space<vmem>>, vector<10x10xf32>
    %cst_19 = arith.constant dense<0.000000e+00> : vector<128x10xf32>
    %33 = tpu.matmul %31, %32, %cst_19 {dimension_numbers = #tpu.dot_dimension_numbers<[1], [0], [0], [1], [0, 0, 1, 1], [], []>} : vector<128x10xf32>, vector<10x10xf32>, vector<128x10xf32> -> vector<128x10xf32>
    %c0_20 = arith.constant 0 : index
    %c0_21 = arith.constant 0 : index
    %34 = vector.load %arg9[%c0_20, %c0_21] : memref<128x10xf32, #tpu.memory_space<vmem>>, vector<128x10xf32>
    tpu.vector_store %arg9[%c0_20, %c0_21], %33 {strides = array<i32>} : memref<128x10xf32, #tpu.memory_space<vmem>>, vector<128x10xf32>,
    %35 = vector.shape_cast %20 : vector<128x5xf32> to vector<2x64x5xf32>
    %cst_22 = arith.constant dense<0.000000e+00> : vector<2x64xf32>
    %36 = vector.multi_reduction <add>, %35, %cst_22 [2] : vector<2x64x5xf32> to vector<2x64xf32>
    %37 = vector.shape_cast %36 : vector<2x64xf32> to vector<2x64x1xf32>
    %cst_23 = arith.constant dense<0.000000e+00> : vector<2x1xf32>
    %38 = vector.multi_reduction <add>, %37, %cst_23 [1] : vector<2x64x1xf32> to vector<2x1xf32>
    %39 = vector.shape_cast %38 : vector<2x1xf32> to vector<2x1x1xf32>
    %40 = vector.shape_cast %39 : vector<2x1x1xf32> to vector<2x1xf32>
    %41 = vector.shape_cast %40 : vector<2x1xf32> to vector<2x1xf32>
    %42 = vector.broadcast %41 : vector<2x1xf32> to vector<2x128xf32>
    %c0_24 = arith.constant 0 : index
    %c0_25 = arith.constant 0 : index
    %43 = vector.load %arg10[%c0_24, %c0_25] : memref<2x128xf32, #tpu.memory_space<vmem>>, vector<2x128xf32>
    tpu.vector_store %arg10[%c0_24, %c0_25], %42 {strides = array<i32>} : memref<2x128xf32, #tpu.memory_space<vmem>>, vector<2x128xf32>,
    return
  }
  func.func @transform_0(%arg0: i32) -> (i32, i32) {
    %c0_i32 = arith.constant 0 : i32
    %c0_i32_0 = arith.constant 0 : i32
    %c0_i32_1 = arith.constant 0 : i32
    return %c0_i32, %c0_i32_0 : i32, i32
  }
  func.func @transform_1(%arg0: i32) -> (i32, i32) {
    %c0_i32 = arith.constant 0 : i32
    %c0_i32_0 = arith.constant 0 : i32
    %c0_i32_1 = arith.constant 0 : i32
    return %c0_i32, %c0_i32_0 : i32, i32
  }
  func.func @transform_2(%arg0: i32) -> (i32, i32) {
    %c0_i32 = arith.constant 0 : i32
    %c0_i32_0 = arith.constant 0 : i32
    %c0_i32_1 = arith.constant 0 : i32
    return %c0_i32, %c0_i32_0 : i32, i32
  }
  func.func @transform_3(%arg0: i32) -> (i32, i32) {
    %c0_i32 = arith.constant 0 : i32
    %c0_i32_0 = arith.constant 0 : i32
    %c0_i32_1 = arith.constant 0 : i32
    return %c0_i32, %c0_i32_0 : i32, i32
  }
  func.func @transform_4(%arg0: i32) -> (i32, i32) {
    %c0_i32 = arith.constant 0 : i32
    %c0_i32_0 = arith.constant 0 : i32
    %c0_i32_1 = arith.constant 0 : i32
    return %c0_i32, %c0_i32_0 : i32, i32
  }
  func.func @transform_5(%arg0: i32) -> (i32, i32) {
    %c0_i32 = arith.constant 0 : i32
    %c0_i32_0 = arith.constant 0 : i32
    %c0_i32_1 = arith.constant 0 : i32
    return %c0_i32, %c0_i32_0 : i32, i32
  }
  func.func @transform_6(%arg0: i32) -> (i32, i32) {
    %c0_i32 = arith.constant 0 : i32
    %c0_i32_0 = arith.constant 0 : i32
    %c0_i32_1 = arith.constant 0 : i32
    return %c0_i32, %c0_i32_0 : i32, i32
  }
  func.func @transform_7(%arg0: i32) -> (i32, i32) {
    %c0_i32 = arith.constant 0 : i32
    %c0_i32_0 = arith.constant 0 : i32
    %c0_i32_1 = arith.constant 0 : i32
    return %c0_i32, %c0_i32_0 : i32, i32
  }
  func.func @transform_8(%arg0: i32) -> (i32, i32) {
    %c0_i32 = arith.constant 0 : i32
    %c0_i32_0 = arith.constant 0 : i32
    %c0_i32_1 = arith.constant 0 : i32
    return %c0_i32, %c0_i32_0 : i32, i32
  }
  func.func @transform_9(%arg0: i32) -> (i32, i32) {
    %c0_i32 = arith.constant 0 : i32
    %c0_i32_0 = arith.constant 0 : i32
    %c0_i32_1 = arith.constant 0 : i32
    return %c0_i32, %c0_i32_0 : i32, i32
  }
}

module attributes {stable_mosaic.version = 11 : i64} {
  func.func @_tail_kernel(%arg0: i32, %arg1: memref<2x8x8x10xf32, #tpu.memory_space<vmem>>, %arg2: memref<2x4x4x8xf32, #tpu.memory_space<vmem>>, %arg3: memref<32x8xf32, #tpu.memory_space<vmem>>, %arg4: memref<8x32xf32, #tpu.memory_space<vmem>>, %arg5: memref<32x4xf32, #tpu.memory_space<vmem>>, %arg6: memref<4x32xf32, #tpu.memory_space<vmem>>, %arg7: memref<2x32x32xf32, #tpu.memory_space<vmem>>, %arg8: memref<2x1x128xf32, #tpu.memory_space<vmem>>) attributes {dimension_semantics = [#tpu.dimension_semantics<arbitrary>], iteration_bounds = array<i64: 1>, scalar_prefetch = 0 : i64, scratch_operands = 0 : i64, tpu.core_type = #tpu.core_type<tc>, window_params = [{pipeline_mode = #tpu.pipeline_mode<synchronous>, transform_indices = @transform_0, window_bounds = array<i64: 2, 8, 8, 10>}, {pipeline_mode = #tpu.pipeline_mode<synchronous>, transform_indices = @transform_1, window_bounds = array<i64: 2, 4, 4, 8>}, {pipeline_mode = #tpu.pipeline_mode<synchronous>, transform_indices = @transform_2, window_bounds = array<i64: 32, 8>}, {pipeline_mode = #tpu.pipeline_mode<synchronous>, transform_indices = @transform_3, window_bounds = array<i64: 8, 32>}, {pipeline_mode = #tpu.pipeline_mode<synchronous>, transform_indices = @transform_4, window_bounds = array<i64: 32, 4>}, {pipeline_mode = #tpu.pipeline_mode<synchronous>, transform_indices = @transform_5, window_bounds = array<i64: 4, 32>}, {pipeline_mode = #tpu.pipeline_mode<synchronous>, transform_indices = @transform_6, window_bounds = array<i64: 2, 32, 32>}, {pipeline_mode = #tpu.pipeline_mode<synchronous>, transform_indices = @transform_7, window_bounds = array<i64: 2, 1, 128>}]} {
    %c0 = arith.constant 0 : index
    %c0_0 = arith.constant 0 : index
    %0 = vector.load %arg3[%c0, %c0_0] : memref<32x8xf32, #tpu.memory_space<vmem>>, vector<32x8xf32>
    %c0_1 = arith.constant 0 : index
    %c0_2 = arith.constant 0 : index
    %1 = vector.load %arg4[%c0_1, %c0_2] : memref<8x32xf32, #tpu.memory_space<vmem>>, vector<8x32xf32>
    %c0_3 = arith.constant 0 : index
    %c0_4 = arith.constant 0 : index
    %2 = vector.load %arg5[%c0_3, %c0_4] : memref<32x4xf32, #tpu.memory_space<vmem>>, vector<32x4xf32>
    %c0_5 = arith.constant 0 : index
    %c0_6 = arith.constant 0 : index
    %3 = vector.load %arg6[%c0_5, %c0_6] : memref<4x32xf32, #tpu.memory_space<vmem>>, vector<4x32xf32>
    %c0_7 = arith.constant 0 : index
    %c0_8 = arith.constant 0 : index
    %c0_9 = arith.constant 0 : index
    %c0_10 = arith.constant 0 : index
    %4 = vector.load %arg1[%c0_7, %c0_8, %c0_9, %c0_10] : memref<2x8x8x10xf32, #tpu.memory_space<vmem>>, vector<1x8x8x10xf32>
    %5 = vector.shape_cast %4 : vector<1x8x8x10xf32> to vector<8x8x10xf32>
    %6 = arith.mulf %5, %5 : vector<8x8x10xf32>
    %cst = arith.constant dense<0.000000e+00> : vector<8x8xf32>
    %7 = vector.multi_reduction <add>, %6, %cst [2] : vector<8x8x10xf32> to vector<8x8xf32>
    %cst_11 = arith.constant 1.000000e+01 : f32
    %8 = vector.broadcast %cst_11 : f32 to vector<8x8xf32>
    %9 = arith.divf %7, %8 : vector<8x8xf32>
    %cst_12 = arith.constant -5.000000e-01 : f32
    %10 = vector.broadcast %cst_12 : f32 to vector<8x8xf32>
    %11 = arith.mulf %10, %9 : vector<8x8xf32>
    %12 = math.exp %11 : vector<8x8xf32>
    %cst_13 = arith.constant dense<0.000000e+00> : vector<32x8xf32>
    %13 = tpu.matmul %0, %12, %cst_13 {dimension_numbers = #tpu.dot_dimension_numbers<[1], [0], [0], [1], [0, 0, 1, 1], [], []>} : vector<32x8xf32>, vector<8x8xf32>, vector<32x8xf32> -> vector<32x8xf32>
    %cst_14 = arith.constant dense<0.000000e+00> : vector<32x32xf32>
    %14 = tpu.matmul %13, %1, %cst_14 {dimension_numbers = #tpu.dot_dimension_numbers<[1], [0], [0], [1], [0, 0, 1, 1], [], []>} : vector<32x8xf32>, vector<8x32xf32>, vector<32x32xf32> -> vector<32x32xf32>
    %c0_15 = arith.constant 0 : index
    %c0_16 = arith.constant 0 : index
    %c0_17 = arith.constant 0 : index
    %c0_18 = arith.constant 0 : index
    %15 = vector.load %arg2[%c0_15, %c0_16, %c0_17, %c0_18] : memref<2x4x4x8xf32, #tpu.memory_space<vmem>>, vector<1x4x4x8xf32>
    %16 = vector.shape_cast %15 : vector<1x4x4x8xf32> to vector<4x4x8xf32>
    %17 = arith.mulf %16, %16 : vector<4x4x8xf32>
    %cst_19 = arith.constant dense<0.000000e+00> : vector<4x4xf32>
    %18 = vector.multi_reduction <add>, %17, %cst_19 [2] : vector<4x4x8xf32> to vector<4x4xf32>
    %cst_20 = arith.constant 8.000000e+00 : f32
    %19 = vector.broadcast %cst_20 : f32 to vector<4x4xf32>
    %20 = arith.divf %18, %19 : vector<4x4xf32>
    %cst_21 = arith.constant -5.000000e-01 : f32
    %21 = vector.broadcast %cst_21 : f32 to vector<4x4xf32>
    %22 = arith.mulf %21, %20 : vector<4x4xf32>
    %23 = math.exp %22 : vector<4x4xf32>
    %cst_22 = arith.constant dense<0.000000e+00> : vector<32x4xf32>
    %24 = tpu.matmul %2, %23, %cst_22 {dimension_numbers = #tpu.dot_dimension_numbers<[1], [0], [0], [1], [0, 0, 1, 1], [], []>} : vector<32x4xf32>, vector<4x4xf32>, vector<32x4xf32> -> vector<32x4xf32>
    %cst_23 = arith.constant dense<0.000000e+00> : vector<32x32xf32>
    %25 = tpu.matmul %24, %3, %cst_23 {dimension_numbers = #tpu.dot_dimension_numbers<[1], [0], [0], [1], [0, 0, 1, 1], [], []>} : vector<32x4xf32>, vector<4x32xf32>, vector<32x32xf32> -> vector<32x32xf32>
    %26 = arith.addf %14, %25 : vector<32x32xf32>
    %cst_24 = arith.constant 5.000000e-01 : f32
    %27 = vector.broadcast %cst_24 : f32 to vector<32x32xf32>
    %28 = arith.mulf %27, %26 : vector<32x32xf32>
    %cst_25 = arith.constant 1.000000e+00 : f32
    %29 = vector.broadcast %cst_25 : f32 to vector<32x32xf32>
    %30 = arith.subf %29, %28 : vector<32x32xf32>
    %c0_26 = arith.constant 0 : index
    %c0_27 = arith.constant 0 : index
    %c0_28 = arith.constant 0 : index
    %31 = vector.load %arg7[%c0_26, %c0_27, %c0_28] : memref<2x32x32xf32, #tpu.memory_space<vmem>>, vector<1x32x32xf32>
    %32 = vector.shape_cast %31 : vector<1x32x32xf32> to vector<32x32xf32>
    %33 = vector.shape_cast %30 : vector<32x32xf32> to vector<1x32x32xf32>
    tpu.vector_store %arg7[%c0_26, %c0_27, %c0_28], %33 {strides = array<i32>} : memref<2x32x32xf32, #tpu.memory_space<vmem>>, vector<1x32x32xf32>,
    %cst_29 = arith.constant dense<0xFF800000> : vector<32xf32>
    %34 = vector.multi_reduction <maximumf>, %30, %cst_29 [1] : vector<32x32xf32> to vector<32xf32>
    %35 = vector.shape_cast %34 : vector<32xf32> to vector<32x1xf32>
    %cst_30 = arith.constant dense<0xFF800000> : vector<1xf32>
    %36 = vector.multi_reduction <maximumf>, %35, %cst_30 [0] : vector<32x1xf32> to vector<1xf32>
    %37 = vector.shape_cast %36 : vector<1xf32> to vector<1x1xf32>
    %38 = vector.shape_cast %37 : vector<1x1xf32> to vector<1x1xf32>
    %39 = vector.broadcast %38 : vector<1x1xf32> to vector<1x128xf32>
    %c0_31 = arith.constant 0 : index
    %c0_32 = arith.constant 0 : index
    %c0_33 = arith.constant 0 : index
    %40 = vector.load %arg8[%c0_31, %c0_32, %c0_33] : memref<2x1x128xf32, #tpu.memory_space<vmem>>, vector<1x1x128xf32>
    %41 = vector.shape_cast %40 : vector<1x1x128xf32> to vector<1x128xf32>
    %42 = vector.shape_cast %39 : vector<1x128xf32> to vector<1x1x128xf32>
    tpu.vector_store %arg8[%c0_31, %c0_32, %c0_33], %42 {strides = array<i32>} : memref<2x1x128xf32, #tpu.memory_space<vmem>>, vector<1x1x128xf32>,
    %c1 = arith.constant 1 : index
    %c0_34 = arith.constant 0 : index
    %c0_35 = arith.constant 0 : index
    %c0_36 = arith.constant 0 : index
    %43 = vector.load %arg1[%c1, %c0_34, %c0_35, %c0_36] : memref<2x8x8x10xf32, #tpu.memory_space<vmem>>, vector<1x8x8x10xf32>
    %44 = vector.shape_cast %43 : vector<1x8x8x10xf32> to vector<8x8x10xf32>
    %45 = arith.mulf %44, %44 : vector<8x8x10xf32>
    %cst_37 = arith.constant dense<0.000000e+00> : vector<8x8xf32>
    %46 = vector.multi_reduction <add>, %45, %cst_37 [2] : vector<8x8x10xf32> to vector<8x8xf32>
    %cst_38 = arith.constant 1.000000e+01 : f32
    %47 = vector.broadcast %cst_38 : f32 to vector<8x8xf32>
    %48 = arith.divf %46, %47 : vector<8x8xf32>
    %cst_39 = arith.constant -5.000000e-01 : f32
    %49 = vector.broadcast %cst_39 : f32 to vector<8x8xf32>
    %50 = arith.mulf %49, %48 : vector<8x8xf32>
    %51 = math.exp %50 : vector<8x8xf32>
    %cst_40 = arith.constant dense<0.000000e+00> : vector<32x8xf32>
    %52 = tpu.matmul %0, %51, %cst_40 {dimension_numbers = #tpu.dot_dimension_numbers<[1], [0], [0], [1], [0, 0, 1, 1], [], []>} : vector<32x8xf32>, vector<8x8xf32>, vector<32x8xf32> -> vector<32x8xf32>
    %cst_41 = arith.constant dense<0.000000e+00> : vector<32x32xf32>
    %53 = tpu.matmul %52, %1, %cst_41 {dimension_numbers = #tpu.dot_dimension_numbers<[1], [0], [0], [1], [0, 0, 1, 1], [], []>} : vector<32x8xf32>, vector<8x32xf32>, vector<32x32xf32> -> vector<32x32xf32>
    %c1_42 = arith.constant 1 : index
    %c0_43 = arith.constant 0 : index
    %c0_44 = arith.constant 0 : index
    %c0_45 = arith.constant 0 : index
    %54 = vector.load %arg2[%c1_42, %c0_43, %c0_44, %c0_45] : memref<2x4x4x8xf32, #tpu.memory_space<vmem>>, vector<1x4x4x8xf32>
    %55 = vector.shape_cast %54 : vector<1x4x4x8xf32> to vector<4x4x8xf32>
    %56 = arith.mulf %55, %55 : vector<4x4x8xf32>
    %cst_46 = arith.constant dense<0.000000e+00> : vector<4x4xf32>
    %57 = vector.multi_reduction <add>, %56, %cst_46 [2] : vector<4x4x8xf32> to vector<4x4xf32>
    %cst_47 = arith.constant 8.000000e+00 : f32
    %58 = vector.broadcast %cst_47 : f32 to vector<4x4xf32>
    %59 = arith.divf %57, %58 : vector<4x4xf32>
    %cst_48 = arith.constant -5.000000e-01 : f32
    %60 = vector.broadcast %cst_48 : f32 to vector<4x4xf32>
    %61 = arith.mulf %60, %59 : vector<4x4xf32>
    %62 = math.exp %61 : vector<4x4xf32>
    %cst_49 = arith.constant dense<0.000000e+00> : vector<32x4xf32>
    %63 = tpu.matmul %2, %62, %cst_49 {dimension_numbers = #tpu.dot_dimension_numbers<[1], [0], [0], [1], [0, 0, 1, 1], [], []>} : vector<32x4xf32>, vector<4x4xf32>, vector<32x4xf32> -> vector<32x4xf32>
    %cst_50 = arith.constant dense<0.000000e+00> : vector<32x32xf32>
    %64 = tpu.matmul %63, %3, %cst_50 {dimension_numbers = #tpu.dot_dimension_numbers<[1], [0], [0], [1], [0, 0, 1, 1], [], []>} : vector<32x4xf32>, vector<4x32xf32>, vector<32x32xf32> -> vector<32x32xf32>
    %65 = arith.addf %53, %64 : vector<32x32xf32>
    %cst_51 = arith.constant 5.000000e-01 : f32
    %66 = vector.broadcast %cst_51 : f32 to vector<32x32xf32>
    %67 = arith.mulf %66, %65 : vector<32x32xf32>
    %cst_52 = arith.constant 1.000000e+00 : f32
    %68 = vector.broadcast %cst_52 : f32 to vector<32x32xf32>
    %69 = arith.subf %68, %67 : vector<32x32xf32>
    %c1_53 = arith.constant 1 : index
    %c0_54 = arith.constant 0 : index
    %c0_55 = arith.constant 0 : index
    %70 = vector.load %arg7[%c1_53, %c0_54, %c0_55] : memref<2x32x32xf32, #tpu.memory_space<vmem>>, vector<1x32x32xf32>
    %71 = vector.shape_cast %70 : vector<1x32x32xf32> to vector<32x32xf32>
    %72 = vector.shape_cast %69 : vector<32x32xf32> to vector<1x32x32xf32>
    tpu.vector_store %arg7[%c1_53, %c0_54, %c0_55], %72 {strides = array<i32>} : memref<2x32x32xf32, #tpu.memory_space<vmem>>, vector<1x32x32xf32>,
    %cst_56 = arith.constant dense<0xFF800000> : vector<32xf32>
    %73 = vector.multi_reduction <maximumf>, %69, %cst_56 [1] : vector<32x32xf32> to vector<32xf32>
    %74 = vector.shape_cast %73 : vector<32xf32> to vector<32x1xf32>
    %cst_57 = arith.constant dense<0xFF800000> : vector<1xf32>
    %75 = vector.multi_reduction <maximumf>, %74, %cst_57 [0] : vector<32x1xf32> to vector<1xf32>
    %76 = vector.shape_cast %75 : vector<1xf32> to vector<1x1xf32>
    %77 = vector.shape_cast %76 : vector<1x1xf32> to vector<1x1xf32>
    %78 = vector.broadcast %77 : vector<1x1xf32> to vector<1x128xf32>
    %c1_58 = arith.constant 1 : index
    %c0_59 = arith.constant 0 : index
    %c0_60 = arith.constant 0 : index
    %79 = vector.load %arg8[%c1_58, %c0_59, %c0_60] : memref<2x1x128xf32, #tpu.memory_space<vmem>>, vector<1x1x128xf32>
    %80 = vector.shape_cast %79 : vector<1x1x128xf32> to vector<1x128xf32>
    %81 = vector.shape_cast %78 : vector<1x128xf32> to vector<1x1x128xf32>
    tpu.vector_store %arg8[%c1_58, %c0_59, %c0_60], %81 {strides = array<i32>} : memref<2x1x128xf32, #tpu.memory_space<vmem>>, vector<1x1x128xf32>,
    return
  }
  func.func @transform_0(%arg0: i32) -> (i32, i32, i32, i32) {
    %c0_i32 = arith.constant 0 : i32
    %c0_i32_0 = arith.constant 0 : i32
    %c0_i32_1 = arith.constant 0 : i32
    %c0_i32_2 = arith.constant 0 : i32
    %c0_i32_3 = arith.constant 0 : i32
    return %c0_i32, %c0_i32_0, %c0_i32_1, %c0_i32_2 : i32, i32, i32, i32
  }
  func.func @transform_1(%arg0: i32) -> (i32, i32, i32, i32) {
    %c0_i32 = arith.constant 0 : i32
    %c0_i32_0 = arith.constant 0 : i32
    %c0_i32_1 = arith.constant 0 : i32
    %c0_i32_2 = arith.constant 0 : i32
    %c0_i32_3 = arith.constant 0 : i32
    return %c0_i32, %c0_i32_0, %c0_i32_1, %c0_i32_2 : i32, i32, i32, i32
  }
  func.func @transform_2(%arg0: i32) -> (i32, i32) {
    %c0_i32 = arith.constant 0 : i32
    %c0_i32_0 = arith.constant 0 : i32
    %c0_i32_1 = arith.constant 0 : i32
    return %c0_i32, %c0_i32_0 : i32, i32
  }
  func.func @transform_3(%arg0: i32) -> (i32, i32) {
    %c0_i32 = arith.constant 0 : i32
    %c0_i32_0 = arith.constant 0 : i32
    %c0_i32_1 = arith.constant 0 : i32
    return %c0_i32, %c0_i32_0 : i32, i32
  }
  func.func @transform_4(%arg0: i32) -> (i32, i32) {
    %c0_i32 = arith.constant 0 : i32
    %c0_i32_0 = arith.constant 0 : i32
    %c0_i32_1 = arith.constant 0 : i32
    return %c0_i32, %c0_i32_0 : i32, i32
  }
  func.func @transform_5(%arg0: i32) -> (i32, i32) {
    %c0_i32 = arith.constant 0 : i32
    %c0_i32_0 = arith.constant 0 : i32
    %c0_i32_1 = arith.constant 0 : i32
    return %c0_i32, %c0_i32_0 : i32, i32
  }
  func.func @transform_6(%arg0: i32) -> (i32, i32, i32) {
    %c0_i32 = arith.constant 0 : i32
    %c0_i32_0 = arith.constant 0 : i32
    %c0_i32_1 = arith.constant 0 : i32
    %c0_i32_2 = arith.constant 0 : i32
    return %c0_i32, %c0_i32_0, %c0_i32_1 : i32, i32, i32
  }
  func.func @transform_7(%arg0: i32) -> (i32, i32, i32) {
    %c0_i32 = arith.constant 0 : i32
    %c0_i32_0 = arith.constant 0 : i32
    %c0_i32_1 = arith.constant 0 : i32
    %c0_i32_2 = arith.constant 0 : i32
    return %c0_i32, %c0_i32_0, %c0_i32_1 : i32, i32, i32
  }
}

</mosaic_0001>

<bundles_post_ra>
// kernel: uflow_forward.8
= control target key start
LH: loop header
LB: loop body
LE: loop exit
PB: predicated region body
PF: predicated region fallthrough
CT: control target
= control target key end

     0   :  { %vm43_vm0 = vcmask 64512   ;;  %s541_s24 = smov 8   ;;  %vm322_vm1 = vcmask 130048   ;;  %vm452_vm2 = vcmask 1041409   ;;  %s695_s1 = inlined_call_operand.vmem [shape: f32[8,8], index: 1, kind: input, shape index: {}]   ;;  %s696_s0 = inlined_call_operand.vmem [shape: f32[32,16], index: 0, kind: input, shape index: {}]   ;;  %s697_s3 = inlined_call_operand.vmem [shape: f32[8,16], index: 3, kind: input, shape index: {}]   ;;  %s698_s2 = inlined_call_operand.vmem [shape: f32[1,8], index: 2, kind: input, shape index: {}]   ;;  %s699_s4 = inlined_call_operand.vmem [shape: f32[1,16], index: 4, kind: input, shape index: {}]   ;;  %s700_s7 = inlined_call_operand.vmem [shape: f32[16,16], index: 7, kind: input, shape index: {}]   ;;  %s701_s5 = inlined_call_operand.vmem [shape: f32[1,16], index: 5, kind: input, shape index: {}]   ;;  %s702_s6 = inlined_call_operand.vmem [shape: f32[1,16], index: 6, kind: input, shape index: {}]   ;;  %s703_s9 = inlined_call_operand.vmem [shape: f32[2,128], index: 9, kind: output, shape index: {1}]   ;;  %s704_s8 = inlined_call_operand.vmem [shape: f32[32,16], index: 8, kind: output, shape index: {0}]  }
   0x1   :  { %v35_v0 = vld [vmem:[%s695_s1] sm:$0xff]  ;;  %v603_v2 = vld [vmem:[%s696_s0 + $0x8] sm:$0xff]  ;;  %v610_v3 = vld [vmem:[%s696_s0 + $0x10] sm:$0xff] }
   0x2   :  { %v598_v1 = vld [vmem:[%s696_s0] sm:$0xff]  ;;  %496 = vmatprep.subr.mxu0 %v35_v0  ;;  %522 = vmatprep.subr.mxu1 %v35_v0  ;;  %v615_v4 = vld [vmem:[%s696_s0 + $0x18] sm:$0xff]  ;;  %v321_v44 = vld [vmem:[%s700_s7 + $0x8] sm:$0xff] }
   0x3   :  { %498 = vmatprep.mubr.msk.f32.mxu0 %vm43_vm0, %v598_v1  ;;  %497 = vmatpush3.msra.mxu0 %v35_v0  ;;  %v145_v5 = vld [vmem:[%s697_s3] sm:$0xff] }
   0x4   :  { %499 = vmatmul.mubr.msk.f32.vlgmr.msra.gmra.mxu0 %vm43_vm0, %v603_v2  ;;  %523 = vmatpush3.msra.mxu1 %v35_v0  ;;  %v464_v6 = vld [vmem:[%s698_s2] ss:$0 sm:$0xff] }
   0x5   :  { %501 = vmatprep.mubr.msk.f32.mxu1 %vm43_vm0, %v610_v3  ;;  %504 = vmatprep.subr.mxu1 %v145_v5  ;;  %v469_v19 = vld [vmem:[%s699_s4] ss:$0 sm:$0xff] }
   0x6   :  { %502 = vmatmul.mubr.msk.f32.vlgmr.msra.gmra.mxu1 %vm43_vm0, %v615_v4  ;;  %512 = vmatprep.subr.mxu0 %v321_v44  ;;  %v320_v45 = vld [vmem:[%s700_s7] sm:$0xff] }
   0x7   :  { %505 = vmatpush3.msra.mxu1 %v145_v5  ;;  %513 = vmatpush3.msra.mxu0 %v321_v44  ;;  %v474_v56 = vld [vmem:[%s701_s5] ss:$0 sm:$0xff] }
   0x8   :  { %514 = vmatprep.subr.mxu0 %v320_v45  ;;  %v475_v62 = vld [vmem:[%s702_s6] ss:$0 sm:$0xff] }
   0x9   :  { %515 = vmatpush3.msra.mxu0 %v320_v45 }
  0xc4   :  { %v500_v7 = vpop.f32.mrf.mxu0 }
  0xc5   :  { %v128_v8 = vadd.f32 %v500_v7, %v464_v6 }
  0xc6   :  { %v122_v9 = vpop.f32.mrf.mxu0  ;;  %v503_v10 = vpop.f32.mrf.mxu1 }
  0xc7   :  { %v123_v11 = vadd.f32 %v464_v6, %v122_v9  ;;  %v142_v15 = vmax.f32 %v128_v8, 0.0  ;;  %v138_v16 = vadd.f32 %v503_v10, %v464_v6 }
  0xc8   :  { %v132_v12 = vpop.f32.mrf.mxu1 }
  0xc9   :  { %v141_v13 = vmax.f32 %v123_v11, 0.0  ;;  %v133_v14 = vadd.f32 %v464_v6, %v132_v12  ;;  %v144_v18 = vmax.f32 %v138_v16, 0.0 }
  0xcb   :  { %v143_v17 = vmax.f32 %v133_v14, 0.0  ;;  %506 = vmatprep.mubr.msk.f32.mxu1 %vm43_vm0, %v141_v13 }
  0xcc   :  { %507 = vmatmul.mubr.msk.f32.vlgmr.msra.gmra.mxu1 %vm43_vm0, %v142_v15 }
  0xcd   :  { %509 = vmatprep.mubr.msk.f32.mxu1 %vm43_vm0, %v143_v17 }
  0xd0   :  { %510 = vmatmul.mubr.msk.f32.gmra.mxu1 %vm43_vm0, %v144_v18 }
 0x18c   :  { %v508_v20 = vpop.f32.mrf.mxu1 }
 0x18d   :  { %v237_v21 = vadd.f32 %v508_v20, %v469_v19 }
 0x18e   :  { %v231_v22 = vpop.f32.mrf.mxu1 }
 0x18f   :  { %v636_v23 = vmul.f32 0.1, %v237_v21  ;;  %v232_v24 = vadd.f32 %v469_v19, %v231_v22 }
 0x190   :  { %v511_v25 = vpop.f32.mrf.mxu1 }
 0x191   :  { %525 = vtanh.f32 %v636_v23  ;;  %v250_v26 = vmul.f32 0.1, %v232_v24  ;;  %v247_v27 = vadd.f32 %v511_v25, %v469_v19 }
 0x192   :  { %v241_v28 = vpop.f32.mrf.mxu1 }
 0x193   :  { %527 = vtanh.f32 %v250_v26  ;;  %v639_v29 = vmul.f32 0.1, %v247_v27  ;;  %v242_v30 = vadd.f32 %v469_v19, %v241_v28 }
 0x195   :  { %529 = vtanh.f32 %v639_v29  ;;  %v252_v31 = vmul.f32 0.1, %v242_v30 }
 0x197   :  { %531 = vtanh.f32 %v252_v31 }
 0x19e   :  { %v526_v32 = vpop.eup %525 }
 0x19f   :  { %v259_v34 = vmul.f32 2.0, %v526_v32 }
 0x1a0   :  { %v528_v33 = vpop.eup %527 }
 0x1a1   :  { %v258_v35 = vmul.f32 2.0, %v528_v33  ;;  %v264_v39 = vmul.f32 1.442695, %v259_v34  ;;  %v427_v53 = vsel %vm43_vm0, %v259_v34, 0.0 }
 0x1a2   :  { %v530_v36 = vpop.eup %529 }
 0x1a3   :  { %v262_v37 = vmul.f32 1.442695, %v258_v35  ;;  %v261_v40 = vmul.f32 2.0, %v530_v36  ;;  %v424_v50 = vsel %vm43_vm0, %v258_v35, 0.0 }
 0x1a4   :  { %v532_v38 = vpop.eup %531 }
 0x1a5   :  { %533 = vpow2.f32 %v262_v37  ;;  %v260_v41 = vmul.f32 2.0, %v532_v38  ;;  %v268_v43 = vmul.f32 1.442695, %v261_v40  ;;  %v433_v52 = vsel %vm43_vm0, %v261_v40, 0.0 }
 0x1a6   :  { %535 = vpow2.f32 %v264_v39 }
 0x1a7   :  { %v266_v42 = vmul.f32 1.442695, %v260_v41  ;;  %v430_v51 = vsel %vm43_vm0, %v260_v41, 0.0 }
 0x1a9   :  { %537 = vpow2.f32 %v266_v42 }
 0x1aa   :  { %539 = vpow2.f32 %v268_v43 }
 0x1b2   :  { %v534_v46 = vpop.eup %533 }
 0x1b3   :  { %274 = vrot.lane.b32.xlu0 %v534_v46, %s541_s24  ;;  %v536_v47 = vpop.eup %535 }
 0x1b6   :  { %v538_v48 = vpop.eup %537 }
 0x1b7   :  { %278 = vrot.lane.b32.xlu1 %v538_v48, %s541_s24  ;;  %276 = vrot.lane.b32.xlu0 %v536_v47, %s541_s24  ;;  %v540_v49 = vpop.eup %539 }
 0x1bb   :  { %280 = vrot.lane.b32.xlu1 %v540_v49, %s541_s24 }
 0x1d6   :  { %425 = vadd.xlane.f32.xlu0 %v424_v50 }
 0x1da   :  { %431 = vadd.xlane.f32.xlu0 %v430_v51 }
 0x1de   :  { %434 = vadd.xlane.f32.xlu0 %v433_v52 }
 0x1df   :  { %428 = vadd.xlane.f32.xlu1 %v427_v53 }
 0x225   :  { %v275_v54 = vpop.permute.xlu0 %274 }
 0x226   :  { %v286_v55 = vmul.f32 %v275_v54, %v598_v1 }
 0x228   :  { %v290_v57 = vadd.f32 %v286_v55, %v250_v26 }
 0x229   :  { %v279_v58 = vpop.permute.xlu1 %278  ;;  %v277_v59 = vpop.permute.xlu0 %276 }
 0x22a   :  { %v294_v60 = vsel %vm43_vm0, %v598_v1, %v290_v57  ;;  %v288_v61 = vmul.f32 %v279_v58, %v610_v3  ;;  %v287_v63 = vmul.f32 %v277_v59, %v603_v2 }
 0x22b   :  { %v305_v0 = vmul.f32 %v474_v56, %v294_v60 }
 0x22c   :  { %v292_v5 = vadd.f32 %v288_v61, %v252_v31  ;;  %v291_v6 = vadd.f32 %v287_v63, %v636_v23 }
 0x22d   :  { %v281_v7 = vpop.permute.xlu1 %280  ;;  %v316_v8 = vadd.f32 %v475_v62, %v305_v0 }
 0x22e   :  { %v296_v9 = vsel %vm43_vm0, %v610_v3, %v292_v5  ;;  %v295_v1 = vsel %vm43_vm0, %v603_v2, %v291_v6  ;;  %v289_v10 = vmul.f32 %v281_v7, %v615_v4 }
 0x22f   :  { %v307_v11 = vmul.f32 %v474_v56, %v296_v9  ;;  %v306_v12 = vmul.f32 %v474_v56, %v295_v1  ;;  %516 = vmatprep.mubr.msk.f32.mxu0 %vm322_vm1, %v316_v8 }
 0x230   :  { %v293_v13 = vadd.f32 %v289_v10, %v639_v29 }
 0x231   :  { %v317_v14 = vadd.f32 %v475_v62, %v306_v12  ;;  %v318_v15 = vadd.f32 %v475_v62, %v307_v11 }
 0x232   :  { %v297_v16 = vsel %vm43_vm0, %v615_v4, %v293_v13 }
 0x233   :  { %v308_v17 = vmul.f32 %v474_v56, %v297_v16  ;;  %517 = vmatmul.mubr.msk.f32.vlgmr.msra.gmra.mxu0 %vm322_vm1, %v317_v14 }
 0x234   :  { %519 = vmatprep.mubr.msk.f32.mxu0 %vm322_vm1, %v318_v15 }
 0x235   :  { %v319_v3 = vadd.f32 %v475_v62, %v308_v17 }
 0x237   :  { %520 = vmatmul.mubr.msk.f32.gmra.mxu0 %vm322_vm1, %v319_v3 }
 0x25f   :  { %v426_v2 = vpop.xlane.xlu0 %425 }
 0x263   :  { %v432_v18 = vpop.xlane.xlu0 %431 }
 0x267   :  { %v435_v19 = vpop.xlane.xlu0 %434 }
 0x268   :  { %v443_v20 = vadd.f32 %v435_v19, %v432_v18  ;;  %v429_v21 = vpop.xlane.xlu1 %428 }
 0x269   :  { %v436_v22 = vadd.f32 %v429_v21, %v426_v2 }
 0x26a   :  { %v444_v23 = vrot.slane %v443_v20, 4 }
 0x26b   :  { %v437_v24 = vrot.slane %v436_v22, 4 }
 0x26c   :  { %v445_v25 = vadd.f32 %v444_v23, %v443_v20 }
 0x26d   :  { %v438_v26 = vadd.f32 %v437_v24, %v436_v22 }
 0x26e   :  { %v446_v27 = vrot.slane %v445_v25, 2 }
 0x26f   :  { %v439_v4 = vrot.slane %v438_v26, 2 }
 0x270   :  { %v447_v28 = vadd.f32 %v446_v27, %v445_v25 }
 0x271   :  { %v440_v29 = vadd.f32 %v439_v4, %v438_v26 }
 0x272   :  { %v448_v30 = vrot.slane %v447_v28, 1 }
 0x273   :  { %v441_v31 = vrot.slane %v440_v29, 1 }
 0x274   :  { %v449_v32 = vadd.f32 %v448_v30, %v447_v28 }
 0x275   :  { %v442_v33 = vadd.f32 %v441_v31, %v440_v29 }
 0x277   :  { %v453_v34 = vsel %vm452_vm2, %v449_v32, %v442_v33 }
 0x278   :  { %455 = vst [vmem:[%s703_s9] sm:$0x3] %v453_v34 }
 0x2f3   :  { %v518_v35 = vpop.f32.mrf.mxu0 }
 0x2f4   :  { %421 = vst.msk [vmem:[%s704_s8 + $0x8] sm:$0xff] %vm322_vm1, %v518_v35 }
 0x2f5   :  { %v401_v36 = vpop.f32.mrf.mxu0 }
 0x2f6   :  { %420 = vst.msk [vmem:[%s704_s8] sm:$0xff] %vm322_vm1, %v401_v36 }
 0x2f7   :  { %v521_v37 = vpop.f32.mrf.mxu0 }
 0x2f8   :  { %423 = vst.msk [vmem:[%s704_s8 + $0x18] sm:$0xff] %vm322_vm1, %v521_v37 }
 0x2f9   :  { %v411_v38 = vpop.f32.mrf.mxu0 }
 0x2fa   :  { %422 = vst.msk [vmem:[%s704_s8 + $0x10] sm:$0xff] %vm322_vm1, %v411_v38 }

// kernel: uflow_forward.7
= control target key start
LH: loop header
LB: loop body
LE: loop exit
PB: predicated region body
PF: predicated region fallthrough
CT: control target
= control target key end

     0   :  { %vm57_vm0 = vcmask 62464   ;;  %vm71_vm1 = vcmask 60416   ;;  %v1492_v0 = vmov 0.0   ;;  %s1493_s17 = smov 8   ;;  %s1495_s18 = smov 24   ;;  %vm409_vm2 = vcmask 64512   ;;  %s2108_s0 = inlined_call_operand.vmem [shape: f32[32,16], index: 0, kind: input, shape index: {}]   ;;  %s2109_s1 = inlined_call_operand.vmem [shape: f32[72,8], index: 1, kind: input, shape index: {}]   ;;  %s2110_s2 = inlined_call_operand.vmem [shape: f32[1,8], index: 2, kind: input, shape index: {}]   ;;  %s2111_s3 = inlined_call_operand.vmem [shape: f32[72,16], index: 3, kind: input, shape index: {}]   ;;  %s2112_s4 = inlined_call_operand.vmem [shape: f32[1,16], index: 4, kind: input, shape index: {}]   ;;  %s2113_s7 = inlined_call_operand.vmem [shape: f32[16,16], index: 7, kind: input, shape index: {}]   ;;  %s2114_s5 = inlined_call_operand.vmem [shape: f32[1,16], index: 5, kind: input, shape index: {}]   ;;  %s2115_s6 = inlined_call_operand.vmem [shape: f32[1,16], index: 6, kind: input, shape index: {}]   ;;  %s2116_s9 = inlined_call_operand.vmem [shape: f32[2,128], index: 9, kind: output, shape index: {1}]   ;;  %s2117_s8 = inlined_call_operand.vmem [shape: f32[32,16], index: 8, kind: output, shape index: {0}]  }
   0x1   :  { %58 = vst.msk [vmem:[#allocation2] sm:$0x3f] %vm57_vm0, %v1492_v0  ;;  %59 = vst.msk [vmem:[#allocation2 + $0x8] sm:$0x3f] %vm57_vm0, %v1492_v0  ;;  %v1578_v1 = vld [vmem:[%s2108_s0 + $0x8] sm:$0xff]  ;;  %v1583_v2 = vld [vmem:[%s2108_s0] sm:$0xff] }
   0x2   :  { %60 = vst.msk [vmem:[#allocation2 + $0x10] sm:$0x3f] %vm57_vm0, %v1492_v0  ;;  %61 = vst.msk [vmem:[#allocation2 + $0x18] sm:$0x3f] %vm57_vm0, %v1492_v0  ;;  %v1588_v3 = vld [vmem:[%s2108_s0 + $0x10] sm:$0xff]  ;;  %v39_v4 = vcombine.high %v1583_v2, %v1583_v2  ;;  %v40_v5 = vcombine.high %v1578_v1, %v1578_v1  ;;  %v1605_v7 = vld [vmem:[%s2108_s0 + $0x18] sm:$0xff] }
   0x3   :  { %62 = vst.msk [vmem:[#allocation2 + $0x20] sm:$0x3f] %vm57_vm0, %v1492_v0  ;;  %63 = vst.msk [vmem:[#allocation2 + $0x28] sm:$0x3f] %vm57_vm0, %v1492_v0  ;;  %v41_v6 = vcombine.high %v1588_v3, %v1588_v3  ;;  %v42_v8 = vcombine.high %v1605_v7, %v1605_v7  ;;  %s1494_s0 = smov 16   ;;  %s1496_s19 = smov 32  }
   0x4   :  { %64 = vst.msk [vmem:[#allocation2 + $0x30] sm:$0x3f] %vm57_vm0, %v1492_v0  ;;  %65 = vst.msk [vmem:[#allocation2 + $0x38] sm:$0x3f] %vm57_vm0, %v1492_v0  ;;  %s1497_s20 = smov 40   ;;  %s1498_s21 = smov 48  }
   0x5   :  { %66 = vst.msk [vmem:[#allocation2 + $0x40] sm:$0x3f] %vm57_vm0, %v1492_v0  ;;  %67 = vst.msk [vmem:[#allocation2 + $0x48] sm:$0x3f] %vm57_vm0, %v1492_v0  ;;  %s1499_s22 = smov 56   ;;  %v55_v45 = vld [vmem:[%s2109_s1 + $0x40] sm:$0xff] }
   0x6   :  { %68 = vst.msk [vmem:[#allocation2 + $0x50] sm:$0x3f] %vm57_vm0, %v1492_v0  ;;  %69 = vst.msk [vmem:[#allocation2 + $0x58] sm:$0x3f] %vm57_vm0, %v1492_v0  ;;  %1405 = vmatprep.subr.mxu0 %v55_v45  ;;  %v54_v48 = vld [vmem:[%s2109_s1 + $0x38] sm:$0xff]  ;;  %v53_v49 = vld [vmem:[%s2109_s1 + $0x30] sm:$0xff] }
   0x7   :  { %619 = vst.msk [vmem:[#allocation3] sm:$0x3f] %vm57_vm0, %v1492_v0  ;;  %620 = vst.msk [vmem:[#allocation3 + $0x8] sm:$0x3f] %vm57_vm0, %v1492_v0  ;;  %1406 = vmatpush3.msra.mxu0 %v55_v45  ;;  %v52_v52 = vld [vmem:[%s2109_s1 + $0x28] sm:$0xff]  ;;  %v51_v53 = vld [vmem:[%s2109_s1 + $0x20] sm:$0xff] }
   0x8   :  { %621 = vst.msk [vmem:[#allocation3 + $0x10] sm:$0x3f] %vm57_vm0, %v1492_v0  ;;  %622 = vst.msk [vmem:[#allocation3 + $0x18] sm:$0x3f] %vm57_vm0, %v1492_v0  ;;  %v88_v9 = vld [vmem:[#allocation2 + $0x1] sm:$0xf]  ;;  %1407 = vmatprep.subr.mxu0 %v54_v48 }
   0x9   :  { %623 = vst.msk [vmem:[#allocation3 + $0x20] sm:$0x3f] %vm57_vm0, %v1492_v0  ;;  %624 = vst.msk [vmem:[#allocation3 + $0x28] sm:$0x3f] %vm57_vm0, %v1492_v0  ;;  %161 = vrot.lane.b32.xlu0 %v88_v9, %s1493_s17  ;;  %v96_v11 = vld [vmem:[#allocation2 + $0x2] sm:$0xf]  ;;  %1408 = vmatpush3.msra.mxu0 %v54_v48 }
   0xa   :  { %625 = vst.msk [vmem:[#allocation3 + $0x30] sm:$0x3f] %vm57_vm0, %v1492_v0  ;;  %626 = vst.msk [vmem:[#allocation3 + $0x38] sm:$0x3f] %vm57_vm0, %v1492_v0  ;;  %v132_v42 = vld [vmem:[#allocation2 + $0x28] sm:$0xf]  ;;  %1409 = vmatprep.subr.mxu0 %v53_v49 }
   0xb   :  { %627 = vst.msk [vmem:[#allocation3 + $0x40] sm:$0x3f] %vm57_vm0, %v1492_v0  ;;  %628 = vst.msk [vmem:[#allocation3 + $0x48] sm:$0x3f] %vm57_vm0, %v1492_v0  ;;  %v92_v23 = vld [vmem:[#allocation2 + $0x31] sm:$0xf]  ;;  %1410 = vmatpush3.msra.mxu0 %v53_v49 }
   0xc   :  { %629 = vst.msk [vmem:[#allocation3 + $0x50] sm:$0x3f] %vm57_vm0, %v1492_v0  ;;  %630 = vst.msk [vmem:[#allocation3 + $0x58] sm:$0x3f] %vm57_vm0, %v1492_v0  ;;  %v100_v31 = vld [vmem:[#allocation2 + $0x32] sm:$0xf]  ;;  %1411 = vmatprep.subr.mxu0 %v52_v52 }
   0xd   :  { %74 = vst.msk [vmem:[#allocation2 + $0x19] sm:$0xf] %vm71_vm1, %v1578_v1  ;;  %72 = vst.msk [vmem:[#allocation2 + $0x9] sm:$0xf] %vm71_vm1, %v1583_v2  ;;  %193 = vrot.lane.b32.xlu0 %v96_v11, %s1494_s0  ;;  %1412 = vmatpush3.msra.mxu0 %v52_v52  ;;  %v140_v55 = vld [vmem:[#allocation2 + $0x29] sm:$0xf] }
   0xe   :  { %76 = vst.msk [vmem:[#allocation2 + $0x39] sm:$0xf] %vm71_vm1, %v1588_v3  ;;  %78 = vst.msk [vmem:[#allocation2 + $0x49] sm:$0xf] %vm71_vm1, %v1605_v7  ;;  %1413 = vmatprep.subr.mxu0 %v51_v53  ;;  %v50_v56 = vld [vmem:[%s2109_s1 + $0x18] sm:$0xff]  ;;  %v49_v57 = vld [vmem:[%s2109_s1 + $0x10] sm:$0xff] }
   0xf   :  { %73 = vst.msk [vmem:[#allocation2 + $0x11] sm:$0xf] %vm71_vm1, %v39_v4  ;;  %75 = vst.msk [vmem:[#allocation2 + $0x21] sm:$0xf] %vm71_vm1, %v40_v5  ;;  %1414 = vmatpush3.msra.mxu0 %v51_v53  ;;  %v48_v60 = vld [vmem:[%s2109_s1 + $0x8] sm:$0xff]  ;;  %s1500_s24 = smov 64  }
  0x10   :  { %77 = vst.msk [vmem:[#allocation2 + $0x41] sm:$0xf] %vm71_vm1, %v41_v6  ;;  %79 = vst.msk [vmem:[#allocation2 + $0x51] sm:$0xf] %vm71_vm1, %v42_v8  ;;  %1415 = vmatprep.subr.mxu0 %v50_v56  ;;  %v47_v61 = vld [vmem:[%s2109_s1] sm:$0xff]  ;;  %vm418_vm3 = vcmask 130048  }
  0x11   :  { %1416 = vmatpush3.msra.mxu0 %v50_v56  ;;  %v148_v6 = vld [vmem:[#allocation2 + $0x2a] sm:$0xf]  ;;  %vm427_vm4 = vcmask 195584   ;;  %vm436_vm5 = vcmask 261120   ;;  %vm445_vm6 = vcmask 326656   ;;  %vm454_vm7 = vcmask 392192  }
  0x12   :  { %1417 = vmatprep.subr.mxu0 %v49_v57  ;;  %vm463_vm8 = vcmask 457728   ;;  %vm472_vm9 = vcmask 523264   ;;  %vm499_vm10 = vcmask 588800   ;;  %vm1345_vm11 = vcmask 1041409  }
  0x13   :  { %1418 = vmatpush3.msra.mxu0 %v49_v57 }
  0x14   :  { %v91_v10 = vld [vmem:[#allocation2 + $0x19] sm:$0xf]  ;;  %v97_v12 = vld [vmem:[#allocation2 + $0xa] sm:$0xf]  ;;  %1419 = vmatprep.subr.mxu0 %v48_v60 }
  0x15   :  { %167 = vrot.lane.b32.xlu1 %v91_v10, %s1493_s17  ;;  %v89_v13 = vld [vmem:[#allocation2 + $0x9] sm:$0xf]  ;;  %v99_v14 = vld [vmem:[#allocation2 + $0x1a] sm:$0xf]  ;;  %1420 = vmatpush3.msra.mxu0 %v48_v60 }
  0x16   :  { %163 = vrot.lane.b32.xlu0 %v89_v13, %s1493_s17  ;;  %v98_v15 = vld [vmem:[#allocation2 + $0x12] sm:$0xf]  ;;  %v104_v17 = vld [vmem:[#allocation2 + $0x8] sm:$0xf]  ;;  %v106_v19 = vld [vmem:[#allocation2 + $0x18] sm:$0xf]  ;;  %1421 = vmatprep.subr.mxu0 %v47_v61 }
  0x17   :  { %v90_v16 = vld [vmem:[#allocation2 + $0x11] sm:$0xf]  ;;  %v107_v20 = vld [vmem:[#allocation2 + $0x20] sm:$0xf]  ;;  %v112_v21 = vld [vmem:[#allocation2 + $0x9] sm:$0xf]  ;;  %1422 = vmatpush3.msra.mxu0 %v47_v61 }
  0x18   :  { %v105_v18 = vld [vmem:[#allocation2 + $0x10] sm:$0xf]  ;;  %v93_v24 = vld [vmem:[#allocation2 + $0x39] sm:$0xf]  ;;  %v115_v26 = vld [vmem:[#allocation2 + $0x21] sm:$0xf] }
  0x19   :  { %195 = vrot.lane.b32.xlu1 %v97_v12, %s1494_s0  ;;  %v113_v22 = vld [vmem:[#allocation2 + $0x11] sm:$0xf]  ;;  %v114_v25 = vld [vmem:[#allocation2 + $0x19] sm:$0xf]  ;;  %v120_v27 = vld [vmem:[#allocation2 + $0xa] sm:$0xf] }
  0x1a   :  { %197 = vrot.lane.b32.xlu0 %v98_v15, %s1494_s0  ;;  %v121_v28 = vld [vmem:[#allocation2 + $0x12] sm:$0xf]  ;;  %v94_v29 = vld [vmem:[#allocation2 + $0x41] sm:$0xf]  ;;  %v95_v30 = vld [vmem:[#allocation2 + $0x49] sm:$0xf] }
  0x1b   :  { %v101_v32 = vld [vmem:[#allocation2 + $0x3a] sm:$0xf]  ;;  %v123_v34 = vld [vmem:[#allocation2 + $0x22] sm:$0xf]  ;;  %v129_v35 = vld [vmem:[#allocation2 + $0x10] sm:$0xf] }
  0x1c   :  { %v122_v33 = vld [vmem:[#allocation2 + $0x1a] sm:$0xf]  ;;  %v102_v37 = vld [vmem:[#allocation2 + $0x42] sm:$0xf]  ;;  %v103_v38 = vld [vmem:[#allocation2 + $0x4a] sm:$0xf] }
  0x1d   :  { %199 = vrot.lane.b32.xlu1 %v99_v14, %s1494_s0  ;;  %v130_v36 = vld [vmem:[#allocation2 + $0x18] sm:$0xf]  ;;  %v109_v40 = vld [vmem:[#allocation2 + $0x40] sm:$0xf]  ;;  %v137_v43 = vld [vmem:[#allocation2 + $0x11] sm:$0xf] }
  0x1e   :  { %225 = vrot.lane.b32.xlu0 %v104_v17, %s1495_s18  ;;  %v108_v39 = vld [vmem:[#allocation2 + $0x38] sm:$0xf]  ;;  %v131_v41 = vld [vmem:[#allocation2 + $0x20] sm:$0xf]  ;;  %v110_v46 = vld [vmem:[#allocation2 + $0x48] sm:$0xf] }
  0x1f   :  { %v138_v44 = vld [vmem:[#allocation2 + $0x19] sm:$0xf]  ;;  %v111_v47 = vld [vmem:[#allocation2 + $0x50] sm:$0xf]  ;;  %v117_v51 = vld [vmem:[#allocation2 + $0x41] sm:$0xf] }
  0x20   :  { %v116_v50 = vld [vmem:[#allocation2 + $0x39] sm:$0xf]  ;;  %v139_v54 = vld [vmem:[#allocation2 + $0x21] sm:$0xf]  ;;  %v145_v58 = vld [vmem:[#allocation2 + $0x12] sm:$0xf] }
  0x21   :  { %165 = vrot.lane.b32.xlu1 %v90_v16, %s1493_s17  ;;  %v146_v59 = vld [vmem:[#allocation2 + $0x1a] sm:$0xf]  ;;  %v118_v62 = vld [vmem:[#allocation2 + $0x49] sm:$0xf]  ;;  %v119_v63 = vld [vmem:[#allocation2 + $0x51] sm:$0xf] }
  0x22   :  { %229 = vrot.lane.b32.xlu0 %v106_v19, %s1495_s18  ;;  %v124_v0 = vld [vmem:[#allocation2 + $0x3a] sm:$0xf]  ;;  %v125_v4 = vld [vmem:[#allocation2 + $0x42] sm:$0xf]  ;;  %v126_v8 = vld [vmem:[#allocation2 + $0x4a] sm:$0xf] }
  0x23   :  { %v147_v5 = vld [vmem:[#allocation2 + $0x22] sm:$0xf]  ;;  %v127_v9 = vld [vmem:[#allocation2 + $0x52] sm:$0xf]  ;;  %v134_v11 = vld [vmem:[#allocation2 + $0x48] sm:$0xf] }
  0x24   :  { %v133_v10 = vld [vmem:[#allocation2 + $0x40] sm:$0xf]  ;;  %v135_v12 = vld [vmem:[#allocation2 + $0x50] sm:$0xf]  ;;  %v136_v13 = vld [vmem:[#allocation2 + $0x58] sm:$0xf] }
  0x25   :  { %227 = vrot.lane.b32.xlu1 %v105_v18, %s1495_s18  ;;  %v141_v14 = vld [vmem:[#allocation2 + $0x41] sm:$0xf]  ;;  %v142_v15 = vld [vmem:[#allocation2 + $0x49] sm:$0xf]  ;;  %v143_v16 = vld [vmem:[#allocation2 + $0x51] sm:$0xf] }
  0x26   :  { %257 = vrot.lane.b32.xlu0 %v112_v21, %s1496_s19  ;;  %v144_v18 = vld [vmem:[#allocation2 + $0x59] sm:$0xf] }
  0x29   :  { %231 = vrot.lane.b32.xlu1 %v107_v20, %s1495_s18  ;;  %v149_v20 = vld [vmem:[#allocation2 + $0x42] sm:$0xf] }
  0x2a   :  { %169 = vrot.lane.b32.xlu0 %v92_v23, %s1493_s17 }
  0x2d   :  { %259 = vrot.lane.b32.xlu1 %v113_v22, %s1496_s19  ;;  %v150_v22 = vld [vmem:[#allocation2 + $0x4a] sm:$0xf] }
  0x2e   :  { %261 = vrot.lane.b32.xlu0 %v114_v25, %s1496_s19 }
  0x31   :  { %171 = vrot.lane.b32.xlu1 %v93_v24, %s1493_s17  ;;  %v151_v24 = vld [vmem:[#allocation2 + $0x52] sm:$0xf] }
  0x32   :  { %289 = vrot.lane.b32.xlu0 %v120_v27, %s1497_s20 }
  0x35   :  { %263 = vrot.lane.b32.xlu1 %v115_v26, %s1496_s19  ;;  %v152_v26 = vld [vmem:[#allocation2 + $0x5a] sm:$0xf] }
  0x36   :  { %173 = vrot.lane.b32.xlu0 %v94_v29, %s1493_s17 }
  0x39   :  { %291 = vrot.lane.b32.xlu1 %v121_v28, %s1497_s20  ;;  %v648_v28 = vld [vmem:[#allocation3 + $0x1] sm:$0xf] }
  0x3a   :  { %201 = vrot.lane.b32.xlu0 %v100_v31, %s1494_s0 }
  0x3d   :  { %175 = vrot.lane.b32.xlu1 %v95_v30, %s1493_s17  ;;  %v692_v30 = vld [vmem:[#allocation3 + $0x28] sm:$0xf] }
  0x3e   :  { %293 = vrot.lane.b32.xlu0 %v122_v33, %s1497_s20 }
  0x41   :  { %203 = vrot.lane.b32.xlu1 %v101_v32, %s1494_s0  ;;  %v656_v32 = vld [vmem:[#allocation3 + $0x2] sm:$0xf] }
  0x42   :  { %321 = vrot.lane.b32.xlu0 %v129_v35, %s1498_s21 }
  0x45   :  { %295 = vrot.lane.b32.xlu1 %v123_v34, %s1497_s20  ;;  %v700_v34 = vld [vmem:[#allocation3 + $0x29] sm:$0xf] }
  0x46   :  { %205 = vrot.lane.b32.xlu0 %v102_v37, %s1494_s0 }
  0x49   :  { %323 = vrot.lane.b32.xlu1 %v130_v36, %s1498_s21 }
  0x4a   :  { %233 = vrot.lane.b32.xlu0 %v108_v39, %s1495_s18 }
  0x4d   :  { %207 = vrot.lane.b32.xlu1 %v103_v38, %s1494_s0 }
  0x4e   :  { %325 = vrot.lane.b32.xlu0 %v131_v41, %s1498_s21 }
  0x51   :  { %235 = vrot.lane.b32.xlu1 %v109_v40, %s1495_s18 }
  0x52   :  { %353 = vrot.lane.b32.xlu0 %v137_v43, %s1499_s22 }
  0x55   :  { %327 = vrot.lane.b32.xlu1 %v132_v42, %s1498_s21 }
  0x56   :  { %237 = vrot.lane.b32.xlu0 %v110_v46, %s1495_s18 }
  0x59   :  { %355 = vrot.lane.b32.xlu1 %v138_v44, %s1499_s22 }
  0x5a   :  { %265 = vrot.lane.b32.xlu0 %v116_v50, %s1496_s19 }
  0x5d   :  { %239 = vrot.lane.b32.xlu1 %v111_v47, %s1495_s18 }
  0x5e   :  { %357 = vrot.lane.b32.xlu0 %v139_v54, %s1499_s22 }
  0x61   :  { %267 = vrot.lane.b32.xlu1 %v117_v51, %s1496_s19 }
  0x62   :  { %385 = vrot.lane.b32.xlu0 %v145_v58, %s1500_s24 }
  0x65   :  { %359 = vrot.lane.b32.xlu1 %v140_v55, %s1499_s22 }
  0x66   :  { %269 = vrot.lane.b32.xlu0 %v118_v62, %s1496_s19 }
  0x69   :  { %387 = vrot.lane.b32.xlu1 %v146_v59, %s1500_s24 }
  0x6a   :  { %297 = vrot.lane.b32.xlu0 %v124_v0, %s1497_s20  ;;  %v81_v0 = vld [vmem:[#allocation2 + $0x8] sm:$0xf] }
  0x6d   :  { %271 = vrot.lane.b32.xlu1 %v119_v63, %s1496_s19 }
  0x6e   :  { %389 = vrot.lane.b32.xlu0 %v147_v5, %s1500_s24 }
  0x71   :  { %299 = vrot.lane.b32.xlu1 %v125_v4, %s1497_s20  ;;  %v80_v4 = vld [vmem:[#allocation2] sm:$0xf] }
  0x72   :  { %301 = vrot.lane.b32.xlu0 %v126_v8, %s1497_s20 }
  0x75   :  { %391 = vrot.lane.b32.xlu1 %v148_v6, %s1500_s24 }
  0x76   :  { %329 = vrot.lane.b32.xlu0 %v133_v10, %s1498_s21 }
  0x79   :  { %303 = vrot.lane.b32.xlu1 %v127_v9, %s1497_s20 }
  0x7a   :  { %333 = vrot.lane.b32.xlu0 %v135_v12, %s1498_s21 }
  0x7b   :  { %v1700_v17 = vpop.permute.xlu0 %161 }
  0x7c   :  { %v410_v9 = vsel %vm409_vm2, %v80_v4, %v1700_v17 }
  0x7d   :  { %331 = vrot.lane.b32.xlu1 %v134_v11, %s1498_s21 }
  0x7e   :  { %361 = vrot.lane.b32.xlu0 %v141_v14, %s1499_s22 }
  0x7f   :  { %v194_v21 = vpop.permute.xlu0 %193 }
  0x80   :  { %v419_v10 = vsel %vm418_vm3, %v410_v9, %v194_v21 }
  0x81   :  { %335 = vrot.lane.b32.xlu1 %v136_v13, %s1498_s21 }
  0x82   :  { %365 = vrot.lane.b32.xlu0 %v143_v16, %s1499_s22 }
  0x85   :  { %363 = vrot.lane.b32.xlu1 %v142_v15, %s1499_s22 }
  0x86   :  { %393 = vrot.lane.b32.xlu0 %v149_v20, %s1500_s24 }
  0x87   :  { %v1702_v19 = vpop.permute.xlu1 %167 }
  0x88   :  { %v164_v25 = vpop.permute.xlu0 %163 }
  0x89   :  { %367 = vrot.lane.b32.xlu1 %v144_v18, %s1499_s22  ;;  %v411_v6 = vsel %vm409_vm2, %v81_v0, %v164_v25  ;;  %v82_v25 = vld [vmem:[#allocation2 + $0x10] sm:$0xf] }
  0x8a   :  { %397 = vrot.lane.b32.xlu0 %v151_v24, %s1500_s24 }
  0x8b   :  { %v1706_v23 = vpop.permute.xlu1 %195 }
  0x8c   :  { %v1714_v29 = vpop.permute.xlu0 %197  ;;  %v420_v12 = vsel %vm418_vm3, %v411_v6, %v1706_v23 }
  0x8d   :  { %395 = vrot.lane.b32.xlu1 %v150_v22, %s1500_s24 }
  0x8e   :  { %721 = vrot.lane.b32.xlu0 %v648_v28, %s1493_s17 }
  0x8f   :  { %v1710_v27 = vpop.permute.xlu1 %199 }
  0x90   :  { %v226_v33 = vpop.permute.xlu0 %225 }
  0x91   :  { %399 = vrot.lane.b32.xlu1 %v152_v26, %s1500_s24  ;;  %v428_v11 = vsel %vm427_vm4, %v419_v10, %v226_v33 }
  0x92   :  { %753 = vrot.lane.b32.xlu0 %v656_v32, %s1494_s0 }
  0x93   :  { %v1716_v31 = vpop.permute.xlu1 %165 }
  0x94   :  { %v1722_v36 = vpop.permute.xlu0 %229 }
  0x95   :  { %887 = vrot.lane.b32.xlu1 %v692_v30, %s1498_s21 }
  0x97   :  { %v228_v35 = vpop.permute.xlu1 %227 }
  0x98   :  { %v258_v38 = vpop.permute.xlu0 %257  ;;  %v429_v14 = vsel %vm427_vm4, %v420_v12, %v228_v35  ;;  %v412_v35 = vsel %vm409_vm2, %v82_v25, %v1716_v31 }
  0x99   :  { %919 = vrot.lane.b32.xlu1 %v700_v34, %s1499_s22  ;;  %v437_v15 = vsel %vm436_vm5, %v428_v11, %v258_v38  ;;  %v83_v34 = vld [vmem:[#allocation2 + $0x18] sm:$0xf] }
  0x9b   :  { %v1724_v37 = vpop.permute.xlu1 %231 }
  0x9c   :  { %v1726_v40 = vpop.permute.xlu0 %169 }
  0x9f   :  { %v260_v39 = vpop.permute.xlu1 %259 }
  0xa0   :  { %v1730_v42 = vpop.permute.xlu0 %261  ;;  %v438_v18 = vsel %vm436_vm5, %v429_v14, %v260_v39 }
  0xa3   :  { %v1728_v41 = vpop.permute.xlu1 %171 }
  0xa4   :  { %v290_v44 = vpop.permute.xlu0 %289 }
  0xa5   :  { %v446_v17 = vsel %vm445_vm6, %v437_v15, %v290_v44  ;;  %v413_v44 = vsel %vm409_vm2, %v83_v34, %v1702_v19 }
  0xa7   :  { %v1732_v43 = vpop.permute.xlu1 %263 }
  0xa8   :  { %v1734_v46 = vpop.permute.xlu0 %173 }
  0xab   :  { %v292_v45 = vpop.permute.xlu1 %291 }
  0xac   :  { %v1738_v48 = vpop.permute.xlu0 %201  ;;  %v447_v20 = vsel %vm445_vm6, %v438_v18, %v292_v45  ;;  %v421_v45 = vsel %vm418_vm3, %v412_v35, %v1714_v29  ;;  %v85_v18 = vld [vmem:[#allocation2 + $0x38] sm:$0xf] }
  0xaf   :  { %v1736_v47 = vpop.permute.xlu1 %175 }
  0xb0   :  { %v1742_v50 = vpop.permute.xlu0 %293 }
  0xb3   :  { %v1740_v49 = vpop.permute.xlu1 %203 }
  0xb4   :  { %v322_v52 = vpop.permute.xlu0 %321 }
  0xb5   :  { %v455_v21 = vsel %vm454_vm7, %v446_v17, %v322_v52  ;;  %v422_v52 = vsel %vm418_vm3, %v413_v44, %v1710_v27 }
  0xb6   :  { %v431_v31 = vsel %vm427_vm4, %v422_v52, %v1724_v37 }
  0xb7   :  { %v1744_v51 = vpop.permute.xlu1 %295  ;;  %v440_v19 = vsel %vm436_vm5, %v431_v31, %v1732_v43 }
  0xb8   :  { %v1746_v54 = vpop.permute.xlu0 %205  ;;  %v449_v27 = vsel %vm445_vm6, %v440_v19, %v1744_v51 }
  0xbb   :  { %v324_v53 = vpop.permute.xlu1 %323 }
  0xbc   :  { %v1750_v56 = vpop.permute.xlu0 %233  ;;  %v456_v22 = vsel %vm454_vm7, %v447_v20, %v324_v53  ;;  %v430_v53 = vsel %vm427_vm4, %v421_v45, %v1722_v36  ;;  %v415_v20 = vsel %vm409_vm2, %v85_v18, %v1728_v41 }
  0xbf   :  { %v1748_v55 = vpop.permute.xlu1 %207 }
  0xc0   :  { %v326_v58 = vpop.permute.xlu0 %325 }
  0xc3   :  { %v1752_v57 = vpop.permute.xlu1 %235 }
  0xc4   :  { %v354_v60 = vpop.permute.xlu0 %353 }
  0xc5   :  { %v464_v23 = vsel %vm463_vm8, %v455_v21, %v354_v60  ;;  %v86_v21 = vld [vmem:[#allocation2 + $0x40] sm:$0xf] }
  0xc6   :  { %v416_v41 = vsel %vm409_vm2, %v86_v21, %v1734_v46 }
  0xc7   :  { %v328_v59 = vpop.permute.xlu1 %327 }
  0xc8   :  { %v1754_v62 = vpop.permute.xlu0 %237  ;;  %v458_v36 = vsel %vm454_vm7, %v449_v27, %v328_v59  ;;  %v84_v59 = vld [vmem:[#allocation2 + $0x30] sm:$0xf] }
  0xcb   :  { %v356_v61 = vpop.permute.xlu1 %355 }
  0xcc   :  { %v1758_v5 = vpop.permute.xlu0 %265  ;;  %v465_v26 = vsel %vm463_vm8, %v456_v22, %v356_v61  ;;  %v439_v61 = vsel %vm436_vm5, %v430_v53, %v1730_v42 }
  0xcd   :  { %v448_v29 = vsel %vm445_vm6, %v439_v61, %v1742_v50 }
  0xce   :  { %v457_v4 = vsel %vm454_vm7, %v448_v29, %v326_v58 }
  0xcf   :  { %v1756_v63 = vpop.permute.xlu1 %239 }
  0xd0   :  { %v358_v13 = vpop.permute.xlu0 %357 }
  0xd1   :  { %v466_v6 = vsel %vm463_vm8, %v457_v4, %v358_v13 }
  0xd3   :  { %v1761_v8 = vpop.permute.xlu1 %267 }
  0xd4   :  { %v386_v24 = vpop.permute.xlu0 %385 }
  0xd5   :  { %v473_v28 = vsel %vm472_vm9, %v464_v23, %v386_v24  ;;  %v87_v23 = vld [vmem:[#allocation2 + $0x48] sm:$0xf]  ;;  %v424_v24 = vsel %vm418_vm3, %v415_v20, %v1740_v49 }
  0xd6   :  { %v417_v49 = vsel %vm409_vm2, %v87_v23, %v1736_v47 }
  0xd7   :  { %v360_v16 = vpop.permute.xlu1 %359 }
  0xd8   :  { %v270_v38 = vpop.permute.xlu0 %269  ;;  %v467_v9 = vsel %vm463_vm8, %v458_v36, %v360_v16  ;;  %v414_v16 = vsel %vm409_vm2, %v84_v59, %v1726_v40  ;;  %v708_v36 = vld [vmem:[#allocation3 + $0x2a] sm:$0xf] }
  0xd9   :  { %v423_v22 = vsel %vm418_vm3, %v414_v16, %v1738_v48  ;;  %951 = vrot.lane.b32.xlu1 %v708_v36, %s1500_s24  ;;  %v609_v36 = vld [vmem:[%s2111_s3] sm:$0xff] }
  0xda   :  { %v432_v25 = vsel %vm427_vm4, %v423_v22, %v1750_v56  ;;  %v425_v56 = vsel %vm418_vm3, %v416_v41, %v1746_v54 }
  0xdb   :  { %v388_v30 = vpop.permute.xlu1 %387  ;;  %v441_v40 = vsel %vm436_vm5, %v432_v25, %v1758_v5  ;;  %v426_v5 = vsel %vm418_vm3, %v417_v49, %v1748_v55  ;;  %v434_v46 = vsel %vm427_vm4, %v425_v56, %v1754_v62 }
  0xdc   :  { %v474_v32 = vsel %vm472_vm9, %v465_v26, %v388_v30  ;;  %v298_v60 = vpop.permute.xlu0 %297  ;;  %v435_v47 = vsel %vm427_vm4, %v426_v5, %v1756_v63  ;;  %v443_v54 = vsel %vm436_vm5, %v434_v46, %v270_v38 }
  0xdd   :  { %v495_v33 = vcombine.low %v473_v28, %v474_v32  ;;  %v433_v28 = vsel %vm427_vm4, %v424_v24, %v1752_v57  ;;  %v450_v32 = vsel %vm445_vm6, %v441_v40, %v298_v60 }
  0xde   :  { %v442_v48 = vsel %vm436_vm5, %v433_v28, %v1761_v8 }
  0xdf   :  { %1423 = vmatprep.mubr.msk.f32.mxu0 %vm499_vm10, %v495_v33  ;;  %v272_v39 = vpop.permute.xlu1 %271 }
  0xe0   :  { %v390_v37 = vpop.permute.xlu0 %389  ;;  %v444_v55 = vsel %vm436_vm5, %v435_v47, %v272_v39 }
  0xe1   :  { %v475_v42 = vsel %vm472_vm9, %v466_v6, %v390_v37  ;;  %v652_v6 = vld [vmem:[#allocation3 + $0x31] sm:$0xf]  ;;  %v696_v37 = vld [vmem:[#allocation3 + $0x58] sm:$0xf] }
  0xe2   :  { %729 = vrot.lane.b32.xlu0 %v652_v6, %s1493_s17  ;;  %895 = vrot.lane.b32.xlu1 %v696_v37, %s1498_s21 }
  0xe3   :  { %v300_v0 = vpop.permute.xlu1 %299 }
  0xe4   :  { %v302_v12 = vpop.permute.xlu0 %301  ;;  %v451_v57 = vsel %vm445_vm6, %v442_v48, %v300_v0 }
  0xe5   :  { %v452_v53 = vsel %vm445_vm6, %v443_v54, %v302_v12  ;;  %v617_v54 = vld [vmem:[%s2111_s3 + $0x40] sm:$0xff] }
  0xe6   :  { %1429 = vmatprep.subr.mxu1 %v617_v54 }
  0xe7   :  { %v392_v10 = vpop.permute.xlu1 %391  ;;  %1430 = vmatpush3.msra.mxu1 %v617_v54 }
  0xe8   :  { %v476_v43 = vsel %vm472_vm9, %v467_v9, %v392_v10  ;;  %v330_v51 = vpop.permute.xlu0 %329  ;;  %v660_v9 = vld [vmem:[#allocation3 + $0x32] sm:$0xf]  ;;  %v1357_v10 = vld [vmem:[%s2110_s2] ss:$0 sm:$0xff] }
  0xe9   :  { %v496_v11 = vcombine.low %v475_v42, %v476_v43  ;;  %v459_v33 = vsel %vm454_vm7, %v450_v32, %v330_v51  ;;  %761 = vrot.lane.b32.xlu0 %v660_v9, %s1494_s0  ;;  %v704_v42 = vld [vmem:[#allocation3 + $0x59] sm:$0xf] }
  0xea   :  { %927 = vrot.lane.b32.xlu1 %v704_v42, %s1499_s22 }
  0xeb   :  { %v304_v50 = vpop.permute.xlu1 %303  ;;  %1424 = vmatmul.mubr.msk.f32.vlgmr.msra.gmra.mxu0 %vm499_vm10, %v496_v11 }
  0xec   :  { %v334_v58 = vpop.permute.xlu0 %333  ;;  %v453_v60 = vsel %vm445_vm6, %v444_v55, %v304_v50  ;;  %v615_v55 = vld [vmem:[%s2111_s3 + $0x30] sm:$0xff] }
  0xed   :  { %v461_v31 = vsel %vm454_vm7, %v452_v53, %v334_v58  ;;  %v614_v53 = vld [vmem:[%s2111_s3 + $0x28] sm:$0xff] }
  0xef   :  { %v332_v14 = vpop.permute.xlu1 %331 }
  0xf0   :  { %v362_v13 = vpop.permute.xlu0 %361  ;;  %v460_v8 = vsel %vm454_vm7, %v451_v57, %v332_v14 }
  0xf1   :  { %v468_v34 = vsel %vm463_vm8, %v459_v33, %v362_v13 }
  0xf3   :  { %v336_v15 = vpop.permute.xlu1 %335 }
  0xf4   :  { %v366_v26 = vpop.permute.xlu0 %365  ;;  %v462_v63 = vsel %vm454_vm7, %v453_v60, %v336_v15 }
  0xf5   :  { %v470_v38 = vsel %vm463_vm8, %v461_v31, %v366_v26  ;;  %v613_v31 = vld [vmem:[%s2111_s3 + $0x20] sm:$0xff] }
  0xf7   :  { %v364_v17 = vpop.permute.xlu1 %363 }
  0xf8   :  { %v394_v35 = vpop.permute.xlu0 %393  ;;  %v469_v44 = vsel %vm463_vm8, %v460_v8, %v364_v17 }
  0xf9   :  { %v477_v45 = vsel %vm472_vm9, %v468_v34, %v394_v35 }
  0xfb   :  { %v368_v30 = vpop.permute.xlu1 %367 }
  0xfc   :  { %v398_v0 = vpop.permute.xlu0 %397  ;;  %v471_v19 = vsel %vm463_vm8, %v462_v63, %v368_v30 }
  0xfd   :  { %v479_v29 = vsel %vm472_vm9, %v470_v38, %v398_v0  ;;  %v612_v38 = vld [vmem:[%s2111_s3 + $0x18] sm:$0xff]  ;;  %v611_v0 = vld [vmem:[%s2111_s3 + $0x10] sm:$0xff] }
  0xff   :  { %v396_v52 = vpop.permute.xlu1 %395 }
 0x100   :  { %v478_v62 = vsel %vm472_vm9, %v469_v44, %v396_v52  ;;  %v616_v44 = vld [vmem:[%s2111_s3 + $0x38] sm:$0xff] }
 0x101   :  { %v497_v61 = vcombine.low %v477_v45, %v478_v62  ;;  %1431 = vmatprep.subr.mxu1 %v616_v44 }
 0x102   :  { %1432 = vmatpush3.msra.mxu1 %v616_v44 }
 0x103   :  { %v400_v27 = vpop.permute.xlu1 %399  ;;  %1426 = vmatprep.mubr.msk.f32.mxu0 %vm499_vm10, %v497_v61  ;;  %1433 = vmatprep.subr.mxu1 %v615_v55 }
 0x104   :  { %v480_v39 = vsel %vm472_vm9, %v471_v19, %v400_v27  ;;  %1434 = vmatpush3.msra.mxu1 %v615_v55  ;;  %v610_v27 = vld [vmem:[%s2111_s3 + $0x8] sm:$0xff] }
 0x105   :  { %v498_v4 = vcombine.low %v479_v29, %v480_v39  ;;  %1435 = vmatprep.subr.mxu1 %v614_v53 }
 0x106   :  { %1436 = vmatpush3.msra.mxu1 %v614_v53 }
 0x107   :  { %1427 = vmatmul.mubr.msk.f32.gmra.mxu0 %vm499_vm10, %v498_v4  ;;  %1437 = vmatprep.subr.mxu1 %v613_v31 }
 0x108   :  { %1438 = vmatpush3.msra.mxu1 %v613_v31 }
 0x109   :  { %1439 = vmatprep.subr.mxu1 %v612_v38 }
 0x10a   :  { %1440 = vmatpush3.msra.mxu1 %v612_v38 }
 0x10b   :  { %1441 = vmatprep.subr.mxu1 %v611_v0 }
 0x10c   :  { %1442 = vmatpush3.msra.mxu1 %v611_v0 }
 0x10d   :  { %1443 = vmatprep.subr.mxu1 %v610_v27 }
 0x10e   :  { %1444 = vmatpush3.msra.mxu1 %v610_v27 }
 0x10f   :  { %1445 = vmatprep.subr.mxu1 %v609_v36 }
 0x110   :  { %1446 = vmatpush3.msra.mxu1 %v609_v36 }
 0x1ab   :  { %v1425_v43 = vpop.f32.mrf.mxu0 }
 0x1ac   :  { %v580_v11 = vadd.f32 %v1425_v43, %v1357_v10 }
 0x1ad   :  { %v574_v12 = vpop.f32.mrf.mxu0 }
 0x1ae   :  { %v594_v50 = vmax.f32 %v580_v11, 0.0  ;;  %v575_v51 = vadd.f32 %v1357_v10, %v574_v12 }
 0x1b0   :  { %v602_v14 = vcombine.high %v594_v50, %v594_v50  ;;  %634 = vst.msk [vmem:[#allocation3 + $0x19] sm:$0xf] %vm71_vm1, %v594_v50  ;;  %v593_v58 = vmax.f32 %v575_v51, 0.0 }
 0x1b2   :  { %635 = vst.msk [vmem:[#allocation3 + $0x21] sm:$0xf] %vm71_vm1, %v602_v14  ;;  %v601_v15 = vcombine.high %v593_v58, %v593_v58  ;;  %632 = vst.msk [vmem:[#allocation3 + $0x9] sm:$0xf] %vm71_vm1, %v593_v58 }
 0x1b4   :  { %633 = vst.msk [vmem:[#allocation3 + $0x11] sm:$0xf] %vm71_vm1, %v601_v15 }
 0x1b7   :  { %v666_v59 = vld [vmem:[#allocation3 + $0x18] sm:$0xf] }
 0x1b8   :  { %v651_v18 = vld [vmem:[#allocation3 + $0x19] sm:$0xf]  ;;  %789 = vrot.lane.b32.xlu0 %v666_v59, %s1495_s18 }
 0x1b9   :  { %727 = vrot.lane.b32.xlu1 %v651_v18, %s1493_s17  ;;  %v674_v13 = vld [vmem:[#allocation3 + $0x19] sm:$0xf]  ;;  %v664_v22 = vld [vmem:[#allocation3 + $0x8] sm:$0xf]  ;;  %v691_v57 = vld [vmem:[#allocation3 + $0x20] sm:$0xf]  ;;  %v1943_v18 = vpop.permute.xlu1 %887 }
 0x1ba   :  { %v659_v17 = vld [vmem:[#allocation3 + $0x1a] sm:$0xf]  ;;  %v672_v25 = vld [vmem:[#allocation3 + $0x9] sm:$0xf]  ;;  %v699_v5 = vld [vmem:[#allocation3 + $0x21] sm:$0xf] }
 0x1bb   :  { %v682_v16 = vld [vmem:[#allocation3 + $0x1a] sm:$0xf]  ;;  %v680_v41 = vld [vmem:[#allocation3 + $0xa] sm:$0xf]  ;;  %v667_v46 = vld [vmem:[#allocation3 + $0x20] sm:$0xf] }
 0x1bc   :  { %821 = vrot.lane.b32.xlu0 %v674_v13, %s1496_s19  ;;  %v690_v20 = vld [vmem:[#allocation3 + $0x18] sm:$0xf]  ;;  %v649_v48 = vld [vmem:[#allocation3 + $0x9] sm:$0xf]  ;;  %v707_v8 = vld [vmem:[#allocation3 + $0x22] sm:$0xf] }
 0x1bd   :  { %759 = vrot.lane.b32.xlu1 %v659_v17, %s1494_s0  ;;  %v698_v21 = vld [vmem:[#allocation3 + $0x19] sm:$0xf]  ;;  %v657_v33 = vld [vmem:[#allocation3 + $0xa] sm:$0xf]  ;;  %v675_v34 = vld [vmem:[#allocation3 + $0x21] sm:$0xf] }
 0x1be   :  { %v706_v24 = vld [vmem:[#allocation3 + $0x1a] sm:$0xf]  ;;  %v683_v35 = vld [vmem:[#allocation3 + $0x22] sm:$0xf]  ;;  %v650_v47 = vld [vmem:[#allocation3 + $0x11] sm:$0xf] }
 0x1bf   :  { %v665_v45 = vld [vmem:[#allocation3 + $0x10] sm:$0xf] }
 0x1c0   :  { %853 = vrot.lane.b32.xlu0 %v682_v16, %s1497_s20  ;;  %v658_v52 = vld [vmem:[#allocation3 + $0x12] sm:$0xf]  ;;  %v1947_v16 = vpop.permute.xlu1 %919 }
 0x1c1   :  { %883 = vrot.lane.b32.xlu1 %v690_v20, %s1498_s21  ;;  %v673_v62 = vld [vmem:[#allocation3 + $0x11] sm:$0xf] }
 0x1c2   :  { %v689_v60 = vld [vmem:[#allocation3 + $0x10] sm:$0xf] }
 0x1c3   :  { %v681_v61 = vld [vmem:[#allocation3 + $0x12] sm:$0xf] }
 0x1c4   :  { %785 = vrot.lane.b32.xlu0 %v664_v22, %s1495_s18  ;;  %v697_v63 = vld [vmem:[#allocation3 + $0x11] sm:$0xf]  ;;  %v722_v22 = vpop.permute.xlu0 %721 }
 0x1c5   :  { %915 = vrot.lane.b32.xlu1 %v698_v21, %s1499_s22  ;;  %v705_v4 = vld [vmem:[#allocation3 + $0x12] sm:$0xf] }
 0x1c7   :  { %v1428_v23 = vpop.f32.mrf.mxu0 }
 0x1c8   :  { %v590_v26 = vadd.f32 %v1428_v23, %v1357_v10  ;;  %817 = vrot.lane.b32.xlu0 %v672_v25, %s1496_s19  ;;  %v1953_v25 = vpop.permute.xlu1 %951 }
 0x1c9   :  { %947 = vrot.lane.b32.xlu1 %v706_v24, %s1500_s24  ;;  %v584_v28 = vpop.f32.mrf.mxu0 }
 0x1ca   :  { %v596_v40 = vmax.f32 %v590_v26, 0.0  ;;  %v585_v30 = vadd.f32 %v1357_v10, %v584_v28  ;;  %v1955_v26 = vpop.permute.xlu0 %753 }
 0x1cc   :  { %v604_v32 = vcombine.high %v596_v40, %v596_v40  ;;  %638 = vst.msk [vmem:[#allocation3 + $0x49] sm:$0xf] %vm71_vm1, %v596_v40  ;;  %v595_v49 = vmax.f32 %v585_v30, 0.0  ;;  %849 = vrot.lane.b32.xlu0 %v680_v41, %s1497_s20  ;;  %v712_v30 = vld [vmem:[#allocation3 + $0x5a] sm:$0xf]  ;;  %v1959_v41 = vpop.permute.xlu1 %895 }
 0x1cd   :  { %723 = vrot.lane.b32.xlu1 %v649_v48, %s1493_s17 }
 0x1ce   :  { %639 = vst.msk [vmem:[#allocation3 + $0x51] sm:$0xf] %vm71_vm1, %v604_v32  ;;  %v603_v56 = vcombine.high %v595_v49, %v595_v49  ;;  %636 = vst.msk [vmem:[#allocation3 + $0x39] sm:$0xf] %vm71_vm1, %v595_v49  ;;  %v1961_v32 = vpop.permute.xlu0 %729 }
 0x1d0   :  { %637 = vst.msk [vmem:[#allocation3 + $0x41] sm:$0xf] %vm71_vm1, %v603_v56  ;;  %885 = vrot.lane.b32.xlu0 %v691_v57, %s1498_s21  ;;  %v1966_v56 = vpop.permute.xlu1 %927 }
 0x1d1   :  { %755 = vrot.lane.b32.xlu1 %v657_v33, %s1494_s0 }
 0x1d2   :  { %v1968_v57 = vpop.permute.xlu0 %761 }
 0x1d3   :  { %v655_v19 = vld [vmem:[#allocation3 + $0x49] sm:$0xf] }
 0x1d4   :  { %917 = vrot.lane.b32.xlu0 %v699_v5, %s1499_s22  ;;  %v670_v29 = vld [vmem:[#allocation3 + $0x48] sm:$0xf] }
 0x1d5   :  { %791 = vrot.lane.b32.xlu1 %v667_v46, %s1495_s18  ;;  %v663_v39 = vld [vmem:[#allocation3 + $0x4a] sm:$0xf]  ;;  %v668_v43 = vld [vmem:[#allocation3 + $0x38] sm:$0xf]  ;;  %v671_v14 = vld [vmem:[#allocation3 + $0x50] sm:$0xf] }
 0x1d6   :  { %v694_v6 = vld [vmem:[#allocation3 + $0x48] sm:$0xf]  ;;  %v653_v11 = vld [vmem:[#allocation3 + $0x39] sm:$0xf]  ;;  %v695_v58 = vld [vmem:[#allocation3 + $0x50] sm:$0xf] }
 0x1d7   :  { %v678_v37 = vld [vmem:[#allocation3 + $0x49] sm:$0xf]  ;;  %v676_v12 = vld [vmem:[#allocation3 + $0x39] sm:$0xf]  ;;  %v679_v15 = vld [vmem:[#allocation3 + $0x51] sm:$0xf] }
 0x1d8   :  { %949 = vrot.lane.b32.xlu0 %v707_v8, %s1500_s24  ;;  %v702_v9 = vld [vmem:[#allocation3 + $0x49] sm:$0xf]  ;;  %v661_v50 = vld [vmem:[#allocation3 + $0x3a] sm:$0xf]  ;;  %v703_v59 = vld [vmem:[#allocation3 + $0x51] sm:$0xf] }
 0x1d9   :  { %823 = vrot.lane.b32.xlu1 %v675_v34, %s1496_s19  ;;  %v686_v42 = vld [vmem:[#allocation3 + $0x4a] sm:$0xf]  ;;  %v684_v51 = vld [vmem:[#allocation3 + $0x3a] sm:$0xf]  ;;  %v687_v13 = vld [vmem:[#allocation3 + $0x52] sm:$0xf] }
 0x1da   :  { %v710_v10 = vld [vmem:[#allocation3 + $0x4a] sm:$0xf]  ;;  %v654_v17 = vld [vmem:[#allocation3 + $0x41] sm:$0xf]  ;;  %v711_v49 = vld [vmem:[#allocation3 + $0x52] sm:$0xf] }
 0x1db   :  { %v669_v20 = vld [vmem:[#allocation3 + $0x40] sm:$0xf] }
 0x1dc   :  { %725 = vrot.lane.b32.xlu0 %v650_v47, %s1493_s17  ;;  %v662_v21 = vld [vmem:[#allocation3 + $0x42] sm:$0xf] }
 0x1dd   :  { %855 = vrot.lane.b32.xlu1 %v683_v35, %s1497_s20  ;;  %v677_v23 = vld [vmem:[#allocation3 + $0x41] sm:$0xf] }
 0x1de   :  { %v693_v24 = vld [vmem:[#allocation3 + $0x40] sm:$0xf] }
 0x1df   :  { %v685_v28 = vld [vmem:[#allocation3 + $0x42] sm:$0xf] }
 0x1e0   :  { %757 = vrot.lane.b32.xlu0 %v658_v52, %s1494_s0  ;;  %v701_v40 = vld [vmem:[#allocation3 + $0x41] sm:$0xf] }
 0x1e1   :  { %787 = vrot.lane.b32.xlu1 %v665_v45, %s1495_s18  ;;  %v709_v48 = vld [vmem:[#allocation3 + $0x42] sm:$0xf] }
 0x1e4   :  { %881 = vrot.lane.b32.xlu0 %v689_v60, %s1498_s21 }
 0x1e5   :  { %819 = vrot.lane.b32.xlu1 %v673_v62, %s1496_s19 }
 0x1e8   :  { %913 = vrot.lane.b32.xlu0 %v697_v63, %s1499_s22 }
 0x1e9   :  { %851 = vrot.lane.b32.xlu1 %v681_v61, %s1497_s20 }
 0x1ec   :  { %797 = vrot.lane.b32.xlu0 %v670_v29, %s1495_s18 }
 0x1ed   :  { %735 = vrot.lane.b32.xlu1 %v655_v19, %s1493_s17  ;;  %v642_v19 = vld [vmem:[#allocation3 + $0x10] sm:$0xf] }
 0x1f0   :  { %945 = vrot.lane.b32.xlu0 %v705_v4, %s1500_s24 }
 0x1f1   :  { %767 = vrot.lane.b32.xlu1 %v663_v39, %s1494_s0 }
 0x1f4   :  { %829 = vrot.lane.b32.xlu0 %v678_v37, %s1496_s19  ;;  %v641_v37 = vld [vmem:[#allocation3 + $0x8] sm:$0xf] }
 0x1f5   :  { %891 = vrot.lane.b32.xlu1 %v694_v6, %s1498_s21  ;;  %v643_v6 = vld [vmem:[#allocation3 + $0x18] sm:$0xf] }
 0x1f8   :  { %861 = vrot.lane.b32.xlu0 %v686_v42, %s1497_s20 }
 0x1f9   :  { %923 = vrot.lane.b32.xlu1 %v702_v9, %s1499_s22 }
 0x1fc   :  { %793 = vrot.lane.b32.xlu0 %v668_v43, %s1495_s18  ;;  %v640_v43 = vld [vmem:[#allocation3] sm:$0xf] }
 0x1fd   :  { %955 = vrot.lane.b32.xlu1 %v710_v10, %s1500_s24 }
 0x200   :  { %825 = vrot.lane.b32.xlu0 %v676_v12, %s1496_s19 }
 0x201   :  { %731 = vrot.lane.b32.xlu1 %v653_v11, %s1493_s17 }
 0x204   :  { %857 = vrot.lane.b32.xlu0 %v684_v51, %s1497_s20 }
 0x205   :  { %763 = vrot.lane.b32.xlu1 %v661_v50, %s1494_s0 }
 0x208   :  { %893 = vrot.lane.b32.xlu0 %v695_v58, %s1498_s21 }
 0x209   :  { %799 = vrot.lane.b32.xlu1 %v671_v14, %s1495_s18 }
 0x20c   :  { %925 = vrot.lane.b32.xlu0 %v703_v59, %s1499_s22  ;;  %v969_v59 = vsel %vm409_vm2, %v640_v43, %v722_v22 }
 0x20d   :  { %831 = vrot.lane.b32.xlu1 %v679_v15, %s1496_s19 }
 0x210   :  { %733 = vrot.lane.b32.xlu0 %v654_v17, %s1493_s17 }
 0x211   :  { %863 = vrot.lane.b32.xlu1 %v687_v13, %s1497_s20 }
 0x214   :  { %765 = vrot.lane.b32.xlu0 %v662_v21, %s1494_s0 }
 0x215   :  { %795 = vrot.lane.b32.xlu1 %v669_v20, %s1495_s18 }
 0x218   :  { %889 = vrot.lane.b32.xlu0 %v693_v24, %s1498_s21 }
 0x219   :  { %827 = vrot.lane.b32.xlu1 %v677_v23, %s1496_s19 }
 0x21c   :  { %921 = vrot.lane.b32.xlu0 %v701_v40, %s1499_s22  ;;  %v977_v40 = vsel %vm418_vm3, %v969_v59, %v1955_v26  ;;  %v647_v59 = vld [vmem:[#allocation3 + $0x48] sm:$0xf] }
 0x21d   :  { %859 = vrot.lane.b32.xlu1 %v685_v28, %s1497_s20 }
 0x220   :  { %953 = vrot.lane.b32.xlu0 %v709_v48, %s1500_s24 }
 0x221   :  { %959 = vrot.lane.b32.xlu1 %v712_v30, %s1500_s24 }
 0x224   :  { %957 = vrot.lane.b32.xlu0 %v711_v49, %s1500_s24 }
 0x22a   :  { %v790_v33 = vpop.permute.xlu0 %789 }
 0x22b   :  { %v728_v5 = vpop.permute.xlu1 %727 }
 0x22c   :  { %v972_v11 = vsel %vm409_vm2, %v643_v6, %v728_v5 }
 0x22e   :  { %v822_v46 = vpop.permute.xlu0 %821 }
 0x22f   :  { %v760_v8 = vpop.permute.xlu1 %759 }
 0x230   :  { %v980_v50 = vsel %vm418_vm3, %v972_v11, %v760_v8  ;;  %v644_v11 = vld [vmem:[#allocation3 + $0x30] sm:$0xf] }
 0x232   :  { %v854_v34 = vpop.permute.xlu0 %853 }
 0x233   :  { %v884_v35 = vpop.permute.xlu1 %883 }
 0x236   :  { %v786_v54 = vpop.permute.xlu0 %785 }
 0x237   :  { %v916_v47 = vpop.permute.xlu1 %915  ;;  %v985_v48 = vsel %vm427_vm4, %v977_v40, %v786_v54 }
 0x23a   :  { %v818_v45 = vpop.permute.xlu0 %817 }
 0x23b   :  { %v948_v44 = vpop.permute.xlu1 %947  ;;  %v993_v5 = vsel %vm436_vm5, %v985_v48, %v818_v45 }
 0x23e   :  { %v850_v52 = vpop.permute.xlu0 %849 }
 0x23f   :  { %v724_v55 = vpop.permute.xlu1 %723  ;;  %v1001_v8 = vsel %vm445_vm6, %v993_v5, %v850_v52 }
 0x240   :  { %v970_v12 = vsel %vm409_vm2, %v641_v37, %v724_v55 }
 0x242   :  { %v886_v53 = vpop.permute.xlu0 %885 }
 0x243   :  { %v756_v62 = vpop.permute.xlu1 %755 }
 0x244   :  { %v978_v51 = vsel %vm418_vm3, %v970_v12, %v756_v62 }
 0x246   :  { %v918_v60 = vpop.permute.xlu0 %917 }
 0x247   :  { %v792_v31 = vpop.permute.xlu1 %791 }
 0x248   :  { %v988_v14 = vsel %vm427_vm4, %v980_v50, %v792_v31  ;;  %v973_v50 = vsel %vm409_vm2, %v644_v11, %v1961_v32 }
 0x24a   :  { %v950_v61 = vpop.permute.xlu0 %949 }
 0x24b   :  { %v824_v63 = vpop.permute.xlu1 %823 }
 0x24c   :  { %v996_v13 = vsel %vm436_vm5, %v988_v14, %v824_v63 }
 0x24e   :  { %v726_v0 = vpop.permute.xlu0 %725 }
 0x24f   :  { %v856_v38 = vpop.permute.xlu1 %855  ;;  %v971_v29 = vsel %vm409_vm2, %v642_v19, %v726_v0 }
 0x250   :  { %v1004_v23 = vsel %vm445_vm6, %v996_v13, %v856_v38 }
 0x251   :  { %v1012_v22 = vsel %vm454_vm7, %v1004_v23, %v1943_v18 }
 0x252   :  { %v758_v39 = vpop.permute.xlu0 %757  ;;  %v1020_v26 = vsel %vm463_vm8, %v1012_v22, %v1947_v16 }
 0x253   :  { %v788_v27 = vpop.permute.xlu1 %787  ;;  %v979_v4 = vsel %vm418_vm3, %v971_v29, %v758_v39  ;;  %v1028_v52 = vsel %vm472_vm9, %v1020_v26, %v1953_v25 }
 0x254   :  { %v987_v36 = vsel %vm427_vm4, %v979_v4, %v790_v33  ;;  %v986_v58 = vsel %vm427_vm4, %v978_v51, %v788_v27  ;;  %v645_v51 = vld [vmem:[#allocation3 + $0x38] sm:$0xf] }
 0x255   :  { %v995_v9 = vsel %vm436_vm5, %v987_v36, %v822_v46 }
 0x256   :  { %v882_v10 = vpop.permute.xlu0 %881  ;;  %v1003_v15 = vsel %vm445_vm6, %v995_v9, %v854_v34  ;;  %v646_v9 = vld [vmem:[#allocation3 + $0x40] sm:$0xf] }
 0x257   :  { %v820_v42 = vpop.permute.xlu1 %819  ;;  %v1011_v28 = vsel %vm454_vm7, %v1003_v15, %v886_v53 }
 0x258   :  { %v994_v17 = vsel %vm436_vm5, %v986_v58, %v820_v42  ;;  %v1019_v46 = vsel %vm463_vm8, %v1011_v28, %v918_v60 }
 0x259   :  { %v1027_v18 = vsel %vm472_vm9, %v1019_v46, %v950_v61 }
 0x25a   :  { %v914_v21 = vpop.permute.xlu0 %913 }
 0x25b   :  { %v852_v20 = vpop.permute.xlu1 %851 }
 0x25c   :  { %v1002_v24 = vsel %vm445_vm6, %v994_v17, %v852_v20 }
 0x25d   :  { %v1010_v30 = vsel %vm454_vm7, %v1002_v24, %v884_v35  ;;  %v1009_v35 = vsel %vm454_vm7, %v1001_v8, %v882_v10 }
 0x25e   :  { %v798_v33 = vpop.permute.xlu0 %797  ;;  %v1018_v34 = vsel %vm463_vm8, %v1010_v30, %v916_v47  ;;  %v1017_v54 = vsel %vm463_vm8, %v1009_v35, %v914_v21  ;;  %v1048_v47 = vcombine.low %v1027_v18, %v1028_v52  ;;  %v981_v21 = vsel %vm418_vm3, %v973_v50, %v1968_v57 }
 0x25f   :  { %v736_v49 = vpop.permute.xlu1 %735  ;;  %v1026_v45 = vsel %vm472_vm9, %v1018_v34, %v948_v44 }
 0x260   :  { %v976_v17 = vsel %vm409_vm2, %v647_v59, %v736_v49 }
 0x262   :  { %v946_v53 = vpop.permute.xlu0 %945 }
 0x263   :  { %v768_v55 = vpop.permute.xlu1 %767  ;;  %v1025_v62 = vsel %vm472_vm9, %v1017_v54, %v946_v53 }
 0x264   :  { %v1047_v60 = vcombine.low %v1025_v62, %v1026_v45  ;;  %v984_v23 = vsel %vm418_vm3, %v976_v17, %v768_v55 }
 0x266   :  { %1447 = vmatprep.mubr.msk.f32.mxu1 %vm499_vm10, %v1047_v60  ;;  %v830_v16 = vpop.permute.xlu0 %829 }
 0x267   :  { %v892_v31 = vpop.permute.xlu1 %891  ;;  %1448 = vmatmul.mubr.msk.f32.vlgmr.msra.gmra.mxu1 %vm499_vm10, %v1048_v47 }
 0x26a   :  { %v862_v38 = vpop.permute.xlu0 %861 }
 0x26b   :  { %v924_v63 = vpop.permute.xlu1 %923 }
 0x26e   :  { %v794_v19 = vpop.permute.xlu0 %793 }
 0x26f   :  { %v956_v0 = vpop.permute.xlu1 %955  ;;  %v989_v28 = vsel %vm427_vm4, %v981_v21, %v794_v19 }
 0x272   :  { %v826_v29 = vpop.permute.xlu0 %825 }
 0x273   :  { %v732_v61 = vpop.permute.xlu1 %731  ;;  %v997_v49 = vsel %vm436_vm5, %v989_v28, %v826_v29 }
 0x274   :  { %v974_v13 = vsel %vm409_vm2, %v645_v51, %v732_v61 }
 0x276   :  { %v858_v39 = vpop.permute.xlu0 %857 }
 0x277   :  { %v764_v27 = vpop.permute.xlu1 %763  ;;  %v1005_v5 = vsel %vm445_vm6, %v997_v49, %v858_v39  ;;  %v1367_v49 = vld [vmem:[%s2114_s5] ss:$0 sm:$0xff] }
 0x278   :  { %v982_v20 = vsel %vm418_vm3, %v974_v13, %v764_v27 }
 0x27a   :  { %v894_v4 = vpop.permute.xlu0 %893 }
 0x27b   :  { %v800_v44 = vpop.permute.xlu1 %799 }
 0x27c   :  { %v992_v40 = vsel %vm427_vm4, %v984_v23, %v800_v44 }
 0x27e   :  { %v926_v6 = vpop.permute.xlu0 %925 }
 0x27f   :  { %v832_v36 = vpop.permute.xlu1 %831 }
 0x282   :  { %v734_v37 = vpop.permute.xlu0 %733 }
 0x283   :  { %v864_v25 = vpop.permute.xlu1 %863  ;;  %v975_v42 = vsel %vm409_vm2, %v646_v9, %v734_v37 }
 0x286   :  { %v766_v43 = vpop.permute.xlu0 %765 }
 0x287   :  { %v796_v10 = vpop.permute.xlu1 %795  ;;  %v983_v12 = vsel %vm418_vm3, %v975_v42, %v766_v43  ;;  %v1215_v42 = vld [vmem:[%s2113_s7 + $0x8] sm:$0xff] }
 0x288   :  { %v991_v14 = vsel %vm427_vm4, %v983_v12, %v798_v33  ;;  %v990_v24 = vsel %vm427_vm4, %v982_v20, %v796_v10  ;;  %v1000_v33 = vsel %vm436_vm5, %v992_v40, %v832_v36  ;;  %v1214_v10 = vld [vmem:[%s2113_s7] sm:$0xff]  ;;  %1453 = vmatprep.subr.mxu0 %v1215_v42  ;;  %1463 = vmatprep.subr.mxu1 %v1215_v42 }
 0x289   :  { %v999_v32 = vsel %vm436_vm5, %v991_v14, %v830_v16  ;;  %v1008_v46 = vsel %vm445_vm6, %v1000_v33, %v864_v25  ;;  %1454 = vmatpush3.msra.mxu0 %v1215_v42  ;;  %1465 = vmatpush3.msra.mxu1 %v1215_v42 }
 0x28a   :  { %v890_v15 = vpop.permute.xlu0 %889  ;;  %v1007_v34 = vsel %vm445_vm6, %v999_v32, %v862_v38  ;;  %v1016_v18 = vsel %vm454_vm7, %v1008_v46, %v1959_v41  ;;  %v1362_v41 = vld [vmem:[%s2112_s4] ss:$0 sm:$0xff]  ;;  %1455 = vmatprep.subr.mxu0 %v1214_v10  ;;  %1464 = vmatprep.subr.mxu1 %v1214_v10 }
 0x28b   :  { %v828_v58 = vpop.permute.xlu1 %827  ;;  %v1013_v26 = vsel %vm454_vm7, %v1005_v5, %v890_v15  ;;  %v1015_v45 = vsel %vm454_vm7, %v1007_v34, %v894_v4  ;;  %v1024_v47 = vsel %vm463_vm8, %v1016_v18, %v1966_v56  ;;  %1456 = vmatpush3.msra.mxu0 %v1214_v10  ;;  %1466 = vmatpush3.msra.mxu1 %v1214_v10  ;;  %v1368_v46 = vld [vmem:[%s2115_s6] ss:$0 sm:$0xff] }
 0x28c   :  { %v998_v30 = vsel %vm436_vm5, %v990_v24, %v828_v58 }
 0x28e   :  { %v922_v22 = vpop.permute.xlu0 %921 }
 0x28f   :  { %v860_v48 = vpop.permute.xlu1 %859  ;;  %v1021_v54 = vsel %vm463_vm8, %v1013_v26, %v922_v22 }
 0x290   :  { %v1006_v57 = vsel %vm445_vm6, %v998_v30, %v860_v48 }
 0x291   :  { %v1014_v8 = vsel %vm454_vm7, %v1006_v57, %v892_v31  ;;  %v1023_v31 = vsel %vm463_vm8, %v1015_v45, %v926_v6 }
 0x292   :  { %v1022_v35 = vsel %vm463_vm8, %v1014_v8, %v924_v63  ;;  %v954_v53 = vpop.permute.xlu0 %953 }
 0x293   :  { %v1030_v55 = vsel %vm472_vm9, %v1022_v35, %v956_v0  ;;  %v1029_v62 = vsel %vm472_vm9, %v1021_v54, %v954_v53  ;;  %v960_v60 = vpop.permute.xlu1 %959 }
 0x294   :  { %v1049_v52 = vcombine.low %v1029_v62, %v1030_v55  ;;  %v1032_v63 = vsel %vm472_vm9, %v1024_v47, %v960_v60 }
 0x296   :  { %v958_v16 = vpop.permute.xlu0 %957  ;;  %1450 = vmatprep.mubr.msk.f32.mxu1 %vm499_vm10, %v1049_v52 }
 0x297   :  { %v1031_v38 = vsel %vm472_vm9, %v1023_v31, %v958_v16 }
 0x298   :  { %v1050_v0 = vcombine.low %v1031_v38, %v1032_v63 }
 0x29a   :  { %1451 = vmatmul.mubr.msk.f32.gmra.mxu1 %vm499_vm10, %v1050_v0 }
 0x327   :  { %v1449_v19 = vpop.f32.mrf.mxu1 }
 0x328   :  { %v1131_v61 = vadd.f32 %v1449_v19, %v1362_v41 }
 0x329   :  { %v1125_v29 = vpop.f32.mrf.mxu1 }
 0x32a   :  { %v2049_v56 = vmul.f32 0.1, %v1131_v61  ;;  %v1126_v27 = vadd.f32 %v1362_v41, %v1125_v29 }
 0x32c   :  { %1476 = vtanh.f32 %v2049_v56  ;;  %v1144_v39 = vmul.f32 0.1, %v1126_v27 }
 0x32e   :  { %1478 = vtanh.f32 %v1144_v39 }
 0x339   :  { %v1477_v44 = vpop.eup %1476 }
 0x33a   :  { %v1153_v36 = vmul.f32 2.0, %v1477_v44 }
 0x33b   :  { %v1479_v4 = vpop.eup %1478 }
 0x33c   :  { %v1152_v6 = vmul.f32 2.0, %v1479_v4  ;;  %v1158_v37 = vmul.f32 1.442695, %v1153_v36  ;;  %v1320_v30 = vsel %vm409_vm2, %v1153_v36, 0.0 }
 0x33e   :  { %v1156_v25 = vmul.f32 1.442695, %v1152_v6  ;;  %v1317_v20 = vsel %vm409_vm2, %v1152_v6, 0.0 }
 0x340   :  { %1480 = vpow2.f32 %v1156_v25 }
 0x341   :  { %1482 = vpow2.f32 %v1158_v37 }
 0x34d   :  { %v1481_v9 = vpop.eup %1480 }
 0x34e   :  { %1168 = vrot.lane.b32.xlu0 %v1481_v9, %s1493_s17  ;;  %v1483_v43 = vpop.eup %1482 }
 0x352   :  { %1170 = vrot.lane.b32.xlu0 %v1483_v43, %s1493_s17 }
 0x35a   :  { %v1452_v11 = vpop.f32.mrf.mxu1 }
 0x35b   :  { %v1141_v12 = vadd.f32 %v1452_v11, %v1362_v41 }
 0x35c   :  { %v1135_v50 = vpop.f32.mrf.mxu1 }
 0x35d   :  { %v1147_v51 = vmul.f32 0.1, %v1141_v12  ;;  %v1136_v14 = vadd.f32 %v1362_v41, %v1135_v50 }
 0x35f   :  { %1484 = vtanh.f32 %v1147_v51  ;;  %v1146_v58 = vmul.f32 0.1, %v1136_v14 }
 0x361   :  { %1486 = vtanh.f32 %v1146_v58 }
 0x36c   :  { %v1485_v15 = vpop.eup %1484 }
 0x36d   :  { %v1155_v17 = vmul.f32 2.0, %v1485_v15 }
 0x36e   :  { %v1487_v59 = vpop.eup %1486 }
 0x36f   :  { %v1154_v13 = vmul.f32 2.0, %v1487_v59  ;;  %v1162_v23 = vmul.f32 1.442695, %v1155_v17  ;;  %v1326_v32 = vsel %vm409_vm2, %v1155_v17, 0.0 }
 0x371   :  { %1318 = vadd.xlane.f32.xlu0 %v1317_v20  ;;  %v1160_v21 = vmul.f32 1.442695, %v1154_v13  ;;  %v1323_v24 = vsel %vm409_vm2, %v1154_v13, 0.0 }
 0x373   :  { %1488 = vpow2.f32 %v1160_v21 }
 0x374   :  { %1490 = vpow2.f32 %v1162_v23 }
 0x375   :  { %1324 = vadd.xlane.f32.xlu0 %v1323_v24 }
 0x379   :  { %1327 = vadd.xlane.f32.xlu0 %v1326_v32 }
 0x380   :  { %v1489_v28 = vpop.eup %1488 }
 0x381   :  { %1172 = vrot.lane.b32.xlu1 %v1489_v28, %s1493_s17  ;;  %v1491_v40 = vpop.eup %1490 }
 0x385   :  { %1174 = vrot.lane.b32.xlu1 %v1491_v40, %s1493_s17 }
 0x3a9   :  { %1321 = vadd.xlane.f32.xlu1 %v1320_v30 }
 0x3c0   :  { %v1169_v48 = vpop.permute.xlu0 %1168 }
 0x3c1   :  { %v1180_v22 = vmul.f32 %v1169_v48, %v1583_v2 }
 0x3c3   :  { %v1184_v33 = vadd.f32 %v1180_v22, %v1144_v39 }
 0x3c4   :  { %v1171_v57 = vpop.permute.xlu0 %1170 }
 0x3c5   :  { %v1188_v5 = vsel %vm409_vm2, %v1583_v2, %v1184_v33  ;;  %v1181_v8 = vmul.f32 %v1171_v57, %v1578_v1 }
 0x3c6   :  { %v1199_v34 = vmul.f32 %v1367_v49, %v1188_v5 }
 0x3c7   :  { %v1185_v26 = vadd.f32 %v1181_v8, %v2049_v56 }
 0x3c8   :  { %v1210_v35 = vadd.f32 %v1368_v46, %v1199_v34 }
 0x3c9   :  { %v1189_v54 = vsel %vm409_vm2, %v1578_v1, %v1185_v26 }
 0x3ca   :  { %v1200_v55 = vmul.f32 %v1367_v49, %v1189_v54  ;;  %1457 = vmatprep.mubr.msk.f32.mxu0 %vm418_vm3, %v1210_v35 }
 0x3cc   :  { %v1211_v53 = vadd.f32 %v1368_v46, %v1200_v55 }
 0x3ce   :  { %1458 = vmatmul.mubr.msk.f32.vlgmr.msra.gmra.mxu0 %vm418_vm3, %v1211_v53 }
 0x3f3   :  { %v1173_v2 = vpop.permute.xlu1 %1172 }
 0x3f4   :  { %v1182_v18 = vmul.f32 %v1173_v2, %v1588_v3 }
 0x3f6   :  { %v1186_v62 = vadd.f32 %v1182_v18, %v1146_v58 }
 0x3f7   :  { %v1175_v45 = vpop.permute.xlu1 %1174 }
 0x3f8   :  { %v1190_v60 = vsel %vm409_vm2, %v1588_v3, %v1186_v62  ;;  %v1183_v52 = vmul.f32 %v1175_v45, %v1605_v7 }
 0x3f9   :  { %v1201_v47 = vmul.f32 %v1367_v49, %v1190_v60 }
 0x3fa   :  { %v1187_v31 = vadd.f32 %v1183_v52, %v1147_v51  ;;  %v1319_v0 = vpop.xlane.xlu0 %1318 }
 0x3fb   :  { %v1212_v16 = vadd.f32 %v1368_v46, %v1201_v47 }
 0x3fc   :  { %v1191_v1 = vsel %vm409_vm2, %v1605_v7, %v1187_v31 }
 0x3fd   :  { %v1202_v63 = vmul.f32 %v1367_v49, %v1191_v1  ;;  %1460 = vmatprep.mubr.msk.f32.mxu1 %vm418_vm3, %v1212_v16 }
 0x3fe   :  { %v1325_v41 = vpop.xlane.xlu0 %1324 }
 0x3ff   :  { %v1213_v38 = vadd.f32 %v1368_v46, %v1202_v63 }
 0x401   :  { %1461 = vmatmul.mubr.msk.f32.vlgmr.msra.gmra.mxu1 %vm418_vm3, %v1213_v38 }
 0x402   :  { %v1328_v19 = vpop.xlane.xlu0 %1327 }
 0x403   :  { %v1336_v61 = vadd.f32 %v1328_v19, %v1325_v41 }
 0x405   :  { %v1337_v29 = vrot.slane %v1336_v61, 4 }
 0x407   :  { %v1338_v3 = vadd.f32 %v1337_v29, %v1336_v61 }
 0x409   :  { %v1339_v27 = vrot.slane %v1338_v3, 2 }
 0x40b   :  { %v1340_v4 = vadd.f32 %v1339_v27, %v1338_v3 }
 0x40d   :  { %v1341_v7 = vrot.slane %v1340_v4, 1 }
 0x40f   :  { %v1342_v9 = vadd.f32 %v1341_v7, %v1340_v4 }
 0x432   :  { %v1322_v56 = vpop.xlane.xlu1 %1321 }
 0x433   :  { %v1329_v39 = vadd.f32 %v1322_v56, %v1319_v0 }
 0x435   :  { %v1330_v44 = vrot.slane %v1329_v39, 4 }
 0x437   :  { %v1331_v36 = vadd.f32 %v1330_v44, %v1329_v39 }
 0x439   :  { %v1332_v6 = vrot.slane %v1331_v36, 2 }
 0x43b   :  { %v1333_v25 = vadd.f32 %v1332_v6, %v1331_v36 }
 0x43d   :  { %v1334_v37 = vrot.slane %v1333_v25, 1 }
 0x43f   :  { %v1335_v42 = vadd.f32 %v1334_v37, %v1333_v25 }
 0x441   :  { %v1346_v10 = vsel %vm1345_vm11, %v1342_v9, %v1335_v42 }
 0x442   :  { %1348 = vst [vmem:[%s2116_s9] sm:$0x3] %v1346_v10 }
 0x48e   :  { %v1459_v43 = vpop.f32.mrf.mxu0 }
 0x48f   :  { %1314 = vst.msk [vmem:[%s2117_s8 + $0x8] sm:$0xff] %vm418_vm3, %v1459_v43 }
 0x490   :  { %v1294_v11 = vpop.f32.mrf.mxu0 }
 0x491   :  { %1313 = vst.msk [vmem:[%s2117_s8] sm:$0xff] %vm418_vm3, %v1294_v11 }
 0x4c1   :  { %v1462_v12 = vpop.f32.mrf.mxu1 }
 0x4c2   :  { %1316 = vst.msk [vmem:[%s2117_s8 + $0x18] sm:$0xff] %vm418_vm3, %v1462_v12 }
 0x4c3   :  { %v1304_v50 = vpop.f32.mrf.mxu1 }
 0x4c4   :  { %1315 = vst.msk [vmem:[%s2117_s8 + $0x10] sm:$0xff] %vm418_vm3, %v1304_v50 }

// kernel: uflow_forward.6
= control target key start
LH: loop header
LB: loop body
LE: loop exit
PB: predicated region body
PF: predicated region fallthrough
CT: control target
= control target key end

     0   :  { %vm46_vm0 = vcmask 23552   ;;  %vm48_vm1 = vcmask 17408   ;;  %v1813_v0 = vmov 0.0   ;;  %s1814_s10 = smov 3   ;;  %vm1147_vm2 = vcmask 21504   ;;  %s1815_s12 = smov 6   ;;  %s3110_s0 = inlined_call_operand.vmem [shape: f32[2,8,8,3], index: 0, kind: input, shape index: {}]   ;;  %s3111_s1 = inlined_call_operand.vmem [shape: f32[2,4,4,3], index: 1, kind: input, shape index: {}]   ;;  %s3112_s2 = inlined_call_operand.vmem [shape: f32[27,8], index: 2, kind: input, shape index: {}]   ;;  %s3113_s4 = inlined_call_operand.vmem [shape: f32[27,16], index: 4, kind: input, shape index: {}]   ;;  %s3114_s3 = inlined_call_operand.vmem [shape: f32[1,8], index: 3, kind: input, shape index: {}]   ;;  %s3115_s6 = inlined_call_operand.vmem [shape: f32[128,8], index: 6, kind: output, shape index: {0}]   ;;  %s3116_s5 = inlined_call_operand.vmem [shape: f32[1,16], index: 5, kind: input, shape index: {}]   ;;  %s3117_s7 = inlined_call_operand.vmem [shape: f32[32,16], index: 7, kind: output, shape index: {1}]  }
   0x1   :  { %47 = vst.msk [vmem:[#allocation2] sm:$0xff] %vm46_vm0, %v1813_v0  ;;  %50 = vst.msk [vmem:[#allocation2 + $0x10] sm:$0xff] %vm46_vm0, %v1813_v0  ;;  %v26_v1 = vld [vmem:[%s3110_s0 + $0x8] sm:$0xff]  ;;  %v25_v2 = vld [vmem:[%s3110_s0] sm:$0xff]  ;;  %vm1161_vm3 = vcmask 19456   ;;  %s1816_s17 = smov 9  }
   0x2   :  { %49 = vst.msk [vmem:[#allocation2 + $0x8] sm:$0x3] %vm48_vm1, %v1813_v0  ;;  %51 = vst.msk [vmem:[#allocation2 + $0x18] sm:$0x3] %vm48_vm1, %v1813_v0  ;;  %v27_v3 = vld [vmem:[%s3110_s0 + $0x10] sm:$0xff]  ;;  %v28_v4 = vld [vmem:[%s3110_s0 + $0x18] sm:$0xff] }
   0x3   :  { %52 = vst.msk [vmem:[#allocation2 + $0x20] sm:$0xff] %vm46_vm0, %v1813_v0  ;;  %54 = vst.msk [vmem:[#allocation2 + $0x30] sm:$0xff] %vm46_vm0, %v1813_v0  ;;  %v29_v5 = vld [vmem:[%s3110_s0 + $0x20] sm:$0xff]  ;;  %v30_v6 = vld [vmem:[%s3110_s0 + $0x28] sm:$0xff]  ;;  %s1817_s20 = smov 12   ;;  %s1818_s23 = smov 15  }
   0x4   :  { %53 = vst.msk [vmem:[#allocation2 + $0x28] sm:$0x3] %vm48_vm1, %v1813_v0  ;;  %55 = vst.msk [vmem:[#allocation2 + $0x38] sm:$0x3] %vm48_vm1, %v1813_v0  ;;  %v31_v7 = vld [vmem:[%s3110_s0 + $0x30] sm:$0xff]  ;;  %v33_v8 = vld [vmem:[%s3110_s0 + $0x40] sm:$0xff] }
   0x5   :  { %56 = vst.msk [vmem:[#allocation2 + $0x40] sm:$0xff] %vm46_vm0, %v1813_v0  ;;  %58 = vst.msk [vmem:[#allocation2 + $0x50] sm:$0xff] %vm46_vm0, %v1813_v0  ;;  %v34_v9 = vld [vmem:[%s3110_s0 + $0x48] sm:$0xff]  ;;  %v35_v10 = vld [vmem:[%s3110_s0 + $0x50] sm:$0xff]  ;;  %s1819_s26 = smov 18   ;;  %vm952_vm4 = vcmask 1042432  }
   0x6   :  { %57 = vst.msk [vmem:[#allocation2 + $0x48] sm:$0x3] %vm48_vm1, %v1813_v0  ;;  %59 = vst.msk [vmem:[#allocation2 + $0x58] sm:$0x3] %vm48_vm1, %v1813_v0  ;;  %v36_v11 = vld [vmem:[%s3110_s0 + $0x58] sm:$0xff]  ;;  %v37_v12 = vld [vmem:[%s3110_s0 + $0x60] sm:$0xff] }
   0x7   :  { %60 = vst.msk [vmem:[#allocation2 + $0x60] sm:$0xff] %vm46_vm0, %v1813_v0  ;;  %62 = vst.msk [vmem:[#allocation2 + $0x70] sm:$0xff] %vm46_vm0, %v1813_v0  ;;  %v38_v13 = vld [vmem:[%s3110_s0 + $0x68] sm:$0xff]  ;;  %v39_v14 = vld [vmem:[%s3110_s0 + $0x70] sm:$0xff]  ;;  %s1820_s8 = smov 21   ;;  %s1821_s16 = smov 24  }
   0x8   :  { %61 = vst.msk [vmem:[#allocation2 + $0x68] sm:$0x3] %vm48_vm1, %v1813_v0  ;;  %63 = vst.msk [vmem:[#allocation2 + $0x78] sm:$0x3] %vm48_vm1, %v1813_v0  ;;  %v32_v15 = vld [vmem:[%s3110_s0 + $0x38] sm:$0xff]  ;;  %vm778_vm5 = vcmask 48128  }
   0x9   :  { %64 = vst.msk [vmem:[#allocation2 + $0x80] sm:$0xff] %vm46_vm0, %v1813_v0  ;;  %66 = vst.msk [vmem:[#allocation2 + $0x90] sm:$0xff] %vm46_vm0, %v1813_v0  ;;  %v40_v16 = vld [vmem:[%s3110_s0 + $0x78] sm:$0xff]  ;;  %v121_v17 = vld [vmem:[#allocation2 + $0x1] sm:$0xff]  ;;  %vm795_vm6 = vcmask 72704   ;;  %vm812_vm7 = vcmask 97280  }
   0xa   :  { %65 = vst.msk [vmem:[#allocation2 + $0x88] sm:$0x3] %vm48_vm1, %v1813_v0  ;;  %67 = vst.msk [vmem:[#allocation2 + $0x98] sm:$0x3] %vm48_vm1, %v1813_v0  ;;  %266 = vrot.lane.b32.xlu0 %v121_v17, %s1814_s10  ;;  %v137_v33 = vld [vmem:[#allocation2 + $0x2] sm:$0xff]  ;;  %vm829_vm8 = vcmask 121856  }
   0xb   :  { %68 = vst.msk [vmem:[#allocation2 + $0xa0] sm:$0xff] %vm46_vm0, %v1813_v0  ;;  %70 = vst.msk [vmem:[#allocation2 + $0xb0] sm:$0xff] %vm46_vm0, %v1813_v0  ;;  %v1134_v35 = vld [vmem:[%s3111_s1] sm:$0xf]  ;;  %v1135_v42 = vld [vmem:[%s3111_s1 + $0x4] sm:$0xf] }
   0xc   :  { %69 = vst.msk [vmem:[#allocation2 + $0xa8] sm:$0x3] %vm48_vm1, %v1813_v0  ;;  %71 = vst.msk [vmem:[#allocation2 + $0xb8] sm:$0x3] %vm48_vm1, %v1813_v0  ;;  %v1136_v43 = vld [vmem:[%s3111_s1 + $0x8] sm:$0xf] }
   0xd   :  { %72 = vst.msk [vmem:[#allocation2 + $0xc0] sm:$0xff] %vm46_vm0, %v1813_v0  ;;  %74 = vst.msk [vmem:[#allocation2 + $0xd0] sm:$0xff] %vm46_vm0, %v1813_v0  ;;  %v1137_v62 = vld [vmem:[%s3111_s1 + $0xc] sm:$0xf]  ;;  %vm846_vm9 = vcmask 146432   ;;  %vm863_vm10 = vcmask 171008  }
   0xe   :  { %73 = vst.msk [vmem:[#allocation2 + $0xc8] sm:$0x3] %vm48_vm1, %v1813_v0  ;;  %75 = vst.msk [vmem:[#allocation2 + $0xd8] sm:$0x3] %vm48_vm1, %v1813_v0  ;;  %vm880_vm11 = vcmask 195584   ;;  %vm903_vm12 = vcmask 220160  }
   0xf   :  { %76 = vst.msk [vmem:[#allocation2 + $0xe0] sm:$0xff] %vm46_vm0, %v1813_v0  ;;  %78 = vst.msk [vmem:[#allocation2 + $0xf0] sm:$0xff] %vm46_vm0, %v1813_v0  ;;  %vm1117_vm13 = vcmask 64512   ;;  %vm1681_vm14 = vcmask 130048  }
  0x10   :  { %77 = vst.msk [vmem:[#allocation2 + $0xe8] sm:$0x3] %vm48_vm1, %v1813_v0  ;;  %79 = vst.msk [vmem:[#allocation2 + $0xf8] sm:$0x3] %vm48_vm1, %v1813_v0 }
  0x11   :  { %80 = vst.msk [vmem:[#allocation2 + $0x100] sm:$0xff] %vm46_vm0, %v1813_v0  ;;  %82 = vst.msk [vmem:[#allocation2 + $0x110] sm:$0xff] %vm46_vm0, %v1813_v0 }
  0x12   :  { %81 = vst.msk [vmem:[#allocation2 + $0x108] sm:$0x3] %vm48_vm1, %v1813_v0  ;;  %83 = vst.msk [vmem:[#allocation2 + $0x118] sm:$0x3] %vm48_vm1, %v1813_v0 }
  0x13   :  { %84 = vst.msk [vmem:[#allocation2 + $0x120] sm:$0xff] %vm46_vm0, %v1813_v0  ;;  %86 = vst.msk [vmem:[#allocation2 + $0x130] sm:$0xff] %vm46_vm0, %v1813_v0  ;;  %v129_v25 = vld [vmem:[#allocation2 + $0xa1] sm:$0xff] }
  0x14   :  { %85 = vst.msk [vmem:[#allocation2 + $0x128] sm:$0x3] %vm48_vm1, %v1813_v0  ;;  %87 = vst.msk [vmem:[#allocation2 + $0x138] sm:$0x3] %vm48_vm1, %v1813_v0  ;;  %v145_v44 = vld [vmem:[#allocation2 + $0xa2] sm:$0xff] }
  0x15   :  { %90 = vst.msk [vmem:[#allocation2 + $0x21] sm:$0xff] %vm46_vm0, %v26_v1  ;;  %89 = vst.msk [vmem:[#allocation2 + $0x11] sm:$0xff] %vm46_vm0, %v25_v2 }
  0x16   :  { %91 = vst.msk [vmem:[#allocation2 + $0x31] sm:$0xff] %vm46_vm0, %v27_v3  ;;  %92 = vst.msk [vmem:[#allocation2 + $0x41] sm:$0xff] %vm46_vm0, %v28_v4 }
  0x17   :  { %93 = vst.msk [vmem:[#allocation2 + $0x51] sm:$0xff] %vm46_vm0, %v29_v5  ;;  %94 = vst.msk [vmem:[#allocation2 + $0x61] sm:$0xff] %vm46_vm0, %v30_v6  ;;  %v1138_v5 = vld [vmem:[%s3111_s1 + $0x10] sm:$0xf] }
  0x18   :  { %95 = vst.msk [vmem:[#allocation2 + $0x71] sm:$0xff] %vm46_vm0, %v31_v7  ;;  %97 = vst.msk [vmem:[#allocation2 + $0xb1] sm:$0xff] %vm46_vm0, %v33_v8  ;;  %v1139_v8 = vld [vmem:[%s3111_s1 + $0x14] sm:$0xf] }
  0x19   :  { %98 = vst.msk [vmem:[#allocation2 + $0xc1] sm:$0xff] %vm46_vm0, %v34_v9  ;;  %99 = vst.msk [vmem:[#allocation2 + $0xd1] sm:$0xff] %vm46_vm0, %v35_v10 }
  0x1a   :  { %100 = vst.msk [vmem:[#allocation2 + $0xe1] sm:$0xff] %vm46_vm0, %v36_v11  ;;  %101 = vst.msk [vmem:[#allocation2 + $0xf1] sm:$0xff] %vm46_vm0, %v37_v12  ;;  %v1140_v11 = vld [vmem:[%s3111_s1 + $0x18] sm:$0xf] }
  0x1b   :  { %102 = vst.msk [vmem:[#allocation2 + $0x101] sm:$0xff] %vm46_vm0, %v38_v13  ;;  %103 = vst.msk [vmem:[#allocation2 + $0x111] sm:$0xff] %vm46_vm0, %v39_v14  ;;  %v44_v14 = vld [vmem:[%s3112_s2 + $0x18] sm:$0x7] }
  0x1c   :  { %96 = vst.msk [vmem:[#allocation2 + $0x81] sm:$0xff] %vm46_vm0, %v32_v15  ;;  %104 = vst.msk [vmem:[#allocation2 + $0x121] sm:$0xff] %vm46_vm0, %v40_v16  ;;  %v2007_v18 = vld [vmem:[#allocation2 + $0x21] sm:$0xff]  ;;  %v2011_v19 = vld [vmem:[#allocation2 + $0x11] sm:$0xff]  ;;  %1746 = vmatprep.subr.msk.mxu0 %vm952_vm4, %v44_v14  ;;  %1792 = vmatprep.subr.msk.mxu1 %vm952_vm4, %v44_v14 }
  0x1d   :  { %270 = vrot.lane.b32.xlu1 %v2007_v18, %s1814_s10  ;;  %v2013_v20 = vld [vmem:[#allocation2 + $0x31] sm:$0xff]  ;;  %268 = vrot.lane.b32.xlu0 %v2011_v19, %s1814_s10  ;;  %v2019_v21 = vld [vmem:[#allocation2 + $0x41] sm:$0xff]  ;;  %1148 = vst.msk [vmem:[#allocation3] sm:$0x3f] %vm1147_vm2, %v1813_v0  ;;  %1149 = vst.msk [vmem:[#allocation3 + $0x8] sm:$0x3f] %vm1147_vm2, %v1813_v0 }
  0x1e   :  { %v2021_v22 = vld [vmem:[#allocation2 + $0x51] sm:$0xff]  ;;  %v2027_v23 = vld [vmem:[#allocation2 + $0x61] sm:$0xff]  ;;  %1150 = vst.msk [vmem:[#allocation3 + $0x10] sm:$0x3f] %vm1147_vm2, %v1813_v0  ;;  %1151 = vst.msk [vmem:[#allocation3 + $0x18] sm:$0x3f] %vm1147_vm2, %v1813_v0  ;;  %1747 = vmatpush3.msk.msra.mxu0 %vm952_vm4, %v44_v14  ;;  %1796 = vmatpush3.msk.msra.mxu1 %vm952_vm4, %v44_v14 }
  0x1f   :  { %v2029_v24 = vld [vmem:[#allocation2 + $0x71] sm:$0xff]  ;;  %1152 = vst.msk [vmem:[#allocation3 + $0x20] sm:$0x3f] %vm1147_vm2, %v1813_v0  ;;  %1153 = vst.msk [vmem:[#allocation3 + $0x28] sm:$0x3f] %vm1147_vm2, %v1813_v0  ;;  %v2079_v36 = vld [vmem:[#allocation2 + $0x22] sm:$0xff] }
  0x20   :  { %v130_v26 = vld [vmem:[#allocation2 + $0xb1] sm:$0xff]  ;;  %v131_v27 = vld [vmem:[#allocation2 + $0xc1] sm:$0xff]  ;;  %1154 = vst.msk [vmem:[#allocation3 + $0x30] sm:$0x3f] %vm1147_vm2, %v1813_v0  ;;  %1155 = vst.msk [vmem:[#allocation3 + $0x38] sm:$0x3f] %vm1147_vm2, %v1813_v0 }
  0x21   :  { %272 = vrot.lane.b32.xlu1 %v2013_v20, %s1814_s10  ;;  %274 = vrot.lane.b32.xlu0 %v2019_v21, %s1814_s10  ;;  %v2037_v28 = vld [vmem:[#allocation2 + $0xd1] sm:$0xff]  ;;  %v2042_v29 = vld [vmem:[#allocation2 + $0xe1] sm:$0xff]  ;;  %1156 = vst.msk [vmem:[#allocation3 + $0x40] sm:$0x3f] %vm1147_vm2, %v1813_v0  ;;  %1157 = vst.msk [vmem:[#allocation3 + $0x48] sm:$0x3f] %vm1147_vm2, %v1813_v0 }
  0x22   :  { %v2044_v30 = vld [vmem:[#allocation2 + $0xf1] sm:$0xff]  ;;  %v2050_v31 = vld [vmem:[#allocation2 + $0x101] sm:$0xff]  ;;  %1158 = vst.msk [vmem:[#allocation3 + $0x50] sm:$0x3f] %vm1147_vm2, %v1813_v0  ;;  %1159 = vst.msk [vmem:[#allocation3 + $0x58] sm:$0x3f] %vm1147_vm2, %v1813_v0 }
  0x23   :  { %v2052_v32 = vld [vmem:[#allocation2 + $0x111] sm:$0xff]  ;;  %1162 = vst.msk [vmem:[#allocation3 + $0x9] sm:$0xf] %vm1161_vm3, %v1134_v35  ;;  %v2087_v38 = vld [vmem:[#allocation2 + $0x42] sm:$0xff]  ;;  %1163 = vst.msk [vmem:[#allocation3 + $0x11] sm:$0xf] %vm1161_vm3, %v1135_v42 }
  0x24   :  { %v2070_v34 = vld [vmem:[#allocation2 + $0x12] sm:$0xff]  ;;  %v2095_v40 = vld [vmem:[#allocation2 + $0x62] sm:$0xff]  ;;  %1164 = vst.msk [vmem:[#allocation3 + $0x19] sm:$0xf] %vm1161_vm3, %v1136_v43  ;;  %1165 = vst.msk [vmem:[#allocation3 + $0x21] sm:$0xf] %vm1161_vm3, %v1137_v62 }
  0x25   :  { %276 = vrot.lane.b32.xlu1 %v2021_v22, %s1814_s10  ;;  %278 = vrot.lane.b32.xlu0 %v2027_v23, %s1814_s10  ;;  %v2081_v37 = vld [vmem:[#allocation2 + $0x32] sm:$0xff]  ;;  %v147_v46 = vld [vmem:[#allocation2 + $0xc2] sm:$0xff]  ;;  %1166 = vst.msk [vmem:[#allocation3 + $0x39] sm:$0xf] %vm1161_vm3, %v1138_v5  ;;  %1167 = vst.msk [vmem:[#allocation3 + $0x41] sm:$0xf] %vm1161_vm3, %v1139_v8 }
  0x26   :  { %v2089_v39 = vld [vmem:[#allocation2 + $0x52] sm:$0xff]  ;;  %v2115_v48 = vld [vmem:[#allocation2 + $0xe2] sm:$0xff]  ;;  %1168 = vst.msk [vmem:[#allocation3 + $0x49] sm:$0xf] %vm1161_vm3, %v1140_v11 }
  0x27   :  { %v2097_v41 = vld [vmem:[#allocation2 + $0x72] sm:$0xff]  ;;  %v2123_v50 = vld [vmem:[#allocation2 + $0x102] sm:$0xff] }
  0x28   :  { %v146_v45 = vld [vmem:[#allocation2 + $0xb2] sm:$0xff]  ;;  %v2133_v53 = vld [vmem:[#allocation2 + $0x20] sm:$0xff] }
  0x29   :  { %280 = vrot.lane.b32.xlu1 %v2029_v24, %s1814_s10  ;;  %282 = vrot.lane.b32.xlu0 %v129_v25, %s1814_s10  ;;  %v148_v47 = vld [vmem:[#allocation2 + $0xd2] sm:$0xff]  ;;  %v2141_v55 = vld [vmem:[#allocation2 + $0x40] sm:$0xff] }
  0x2a   :  { %v2117_v49 = vld [vmem:[#allocation2 + $0xf2] sm:$0xff]  ;;  %3120 = vst [vmem:[#allocation4_spill] sm:$0xff] %v2141_v55  ;;  %v2149_v57 = vld [vmem:[#allocation2 + $0x60] sm:$0xff] }
  0x2b   :  { %v2125_v51 = vld [vmem:[#allocation2 + $0x112] sm:$0xff]  ;;  %v2157_v59 = vld [vmem:[#allocation2 + $0x80] sm:$0xff] }
  0x2c   :  { %v2131_v52 = vld [vmem:[#allocation2 + $0x10] sm:$0xff]  ;;  %v2163_v61 = vld [vmem:[#allocation2 + $0xc0] sm:$0xff] }
  0x2d   :  { %284 = vrot.lane.b32.xlu1 %v130_v26, %s1814_s10  ;;  %286 = vrot.lane.b32.xlu0 %v131_v27, %s1814_s10  ;;  %v2139_v54 = vld [vmem:[#allocation2 + $0x30] sm:$0xff]  ;;  %v2174_v0 = vld [vmem:[#allocation2 + $0xe0] sm:$0xff] }
  0x2e   :  { %v2147_v56 = vld [vmem:[#allocation2 + $0x50] sm:$0xff]  ;;  %v2182_v2 = vld [vmem:[#allocation2 + $0x100] sm:$0xff] }
  0x2f   :  { %v2155_v58 = vld [vmem:[#allocation2 + $0x70] sm:$0xff]  ;;  %3121 = vst [vmem:[#allocation5_spill] sm:$0xff] %v2182_v2  ;;  %v2190_v4 = vld [vmem:[#allocation2 + $0x120] sm:$0xff] }
  0x30   :  { %v161_v60 = vld [vmem:[#allocation2 + $0xb0] sm:$0xff]  ;;  %v41_v25 = vld [vmem:[%s3112_s2] sm:$0xff] }
  0x31   :  { %288 = vrot.lane.b32.xlu1 %v2037_v28, %s1814_s10  ;;  %290 = vrot.lane.b32.xlu0 %v2042_v29, %s1814_s10  ;;  %v2171_v63 = vld [vmem:[#allocation2 + $0xd0] sm:$0xff] }
  0x32   :  { %v2180_v1 = vld [vmem:[#allocation2 + $0xf0] sm:$0xff] }
  0x33   :  { %v2188_v3 = vld [vmem:[#allocation2 + $0x110] sm:$0xff] }
  0x34   :  { %v43_v16 = vld [vmem:[%s3112_s2 + $0x10] sm:$0xff] }
  0x35   :  { %292 = vrot.lane.b32.xlu1 %v2044_v30, %s1814_s10  ;;  %294 = vrot.lane.b32.xlu0 %v2050_v31, %s1814_s10  ;;  %v1180_v11 = vld [vmem:[#allocation3 + $0x11] sm:$0xf] }
  0x36   :  { %1748 = vmatprep.subr.mxu0 %v43_v16  ;;  %1793 = vmatprep.subr.mxu1 %v43_v16 }
  0x37   :  { %1749 = vmatpush3.msra.mxu0 %v43_v16  ;;  %1797 = vmatpush3.msra.mxu1 %v43_v16  ;;  %v1181_v16 = vld [vmem:[#allocation3 + $0x19] sm:$0xf] }
  0x39   :  { %296 = vrot.lane.b32.xlu1 %v2052_v32, %s1814_s10  ;;  %330 = vrot.lane.b32.xlu0 %v137_v33, %s1815_s12 }
  0x3d   :  { %332 = vrot.lane.b32.xlu1 %v2070_v34, %s1815_s12  ;;  %334 = vrot.lane.b32.xlu0 %v2079_v36, %s1815_s12 }
  0x41   :  { %336 = vrot.lane.b32.xlu1 %v2081_v37, %s1815_s12  ;;  %338 = vrot.lane.b32.xlu0 %v2087_v38, %s1815_s12 }
  0x45   :  { %340 = vrot.lane.b32.xlu1 %v2089_v39, %s1815_s12  ;;  %342 = vrot.lane.b32.xlu0 %v2095_v40, %s1815_s12 }
  0x49   :  { %344 = vrot.lane.b32.xlu1 %v2097_v41, %s1815_s12  ;;  %346 = vrot.lane.b32.xlu0 %v145_v44, %s1815_s12 }
  0x4d   :  { %348 = vrot.lane.b32.xlu1 %v146_v45, %s1815_s12  ;;  %350 = vrot.lane.b32.xlu0 %v147_v46, %s1815_s12 }
  0x51   :  { %352 = vrot.lane.b32.xlu1 %v148_v47, %s1815_s12  ;;  %354 = vrot.lane.b32.xlu0 %v2115_v48, %s1815_s12 }
  0x55   :  { %356 = vrot.lane.b32.xlu1 %v2117_v49, %s1815_s12  ;;  %358 = vrot.lane.b32.xlu0 %v2123_v50, %s1815_s12 }
  0x59   :  { %360 = vrot.lane.b32.xlu1 %v2125_v51, %s1815_s12  ;;  %394 = vrot.lane.b32.xlu0 %v2131_v52, %s1816_s17 }
  0x5d   :  { %396 = vrot.lane.b32.xlu1 %v2133_v53, %s1816_s17  ;;  %398 = vrot.lane.b32.xlu0 %v2139_v54, %s1816_s17 }
  0x61   :  { %400 = vrot.lane.b32.xlu1 %v2141_v55, %s1816_s17  ;;  %402 = vrot.lane.b32.xlu0 %v2147_v56, %s1816_s17 }
  0x65   :  { %404 = vrot.lane.b32.xlu1 %v2149_v57, %s1816_s17  ;;  %406 = vrot.lane.b32.xlu0 %v2155_v58, %s1816_s17 }
  0x69   :  { %408 = vrot.lane.b32.xlu1 %v2157_v59, %s1816_s17  ;;  %410 = vrot.lane.b32.xlu0 %v161_v60, %s1816_s17 }
  0x6d   :  { %412 = vrot.lane.b32.xlu1 %v2163_v61, %s1816_s17  ;;  %414 = vrot.lane.b32.xlu0 %v2171_v63, %s1816_s17 }
  0x71   :  { %416 = vrot.lane.b32.xlu1 %v2174_v0, %s1816_s17  ;;  %418 = vrot.lane.b32.xlu0 %v2180_v1, %s1816_s17 }
  0x75   :  { %420 = vrot.lane.b32.xlu1 %v2182_v2, %s1816_s17  ;;  %422 = vrot.lane.b32.xlu0 %v2188_v3, %s1816_s17 }
  0x79   :  { %424 = vrot.lane.b32.xlu1 %v2190_v4, %s1816_s17  ;;  %458 = vrot.lane.b32.xlu0 %v2011_v19, %s1817_s20 }
  0x7c   :  { %v2219_v6 = vpop.permute.xlu0 %266 }
  0x7d   :  { %460 = vrot.lane.b32.xlu1 %v2007_v18, %s1817_s20  ;;  %462 = vrot.lane.b32.xlu0 %v2013_v20, %s1817_s20 }
  0x81   :  { %464 = vrot.lane.b32.xlu1 %v2019_v21, %s1817_s20  ;;  %466 = vrot.lane.b32.xlu0 %v2021_v22, %s1817_s20 }
  0x85   :  { %478 = vrot.lane.b32.xlu1 %v2037_v28, %s1817_s20  ;;  %480 = vrot.lane.b32.xlu0 %v2042_v29, %s1817_s20 }
  0x89   :  { %522 = vrot.lane.b32.xlu1 %v2070_v34, %s1818_s23  ;;  %542 = vrot.lane.b32.xlu0 %v148_v47, %s1818_s23  ;;  %v1178_v47 = vld [vmem:[#allocation3 + $0x1] sm:$0xf] }
  0x8d   :  { %524 = vrot.lane.b32.xlu1 %v2079_v36, %s1818_s23  ;;  %544 = vrot.lane.b32.xlu0 %v2115_v48, %s1818_s23 }
  0x8f   :  { %v2221_v7 = vpop.permute.xlu1 %270  ;;  %v2231_v9 = vpop.permute.xlu0 %268 }
  0x91   :  { %586 = vrot.lane.b32.xlu1 %v2133_v53, %s1819_s26  ;;  %606 = vrot.lane.b32.xlu0 %v2174_v0, %s1819_s26 }
  0x93   :  { %v2233_v10 = vpop.permute.xlu1 %272  ;;  %v2243_v12 = vpop.permute.xlu0 %274 }
  0x94   :  { %3122 = vst [vmem:[#allocation6_spill] sm:$0xff] %v2243_v12 }
  0x95   :  { %588 = vrot.lane.b32.xlu1 %v2139_v54, %s1819_s26  ;;  %608 = vrot.lane.b32.xlu0 %v2180_v1, %s1819_s26 }
  0x97   :  { %v2245_v13 = vpop.permute.xlu1 %276  ;;  %v2255_v15 = vpop.permute.xlu0 %278 }
  0x98   :  { %3123 = vst [vmem:[#allocation7_spill] sm:$0xff] %v2245_v13  ;;  %3124 = vst [vmem:[#allocation8_spill] sm:$0xff] %v2255_v15 }
  0x99   :  { %650 = vrot.lane.b32.xlu1 %v2007_v18, %s1820_s8  ;;  %670 = vrot.lane.b32.xlu0 %v2042_v29, %s1820_s8  ;;  %v42_v18 = vld [vmem:[%s3112_s2 + $0x8] sm:$0xff] }
  0x9a   :  { %1750 = vmatprep.subr.mxu0 %v42_v18  ;;  %1794 = vmatprep.subr.mxu1 %v42_v18 }
  0x9b   :  { %v2262_v17 = vpop.permute.xlu1 %280  ;;  %v2272_v19 = vpop.permute.xlu0 %282  ;;  %1751 = vmatpush3.msra.mxu0 %v42_v18  ;;  %1798 = vmatpush3.msra.mxu1 %v42_v18 }
  0x9c   :  { %3125 = vst [vmem:[#allocation9_spill] sm:$0xff] %v2262_v17  ;;  %3126 = vst [vmem:[#allocation10_spill] sm:$0xff] %v2272_v19  ;;  %1752 = vmatprep.subr.mxu0 %v41_v25  ;;  %1795 = vmatprep.subr.mxu1 %v41_v25  ;;  %v1194_v19 = vld [vmem:[#allocation3 + $0x8] sm:$0xf]  ;;  %v1197_v17 = vld [vmem:[#allocation3 + $0x20] sm:$0xf] }
  0x9d   :  { %482 = vrot.lane.b32.xlu1 %v2044_v30, %s1817_s20  ;;  %652 = vrot.lane.b32.xlu0 %v2013_v20, %s1820_s8 }
  0x9e   :  { %1753 = vmatpush3.msra.mxu0 %v41_v25  ;;  %1799 = vmatpush3.msra.mxu1 %v41_v25  ;;  %v1187_v25 = vld [vmem:[#allocation3 + $0xa] sm:$0xf] }
  0x9f   :  { %v2277_v26 = vpop.permute.xlu1 %284  ;;  %v2283_v27 = vpop.permute.xlu0 %286 }
  0xa0   :  { %3127 = vst [vmem:[#allocation11_spill] sm:$0xff] %v2277_v26 }
  0xa1   :  { %672 = vrot.lane.b32.xlu1 %v2044_v30, %s1820_s8  ;;  %714 = vrot.lane.b32.xlu0 %v2079_v36, %s1821_s16 }
  0xa3   :  { %v2285_v28 = vpop.permute.xlu1 %288  ;;  %v2291_v20 = vpop.permute.xlu0 %290 }
  0xa5   :  { %734 = vrot.lane.b32.xlu1 %v2115_v48, %s1821_s16  ;;  %484 = vrot.lane.b32.xlu0 %v2050_v31, %s1817_s20 }
  0xa7   :  { %v2293_v29 = vpop.permute.xlu1 %292  ;;  %v2299_v30 = vpop.permute.xlu0 %294 }
  0xa8   :  { %3128 = vst [vmem:[#allocation12_spill] sm:$0xff] %v2299_v30  ;;  %v1211_v30 = vld [vmem:[#allocation3 + $0x12] sm:$0xf] }
  0xa9   :  { %526 = vrot.lane.b32.xlu1 %v2081_v37, %s1818_s23  ;;  %546 = vrot.lane.b32.xlu0 %v2117_v49, %s1818_s23 }
  0xab   :  { %v2301_v33 = vpop.permute.xlu1 %296  ;;  %v2307_v34 = vpop.permute.xlu0 %330 }
  0xad   :  { %716 = vrot.lane.b32.xlu1 %v2081_v37, %s1821_s16  ;;  %736 = vrot.lane.b32.xlu0 %v2117_v49, %s1821_s16  ;;  %v1141_v49 = vld [vmem:[%s3111_s1 + $0x1c] sm:$0xf] }
  0xae   :  { %1169 = vst.msk [vmem:[#allocation3 + $0x51] sm:$0xf] %vm1161_vm3, %v1141_v49 }
  0xaf   :  { %v2309_v35 = vpop.permute.xlu1 %332  ;;  %v2315_v36 = vpop.permute.xlu0 %334 }
  0xb1   :  { %528 = vrot.lane.b32.xlu1 %v2087_v38, %s1818_s23  ;;  %548 = vrot.lane.b32.xlu0 %v2123_v50, %s1818_s23 }
  0xb3   :  { %v2317_v42 = vpop.permute.xlu1 %336  ;;  %v2323_v37 = vpop.permute.xlu0 %338 }
  0xb4   :  { %3129 = vst [vmem:[#allocation13_spill] sm:$0xff] %v2323_v37  ;;  %v105_v37 = vld [vmem:[#allocation2] sm:$0xff] }
  0xb5   :  { %590 = vrot.lane.b32.xlu1 %v2141_v55, %s1819_s26  ;;  %610 = vrot.lane.b32.xlu0 %v2182_v2, %s1819_s26 }
  0xb7   :  { %v2325_v43 = vpop.permute.xlu1 %340  ;;  %v2331_v44 = vpop.permute.xlu0 %342 }
  0xb8   :  { %3130 = vst [vmem:[#allocation14_spill] sm:$0xff] %v2325_v43  ;;  %3131 = vst [vmem:[#allocation15_spill] sm:$0xff] %v2331_v44  ;;  %v1202_v44 = vld [vmem:[#allocation3 + $0x9] sm:$0xf] }
  0xb9   :  { %592 = vrot.lane.b32.xlu1 %v2147_v56, %s1819_s26  ;;  %612 = vrot.lane.b32.xlu0 %v2188_v3, %s1819_s26  ;;  %v1179_v56 = vld [vmem:[#allocation3 + $0x9] sm:$0xf] }
  0xbb   :  { %v2333_v45 = vpop.permute.xlu1 %344  ;;  %v2339_v46 = vpop.permute.xlu0 %346 }
  0xbc   :  { %3132 = vst [vmem:[#allocation16_spill] sm:$0xff] %v2333_v45  ;;  %3133 = vst [vmem:[#allocation17_spill] sm:$0xff] %v2339_v46  ;;  %v1189_v46 = vld [vmem:[#allocation3 + $0x1a] sm:$0xf] }
  0xbd   :  { %654 = vrot.lane.b32.xlu1 %v2019_v21, %s1820_s8  ;;  %674 = vrot.lane.b32.xlu0 %v2050_v31, %s1820_s8 }
  0xbf   :  { %v2341_v48 = vpop.permute.xlu1 %348  ;;  %v2350_v60 = vpop.permute.xlu0 %350 }
  0xc0   :  { %3134 = vst [vmem:[#allocation18_spill] sm:$0xff] %v2341_v48 }
  0xc1   :  { %1251 = vrot.lane.b32.xlu1 %v1178_v47, %s1814_s10  ;;  %1253 = vrot.lane.b32.xlu0 %v1179_v56, %s1814_s10 }
  0xc3   :  { %v2352_v21 = vpop.permute.xlu1 %352  ;;  %v2357_v62 = vpop.permute.xlu0 %354 }
  0xc5   :  { %486 = vrot.lane.b32.xlu1 %v2052_v32, %s1817_s20  ;;  %656 = vrot.lane.b32.xlu0 %v2021_v22, %s1820_s8  ;;  %v1186_v22 = vld [vmem:[#allocation3 + $0x2] sm:$0xf] }
  0xc7   :  { %v2359_v5 = vpop.permute.xlu1 %356  ;;  %v2365_v31 = vpop.permute.xlu0 %358 }
  0xc8   :  { %3135 = vst [vmem:[#allocation19_spill] sm:$0xff] %v2365_v31 }
  0xc9   :  { %676 = vrot.lane.b32.xlu1 %v2052_v32, %s1820_s8  ;;  %718 = vrot.lane.b32.xlu0 %v2087_v38, %s1821_s16 }
  0xcb   :  { %v2367_v8 = vpop.permute.xlu1 %360  ;;  %v2373_v14 = vpop.permute.xlu0 %394 }
  0xcd   :  { %738 = vrot.lane.b32.xlu1 %v2123_v50, %s1821_s16  ;;  %1255 = vrot.lane.b32.xlu0 %v1180_v11, %s1814_s10  ;;  %v184_v50 = vld [vmem:[#allocation2 + $0x121] sm:$0xff] }
  0xcf   :  { %v2375_v18 = vpop.permute.xlu1 %396  ;;  %v2379_v32 = vpop.permute.xlu0 %398 }
  0xd1   :  { %1257 = vrot.lane.b32.xlu1 %v1181_v16, %s1814_s10  ;;  %1283 = vrot.lane.b32.xlu0 %v1186_v22, %s1815_s12 }
  0xd3   :  { %v2381_v47 = vpop.permute.xlu1 %400  ;;  %v2385_v38 = vpop.permute.xlu0 %402 }
  0xd4   :  { %3136 = vst [vmem:[#allocation20_spill] sm:$0xff] %v2385_v38 }
  0xd5   :  { %1285 = vrot.lane.b32.xlu1 %v1187_v25, %s1815_s12  ;;  %468 = vrot.lane.b32.xlu0 %v2027_v23, %s1817_s20  ;;  %v1188_v25 = vld [vmem:[#allocation3 + $0x12] sm:$0xf] }
  0xd7   :  { %v2387_v49 = vpop.permute.xlu1 %404  ;;  %v2392_v56 = vpop.permute.xlu0 %406 }
  0xd8   :  { %3137 = vst [vmem:[#allocation21_spill] sm:$0xff] %v2387_v49  ;;  %3138 = vst [vmem:[#allocation22_spill] sm:$0xff] %v2392_v56  ;;  %v1203_v49 = vld [vmem:[#allocation3 + $0x11] sm:$0xf] }
  0xd9   :  { %488 = vrot.lane.b32.xlu1 %v184_v50, %s1817_s20  ;;  %530 = vrot.lane.b32.xlu0 %v2089_v39, %s1818_s23 }
  0xdb   :  { %v2394_v11 = vpop.permute.xlu1 %408  ;;  %v2400_v16 = vpop.permute.xlu0 %410 }
  0xdc   :  { %3139 = vst [vmem:[#allocation23_spill] sm:$0xff] %v2394_v11  ;;  %3140 = vst [vmem:[#allocation24_spill] sm:$0xff] %v2400_v16 }
  0xdd   :  { %550 = vrot.lane.b32.xlu1 %v2125_v51, %s1818_s23  ;;  %720 = vrot.lane.b32.xlu0 %v2089_v39, %s1821_s16 }
  0xdf   :  { %v2402_v22 = vpop.permute.xlu1 %412  ;;  %v2408_v48 = vpop.permute.xlu0 %414 }
  0xe0   :  { %3141 = vst [vmem:[#allocation25_spill] sm:$0xff] %v2402_v22  ;;  %v1195_v22 = vld [vmem:[#allocation3 + $0x10] sm:$0xf] }
  0xe1   :  { %740 = vrot.lane.b32.xlu1 %v2125_v51, %s1821_s16  ;;  %1287 = vrot.lane.b32.xlu0 %v1188_v25, %s1815_s12  ;;  %v2422_v51 = vld [vmem:[#allocation2 + $0x122] sm:$0xff] }
  0xe3   :  { %v2410_v26 = vpop.permute.xlu1 %416  ;;  %v2414_v16 = vpop.permute.xlu0 %418 }
  0xe5   :  { %1289 = vrot.lane.b32.xlu1 %v1189_v46, %s1815_s12  ;;  %1315 = vrot.lane.b32.xlu0 %v1194_v19, %s1816_s17  ;;  %v1196_v19 = vld [vmem:[#allocation3 + $0x18] sm:$0xf] }
  0xe7   :  { %v2416_v11 = vpop.permute.xlu1 %420  ;;  %v2420_v39 = vpop.permute.xlu0 %422 }
  0xe8   :  { %3142 = vst [vmem:[#allocation26_spill] sm:$0xff] %v2420_v39 }
  0xe9   :  { %1317 = vrot.lane.b32.xlu1 %v1195_v22, %s1816_s17  ;;  %532 = vrot.lane.b32.xlu0 %v2095_v40, %s1818_s23 }
  0xeb   :  { %v2424_v45 = vpop.permute.xlu1 %424  ;;  %v459_v46 = vpop.permute.xlu0 %458 }
  0xed   :  { %552 = vrot.lane.b32.xlu1 %v2422_v51, %s1818_s23  ;;  %594 = vrot.lane.b32.xlu0 %v2149_v57, %s1819_s26 }
  0xef   :  { %v2430_v25 = vpop.permute.xlu1 %460  ;;  %v2436_v22 = vpop.permute.xlu0 %462 }
  0xf1   :  { %614 = vrot.lane.b32.xlu1 %v2190_v4, %s1819_s26  ;;  %1319 = vrot.lane.b32.xlu0 %v1196_v19, %s1816_s17  ;;  %v217_v4 = vld [vmem:[#allocation2 + $0x130] sm:$0xff] }
  0xf3   :  { %v2438_v56 = vpop.permute.xlu1 %464  ;;  %v2442_v15 = vpop.permute.xlu0 %466 }
  0xf4   :  { %3143 = vst [vmem:[#allocation27_spill] sm:$0xff] %v2442_v15 }
  0xf5   :  { %1321 = vrot.lane.b32.xlu1 %v1197_v17, %s1816_s17  ;;  %1347 = vrot.lane.b32.xlu0 %v1202_v44, %s1817_s20  ;;  %v1182_v44 = vld [vmem:[#allocation3 + $0x31] sm:$0xf] }
  0xf7   :  { %v479_v43 = vpop.permute.xlu1 %478  ;;  %v2446_v57 = vpop.permute.xlu0 %480 }
  0xf9   :  { %1349 = vrot.lane.b32.xlu1 %v1203_v49, %s1817_s20  ;;  %596 = vrot.lane.b32.xlu0 %v2155_v58, %s1819_s26  ;;  %v1183_v49 = vld [vmem:[#allocation3 + $0x39] sm:$0xf] }
  0xfa   :  { %v1204_v58 = vld [vmem:[#allocation3 + $0x19] sm:$0xf] }
  0xfb   :  { %v523_v13 = vpop.permute.xlu1 %522  ;;  %v543_v19 = vpop.permute.xlu0 %542 }
  0xfd   :  { %616 = vrot.lane.b32.xlu1 %v217_v4, %s1819_s26  ;;  %658 = vrot.lane.b32.xlu0 %v2027_v23, %s1820_s8  ;;  %v1205_v4 = vld [vmem:[#allocation3 + $0x21] sm:$0xf]  ;;  %v1210_v23 = vld [vmem:[#allocation3 + $0xa] sm:$0xf] }
  0xff   :  { %v2451_v17 = vpop.permute.xlu1 %524  ;;  %v2456_v39 = vpop.permute.xlu0 %544 }
 0x101   :  { %678 = vrot.lane.b32.xlu1 %v184_v50, %s1820_s8  ;;  %1259 = vrot.lane.b32.xlu0 %v1182_v44, %s1814_s10 }
 0x103   :  { %v587_v31 = vpop.permute.xlu1 %586  ;;  %v607_v15 = vpop.permute.xlu0 %606 }
 0x105   :  { %1261 = vrot.lane.b32.xlu1 %v1183_v49, %s1814_s10  ;;  %1351 = vrot.lane.b32.xlu0 %v1204_v58, %s1817_s20  ;;  %v762_v58 = vsel %vm46_vm0, %v105_v37, %v2219_v6 }
 0x107   :  { %v2460_v2 = vpop.permute.xlu1 %588  ;;  %v2464_v50 = vpop.permute.xlu0 %608 }
 0x109   :  { %1353 = vrot.lane.b32.xlu1 %v1205_v4, %s1817_s20  ;;  %1379 = vrot.lane.b32.xlu0 %v1210_v23, %s1818_s23  ;;  %v772_v4 = vsel %vm46_vm0, %v2163_v61, %v2283_v27  ;;  %v779_v23 = vsel %vm778_vm5, %v762_v58, %v2307_v34  ;;  %v1184_v58 = vld [vmem:[#allocation3 + $0x41] sm:$0xf] }
 0x10a   :  { %v789_v55 = vsel %vm778_vm5, %v772_v4, %v2350_v60  ;;  %v796_v6 = vsel %vm795_vm6, %v779_v23, %v2373_v14 }
 0x10b   :  { %v651_v38 = vpop.permute.xlu1 %650  ;;  %v671_v44 = vpop.permute.xlu0 %670  ;;  %v806_v12 = vsel %vm795_vm6, %v789_v55, %v2408_v48  ;;  %v813_v61 = vsel %vm812_vm7, %v796_v6, %v459_v46 }
 0x10c   :  { %v823_v34 = vsel %vm812_vm7, %v806_v12, %v479_v43 }
 0x10d   :  { %1381 = vrot.lane.b32.xlu1 %v1211_v30, %s1818_s23  ;;  %470 = vrot.lane.b32.xlu0 %v2029_v24, %s1817_s20  ;;  %v233_v30 = vld [vmem:[#allocation2 + $0x131] sm:$0xff]  ;;  %v840_v60 = vsel %vm829_vm8, %v823_v34, %v543_v19 }
 0x10e   :  { %v857_v55 = vsel %vm846_vm9, %v840_v60, %v607_v15  ;;  %v1185_v15 = vld [vmem:[#allocation3 + $0x49] sm:$0xf] }
 0x10f   :  { %v2468_v49 = vpop.permute.xlu1 %482  ;;  %v653_v37 = vpop.permute.xlu0 %652  ;;  %v874_v12 = vsel %vm863_vm10, %v857_v55, %v671_v44  ;;  %v1190_v44 = vld [vmem:[#allocation3 + $0x32] sm:$0xf]  ;;  %v2553_v55 = vld [vmem:[#allocation2 + $0x81] sm:$0xff] }
 0x111   :  { %660 = vrot.lane.b32.xlu1 %v2029_v24, %s1820_s8  ;;  %v830_v24 = vsel %vm829_vm8, %v813_v61, %v523_v13  ;;  %680 = vrot.lane.b32.xlu0 %v233_v30, %s1820_s8 }
 0x112   :  { %v847_v14 = vsel %vm846_vm9, %v830_v24, %v587_v31 }
 0x113   :  { %v673_v27 = vpop.permute.xlu1 %672  ;;  %v864_v48 = vsel %vm863_vm10, %v847_v14, %v651_v38  ;;  %v715_v46 = vpop.permute.xlu0 %714 }
 0x114   :  { %v881_v43 = vsel %vm880_vm11, %v864_v48, %v715_v46 }
 0x115   :  { %722 = vrot.lane.b32.xlu1 %v2095_v40, %s1821_s16  ;;  %742 = vrot.lane.b32.xlu0 %v2422_v51, %s1821_s16  ;;  %v763_v40 = vsel %vm46_vm0, %v2131_v52, %v2231_v9  ;;  %v773_v52 = vsel %vm46_vm0, %v2171_v63, %v2285_v28 }
 0x116   :  { %1754 = vmatprep.mubr.msk.f32.mxu0 %vm903_vm12, %v881_v43  ;;  %v780_v38 = vsel %vm778_vm5, %v763_v40, %v2309_v35  ;;  %v790_v35 = vsel %vm778_vm5, %v773_v52, %v2352_v21 }
 0x117   :  { %v735_v13 = vpop.permute.xlu1 %734  ;;  %v2510_v19 = vpop.permute.xlu0 %484  ;;  %v797_v51 = vsel %vm795_vm6, %v780_v38, %v2375_v18  ;;  %v1191_v18 = vld [vmem:[#allocation3 + $0x3a] sm:$0xf]  ;;  %v807_v30 = vsel %vm795_vm6, %v790_v35, %v2410_v26  ;;  %v774_v35 = vsel %vm46_vm0, %v2174_v0, %v2291_v20 }
 0x118   :  { %v891_v31 = vsel %vm880_vm11, %v874_v12, %v735_v13  ;;  %v814_v9 = vsel %vm812_vm7, %v797_v51, %v2430_v25  ;;  %v1212_v25 = vld [vmem:[#allocation3 + $0x1a] sm:$0xf]  ;;  %v824_v6 = vsel %vm812_vm7, %v807_v30, %v2446_v57  ;;  %v1192_v13 = vld [vmem:[#allocation3 + $0x42] sm:$0xf]  ;;  %v791_v30 = vsel %vm778_vm5, %v774_v35, %v2357_v62 }
 0x119   :  { %1263 = vrot.lane.b32.xlu1 %v1184_v58, %s1814_s10  ;;  %1769 = vmatprep.mubr.msk.f32.mxu1 %vm903_vm12, %v891_v31  ;;  %v831_v23 = vsel %vm829_vm8, %v814_v9, %v2451_v17  ;;  %v841_v17 = vsel %vm829_vm8, %v824_v6, %v2456_v39  ;;  %v1220_v39 = vld [vmem:[#allocation3 + $0x18] sm:$0xf]  ;;  %v1193_v31 = vld [vmem:[#allocation3 + $0x4a] sm:$0xf]  ;;  %v1221_v51 = vld [vmem:[#allocation3 + $0x20] sm:$0xf]  ;;  %v764_v9 = vsel %vm46_vm0, %v2133_v53, %v2221_v7 }
 0x11a   :  { %1265 = vrot.lane.b32.xlu0 %v1185_v15, %s1814_s10  ;;  %v848_v63 = vsel %vm846_vm9, %v831_v23, %v2460_v2  ;;  %v858_v26 = vsel %vm846_vm9, %v841_v17, %v2464_v50  ;;  %v1213_v2 = vld [vmem:[#allocation3 + $0x22] sm:$0xf]  ;;  %v249_v58 = vld [vmem:[#allocation2 + $0x132] sm:$0xff]  ;;  %v781_v23 = vsel %vm778_vm5, %v764_v9, %v2315_v36  ;;  %v808_v7 = vsel %vm795_vm6, %v791_v30, %v2414_v16 }
 0x11b   :  { %v2514_v4 = vpop.permute.xlu1 %526  ;;  %v2531_v28 = vpop.permute.xlu0 %546  ;;  %v865_v21 = vsel %vm863_vm10, %v848_v63, %v653_v37  ;;  %v875_v57 = vsel %vm863_vm10, %v858_v26, %v673_v27  ;;  %v1219_v37 = vld [vmem:[#allocation3 + $0x10] sm:$0xf]  ;;  %v1198_v15 = vld [vmem:[#allocation3 + $0x38] sm:$0xf]  ;;  %v798_v63 = vsel %vm795_vm6, %v781_v23, %v2379_v32  ;;  %v825_v36 = vsel %vm812_vm7, %v808_v7, %v2468_v49  ;;  %v2609_v17 = vld [vmem:[#allocation2 + $0x82] sm:$0xff] }
 0x11c   :  { %v1227_v53 = vld [vmem:[#allocation3 + $0x11] sm:$0xf]  ;;  %v815_v0 = vsel %vm812_vm7, %v798_v63, %v2436_v22  ;;  %v842_v32 = vsel %vm829_vm8, %v825_v36, %v2531_v28  ;;  %v1228_v16 = vld [vmem:[#allocation3 + $0x19] sm:$0xf]  ;;  %v1143_v63 = vld [vmem:[%s3113_s4 + $0x8] sm:$0xff] }
 0x11d   :  { %1291 = vrot.lane.b32.xlu1 %v1190_v44, %s1815_s12  ;;  %v1199_v44 = vld [vmem:[#allocation3 + $0x40] sm:$0xf]  ;;  %v832_v62 = vsel %vm829_vm8, %v815_v0, %v2514_v4  ;;  %v209_v23 = vld [vmem:[#allocation2 + $0x90] sm:$0xff] }
 0x11e   :  { %1293 = vrot.lane.b32.xlu0 %v1191_v18, %s1815_s12  ;;  %v1222_v18 = vld [vmem:[#allocation3 + $0x28] sm:$0xf]  ;;  %v1144_v30 = vld [vmem:[%s3113_s4 + $0x10] sm:$0xff]  ;;  %v1142_v0 = vld [vmem:[%s3113_s4] sm:$0xff] }
 0x11f   :  { %v717_v61 = vpop.permute.xlu1 %716  ;;  %v737_v24 = vpop.permute.xlu0 %736 }
 0x120   :  { %v882_v34 = vsel %vm880_vm11, %v865_v21, %v717_v61  ;;  %v892_v60 = vsel %vm880_vm11, %v875_v57, %v737_v24  ;;  %v1201_v24 = vld [vmem:[#allocation3 + $0x50] sm:$0xf] }
 0x121   :  { %1383 = vrot.lane.b32.xlu1 %v1212_v25, %s1818_s23  ;;  %1755 = vmatmul.mubr.msk.f32.vlgmr.msra.gmra.mxu0 %vm903_vm12, %v882_v34 }
 0x122   :  { %1385 = vrot.lane.b32.xlu0 %v1213_v2, %s1818_s23  ;;  %1770 = vmatmul.mubr.msk.f32.vlgmr.msra.gmra.mxu1 %vm903_vm12, %v892_v60  ;;  %v1200_v2 = vld [vmem:[#allocation3 + $0x48] sm:$0xf]  ;;  %v1206_v60 = vld [vmem:[#allocation3 + $0x39] sm:$0xf] }
 0x123   :  { %v2546_v14 = vpop.permute.xlu1 %528  ;;  %v2551_v50 = vpop.permute.xlu0 %548 }
 0x125   :  { %1411 = vrot.lane.b32.xlu1 %v1219_v37, %s1819_s26 }
 0x126   :  { %1413 = vrot.lane.b32.xlu0 %v1220_v39, %s1819_s26 }
 0x127   :  { %v591_v48 = vpop.permute.xlu1 %590  ;;  %v611_v27 = vpop.permute.xlu0 %610 }
 0x128   :  { %v849_v6 = vsel %vm846_vm9, %v832_v62, %v591_v48  ;;  %v859_v22 = vsel %vm846_vm9, %v842_v32, %v611_v27  ;;  %v1207_v48 = vld [vmem:[#allocation3 + $0x41] sm:$0xf]  ;;  %v1214_v62 = vld [vmem:[#allocation3 + $0x3a] sm:$0xf] }
 0x129   :  { %472 = vrot.lane.b32.xlu1 %v2553_v55, %s1817_s20 }
 0x12a   :  { %534 = vrot.lane.b32.xlu0 %v2097_v41, %s1818_s23 }
 0x12b   :  { %v2558_v46 = vpop.permute.xlu1 %592  ;;  %v2564_v12 = vpop.permute.xlu0 %612 }
 0x12d   :  { %724 = vrot.lane.b32.xlu1 %v2097_v41, %s1821_s16 }
 0x12e   :  { %744 = vrot.lane.b32.xlu0 %v249_v58, %s1821_s16  ;;  %v1229_v58 = vld [vmem:[#allocation3 + $0x21] sm:$0xf] }
 0x12f   :  { %v655_v43 = vpop.permute.xlu1 %654  ;;  %v675_v40 = vpop.permute.xlu0 %674 }
 0x130   :  { %v866_v21 = vsel %vm863_vm10, %v849_v6, %v655_v43  ;;  %v876_v49 = vsel %vm863_vm10, %v859_v22, %v675_v40  ;;  %v775_v43 = vsel %vm46_vm0, %v2180_v1, %v2293_v29  ;;  %v1230_v40 = vld [vmem:[#allocation3 + $0x29] sm:$0xf]  ;;  %v777_v6 = vsel %vm46_vm0, %v2188_v3, %v2301_v33 }
 0x131   :  { %1295 = vrot.lane.b32.xlu1 %v1192_v13, %s1815_s12  ;;  %v1238_v33 = vld [vmem:[#allocation3 + $0x2a] sm:$0xf] }
 0x132   :  { %1297 = vrot.lane.b32.xlu0 %v1193_v31, %s1815_s12 }
 0x133   :  { %v2568_v38 = vpop.permute.xlu1 %1251  ;;  %v2572_v41 = vpop.permute.xlu0 %1253 }
 0x135   :  { %1323 = vrot.lane.b32.xlu1 %v1198_v15, %s1816_s17  ;;  %v792_v15 = vsel %vm778_vm5, %v775_v43, %v2359_v5 }
 0x136   :  { %1325 = vrot.lane.b32.xlu0 %v1199_v44, %s1816_s17 }
 0x137   :  { %v2574_v52 = vpop.permute.xlu1 %486  ;;  %v2590_v25 = vpop.permute.xlu0 %656 }
 0x139   :  { %1415 = vrot.lane.b32.xlu1 %v1221_v51, %s1819_s26 }
 0x13a   :  { %1417 = vrot.lane.b32.xlu0 %v1222_v18, %s1819_s26 }
 0x13b   :  { %v2596_v20 = vpop.permute.xlu1 %676  ;;  %v719_v61 = vpop.permute.xlu0 %718 }
 0x13c   :  { %v883_v4 = vsel %vm880_vm11, %v866_v21, %v719_v61  ;;  %v1237_v61 = vld [vmem:[#allocation3 + $0x22] sm:$0xf] }
 0x13d   :  { %1443 = vrot.lane.b32.xlu1 %v1227_v53, %s1820_s8  ;;  %1757 = vmatprep.mubr.msk.f32.mxu0 %vm903_vm12, %v883_v4  ;;  %v1208_v53 = vld [vmem:[#allocation3 + $0x49] sm:$0xf] }
 0x13e   :  { %1445 = vrot.lane.b32.xlu0 %v1228_v16, %s1820_s8  ;;  %v794_v16 = vsel %vm778_vm5, %v777_v6, %v2367_v8  ;;  %v1172_v8 = vld [vmem:[#allocation3 + $0x10] sm:$0xf] }
 0x13f   :  { %v739_v34 = vpop.permute.xlu1 %738  ;;  %v2619_v28 = vpop.permute.xlu0 %1255  ;;  %v811_v22 = vsel %vm795_vm6, %v794_v16, %v2424_v45  ;;  %v1173_v45 = vld [vmem:[#allocation3 + $0x18] sm:$0xf] }
 0x140   :  { %v893_v26 = vsel %vm880_vm11, %v876_v49, %v739_v34 }
 0x141   :  { %536 = vrot.lane.b32.xlu1 %v2609_v17, %s1818_s23  ;;  %1772 = vmatprep.mubr.msk.f32.mxu1 %vm903_vm12, %v893_v26  ;;  %v177_v26 = vld [vmem:[#allocation2 + $0xb1] sm:$0xff] }
 0x142   :  { %598 = vrot.lane.b32.xlu0 %v2157_v59, %s1819_s26  ;;  %v765_v59 = vsel %vm46_vm0, %v2139_v54, %v2233_v10  ;;  %v1235_v54 = vld [vmem:[#allocation3 + $0x12] sm:$0xf]  ;;  %v809_v10 = vsel %vm795_vm6, %v792_v15, %v2416_v11  ;;  %v1236_v11 = vld [vmem:[#allocation3 + $0x1a] sm:$0xf] }
 0x143   :  { %v2621_v57 = vpop.permute.xlu1 %1257  ;;  %v2626_v37 = vpop.permute.xlu0 %1283  ;;  %v782_v31 = vsel %vm778_vm5, %v765_v59, %v2317_v42  ;;  %v826_v42 = vsel %vm812_vm7, %v809_v10, %v2510_v19  ;;  %v1216_v10 = vld [vmem:[#allocation3 + $0x4a] sm:$0xf] }
 0x144   :  { %v799_v44 = vsel %vm795_vm6, %v782_v31, %v2381_v47  ;;  %v843_v47 = vsel %vm829_vm8, %v826_v42, %v2551_v50 }
 0x145   :  { %1327 = vrot.lane.b32.xlu1 %v1200_v2, %s1816_s17  ;;  %v816_v1 = vsel %vm812_vm7, %v799_v44, %v2438_v56  ;;  %v1145_v56 = vld [vmem:[%s3113_s4 + $0x18] sm:$0x7]  ;;  %v860_v19 = vsel %vm846_vm9, %v843_v47, %v2564_v12 }
 0x146   :  { %1329 = vrot.lane.b32.xlu0 %v1201_v24, %s1816_s17  ;;  %v833_v5 = vsel %vm829_vm8, %v816_v1, %v2546_v14  ;;  %1778 = vmatprep.subr.msk.mxu1 %vm952_vm4, %v1145_v56  ;;  %v877_v50 = vsel %vm863_vm10, %v860_v19, %v2596_v20  ;;  %v1209_v20 = vld [vmem:[#allocation3 + $0x51] sm:$0xf]  ;;  %v1170_v24 = vld [vmem:[#allocation3] sm:$0xf] }
 0x147   :  { %v2628_v39 = vpop.permute.xlu1 %1285  ;;  %v2632_v27 = vpop.permute.xlu0 %468  ;;  %v850_v9 = vsel %vm846_vm9, %v833_v5, %v2558_v46  ;;  %1779 = vmatpush3.msk.msra.mxu1 %vm952_vm4, %v1145_v56  ;;  %v1499_v44 = vsel %vm46_vm0, %v1170_v24, %v2568_v38  ;;  %v1217_v5 = vld [vmem:[#allocation3 + $0x52] sm:$0xf]  ;;  %v1224_v56 = vld [vmem:[#allocation3 + $0x48] sm:$0xf] }
 0x148   :  { %v867_v14 = vsel %vm863_vm10, %v850_v9, %v2590_v25  ;;  %1780 = vmatprep.subr.mxu1 %v1144_v30  ;;  %v2752_v19 = vld [vmem:[#allocation2 + $0xc1] sm:$0xff] }
 0x149   :  { %1355 = vrot.lane.b32.xlu1 %v1206_v60, %s1817_s20  ;;  %1781 = vmatpush3.msra.mxu1 %v1144_v30  ;;  %v1501_v60 = vsel %vm46_vm0, %v1172_v8, %v2619_v28 }
 0x14a   :  { %1357 = vrot.lane.b32.xlu0 %v1207_v48, %s1817_s20  ;;  %1782 = vmatprep.subr.mxu1 %v1143_v63  ;;  %v225_v48 = vld [vmem:[#allocation2 + $0x91] sm:$0xff] }
 0x14b   :  { %v2634_v13 = vpop.permute.xlu1 %488  ;;  %v2650_v51 = vpop.permute.xlu0 %530  ;;  %1783 = vmatpush3.msra.mxu1 %v1143_v63 }
 0x14c   :  { %1784 = vmatprep.subr.mxu1 %v1142_v0  ;;  %v828_v49 = vsel %vm812_vm7, %v811_v22, %v2634_v13  ;;  %v1502_v13 = vsel %vm46_vm0, %v1173_v45, %v2621_v57  ;;  %v1507_v57 = vsel %vm778_vm5, %v1499_v44, %v2626_v37  ;;  %v3145_v22 = vld [vmem:[#allocation4_spill] sm:$0xff]  ;;  %v1234_v44 = vld [vmem:[#allocation3 + $0x59] sm:$0xf] }
 0x14d   :  { %1447 = vrot.lane.b32.xlu1 %v1229_v58, %s1820_s8  ;;  %1785 = vmatpush3.msra.mxu1 %v1142_v0  ;;  %v1171_v58 = vld [vmem:[#allocation3 + $0x8] sm:$0xf]  ;;  %v3147_v45 = vld [vmem:[#allocation20_spill] sm:$0xff] }
 0x14e   :  { %1449 = vrot.lane.b32.xlu0 %v1230_v40, %s1820_s8 }
 0x14f   :  { %v2656_v29 = vpop.permute.xlu1 %550  ;;  %v721_v35 = vpop.permute.xlu0 %720 }
 0x150   :  { %v884_v46 = vsel %vm880_vm11, %v867_v14, %v721_v35  ;;  %v193_v35 = vld [vmem:[#allocation2 + $0xb2] sm:$0xff] }
 0x151   :  { %1475 = vrot.lane.b32.xlu1 %v1235_v54, %s1821_s16  ;;  %1758 = vmatmul.mubr.msk.f32.gmra.mxu0 %vm903_vm12, %v884_v46  ;;  %v1500_v54 = vsel %vm46_vm0, %v1171_v58, %v2572_v41  ;;  %v3149_v58 = vld [vmem:[#allocation5_spill] sm:$0xff] }
 0x152   :  { %1477 = vrot.lane.b32.xlu0 %v1236_v11, %s1821_s16  ;;  %v1508_v1 = vsel %vm778_vm5, %v1500_v54, %v2628_v39 }
 0x153   :  { %v741_v18 = vpop.permute.xlu1 %740  ;;  %v1288_v25 = vpop.permute.xlu0 %1287 }
 0x154   :  { %v894_v12 = vsel %vm880_vm11, %v877_v50, %v741_v18  ;;  %v1509_v59 = vsel %vm778_vm5, %v1501_v60, %v1288_v25  ;;  %v241_v50 = vld [vmem:[#allocation2 + $0x92] sm:$0xff]  ;;  %v1231_v25 = vld [vmem:[#allocation3 + $0x41] sm:$0xf] }
 0x155   :  { %600 = vrot.lane.b32.xlu1 %v209_v23, %s1819_s26  ;;  %1773 = vmatmul.mubr.msk.f32.gmra.mxu1 %vm903_vm12, %v894_v12  ;;  %v1225_v18 = vld [vmem:[#allocation3 + $0x50] sm:$0xf]  ;;  %v1226_v12 = vld [vmem:[#allocation3 + $0x58] sm:$0xf] }
 0x156   :  { %662 = vrot.lane.b32.xlu0 %v2553_v55, %s1820_s8  ;;  %v1215_v55 = vld [vmem:[#allocation3 + $0x42] sm:$0xf] }
 0x157   :  { %v1290_v7 = vpop.permute.xlu1 %1289  ;;  %v1316_v36 = vpop.permute.xlu0 %1315 }
 0x158   :  { %v1510_v31 = vsel %vm778_vm5, %v1502_v13, %v1290_v7  ;;  %v1515_v42 = vsel %vm795_vm6, %v1507_v57, %v1316_v36 }
 0x159   :  { %1359 = vrot.lane.b32.xlu1 %v1208_v53, %s1817_s20 }
 0x15a   :  { %1361 = vrot.lane.b32.xlu0 %v1209_v20, %s1817_s20  ;;  %v1232_v20 = vld [vmem:[#allocation3 + $0x49] sm:$0xf] }
 0x15b   :  { %v1318_v32 = vpop.permute.xlu1 %1317  ;;  %v2706_v21 = vpop.permute.xlu0 %532 }
 0x15c   :  { %v1516_v47 = vsel %vm795_vm6, %v1508_v1, %v1318_v32  ;;  %v1239_v1 = vld [vmem:[#allocation3 + $0x42] sm:$0xf] }
 0x15d   :  { %1387 = vrot.lane.b32.xlu1 %v1214_v62, %s1818_s23  ;;  %v194_v62 = vld [vmem:[#allocation2 + $0xc2] sm:$0xff] }
 0x15e   :  { %1389 = vrot.lane.b32.xlu0 %v1215_v55, %s1818_s23  ;;  %v3144_v55 = vld [vmem:[#allocation6_spill] sm:$0xff] }
 0x15f   :  { %v553_v4 = vpop.permute.xlu1 %552  ;;  %v2715_v34 = vpop.permute.xlu0 %594 }
 0x160   :  { %v2711_v3 = vsel %vm829_vm8, %v828_v49, %v553_v4  ;;  %v210_v49 = vld [vmem:[#allocation2 + $0xc0] sm:$0xff]  ;;  %v3146_v4 = vld [vmem:[#allocation13_spill] sm:$0xff] }
 0x161   :  { %1479 = vrot.lane.b32.xlu1 %v1237_v61, %s1821_s16  ;;  %v766_v61 = vsel %vm46_vm0, %v3145_v22, %v3144_v55  ;;  %v3153_v22 = vld [vmem:[#allocation7_spill] sm:$0xff] }
 0x162   :  { %1481 = vrot.lane.b32.xlu0 %v1238_v33, %s1821_s16  ;;  %v783_v33 = vsel %vm778_vm5, %v766_v61, %v3146_v4 }
 0x163   :  { %v2717_v2 = vpop.permute.xlu1 %614  ;;  %v1320_v43 = vpop.permute.xlu0 %1319  ;;  %v800_v24 = vsel %vm795_vm6, %v783_v33, %v3147_v45  ;;  %v3155_v33 = vld [vmem:[#allocation21_spill] sm:$0xff] }
 0x164   :  { %v1517_v40 = vsel %vm795_vm6, %v1509_v59, %v1320_v43  ;;  %v3150_v59 = vld [vmem:[#allocation27_spill] sm:$0xff] }
 0x165   :  { %474 = vrot.lane.b32.xlu1 %v177_v26, %s1817_s20  ;;  %v1233_v26 = vld [vmem:[#allocation3 + $0x51] sm:$0xf]  ;;  %v817_v43 = vsel %vm812_vm7, %v800_v24, %v3150_v59 }
 0x166   :  { %664 = vrot.lane.b32.xlu0 %v225_v48, %s1820_s8  ;;  %v3148_v48 = vld [vmem:[#allocation12_spill] sm:$0xff] }
 0x167   :  { %v1322_v15 = vpop.permute.xlu1 %1321  ;;  %v1348_v38 = vpop.permute.xlu0 %1347  ;;  %v776_v13 = vsel %vm46_vm0, %v3149_v58, %v3148_v48 }
 0x168   :  { %v1518_v28 = vsel %vm795_vm6, %v1510_v31, %v1322_v15  ;;  %v1523_v9 = vsel %vm812_vm7, %v1515_v42, %v1348_v38  ;;  %v3151_v31 = vld [vmem:[#allocation19_spill] sm:$0xff]  ;;  %v834_v15 = vsel %vm829_vm8, %v817_v43, %v2650_v51  ;;  %v1176_v43 = vld [vmem:[#allocation3 + $0x40] sm:$0xf] }
 0x169   :  { %726 = vrot.lane.b32.xlu1 %v2609_v17, %s1821_s16  ;;  %v1223_v17 = vld [vmem:[#allocation3 + $0x40] sm:$0xf]  ;;  %v851_v57 = vsel %vm846_vm9, %v834_v15, %v2715_v34  ;;  %v1240_v34 = vld [vmem:[#allocation3 + $0x4a] sm:$0xf] }
 0x16a   :  { %1391 = vrot.lane.b32.xlu0 %v1216_v10, %s1818_s23  ;;  %v1177_v15 = vld [vmem:[#allocation3 + $0x48] sm:$0xf] }
 0x16b   :  { %v1350_v11 = vpop.permute.xlu1 %1349  ;;  %v2746_v37 = vpop.permute.xlu0 %596 }
 0x16c   :  { %v1524_v41 = vsel %vm812_vm7, %v1516_v47, %v1350_v11 }
 0x16d   :  { %1393 = vrot.lane.b32.xlu1 %v1217_v5, %s1818_s23 }
 0x16e   :  { %1419 = vrot.lane.b32.xlu0 %v1223_v17, %s1819_s26 }
 0x16f   :  { %v2748_v39 = vpop.permute.xlu1 %616  ;;  %v659_v14 = vpop.permute.xlu0 %658 }
 0x170   :  { %v868_v38 = vsel %vm863_vm10, %v851_v57, %v659_v14  ;;  %v1241_v14 = vld [vmem:[#allocation3 + $0x52] sm:$0xf] }
 0x171   :  { %1421 = vrot.lane.b32.xlu1 %v1224_v56, %s1819_s26 }
 0x172   :  { %476 = vrot.lane.b32.xlu0 %v2752_v19, %s1817_s20 }
 0x173   :  { %v679_v23 = vpop.permute.xlu1 %678  ;;  %v1260_v46 = vpop.permute.xlu0 %1259 }
 0x175   :  { %538 = vrot.lane.b32.xlu1 %v193_v35, %s1818_s23 }
 0x176   :  { %728 = vrot.lane.b32.xlu0 %v241_v50, %s1821_s16  ;;  %v1175_v50 = vld [vmem:[#allocation3 + $0x38] sm:$0xf] }
 0x177   :  { %v2757_v30 = vpop.permute.xlu1 %1261  ;;  %v1352_v63 = vpop.permute.xlu0 %1351 }
 0x178   :  { %v2762_v53 = vsel %vm812_vm7, %v1517_v40, %v1352_v63  ;;  %v793_v40 = vsel %vm778_vm5, %v776_v13, %v3151_v31  ;;  %v1504_v63 = vsel %vm46_vm0, %v1175_v50, %v2757_v30  ;;  %v1809_v30 = vld [vmem:[#allocation2 + $0x50] sm:$0xff] }
 0x179   :  { %1423 = vrot.lane.b32.xlu1 %v1225_v18, %s1819_s26  ;;  %v767_v61 = vsel %vm46_vm0, %v1809_v30, %v3153_v22 }
 0x17a   :  { %1425 = vrot.lane.b32.xlu0 %v1226_v12, %s1819_s26  ;;  %v1242_v12 = vld [vmem:[#allocation3 + $0x5a] sm:$0xf] }
 0x17b   :  { %v1354_v7 = vpop.permute.xlu1 %1353  ;;  %v1380_v36 = vpop.permute.xlu0 %1379 }
 0x17c   :  { %v2765_v0 = vsel %vm812_vm7, %v1518_v28, %v1354_v7  ;;  %v2770_v32 = vsel %vm829_vm8, %v1523_v9, %v1380_v36  ;;  %v3152_v28 = vld [vmem:[#allocation26_spill] sm:$0xff] }
 0x17d   :  { %1451 = vrot.lane.b32.xlu1 %v1231_v25, %s1820_s8  ;;  %v810_v54 = vsel %vm795_vm6, %v793_v40, %v3152_v28  ;;  %v227_v7 = vld [vmem:[#allocation2 + $0xd1] sm:$0xff]  ;;  %v862_v40 = vsel %vm846_vm9, %v2711_v3, %v2748_v39 }
 0x17e   :  { %1453 = vrot.lane.b32.xlu0 %v1232_v20, %s1820_s8  ;;  %v827_v42 = vsel %vm812_vm7, %v810_v54, %v2574_v52 }
 0x17f   :  { %v1382_v6 = vpop.permute.xlu1 %1381  ;;  %v2782_v8 = vpop.permute.xlu0 %470  ;;  %v844_v51 = vsel %vm829_vm8, %v827_v42, %v2656_v29  ;;  %v1174_v29 = vld [vmem:[#allocation3 + $0x30] sm:$0xf] }
 0x180   :  { %v2773_v16 = vsel %vm829_vm8, %v1524_v41, %v1382_v6  ;;  %v861_v9 = vsel %vm846_vm9, %v844_v51, %v2717_v2  ;;  %v211_v41 = vld [vmem:[#allocation2 + $0xd0] sm:$0xff]  ;;  %v1503_v35 = vsel %vm46_vm0, %v1174_v29, %v1260_v46 }
 0x181   :  { %540 = vrot.lane.b32.xlu1 %v194_v62, %s1818_s23  ;;  %v878_v52 = vsel %vm863_vm10, %v861_v9, %v679_v23  ;;  %v243_v6 = vld [vmem:[#allocation2 + $0xd2] sm:$0xff] }
 0x182   :  { %602 = vrot.lane.b32.xlu0 %v210_v49, %s1819_s26  ;;  %v3154_v49 = vld [vmem:[#allocation14_spill] sm:$0xff] }
 0x183   :  { %v2786_v60 = vpop.permute.xlu1 %660  ;;  %v681_v10 = vpop.permute.xlu0 %680 }
 0x185   :  { %1455 = vrot.lane.b32.xlu1 %v1233_v26, %s1820_s8 }
 0x186   :  { %1457 = vrot.lane.b32.xlu0 %v1234_v44, %s1820_s8 }
 0x187   :  { %v723_v5 = vpop.permute.xlu1 %722  ;;  %v743_v11 = vpop.permute.xlu0 %742 }
 0x188   :  { %v885_v47 = vsel %vm880_vm11, %v868_v38, %v723_v5  ;;  %v895_v17 = vsel %vm880_vm11, %v878_v52, %v743_v11 }
 0x189   :  { %1483 = vrot.lane.b32.xlu1 %v1239_v1, %s1821_s16  ;;  %1760 = vmatprep.mubr.msk.f32.mxu0 %vm903_vm12, %v885_v47 }
 0x18a   :  { %1485 = vrot.lane.b32.xlu0 %v1240_v34, %s1821_s16  ;;  %1775 = vmatprep.mubr.msk.f32.mxu1 %vm903_vm12, %v895_v17 }
 0x18b   :  { %v1264_v56 = vpop.permute.xlu1 %1263 }
 0x18c   :  { %v1266_v2 = vpop.permute.xlu0 %1265 }
 0x18d   :  { %604 = vrot.lane.b32.xlu1 %v211_v41, %s1819_s26  ;;  %v1506_v54 = vsel %vm46_vm0, %v1177_v15, %v1266_v2 }
 0x18e   :  { %666 = vrot.lane.b32.xlu0 %v2752_v19, %s1820_s8 }
 0x18f   :  { %v1292_v18 = vpop.permute.xlu1 %1291 }
 0x190   :  { %v1511_v23 = vsel %vm778_vm5, %v1503_v35, %v1292_v18  ;;  %v1294_v25 = vpop.permute.xlu0 %1293 }
 0x191   :  { %1487 = vrot.lane.b32.xlu1 %v1241_v14, %s1821_s16  ;;  %v1512_v20 = vsel %vm778_vm5, %v1504_v63, %v1294_v25 }
 0x192   :  { %1489 = vrot.lane.b32.xlu0 %v1242_v12, %s1821_s16 }
 0x193   :  { %v1384_v36 = vpop.permute.xlu1 %1383 }
 0x194   :  { %v2829_v46 = vsel %vm829_vm8, %v2762_v53, %v1384_v36  ;;  %v2833_v19 = vpop.permute.xlu0 %1385  ;;  %v784_v53 = vsel %vm778_vm5, %v767_v61, %v3154_v49  ;;  %v1810_v49 = vld [vmem:[#allocation2 + $0x60] sm:$0xff] }
 0x195   :  { %668 = vrot.lane.b32.xlu1 %v227_v7, %s1820_s8  ;;  %v801_v26 = vsel %vm795_vm6, %v784_v53, %v3155_v33  ;;  %v1534_v61 = vsel %vm829_vm8, %v2765_v0, %v2833_v19  ;;  %v3156_v53 = vld [vmem:[#allocation8_spill] sm:$0xff] }
 0x196   :  { %730 = vrot.lane.b32.xlu0 %v194_v62, %s1821_s16  ;;  %v818_v24 = vsel %vm812_vm7, %v801_v26, %v2632_v27  ;;  %v879_v27 = vsel %vm863_vm10, %v862_v40, %v681_v10 }
 0x197   :  { %v1412_v55 = vpop.permute.xlu1 %1411  ;;  %v835_v62 = vsel %vm829_vm8, %v818_v24, %v2706_v21  ;;  %v3157_v24 = vld [vmem:[#allocation15_spill] sm:$0xff] }
 0x198   :  { %v1414_v4 = vpop.permute.xlu0 %1413  ;;  %v852_v48 = vsel %vm846_vm9, %v835_v62, %v2746_v37  ;;  %v1505_v37 = vsel %vm46_vm0, %v1176_v43, %v1264_v56  ;;  %v1539_v50 = vsel %vm846_vm9, %v2770_v32, %v1412_v55  ;;  %v3158_v43 = vld [vmem:[#allocation22_spill] sm:$0xff] }
 0x199   :  { %732 = vrot.lane.b32.xlu1 %v243_v6, %s1821_s16  ;;  %v869_v13 = vsel %vm863_vm10, %v852_v48, %v2786_v60  ;;  %v1540_v18 = vsel %vm846_vm9, %v2773_v16, %v1414_v4  ;;  %v768_v4 = vsel %vm46_vm0, %v1810_v49, %v3156_v53 }
 0x19a   :  { %v785_v62 = vsel %vm778_vm5, %v768_v4, %v3157_v24 }
 0x19b   :  { %v2843_v45 = vpop.permute.xlu1 %472  ;;  %v802_v0 = vsel %vm795_vm6, %v785_v62, %v3158_v43 }
 0x19c   :  { %v2851_v58 = vpop.permute.xlu0 %534 }
 0x19f   :  { %v725_v59 = vpop.permute.xlu1 %724 }
 0x1a0   :  { %v886_v31 = vsel %vm880_vm11, %v869_v13, %v725_v59  ;;  %v745_v21 = vpop.permute.xlu0 %744 }
 0x1a1   :  { %1761 = vmatmul.mubr.msk.f32.gmra.mxu0 %vm903_vm12, %v886_v31  ;;  %v896_v44 = vsel %vm880_vm11, %v879_v27, %v745_v21 }
 0x1a2   :  { %1776 = vmatmul.mubr.msk.f32.gmra.mxu1 %vm903_vm12, %v896_v44 }
 0x1a3   :  { %v1296_v28 = vpop.permute.xlu1 %1295 }
 0x1a4   :  { %v1513_v60 = vsel %vm778_vm5, %v1505_v37, %v1296_v28  ;;  %v1298_v57 = vpop.permute.xlu0 %1297 }
 0x1a5   :  { %v1514_v3 = vsel %vm778_vm5, %v1506_v54, %v1298_v57 }
 0x1a7   :  { %v1324_v39 = vpop.permute.xlu1 %1323 }
 0x1a8   :  { %v2868_v1 = vsel %vm795_vm6, %v1511_v23, %v1324_v39  ;;  %v1326_v10 = vpop.permute.xlu0 %1325 }
 0x1a9   :  { %v2871_v42 = vsel %vm795_vm6, %v1512_v20, %v1326_v10 }
 0x1ab   :  { %v1416_v38 = vpop.permute.xlu1 %1415 }
 0x1ac   :  { %v1418_v5 = vpop.permute.xlu0 %1417  ;;  %v1541_v33 = vsel %vm846_vm9, %v2829_v46, %v1416_v38  ;;  %v819_v46 = vsel %vm812_vm7, %v802_v0, %v2782_v8  ;;  %v2936_v8 = vld [vmem:[%s3114_s3] ss:$0 sm:$0xff] }
 0x1ad   :  { %v1542_v26 = vsel %vm846_vm9, %v1534_v61, %v1418_v5  ;;  %v836_v21 = vsel %vm829_vm8, %v819_v46, %v2851_v58  ;;  %v1811_v5 = vld [vmem:[#allocation2 + $0x70] sm:$0xff] }
 0x1af   :  { %v1444_v51 = vpop.permute.xlu1 %1443 }
 0x1b0   :  { %v1446_v47 = vpop.permute.xlu0 %1445  ;;  %v1547_v23 = vsel %vm863_vm10, %v1539_v50, %v1444_v51  ;;  %v3159_v51 = vld [vmem:[#allocation9_spill] sm:$0xff]  ;;  %v3161_v50 = vld [vmem:[#allocation23_spill] sm:$0xff] }
 0x1b1   :  { %v1548_v12 = vsel %vm863_vm10, %v1540_v18, %v1446_v47  ;;  %v769_v47 = vsel %vm46_vm0, %v1811_v5, %v3159_v51  ;;  %v3163_v5 = vld [vmem:[#allocation11_spill] sm:$0xff] }
 0x1b3   :  { %v2873_v9 = vpop.permute.xlu1 %536 }
 0x1b4   :  { %v599_v34 = vpop.permute.xlu0 %598 }
 0x1b5   :  { %v853_v37 = vsel %vm846_vm9, %v836_v21, %v599_v34 }
 0x1b7   :  { %v1328_v52 = vpop.permute.xlu1 %1327 }
 0x1b8   :  { %v2876_v11 = vsel %vm795_vm6, %v1513_v60, %v1328_v52  ;;  %v1330_v41 = vpop.permute.xlu0 %1329 }
 0x1b9   :  { %v2879_v17 = vsel %vm795_vm6, %v1514_v3, %v1330_v41 }
 0x1bb   :  { %v2881_v56 = vpop.permute.xlu1 %1355 }
 0x1bc   :  { %v2883_v29 = vpop.permute.xlu0 %1357 }
 0x1bd   :  { %v1528_v43 = vsel %vm812_vm7, %v2871_v42, %v2883_v29 }
 0x1bf   :  { %v1448_v2 = vpop.permute.xlu1 %1447 }
 0x1c0   :  { %v1450_v14 = vpop.permute.xlu0 %1449  ;;  %v1549_v48 = vsel %vm863_vm10, %v1541_v33, %v1448_v2  ;;  %v3160_v2 = vld [vmem:[#allocation16_spill] sm:$0xff] }
 0x1c1   :  { %v1550_v13 = vsel %vm863_vm10, %v1542_v26, %v1450_v14  ;;  %v786_v14 = vsel %vm778_vm5, %v769_v47, %v3160_v2  ;;  %v3164_v47 = vld [vmem:[#allocation17_spill] sm:$0xff] }
 0x1c2   :  { %v803_v18 = vsel %vm795_vm6, %v786_v14, %v3161_v50  ;;  %v3167_v14 = vld [vmem:[#allocation25_spill] sm:$0xff] }
 0x1c3   :  { %v1476_v35 = vpop.permute.xlu1 %1475 }
 0x1c4   :  { %v1478_v63 = vpop.permute.xlu0 %1477  ;;  %v1555_v25 = vsel %vm880_vm11, %v1547_v23, %v1476_v35 }
 0x1c5   :  { %v1556_v7 = vsel %vm880_vm11, %v1548_v12, %v1478_v63 }
 0x1c6   :  { %v1577_v36 = vcombine.low %v1555_v25, %v1556_v7  ;;  %v820_v25 = vsel %vm812_vm7, %v803_v18, %v2843_v45 }
 0x1c7   :  { %v601_v20 = vpop.permute.xlu1 %600 }
 0x1c8   :  { %1786 = vmatprep.mubr.msk.f32.mxu1 %vm903_vm12, %v1577_v36  ;;  %v663_v6 = vpop.permute.xlu0 %662 }
 0x1c9   :  { %v870_v44 = vsel %vm863_vm10, %v853_v37, %v663_v6 }
 0x1cb   :  { %v2894_v30 = vpop.permute.xlu1 %1359 }
 0x1cc   :  { %v2896_v32 = vpop.permute.xlu0 %1361 }
 0x1cf   :  { %v2898_v55 = vpop.permute.xlu1 %1387 }
 0x1d0   :  { %v2900_v16 = vpop.permute.xlu0 %1389 }
 0x1d3   :  { %v1480_v22 = vpop.permute.xlu1 %1479 }
 0x1d4   :  { %v1482_v59 = vpop.permute.xlu0 %1481  ;;  %v1557_v19 = vsel %vm880_vm11, %v1549_v48, %v1480_v22  ;;  %v837_v22 = vsel %vm829_vm8, %v820_v25, %v2873_v9 }
 0x1d5   :  { %v1558_v31 = vsel %vm880_vm11, %v1550_v13, %v1482_v59  ;;  %v854_v61 = vsel %vm846_vm9, %v837_v22, %v601_v20  ;;  %v1527_v59 = vsel %vm812_vm7, %v2868_v1, %v2881_v56 }
 0x1d6   :  { %v1578_v27 = vcombine.low %v1557_v19, %v1558_v31  ;;  %v1535_v19 = vsel %vm829_vm8, %v1527_v59, %v2898_v55  ;;  %v1536_v31 = vsel %vm829_vm8, %v1528_v43, %v2900_v16  ;;  %v1529_v16 = vsel %vm812_vm7, %v2876_v11, %v2894_v30 }
 0x1d7   :  { %v2918_v40 = vpop.permute.xlu1 %474 }
 0x1d8   :  { %1787 = vmatmul.mubr.msk.f32.vlgmr.msra.gmra.mxu1 %vm903_vm12, %v1578_v27  ;;  %v665_v15 = vpop.permute.xlu0 %664 }
 0x1d9   :  { %v871_v49 = vsel %vm863_vm10, %v854_v61, %v665_v15 }
 0x1db   :  { %v727_v28 = vpop.permute.xlu1 %726 }
 0x1dc   :  { %v887_v60 = vsel %vm880_vm11, %v870_v44, %v727_v28  ;;  %v2929_v54 = vpop.permute.xlu0 %1391  ;;  %v113_v44 = vld [vmem:[#allocation2 + $0xa0] sm:$0xff]  ;;  %v1530_v28 = vsel %vm812_vm7, %v2879_v17, %v2896_v32  ;;  %v3165_v32 = vld [vmem:[#allocation18_spill] sm:$0xff] }
 0x1dd   :  { %1763 = vmatprep.mubr.msk.f32.mxu0 %vm903_vm12, %v887_v60 }
 0x1df   :  { %v2931_v57 = vpop.permute.xlu1 %1393 }
 0x1e0   :  { %v1420_v39 = vpop.permute.xlu0 %1419 }
 0x1e1   :  { %v1756_v58 = vpop.f32.mrf.mxu0  ;;  %v1543_v46 = vsel %vm846_vm9, %v1535_v19, %v1420_v39  ;;  %v1537_v39 = vsel %vm829_vm8, %v1529_v16, %v2929_v54  ;;  %v1712_v16 = vld [vmem:[%s3116_s5] ss:$0 sm:$0xff] }
 0x1e2   :  { %v1028_v3 = vadd.f32 %v1756_v58, %v2936_v8  ;;  %v1771_v41 = vpop.f32.mrf.mxu1  ;;  %v3162_v58 = vld [vmem:[#allocation10_spill] sm:$0xff] }
 0x1e3   :  { %v1422_v10 = vpop.permute.xlu1 %1421  ;;  %v1022_v38 = vpop.f32.mrf.mxu0  ;;  %v1078_v35 = vadd.f32 %v1771_v41, %v2936_v8 }
 0x1e4   :  { %v1102_v34 = vmax.f32 %v1028_v3, 0.0  ;;  %v1023_v52 = vadd.f32 %v2936_v8, %v1022_v38  ;;  %v1072_v12 = vpop.f32.mrf.mxu1  ;;  %v477_v63 = vpop.permute.xlu0 %476  ;;  %v1544_v27 = vsel %vm846_vm9, %v1536_v31, %v1422_v10  ;;  %v770_v3 = vsel %vm46_vm0, %v113_v44, %v3162_v58  ;;  %v1812_v38 = vld [vmem:[#allocation2 + $0xb0] sm:$0xff] }
 0x1e5   :  { %v1112_v7 = vmax.f32 %v1078_v35, 0.0  ;;  %v1073_v36 = vadd.f32 %v2936_v8, %v1072_v12  ;;  %v1538_v10 = vsel %vm829_vm8, %v1530_v28, %v2931_v57  ;;  %v771_v51 = vsel %vm46_vm0, %v1812_v38, %v3163_v5 }
 0x1e6   :  { %1119 = vst.msk [vmem:[%s3115_s6 + $0x8] sm:$0xff] %vm1117_vm13, %v1102_v34  ;;  %v1101_v23 = vmax.f32 %v1023_v52, 0.0  ;;  %v787_v11 = vsel %vm778_vm5, %v770_v3, %v3164_v47  ;;  %v788_v34 = vsel %vm778_vm5, %v771_v51, %v3165_v32  ;;  %v3166_v52 = vld [vmem:[#allocation24_spill] sm:$0xff] }
 0x1e7   :  { %v539_v6 = vpop.permute.xlu1 %538  ;;  %1129 = vst.msk [vmem:[%s3115_s6 + $0x58] sm:$0xff] %vm1117_vm13, %v1112_v7  ;;  %v1111_v45 = vmax.f32 %v1073_v36, 0.0  ;;  %v804_v54 = vsel %vm795_vm6, %v787_v11, %v3166_v52  ;;  %v805_v35 = vsel %vm795_vm6, %v788_v34, %v3167_v14 }
 0x1e8   :  { %1118 = vst.msk [vmem:[%s3115_s6] sm:$0xff] %vm1117_vm13, %v1101_v23  ;;  %v729_v53 = vpop.permute.xlu0 %728  ;;  %v821_v50 = vsel %vm812_vm7, %v804_v54, %v2918_v40  ;;  %v822_v25 = vsel %vm812_vm7, %v805_v35, %v477_v63 }
 0x1e9   :  { %1128 = vst.msk [vmem:[%s3115_s6 + $0x50] sm:$0xff] %vm1117_vm13, %v1111_v45  ;;  %v888_v9 = vsel %vm880_vm11, %v871_v49, %v729_v53  ;;  %v838_v7 = vsel %vm829_vm8, %v821_v50, %v539_v6 }
 0x1ea   :  { %1764 = vmatmul.mubr.msk.f32.gmra.mxu0 %vm903_vm12, %v888_v9 }
 0x1eb   :  { %v1424_v4 = vpop.permute.xlu1 %1423 }
 0x1ec   :  { %v1426_v20 = vpop.permute.xlu0 %1425  ;;  %v1545_v30 = vsel %vm846_vm9, %v1537_v39, %v1424_v4 }
 0x1ed   :  { %v1546_v17 = vsel %vm846_vm9, %v1538_v10, %v1426_v20 }
 0x1ef   :  { %v1452_v33 = vpop.permute.xlu1 %1451 }
 0x1f0   :  { %v1454_v26 = vpop.permute.xlu0 %1453  ;;  %v1551_v21 = vsel %vm863_vm10, %v1543_v46, %v1452_v33 }
 0x1f1   :  { %v1552_v37 = vsel %vm863_vm10, %v1544_v27, %v1454_v26 }
 0x1f3   :  { %v541_v24 = vpop.permute.xlu1 %540 }
 0x1f4   :  { %v603_v62 = vpop.permute.xlu0 %602  ;;  %v839_v22 = vsel %vm829_vm8, %v822_v25, %v541_v24 }
 0x1f5   :  { %v855_v61 = vsel %vm846_vm9, %v838_v7, %v603_v62 }
 0x1f7   :  { %v1456_v48 = vpop.permute.xlu1 %1455 }
 0x1f8   :  { %v1458_v13 = vpop.permute.xlu0 %1457  ;;  %v1553_v41 = vsel %vm863_vm10, %v1545_v30, %v1456_v48 }
 0x1f9   :  { %v1554_v57 = vsel %vm863_vm10, %v1546_v17, %v1458_v13 }
 0x1fb   :  { %v1484_v0 = vpop.permute.xlu1 %1483 }
 0x1fc   :  { %v1486_v1 = vpop.permute.xlu0 %1485  ;;  %v1559_v56 = vsel %vm880_vm11, %v1551_v21, %v1484_v0 }
 0x1fd   :  { %v1560_v42 = vsel %vm880_vm11, %v1552_v37, %v1486_v1 }
 0x1fe   :  { %v1579_v15 = vcombine.low %v1559_v56, %v1560_v42 }
 0x1ff   :  { %v605_v29 = vpop.permute.xlu1 %604 }
 0x200   :  { %1789 = vmatprep.mubr.msk.f32.mxu1 %vm903_vm12, %v1579_v15  ;;  %v667_v55 = vpop.permute.xlu0 %666  ;;  %v856_v45 = vsel %vm846_vm9, %v839_v22, %v605_v29 }
 0x201   :  { %v872_v49 = vsel %vm863_vm10, %v855_v61, %v667_v55 }
 0x203   :  { %v1488_v60 = vpop.permute.xlu1 %1487 }
 0x204   :  { %v1490_v2 = vpop.permute.xlu0 %1489  ;;  %v1561_v18 = vsel %vm880_vm11, %v1553_v41, %v1488_v60 }
 0x205   :  { %v1562_v23 = vsel %vm880_vm11, %v1554_v57, %v1490_v2 }
 0x206   :  { %v1580_v36 = vcombine.low %v1561_v18, %v1562_v23 }
 0x207   :  { %v669_v12 = vpop.permute.xlu1 %668 }
 0x208   :  { %1790 = vmatmul.mubr.msk.f32.gmra.mxu1 %vm903_vm12, %v1580_v36  ;;  %v731_v40 = vpop.permute.xlu0 %730  ;;  %v873_v53 = vsel %vm863_vm10, %v856_v45, %v669_v12 }
 0x209   :  { %v889_v9 = vsel %vm880_vm11, %v872_v49, %v731_v40 }
 0x20a   :  { %1766 = vmatprep.mubr.msk.f32.mxu0 %vm903_vm12, %v889_v9 }
 0x20b   :  { %v733_v4 = vpop.permute.xlu1 %732 }
 0x20c   :  { %v890_v63 = vsel %vm880_vm11, %v873_v53, %v733_v4 }
 0x20d   :  { %1767 = vmatmul.mubr.msk.f32.gmra.mxu0 %vm903_vm12, %v890_v63 }
 0x211   :  { %v1759_v6 = vpop.f32.mrf.mxu0 }
 0x212   :  { %v1038_v20 = vadd.f32 %v1759_v6, %v2936_v8 }
 0x213   :  { %v1032_v24 = vpop.f32.mrf.mxu0 }
 0x214   :  { %v1104_v62 = vmax.f32 %v1038_v20, 0.0  ;;  %v1033_v48 = vadd.f32 %v2936_v8, %v1032_v24 }
 0x215   :  { %v1774_v33 = vpop.f32.mrf.mxu1 }
 0x216   :  { %v1088_v26 = vadd.f32 %v1774_v33, %v2936_v8  ;;  %1121 = vst.msk [vmem:[%s3115_s6 + $0x18] sm:$0xff] %vm1117_vm13, %v1104_v62  ;;  %v1103_v0 = vmax.f32 %v1033_v48, 0.0 }
 0x217   :  { %v1082_v13 = vpop.f32.mrf.mxu1 }
 0x218   :  { %v1114_v59 = vmax.f32 %v1088_v26, 0.0  ;;  %v1083_v43 = vadd.f32 %v2936_v8, %v1082_v13  ;;  %1120 = vst.msk [vmem:[%s3115_s6 + $0x10] sm:$0xff] %vm1117_vm13, %v1103_v0 }
 0x21a   :  { %1131 = vst.msk [vmem:[%s3115_s6 + $0x68] sm:$0xff] %vm1117_vm13, %v1114_v59  ;;  %v1113_v19 = vmax.f32 %v1083_v43, 0.0 }
 0x21c   :  { %1130 = vst.msk [vmem:[%s3115_s6 + $0x60] sm:$0xff] %vm1117_vm13, %v1113_v19 }
 0x261   :  { %v1762_v31 = vpop.f32.mrf.mxu0 }
 0x262   :  { %v1048_v46 = vadd.f32 %v1762_v31, %v2936_v8  ;;  %v1777_v1 = vpop.f32.mrf.mxu1 }
 0x263   :  { %v1042_v27 = vpop.f32.mrf.mxu0  ;;  %v1098_v56 = vadd.f32 %v1777_v1, %v2936_v8 }
 0x264   :  { %v1106_v21 = vmax.f32 %v1048_v46, 0.0  ;;  %v1043_v37 = vadd.f32 %v2936_v8, %v1042_v27  ;;  %v1092_v29 = vpop.f32.mrf.mxu1 }
 0x265   :  { %v1116_v15 = vmax.f32 %v1098_v56, 0.0  ;;  %v1093_v44 = vadd.f32 %v2936_v8, %v1092_v29 }
 0x266   :  { %1123 = vst.msk [vmem:[%s3115_s6 + $0x28] sm:$0xff] %vm1117_vm13, %v1106_v21  ;;  %v1105_v42 = vmax.f32 %v1043_v37, 0.0 }
 0x267   :  { %1133 = vst.msk [vmem:[%s3115_s6 + $0x78] sm:$0xff] %vm1117_vm13, %v1116_v15  ;;  %v1115_v55 = vmax.f32 %v1093_v44, 0.0 }
 0x268   :  { %1122 = vst.msk [vmem:[%s3115_s6 + $0x20] sm:$0xff] %vm1117_vm13, %v1105_v42 }
 0x269   :  { %1132 = vst.msk [vmem:[%s3115_s6 + $0x70] sm:$0xff] %vm1117_vm13, %v1115_v55 }
 0x298   :  { %v1788_v28 = vpop.f32.mrf.mxu1 }
 0x299   :  { %v1664_v60 = vadd.f32 %v1788_v28, %v1712_v16 }
 0x29a   :  { %v1658_v58 = vpop.f32.mrf.mxu1 }
 0x29b   :  { %v1678_v3 = vmax.f32 %v1664_v60, 0.0  ;;  %v1659_v39 = vadd.f32 %v1712_v16, %v1658_v58 }
 0x29d   :  { %1683 = vst.msk [vmem:[%s3117_s7 + $0x8] sm:$0xff] %vm1681_vm14, %v1678_v3  ;;  %v1677_v10 = vmax.f32 %v1659_v39, 0.0 }
 0x29f   :  { %1682 = vst.msk [vmem:[%s3117_s7] sm:$0xff] %vm1681_vm14, %v1677_v10 }
 0x2aa   :  { %v1765_v38 = vpop.f32.mrf.mxu0 }
 0x2ab   :  { %v1058_v5 = vadd.f32 %v1765_v38, %v2936_v8 }
 0x2ac   :  { %v1052_v51 = vpop.f32.mrf.mxu0 }
 0x2ad   :  { %v1108_v47 = vmax.f32 %v1058_v5, 0.0  ;;  %v1053_v11 = vadd.f32 %v2936_v8, %v1052_v51 }
 0x2af   :  { %1125 = vst.msk [vmem:[%s3115_s6 + $0x38] sm:$0xff] %vm1117_vm13, %v1108_v47  ;;  %v1107_v30 = vmax.f32 %v1053_v11, 0.0 }
 0x2b1   :  { %1124 = vst.msk [vmem:[%s3115_s6 + $0x30] sm:$0xff] %vm1117_vm13, %v1107_v30 }
 0x2c8   :  { %v1791_v17 = vpop.f32.mrf.mxu1 }
 0x2c9   :  { %v1674_v32 = vadd.f32 %v1791_v17, %v1712_v16 }
 0x2ca   :  { %v1668_v34 = vpop.f32.mrf.mxu1 }
 0x2cb   :  { %v1680_v52 = vmax.f32 %v1674_v32, 0.0  ;;  %v1669_v54 = vadd.f32 %v1712_v16, %v1668_v34 }
 0x2cd   :  { %v1768_v41 = vpop.f32.mrf.mxu0  ;;  %1685 = vst.msk [vmem:[%s3117_s7 + $0x18] sm:$0xff] %vm1681_vm14, %v1680_v52  ;;  %v1679_v2 = vmax.f32 %v1669_v54, 0.0 }
 0x2ce   :  { %v1068_v57 = vadd.f32 %v1768_v41, %v2936_v8 }
 0x2cf   :  { %v1062_v14 = vpop.f32.mrf.mxu0  ;;  %1684 = vst.msk [vmem:[%s3117_s7 + $0x10] sm:$0xff] %vm1681_vm14, %v1679_v2 }
 0x2d0   :  { %v1110_v35 = vmax.f32 %v1068_v57, 0.0  ;;  %v1063_v50 = vadd.f32 %v2936_v8, %v1062_v14 }
 0x2d2   :  { %1127 = vst.msk [vmem:[%s3115_s6 + $0x48] sm:$0xff] %vm1117_vm13, %v1110_v35  ;;  %v1109_v18 = vmax.f32 %v1063_v50, 0.0 }
 0x2d4   :  { %1126 = vst.msk [vmem:[%s3115_s6 + $0x40] sm:$0xff] %vm1117_vm13, %v1109_v18 }

// kernel: uflow_forward.10
= control target key start
LH: loop header
LB: loop body
LE: loop exit
PB: predicated region body
PF: predicated region fallthrough
CT: control target
= control target key end

     0   :  { %vm104_vm0 = vcmask 1044480   ;;  %vm55_vm1 = vcmask 39936   ;;  %vm762_vm2 = vcmask 1041408   ;;  %s1269_s26 = smov 5   ;;  %vm713_vm3 = vcmask 80896   ;;  %s1803_s1 = inlined_call_operand.vmem [shape: f32[5,5], index: 1, kind: input, shape index: {}]   ;;  %s1804_s0 = inlined_call_operand.vmem [shape: f32[128,10], index: 0, kind: input, shape index: {}]   ;;  %s1805_s3 = inlined_call_operand.vmem [shape: f32[5,10], index: 3, kind: input, shape index: {}]   ;;  %s1806_s2 = inlined_call_operand.vmem [shape: f32[1,5], index: 2, kind: input, shape index: {}]   ;;  %s1807_s4 = inlined_call_operand.vmem [shape: f32[1,10], index: 4, kind: input, shape index: {}]   ;;  %s1808_s7 = inlined_call_operand.vmem [shape: f32[10,10], index: 7, kind: input, shape index: {}]   ;;  %s1809_s5 = inlined_call_operand.vmem [shape: f32[1,10], index: 5, kind: input, shape index: {}]   ;;  %s1810_s6 = inlined_call_operand.vmem [shape: f32[1,10], index: 6, kind: input, shape index: {}]   ;;  %s1811_s9 = inlined_call_operand.vmem [shape: f32[2,128], index: 9, kind: output, shape index: {1}]   ;;  %s1812_s8 = inlined_call_operand.vmem [shape: f32[128,10], index: 8, kind: output, shape index: {0}]  }
   0x1   :  { %v47_v0 = vld [vmem:[%s1803_s1] sm:$0x1f]  ;;  %v1331_v2 = vld [vmem:[%s1804_s0 + $0x8] sm:$0xff]  ;;  %v1339_v3 = vld [vmem:[%s1804_s0 + $0x10] sm:$0xff]  ;;  %vm1003_vm4 = vcmask 1041409  }
   0x2   :  { %v1326_v1 = vld [vmem:[%s1804_s0] sm:$0xff]  ;;  %1122 = vmatprep.subr.msk.mxu0 %vm104_vm0, %v47_v0  ;;  %1202 = vmatprep.subr.msk.mxu1 %vm104_vm0, %v47_v0  ;;  %v1354_v5 = vld [vmem:[%s1804_s0 + $0x48] sm:$0xff]  ;;  %v1359_v6 = vld [vmem:[%s1804_s0 + $0x50] sm:$0xff] }
   0x3   :  { %1124 = vmatprep.mubr.msk.f32.mxu0 %vm55_vm1, %v1326_v1  ;;  %1123 = vmatpush3.msk.msra.mxu0 %vm104_vm0, %v47_v0  ;;  %v1349_v4 = vld [vmem:[%s1804_s0 + $0x40] sm:$0xff]  ;;  %v1366_v7 = vld [vmem:[%s1804_s0 + $0x18] sm:$0xff]  ;;  %v1401_v12 = vld [vmem:[%s1804_s0 + $0x28] sm:$0xff] }
   0x4   :  { %1125 = vmatmul.mubr.msk.f32.vlgmr.msra.gmra.mxu0 %vm55_vm1, %v1331_v2  ;;  %1203 = vmatpush3.msk.msra.mxu1 %vm104_vm0, %v47_v0  ;;  %v1373_v8 = vld [vmem:[%s1804_s0 + $0x20] sm:$0xff]  ;;  %v1385_v10 = vld [vmem:[%s1804_s0 + $0x58] sm:$0xff]  ;;  %v1406_v13 = vld [vmem:[%s1804_s0 + $0x30] sm:$0xff] }
   0x5   :  { %1127 = vmatprep.mubr.msk.f32.mxu0 %vm55_vm1, %v1339_v3  ;;  %1136 = vmatprep.mubr.msk.f32.mxu1 %vm55_vm1, %v1349_v4  ;;  %v269_v9 = vld [vmem:[%s1805_s3] sm:$0x1f]  ;;  %v1415_v14 = vld [vmem:[%s1804_s0 + $0x68] sm:$0xff]  ;;  %v1422_v15 = vld [vmem:[%s1804_s0 + $0x70] sm:$0xff] }
   0x6   :  { %1137 = vmatmul.mubr.msk.f32.vlgmr.msra.gmra.mxu1 %vm55_vm1, %v1354_v5  ;;  %1148 = vmatprep.subr.msk.mxu1 %vm104_vm0, %v269_v9  ;;  %v1393_v11 = vld [vmem:[%s1804_s0 + $0x60] sm:$0xff]  ;;  %v1429_v16 = vld [vmem:[%s1804_s0 + $0x38] sm:$0xff] }
   0x7   :  { %1139 = vmatprep.mubr.msk.f32.mxu1 %vm55_vm1, %v1359_v6  ;;  %1149 = vmatpush3.msk.msra.mxu1 %vm104_vm0, %v269_v9  ;;  %v1438_v17 = vld [vmem:[%s1804_s0 + $0x78] sm:$0xff]  ;;  %v1015_v18 = vld [vmem:[%s1806_s2] ss:$0 sm:$0xff] }
   0x8   :  { %1128 = vmatmul.mubr.msk.f32.gmra.mxu0 %vm55_vm1, %v1366_v7 }
   0x9   :  { %1130 = vmatprep.mubr.msk.f32.mxu0 %vm55_vm1, %v1373_v8 }
   0xa   :  { %1140 = vmatmul.mubr.msk.f32.gmra.mxu1 %vm55_vm1, %v1385_v10 }
   0xb   :  { %1142 = vmatprep.mubr.msk.f32.mxu1 %vm55_vm1, %v1393_v11 }
   0xc   :  { %1131 = vmatmul.mubr.msk.f32.gmra.mxu0 %vm55_vm1, %v1401_v12 }
   0xd   :  { %1133 = vmatprep.mubr.msk.f32.mxu0 %vm55_vm1, %v1406_v13 }
   0xe   :  { %1143 = vmatmul.mubr.msk.f32.gmra.mxu1 %vm55_vm1, %v1415_v14 }
   0xf   :  { %1145 = vmatprep.mubr.msk.f32.mxu1 %vm55_vm1, %v1422_v15 }
  0x10   :  { %1134 = vmatmul.mubr.msk.f32.gmra.mxu0 %vm55_vm1, %v1429_v16 }
  0x12   :  { %1146 = vmatmul.mubr.msk.f32.gmra.mxu1 %vm55_vm1, %v1438_v17 }
  0xc4   :  { %v1126_v19 = vpop.f32.mrf.mxu0 }
  0xc5   :  { %v180_v20 = vadd.f32 %v1126_v19, %v1015_v18 }
  0xc6   :  { %v174_v21 = vpop.f32.mrf.mxu0  ;;  %v1138_v22 = vpop.f32.mrf.mxu1 }
  0xc7   :  { %v175_v23 = vadd.f32 %v1015_v18, %v174_v21  ;;  %v254_v27 = vmax.f32 %v180_v20, 0.0  ;;  %v220_v49 = vadd.f32 %v1138_v22, %v1015_v18  ;;  %v1466_v20 = vld [vmem:[%s1807_s4] ss:$0 sm:$0xff] }
  0xc8   :  { %v1129_v24 = vpop.f32.mrf.mxu0  ;;  %v214_v25 = vpop.f32.mrf.mxu1 }
  0xc9   :  { %v253_v26 = vmax.f32 %v175_v23, 0.0  ;;  %v190_v28 = vadd.f32 %v1129_v24, %v1015_v18  ;;  %v215_v44 = vadd.f32 %v1015_v18, %v214_v25  ;;  %v262_v54 = vmax.f32 %v220_v49, 0.0 }
  0xca   :  { %v184_v29 = vpop.f32.mrf.mxu0  ;;  %v1141_v30 = vpop.f32.mrf.mxu1 }
  0xcb   :  { %v185_v31 = vadd.f32 %v1015_v18, %v184_v29  ;;  %1150 = vmatprep.mubr.msk.f32.mxu1 %vm55_vm1, %v253_v26  ;;  %v256_v36 = vmax.f32 %v190_v28, 0.0  ;;  %v261_v51 = vmax.f32 %v215_v44, 0.0  ;;  %v230_v55 = vadd.f32 %v1141_v30, %v1015_v18  ;;  %v712_v26 = vld [vmem:[%s1808_s7 + $0x8] sm:$0x3] }
  0xcc   :  { %v1132_v32 = vpop.f32.mrf.mxu0  ;;  %1151 = vmatmul.mubr.msk.f32.vlgmr.msra.gmra.mxu1 %vm55_vm1, %v254_v27  ;;  %v224_v33 = vpop.f32.mrf.mxu1  ;;  %1174 = vmatprep.subr.msk.mxu0 %vm762_vm2, %v712_v26 }
  0xcd   :  { %v255_v34 = vmax.f32 %v185_v31, 0.0  ;;  %v200_v35 = vadd.f32 %v1132_v32, %v1015_v18  ;;  %v225_v52 = vadd.f32 %v1015_v18, %v224_v33  ;;  %v264_v59 = vmax.f32 %v230_v55, 0.0  ;;  %1175 = vmatpush3.msk.msra.mxu0 %vm762_vm2, %v712_v26 }
  0xce   :  { %v194_v37 = vpop.f32.mrf.mxu0  ;;  %v1144_v38 = vpop.f32.mrf.mxu1 }
  0xcf   :  { %v195_v39 = vadd.f32 %v1015_v18, %v194_v37  ;;  %1153 = vmatprep.mubr.msk.f32.mxu1 %vm55_vm1, %v255_v34  ;;  %v258_v40 = vmax.f32 %v200_v35, 0.0  ;;  %v263_v56 = vmax.f32 %v225_v52, 0.0  ;;  %v240_v60 = vadd.f32 %v1144_v38, %v1015_v18 }
  0xd0   :  { %v1135_v41 = vpop.f32.mrf.mxu0  ;;  %1154 = vmatmul.mubr.msk.f32.gmra.mxu1 %vm55_vm1, %v256_v36  ;;  %v234_v46 = vpop.f32.mrf.mxu1 }
  0xd1   :  { %v257_v42 = vmax.f32 %v195_v39, 0.0  ;;  %v210_v43 = vadd.f32 %v1135_v41, %v1015_v18  ;;  %v235_v57 = vadd.f32 %v1015_v18, %v234_v46  ;;  %v266_v63 = vmax.f32 %v240_v60, 0.0 }
  0xd2   :  { %v204_v45 = vpop.f32.mrf.mxu0  ;;  %v1147_v53 = vpop.f32.mrf.mxu1 }
  0xd3   :  { %v205_v47 = vadd.f32 %v1015_v18, %v204_v45  ;;  %1156 = vmatprep.mubr.msk.f32.mxu1 %vm55_vm1, %v257_v42  ;;  %v260_v48 = vmax.f32 %v210_v43, 0.0  ;;  %v265_v61 = vmax.f32 %v235_v57, 0.0  ;;  %v250_v0 = vadd.f32 %v1147_v53, %v1015_v18 }
  0xd4   :  { %1157 = vmatmul.mubr.msk.f32.gmra.mxu1 %vm55_vm1, %v258_v40  ;;  %v244_v58 = vpop.f32.mrf.mxu1 }
  0xd5   :  { %v259_v50 = vmax.f32 %v205_v47, 0.0  ;;  %v245_v62 = vadd.f32 %v1015_v18, %v244_v58  ;;  %v268_v19 = vmax.f32 %v250_v0, 0.0 }
  0xd7   :  { %1159 = vmatprep.mubr.msk.f32.mxu1 %vm55_vm1, %v259_v50  ;;  %v267_v9 = vmax.f32 %v245_v62, 0.0 }
  0xd8   :  { %1160 = vmatmul.mubr.msk.f32.gmra.mxu1 %vm55_vm1, %v260_v48 }
  0xd9   :  { %1162 = vmatprep.mubr.msk.f32.mxu1 %vm55_vm1, %v261_v51 }
  0xdc   :  { %1163 = vmatmul.mubr.msk.f32.gmra.mxu1 %vm55_vm1, %v262_v54 }
  0xdd   :  { %1165 = vmatprep.mubr.msk.f32.mxu1 %vm55_vm1, %v263_v56 }
  0xe0   :  { %1166 = vmatmul.mubr.msk.f32.gmra.mxu1 %vm55_vm1, %v264_v59 }
  0xe1   :  { %1168 = vmatprep.mubr.msk.f32.mxu1 %vm55_vm1, %v265_v61 }
  0xe4   :  { %1169 = vmatmul.mubr.msk.f32.gmra.mxu1 %vm55_vm1, %v266_v63 }
  0xe5   :  { %1171 = vmatprep.mubr.msk.f32.mxu1 %vm55_vm1, %v267_v9 }
  0xe8   :  { %1172 = vmatmul.mubr.msk.f32.gmra.mxu1 %vm55_vm1, %v268_v19 }
 0x18c   :  { %v1152_v21 = vpop.f32.mrf.mxu1 }
 0x18d   :  { %v400_v18 = vadd.f32 %v1152_v21, %v1466_v20 }
 0x18e   :  { %v394_v22 = vpop.f32.mrf.mxu1 }
 0x18f   :  { %v1469_v23 = vmul.f32 0.1, %v400_v18  ;;  %v395_v24 = vadd.f32 %v1466_v20, %v394_v22 }
 0x190   :  { %v1155_v25 = vpop.f32.mrf.mxu1 }
 0x191   :  { %1205 = vtanh.f32 %v1469_v23  ;;  %v1476_v27 = vmul.f32 0.1, %v395_v24  ;;  %v410_v28 = vadd.f32 %v1155_v25, %v1466_v20 }
 0x192   :  { %v404_v29 = vpop.f32.mrf.mxu1 }
 0x193   :  { %1207 = vtanh.f32 %v1476_v27  ;;  %v1480_v30 = vmul.f32 0.1, %v410_v28  ;;  %v405_v31 = vadd.f32 %v1466_v20, %v404_v29 }
 0x194   :  { %v1158_v32 = vpop.f32.mrf.mxu1 }
 0x195   :  { %1209 = vtanh.f32 %v1480_v30  ;;  %v1484_v33 = vmul.f32 0.1, %v405_v31  ;;  %v420_v34 = vadd.f32 %v1158_v32, %v1466_v20 }
 0x196   :  { %v414_v35 = vpop.f32.mrf.mxu1 }
 0x197   :  { %1211 = vtanh.f32 %v1484_v33  ;;  %v1488_v36 = vmul.f32 0.1, %v420_v34  ;;  %v415_v37 = vadd.f32 %v1466_v20, %v414_v35 }
 0x198   :  { %v1161_v38 = vpop.f32.mrf.mxu1 }
 0x199   :  { %1213 = vtanh.f32 %v1488_v36  ;;  %v1492_v39 = vmul.f32 0.1, %v415_v37  ;;  %v430_v40 = vadd.f32 %v1161_v38, %v1466_v20 }
 0x19a   :  { %v424_v41 = vpop.f32.mrf.mxu1 }
 0x19b   :  { %1215 = vtanh.f32 %v1492_v39  ;;  %v1496_v42 = vmul.f32 0.1, %v430_v40  ;;  %v425_v43 = vadd.f32 %v1466_v20, %v424_v41 }
 0x19c   :  { %v1164_v44 = vpop.f32.mrf.mxu1 }
 0x19d   :  { %1217 = vtanh.f32 %v1496_v42  ;;  %v1500_v45 = vmul.f32 0.1, %v425_v43  ;;  %v440_v46 = vadd.f32 %v1164_v44, %v1466_v20 }
 0x19e   :  { %v1206_v47 = vpop.eup %1205  ;;  %v434_v48 = vpop.f32.mrf.mxu1 }
 0x19f   :  { %v1503_v49 = vmul.f32 2.0, %v1206_v47  ;;  %1219 = vtanh.f32 %v1500_v45  ;;  %v1506_v50 = vmul.f32 0.1, %v440_v46  ;;  %v435_v51 = vadd.f32 %v1466_v20, %v434_v48 }
 0x1a0   :  { %v1208_v52 = vpop.eup %1207  ;;  %v1167_v53 = vpop.f32.mrf.mxu1 }
 0x1a1   :  { %v523_v54 = vmul.f32 1.442695, %v1503_v49  ;;  %v1510_v55 = vmul.f32 2.0, %v1208_v52  ;;  %1221 = vtanh.f32 %v1506_v50  ;;  %v1513_v56 = vmul.f32 0.1, %v435_v51 }
 0x1a2   :  { %v1210_v57 = vpop.eup %1209  ;;  %v450_v58 = vadd.f32 %v1167_v53, %v1466_v20  ;;  %v444_v59 = vpop.f32.mrf.mxu1 }
 0x1a3   :  { %1223 = vpow2.f32 %v523_v54  ;;  %v521_v60 = vmul.f32 1.442695, %v1510_v55  ;;  %v1517_v61 = vmul.f32 2.0, %v1210_v57  ;;  %v445_v62 = vadd.f32 %v1466_v20, %v444_v59 }
 0x1a4   :  { %v1212_v63 = vpop.eup %1211  ;;  %1225 = vtanh.f32 %v1513_v56  ;;  %v1521_v0 = vmul.f32 0.1, %v450_v58  ;;  %v1170_v9 = vpop.f32.mrf.mxu1 }
 0x1a5   :  { %1227 = vpow2.f32 %v521_v60  ;;  %v1523_v19 = vmul.f32 2.0, %v1212_v63  ;;  %v1525_v21 = vmul.f32 0.1, %v445_v62  ;;  %v460_v22 = vadd.f32 %v1170_v9, %v1466_v20  ;;  %v711_v62 = vld [vmem:[%s1808_s7] sm:$0xff] }
 0x1a6   :  { %v1214_v18 = vpop.eup %1213  ;;  %1229 = vtanh.f32 %v1521_v0  ;;  %v454_v24 = vpop.f32.mrf.mxu1  ;;  %v527_v25 = vmul.f32 1.442695, %v1517_v61  ;;  %1176 = vmatprep.subr.mxu0 %v711_v62 }
 0x1a7   :  { %v525_v26 = vmul.f32 1.442695, %v1523_v19  ;;  %v1531_v28 = vmul.f32 2.0, %v1214_v18  ;;  %v455_v29 = vadd.f32 %v1466_v20, %v454_v24  ;;  %1231 = vtanh.f32 %v1525_v21  ;;  %1177 = vmatpush3.msra.mxu0 %v711_v62 }
 0x1a8   :  { %v1216_v31 = vpop.eup %1215  ;;  %v1535_v32 = vmul.f32 0.1, %v460_v22  ;;  %v1173_v34 = vpop.f32.mrf.mxu1 }
 0x1a9   :  { %1233 = vpow2.f32 %v525_v26  ;;  %v1537_v35 = vmul.f32 2.0, %v1216_v31  ;;  %v1539_v37 = vmul.f32 0.1, %v455_v29  ;;  %v470_v40 = vadd.f32 %v1173_v34, %v1466_v20 }
 0x1aa   :  { %v1218_v38 = vpop.eup %1217  ;;  %1235 = vtanh.f32 %v1535_v32  ;;  %v464_v41 = vpop.f32.mrf.mxu1  ;;  %v531_v43 = vmul.f32 1.442695, %v1531_v28 }
 0x1ab   :  { %1237 = vpow2.f32 %v527_v25  ;;  %v529_v44 = vmul.f32 1.442695, %v1537_v35  ;;  %v465_v46 = vadd.f32 %v1466_v20, %v464_v41  ;;  %v1547_v48 = vmul.f32 0.1, %v470_v40 }
 0x1ac   :  { %v1220_v47 = vpop.eup %1219  ;;  %1239 = vtanh.f32 %v1539_v37  ;;  %v1549_v51 = vmul.f32 2.0, %v1218_v38 }
 0x1ad   :  { %1241 = vpow2.f32 %v529_v44  ;;  %v1551_v52 = vmul.f32 2.0, %v1220_v47  ;;  %v1553_v53 = vmul.f32 0.1, %v465_v46 }
 0x1ae   :  { %v1222_v54 = vpop.eup %1221  ;;  %1243 = vtanh.f32 %v1547_v48  ;;  %v535_v59 = vmul.f32 1.442695, %v1549_v51 }
 0x1af   :  { %1245 = vpow2.f32 %v531_v43  ;;  %v533_v57 = vmul.f32 1.442695, %v1551_v52  ;;  %v1559_v60 = vmul.f32 2.0, %v1222_v54 }
 0x1b0   :  { %v1224_v58 = vpop.eup %1223  ;;  %1247 = vtanh.f32 %v1553_v53 }
 0x1b1   :  { %v1226_v20 = vpop.eup %1225  ;;  %1249 = vpow2.f32 %v533_v57  ;;  %v539_v25 = vmul.f32 1.442695, %v1559_v60 }
 0x1b2   :  { %v1228_v63 = vpop.eup %1227  ;;  %v1564_v9 = vmul.f32 2.0, %v1226_v20  ;;  %1251 = vpow2.f32 %v535_v59 }
 0x1b3   :  { %v1230_v18 = vpop.eup %1229  ;;  %569 = vrot.lane.b32.xlu0 %v1228_v63, %s1269_s26 }
 0x1b4   :  { %v537_v22 = vmul.f32 1.442695, %v1564_v9  ;;  %v1232_v24 = vpop.eup %1231  ;;  %v1569_v26 = vmul.f32 2.0, %v1230_v18 }
 0x1b5   :  { %v515_v31 = vmul.f32 2.0, %v1232_v24 }
 0x1b6   :  { %v1234_v29 = vpop.eup %1233  ;;  %1253 = vpow2.f32 %v537_v22  ;;  %v543_v43 = vmul.f32 1.442695, %v1569_v26 }
 0x1b7   :  { %v1236_v34 = vpop.eup %1235  ;;  %573 = vrot.lane.b32.xlu1 %v1234_v29, %s1269_s26  ;;  %571 = vrot.lane.b32.xlu0 %v1224_v58, %s1269_s26  ;;  %v541_v40 = vmul.f32 1.442695, %v515_v31  ;;  %1255 = vpow2.f32 %v539_v25 }
 0x1b8   :  { %v1238_v38 = vpop.eup %1237  ;;  %v518_v44 = vmul.f32 2.0, %v1236_v34 }
 0x1b9   :  { %v1240_v41 = vpop.eup %1239  ;;  %1257 = vpow2.f32 %v541_v40 }
 0x1ba   :  { %v1242_v46 = vpop.eup %1241  ;;  %v517_v47 = vmul.f32 2.0, %v1240_v41  ;;  %1259 = vpow2.f32 %v543_v43  ;;  %v547_v58 = vmul.f32 1.442695, %v518_v44 }
 0x1bb   :  { %v1244_v54 = vpop.eup %1243  ;;  %575 = vrot.lane.b32.xlu1 %v1238_v38, %s1269_s26  ;;  %577 = vrot.lane.b32.xlu0 %v1242_v46, %s1269_s26 }
 0x1bc   :  { %v1246_v57 = vpop.eup %1245  ;;  %v545_v20 = vmul.f32 1.442695, %v517_v47  ;;  %v520_v62 = vmul.f32 2.0, %v1244_v54 }
 0x1bd   :  { %v1248_v59 = vpop.eup %1247 }
 0x1be   :  { %v1250_v63 = vpop.eup %1249  ;;  %1261 = vpow2.f32 %v545_v20  ;;  %v519_v18 = vmul.f32 2.0, %v1248_v59  ;;  %v551_v24 = vmul.f32 1.442695, %v520_v62  ;;  %v951_v20 = vsel %vm55_vm1, %v1564_v9, 0.0 }
 0x1bf   :  { %579 = vrot.lane.b32.xlu1 %v1246_v57, %s1269_s26  ;;  %581 = vrot.lane.b32.xlu0 %v1250_v63, %s1269_s26  ;;  %1263 = vpow2.f32 %v547_v58  ;;  %v1252_v25 = vpop.eup %1251  ;;  %v927_v57 = vsel %vm55_vm1, %v1510_v55, 0.0  ;;  %v954_v59 = vsel %vm55_vm1, %v1559_v60, 0.0  ;;  %v930_v58 = vsel %vm55_vm1, %v1503_v49, 0.0 }
 0x1c0   :  { %v549_v22 = vmul.f32 1.442695, %v519_v18  ;;  %v957_v63 = vsel %vm55_vm1, %v515_v31, 0.0  ;;  %v960_v55 = vsel %vm55_vm1, %v1569_v26, 0.0  ;;  %v936_v9 = vsel %vm55_vm1, %v1517_v61, 0.0 }
 0x1c1   :  { %v963_v60 = vsel %vm55_vm1, %v517_v47, 0.0  ;;  %v939_v49 = vsel %vm55_vm1, %v1537_v35, 0.0  ;;  %v966_v31 = vsel %vm55_vm1, %v518_v44, 0.0  ;;  %v969_v26 = vsel %vm55_vm1, %v519_v18, 0.0 }
 0x1c2   :  { %1265 = vpow2.f32 %v549_v22  ;;  %v933_v22 = vsel %vm55_vm1, %v1523_v19, 0.0  ;;  %v942_v19 = vsel %vm55_vm1, %v1531_v28, 0.0  ;;  %v945_v61 = vsel %vm55_vm1, %v1551_v52, 0.0  ;;  %v1618_v28 = vld [vmem:[%s1809_s5] ss:$0 sm:$0xff] }
 0x1c3   :  { %v1254_v29 = vpop.eup %1253  ;;  %583 = vrot.lane.b32.xlu1 %v1252_v25, %s1269_s26  ;;  %1267 = vpow2.f32 %v551_v24  ;;  %v972_v47 = vsel %vm55_vm1, %v520_v62, 0.0  ;;  %v948_v35 = vsel %vm55_vm1, %v1549_v51, 0.0  ;;  %v1627_v51 = vld [vmem:[%s1810_s6] ss:$0 sm:$0xff] }
 0x1c4   :  { %585 = vrot.lane.b32.xlu0 %v1254_v29, %s1269_s26  ;;  %v1256_v34 = vpop.eup %1255 }
 0x1c6   :  { %v1258_v38 = vpop.eup %1257 }
 0x1c7   :  { %587 = vrot.lane.b32.xlu1 %v1256_v34, %s1269_s26  ;;  %v1260_v40 = vpop.eup %1259 }
 0x1c8   :  { %589 = vrot.lane.b32.xlu0 %v1258_v38, %s1269_s26 }
 0x1cb   :  { %v1262_v41 = vpop.eup %1261  ;;  %591 = vrot.lane.b32.xlu1 %v1260_v40, %s1269_s26 }
 0x1cc   :  { %593 = vrot.lane.b32.xlu0 %v1262_v41, %s1269_s26  ;;  %v1264_v43 = vpop.eup %1263 }
 0x1cf   :  { %v1266_v46 = vpop.eup %1265  ;;  %595 = vrot.lane.b32.xlu1 %v1264_v43, %s1269_s26 }
 0x1d0   :  { %597 = vrot.lane.b32.xlu0 %v1266_v46, %s1269_s26  ;;  %v1268_v54 = vpop.eup %1267 }
 0x1d3   :  { %599 = vrot.lane.b32.xlu1 %v1268_v54, %s1269_s26 }
 0x1ef   :  { %928 = vadd.xlane.f32.xlu0 %v927_v57 }
 0x1f3   :  { %952 = vadd.xlane.f32.xlu0 %v951_v20 }
 0x1f7   :  { %955 = vadd.xlane.f32.xlu0 %v954_v59  ;;  %931 = vadd.xlane.f32.xlu1 %v930_v58 }
 0x1fb   :  { %958 = vadd.xlane.f32.xlu0 %v957_v63  ;;  %934 = vadd.xlane.f32.xlu1 %v933_v22 }
 0x1ff   :  { %961 = vadd.xlane.f32.xlu0 %v960_v55  ;;  %937 = vadd.xlane.f32.xlu1 %v936_v9 }
 0x203   :  { %964 = vadd.xlane.f32.xlu0 %v963_v60  ;;  %940 = vadd.xlane.f32.xlu1 %v939_v49 }
 0x207   :  { %967 = vadd.xlane.f32.xlu0 %v966_v31  ;;  %943 = vadd.xlane.f32.xlu1 %v942_v19 }
 0x20b   :  { %970 = vadd.xlane.f32.xlu0 %v969_v26  ;;  %946 = vadd.xlane.f32.xlu1 %v945_v61 }
 0x20f   :  { %973 = vadd.xlane.f32.xlu0 %v972_v47  ;;  %949 = vadd.xlane.f32.xlu1 %v948_v35 }
 0x225   :  { %v570_v44 = vpop.permute.xlu0 %569 }
 0x226   :  { %v617_v24 = vmul.f32 %v570_v44, %v1326_v1 }
 0x228   :  { %v633_v18 = vadd.f32 %v617_v24, %v1476_v27 }
 0x229   :  { %v574_v52 = vpop.permute.xlu1 %573  ;;  %v572_v25 = vpop.permute.xlu0 %571 }
 0x22a   :  { %v649_v62 = vsel %vm55_vm1, %v1326_v1, %v633_v18  ;;  %v619_v29 = vmul.f32 %v574_v52, %v1339_v3  ;;  %v618_v34 = vmul.f32 %v572_v25, %v1331_v2 }
 0x22b   :  { %v672_v38 = vmul.f32 %v1618_v28, %v649_v62 }
 0x22c   :  { %v635_v40 = vadd.f32 %v619_v29, %v1484_v33  ;;  %v634_v27 = vadd.f32 %v618_v34, %v1469_v23 }
 0x22d   :  { %v576_v41 = vpop.permute.xlu1 %575  ;;  %v578_v43 = vpop.permute.xlu0 %577  ;;  %v695_v1 = vadd.f32 %v1627_v51, %v672_v38 }
 0x22e   :  { %v651_v46 = vsel %vm55_vm1, %v1339_v3, %v635_v40  ;;  %v650_v54 = vsel %vm55_vm1, %v1331_v2, %v634_v27  ;;  %v620_v57 = vmul.f32 %v576_v41, %v1366_v7  ;;  %v621_v20 = vmul.f32 %v578_v43, %v1373_v8 }
 0x22f   :  { %v674_v59 = vmul.f32 %v1618_v28, %v651_v46  ;;  %v673_v33 = vmul.f32 %v1618_v28, %v650_v54  ;;  %1178 = vmatprep.mubr.msk.f32.mxu0 %vm713_vm3, %v695_v1 }
 0x230   :  { %v636_v23 = vadd.f32 %v620_v57, %v1480_v30  ;;  %v637_v58 = vadd.f32 %v621_v20, %v1492_v39 }
 0x231   :  { %v696_v63 = vadd.f32 %v1627_v51, %v673_v33  ;;  %v580_v3 = vpop.permute.xlu1 %579  ;;  %v582_v22 = vpop.permute.xlu0 %581  ;;  %v697_v2 = vadd.f32 %v1627_v51, %v674_v59 }
 0x232   :  { %v652_v55 = vsel %vm55_vm1, %v1366_v7, %v636_v23  ;;  %v653_v9 = vsel %vm55_vm1, %v1373_v8, %v637_v58  ;;  %v622_v60 = vmul.f32 %v580_v3, %v1401_v12  ;;  %v623_v49 = vmul.f32 %v582_v22, %v1406_v13 }
 0x233   :  { %v675_v30 = vmul.f32 %v1618_v28, %v652_v55  ;;  %v676_v39 = vmul.f32 %v1618_v28, %v653_v9  ;;  %1179 = vmatmul.mubr.msk.f32.vlgmr.msra.gmra.mxu0 %vm713_vm3, %v696_v63 }
 0x234   :  { %v638_v31 = vadd.f32 %v622_v60, %v1488_v36  ;;  %v639_v19 = vadd.f32 %v623_v49, %v1500_v45  ;;  %1181 = vmatprep.mubr.msk.f32.mxu0 %vm713_vm3, %v697_v2 }
 0x235   :  { %v584_v7 = vpop.permute.xlu1 %583  ;;  %v698_v26 = vadd.f32 %v1627_v51, %v675_v30  ;;  %v699_v8 = vadd.f32 %v1627_v51, %v676_v39 }
 0x236   :  { %v654_v61 = vsel %vm55_vm1, %v1401_v12, %v638_v31  ;;  %v655_v47 = vsel %vm55_vm1, %v1406_v13, %v639_v19  ;;  %v624_v35 = vmul.f32 %v584_v7, %v1429_v16  ;;  %v586_v44 = vpop.permute.xlu0 %585 }
 0x237   :  { %v677_v36 = vmul.f32 %v1618_v28, %v654_v61  ;;  %v678_v45 = vmul.f32 %v1618_v28, %v655_v47  ;;  %v625_v24 = vmul.f32 %v586_v44, %v1349_v4  ;;  %1182 = vmatmul.mubr.msk.f32.gmra.mxu0 %vm713_vm3, %v698_v26 }
 0x238   :  { %v640_v18 = vadd.f32 %v624_v35, %v1496_v42  ;;  %1184 = vmatprep.mubr.msk.f32.mxu0 %vm713_vm3, %v699_v8 }
 0x239   :  { %v641_v12 = vadd.f32 %v625_v24, %v1513_v56  ;;  %v588_v52 = vpop.permute.xlu1 %587  ;;  %v700_v13 = vadd.f32 %v1627_v51, %v677_v36  ;;  %v701_v25 = vadd.f32 %v1627_v51, %v678_v45 }
 0x23a   :  { %v656_v62 = vsel %vm55_vm1, %v1429_v16, %v640_v18  ;;  %v626_v29 = vmul.f32 %v588_v52, %v1354_v5  ;;  %v590_v34 = vpop.permute.xlu0 %589 }
 0x23b   :  { %v679_v38 = vmul.f32 %v1618_v28, %v656_v62  ;;  %v657_v42 = vsel %vm55_vm1, %v1349_v4, %v641_v12  ;;  %v627_v40 = vmul.f32 %v590_v34, %v1359_v6  ;;  %1185 = vmatmul.mubr.msk.f32.gmra.mxu0 %vm713_vm3, %v700_v13 }
 0x23c   :  { %v680_v56 = vmul.f32 %v1618_v28, %v657_v42  ;;  %v642_v27 = vadd.f32 %v626_v29, %v1506_v50  ;;  %1187 = vmatprep.mubr.msk.f32.mxu0 %vm713_vm3, %v701_v25 }
 0x23d   :  { %v643_v16 = vadd.f32 %v627_v40, %v1525_v21  ;;  %v592_v41 = vpop.permute.xlu1 %591  ;;  %v702_v43 = vadd.f32 %v1627_v51, %v679_v38 }
 0x23e   :  { %v658_v1 = vsel %vm55_vm1, %v1354_v5, %v642_v27  ;;  %v628_v4 = vmul.f32 %v592_v41, %v1385_v10  ;;  %v594_v46 = vpop.permute.xlu0 %593  ;;  %v703_v54 = vadd.f32 %v1627_v51, %v680_v56 }
 0x23f   :  { %v681_v57 = vmul.f32 %v1618_v28, %v658_v1  ;;  %v659_v50 = vsel %vm55_vm1, %v1359_v6, %v643_v16  ;;  %v629_v20 = vmul.f32 %v594_v46, %v1393_v11  ;;  %1188 = vmatmul.mubr.msk.f32.gmra.mxu0 %vm713_vm3, %v702_v43 }
 0x240   :  { %v682_v21 = vmul.f32 %v1618_v28, %v659_v50  ;;  %v644_v59 = vadd.f32 %v628_v4, %v1521_v0  ;;  %1190 = vmatprep.mubr.msk.f32.mxu0 %vm713_vm3, %v703_v54 }
 0x241   :  { %v645_v5 = vadd.f32 %v629_v20, %v1539_v37  ;;  %v596_v33 = vpop.permute.xlu1 %595  ;;  %v704_v23 = vadd.f32 %v1627_v51, %v681_v57 }
 0x242   :  { %v660_v58 = vsel %vm55_vm1, %v1385_v10, %v644_v59  ;;  %v630_v6 = vmul.f32 %v596_v33, %v1415_v14  ;;  %v598_v63 = vpop.permute.xlu0 %597  ;;  %v705_v3 = vadd.f32 %v1627_v51, %v682_v21 }
 0x243   :  { %v683_v22 = vmul.f32 %v1618_v28, %v660_v58  ;;  %v661_v0 = vsel %vm55_vm1, %v1393_v11, %v645_v5  ;;  %v631_v2 = vmul.f32 %v598_v63, %v1422_v15  ;;  %1191 = vmatmul.mubr.msk.f32.gmra.mxu0 %vm713_vm3, %v704_v23 }
 0x244   :  { %v684_v37 = vmul.f32 %v1618_v28, %v661_v0  ;;  %v646_v55 = vadd.f32 %v630_v6, %v1535_v32  ;;  %1193 = vmatprep.mubr.msk.f32.mxu0 %vm713_vm3, %v705_v3 }
 0x245   :  { %v647_v10 = vadd.f32 %v631_v2, %v1553_v53  ;;  %v600_v9 = vpop.permute.xlu1 %599  ;;  %v706_v60 = vadd.f32 %v1627_v51, %v683_v22 }
 0x246   :  { %v662_v49 = vsel %vm55_vm1, %v1415_v14, %v646_v55  ;;  %v632_v11 = vmul.f32 %v600_v9, %v1438_v17  ;;  %v707_v30 = vadd.f32 %v1627_v51, %v684_v37 }
 0x247   :  { %v685_v39 = vmul.f32 %v1618_v28, %v662_v49  ;;  %v663_v31 = vsel %vm55_vm1, %v1422_v15, %v647_v10  ;;  %1194 = vmatmul.mubr.msk.f32.gmra.mxu0 %vm713_vm3, %v706_v60 }
 0x248   :  { %v686_v32 = vmul.f32 %v1618_v28, %v663_v31  ;;  %v648_v53 = vadd.f32 %v632_v11, %v1547_v48  ;;  %1196 = vmatprep.mubr.msk.f32.mxu0 %vm713_vm3, %v707_v30 }
 0x249   :  { %v708_v19 = vadd.f32 %v1627_v51, %v685_v39 }
 0x24a   :  { %v664_v14 = vsel %vm55_vm1, %v1438_v17, %v648_v53  ;;  %v709_v7 = vadd.f32 %v1627_v51, %v686_v32 }
 0x24b   :  { %v687_v26 = vmul.f32 %v1618_v28, %v664_v14  ;;  %1197 = vmatmul.mubr.msk.f32.gmra.mxu0 %vm713_vm3, %v708_v19 }
 0x24c   :  { %1199 = vmatprep.mubr.msk.f32.mxu0 %vm713_vm3, %v709_v7 }
 0x24d   :  { %v710_v15 = vadd.f32 %v1627_v51, %v687_v26 }
 0x24f   :  { %1200 = vmatmul.mubr.msk.f32.gmra.mxu0 %vm713_vm3, %v710_v15 }
 0x278   :  { %v929_v48 = vpop.xlane.xlu0 %928 }
 0x27c   :  { %v953_v8 = vpop.xlane.xlu0 %952 }
 0x280   :  { %v956_v61 = vpop.xlane.xlu0 %955  ;;  %v932_v47 = vpop.xlane.xlu1 %931 }
 0x281   :  { %v988_v18 = vadd.f32 %v956_v61, %v953_v8  ;;  %v975_v28 = vadd.f32 %v932_v47, %v929_v48 }
 0x284   :  { %v959_v35 = vpop.xlane.xlu0 %958  ;;  %v935_v44 = vpop.xlane.xlu1 %934 }
 0x285   :  { %v989_v12 = vadd.f32 %v988_v18, %v959_v35  ;;  %v976_v52 = vadd.f32 %v975_v28, %v935_v44 }
 0x288   :  { %v962_v36 = vpop.xlane.xlu0 %961  ;;  %v938_v17 = vpop.xlane.xlu1 %937 }
 0x289   :  { %v990_v62 = vadd.f32 %v989_v12, %v962_v36  ;;  %v977_v51 = vadd.f32 %v976_v52, %v938_v17 }
 0x28c   :  { %v965_v45 = vpop.xlane.xlu0 %964  ;;  %v941_v24 = vpop.xlane.xlu1 %940 }
 0x28d   :  { %v991_v29 = vadd.f32 %v990_v62, %v965_v45  ;;  %v978_v34 = vadd.f32 %v977_v51, %v941_v24 }
 0x290   :  { %v968_v13 = vpop.xlane.xlu0 %967  ;;  %v944_v25 = vpop.xlane.xlu1 %943 }
 0x291   :  { %v992_v40 = vadd.f32 %v991_v29, %v968_v13  ;;  %v979_v56 = vadd.f32 %v978_v34, %v944_v25 }
 0x294   :  { %v971_v38 = vpop.xlane.xlu0 %970  ;;  %v947_v42 = vpop.xlane.xlu1 %946 }
 0x295   :  { %v993_v27 = vadd.f32 %v992_v40, %v971_v38  ;;  %v980_v16 = vadd.f32 %v979_v56, %v947_v42 }
 0x298   :  { %v974_v41 = vpop.xlane.xlu0 %973  ;;  %v950_v43 = vpop.xlane.xlu1 %949 }
 0x299   :  { %v994_v1 = vadd.f32 %v993_v27, %v974_v41  ;;  %v981_v4 = vadd.f32 %v980_v16, %v950_v43 }
 0x29b   :  { %v995_v46 = vrot.slane %v994_v1, 4  ;;  %v982_v54 = vrot.slane %v981_v4, 4 }
 0x29d   :  { %v996_v57 = vadd.f32 %v995_v46, %v994_v1  ;;  %v983_v50 = vadd.f32 %v982_v54, %v981_v4 }
 0x29f   :  { %v997_v20 = vrot.slane %v996_v57, 2  ;;  %v984_v21 = vrot.slane %v983_v50, 2 }
 0x2a1   :  { %v998_v59 = vadd.f32 %v997_v20, %v996_v57  ;;  %v985_v5 = vadd.f32 %v984_v21, %v983_v50 }
 0x2a3   :  { %v999_v33 = vrot.slane %v998_v59, 1  ;;  %v986_v23 = vrot.slane %v985_v5, 1 }
 0x2a5   :  { %v1000_v58 = vadd.f32 %v999_v33, %v998_v59  ;;  %v987_v6 = vadd.f32 %v986_v23, %v985_v5 }
 0x2a7   :  { %v1004_v63 = vsel %vm1003_vm4, %v1000_v58, %v987_v6 }
 0x2a8   :  { %1006 = vst [vmem:[%s1811_s9] sm:$0x3] %v1004_v63 }
 0x2f3   :  { %v1180_v3 = vpop.f32.mrf.mxu0 }
 0x2f4   :  { %912 = vst.msk [vmem:[%s1812_s8 + $0x8] sm:$0xff] %vm713_vm3, %v1180_v3 }
 0x2f5   :  { %v832_v22 = vpop.f32.mrf.mxu0 }
 0x2f6   :  { %911 = vst.msk [vmem:[%s1812_s8] sm:$0xff] %vm713_vm3, %v832_v22 }
 0x2f7   :  { %v1183_v0 = vpop.f32.mrf.mxu0 }
 0x2f8   :  { %914 = vst.msk [vmem:[%s1812_s8 + $0x18] sm:$0xff] %vm713_vm3, %v1183_v0 }
 0x2f9   :  { %v842_v2 = vpop.f32.mrf.mxu0 }
 0x2fa   :  { %913 = vst.msk [vmem:[%s1812_s8 + $0x10] sm:$0xff] %vm713_vm3, %v842_v2 }
 0x2fb   :  { %v1186_v37 = vpop.f32.mrf.mxu0 }
 0x2fc   :  { %916 = vst.msk [vmem:[%s1812_s8 + $0x28] sm:$0xff] %vm713_vm3, %v1186_v37 }
 0x2fd   :  { %v852_v55 = vpop.f32.mrf.mxu0 }
 0x2fe   :  { %915 = vst.msk [vmem:[%s1812_s8 + $0x20] sm:$0xff] %vm713_vm3, %v852_v55 }
 0x2ff   :  { %v1189_v10 = vpop.f32.mrf.mxu0 }
 0x300   :  { %918 = vst.msk [vmem:[%s1812_s8 + $0x38] sm:$0xff] %vm713_vm3, %v1189_v10 }
 0x301   :  { %v862_v9 = vpop.f32.mrf.mxu0 }
 0x302   :  { %917 = vst.msk [vmem:[%s1812_s8 + $0x30] sm:$0xff] %vm713_vm3, %v862_v9 }
 0x303   :  { %v1192_v60 = vpop.f32.mrf.mxu0 }
 0x304   :  { %920 = vst.msk [vmem:[%s1812_s8 + $0x48] sm:$0xff] %vm713_vm3, %v1192_v60 }
 0x305   :  { %v872_v49 = vpop.f32.mrf.mxu0 }
 0x306   :  { %919 = vst.msk [vmem:[%s1812_s8 + $0x40] sm:$0xff] %vm713_vm3, %v872_v49 }
 0x307   :  { %v1195_v11 = vpop.f32.mrf.mxu0 }
 0x308   :  { %922 = vst.msk [vmem:[%s1812_s8 + $0x58] sm:$0xff] %vm713_vm3, %v1195_v11 }
 0x309   :  { %v882_v30 = vpop.f32.mrf.mxu0 }
 0x30a   :  { %921 = vst.msk [vmem:[%s1812_s8 + $0x50] sm:$0xff] %vm713_vm3, %v882_v30 }
 0x30b   :  { %v1198_v39 = vpop.f32.mrf.mxu0 }
 0x30c   :  { %924 = vst.msk [vmem:[%s1812_s8 + $0x68] sm:$0xff] %vm713_vm3, %v1198_v39 }
 0x30d   :  { %v892_v31 = vpop.f32.mrf.mxu0 }
 0x30e   :  { %923 = vst.msk [vmem:[%s1812_s8 + $0x60] sm:$0xff] %vm713_vm3, %v892_v31 }
 0x30f   :  { %v1201_v32 = vpop.f32.mrf.mxu0 }
 0x310   :  { %926 = vst.msk [vmem:[%s1812_s8 + $0x78] sm:$0xff] %vm713_vm3, %v1201_v32 }
 0x311   :  { %v902_v53 = vpop.f32.mrf.mxu0 }
 0x312   :  { %925 = vst.msk [vmem:[%s1812_s8 + $0x70] sm:$0xff] %vm713_vm3, %v902_v53 }

// kernel: uflow_forward.11
= control target key start
LH: loop header
LB: loop body
LE: loop exit
PB: predicated region body
PF: predicated region fallthrough
CT: control target
= control target key end

     0   :  { %vm52_vm0 = vcmask 80896   ;;  %s1812_s0 = inlined_call_operand.vmem [shape: f32[2,8,8,10], index: 0, kind: input, shape index: {}]   ;;  %s1813_s1 = inlined_call_operand.vmem [shape: f32[2,4,4,8], index: 1, kind: input, shape index: {}]   ;;  %s1814_s2 = inlined_call_operand.vmem [shape: f32[32,8], index: 2, kind: input, shape index: {}]   ;;  %s1815_s3 = inlined_call_operand.vmem [shape: f32[8,32], index: 3, kind: input, shape index: {}]   ;;  %s1816_s4 = inlined_call_operand.vmem [shape: f32[32,4], index: 4, kind: input, shape index: {}]   ;;  %s1817_s5 = inlined_call_operand.vmem [shape: f32[4,32], index: 5, kind: input, shape index: {}]   ;;  %s1818_s6 = inlined_call_operand.hbm [shape: f32[2,32,32], index: 6, kind: output, shape index: {0}]   ;;  %s1819_s7 = inlined_call_operand.vmem [shape: f32[2,1,128], index: 7, kind: output, shape index: {1}]  }
   0x1   :  { %v38_v0 = vld [vmem:[%s1812_s0 + $0x10] sm:$0xff]  ;;  %v36_v1 = vld [vmem:[%s1812_s0] sm:$0xff]  ;;  %v39_v2 = vld [vmem:[%s1812_s0 + $0x18] sm:$0xff] }
   0x2   :  { %v46_v3 = vmul.f32 %v38_v0, %v38_v0  ;;  %v44_v4 = vmul.f32 %v36_v1, %v36_v1  ;;  %v47_v5 = vmul.f32 %v39_v2, %v39_v2  ;;  %v37_v6 = vld [vmem:[%s1812_s0 + $0x8] sm:$0xff]  ;;  %v40_v9 = vld [vmem:[%s1812_s0 + $0x20] sm:$0xff] }
   0x3   :  { %v45_v7 = vmul.f32 %v37_v6, %v37_v6  ;;  %v41_v8 = vld [vmem:[%s1812_s0 + $0x28] sm:$0xff] }
   0x4   :  { %v59_v10 = vsel %vm52_vm0, %v46_v3, 0.0  ;;  %v53_v11 = vsel %vm52_vm0, %v44_v4, 0.0 }
   0x5   :  { %60 = vadd.xlane.f32.xlu1 %v59_v10  ;;  %54 = vadd.xlane.f32.xlu0 %v53_v11 }
   0x6   :  { %13 = vsyncpa [#allocation3], 0  ;;  %v62_v12 = vsel %vm52_vm0, %v47_v5, 0.0  ;;  %v56_v13 = vsel %vm52_vm0, %v45_v7, 0.0  ;;  %v49_v14 = vmul.f32 %v41_v8, %v41_v8  ;;  %v48_v15 = vmul.f32 %v40_v9, %v40_v9  ;;  %v266_v16 = vld [vmem:[%s1813_s1 + $0x4] sm:$0xf] }
   0x7   :  { %v265_v17 = vld [vmem:[%s1813_s1] sm:$0xf]  ;;  %v270_v20 = vmul.f32 %v266_v16, %v266_v16  ;;  %vm273_vm1 = vcmask 60416   ;;  %v267_v22 = vld [vmem:[%s1813_s1 + $0x8] sm:$0xf]  ;;  %v42_v23 = vld [vmem:[%s1812_s0 + $0x30] sm:$0xff] }
   0x8   :  { %v68_v18 = vsel %vm52_vm0, %v49_v14, 0.0  ;;  %v65_v19 = vsel %vm52_vm0, %v48_v15, 0.0  ;;  %v269_v21 = vmul.f32 %v265_v17, %v265_v17  ;;  %v271_v26 = vmul.f32 %v267_v22, %v267_v22  ;;  %v268_v28 = vld [vmem:[%s1813_s1 + $0xc] sm:$0xf]  ;;  %v43_v29 = vld [vmem:[%s1812_s0 + $0x38] sm:$0xff]  ;;  %v1582_v36 = vld [vmem:[%s1814_s2] sm:$0xff] }
   0x9   :  { %63 = vadd.xlane.f32.xlu1 %v62_v12  ;;  %57 = vadd.xlane.f32.xlu0 %v56_v13  ;;  %v277_v24 = vsel %vm273_vm1, %v270_v20, 0.0  ;;  %v50_v27 = vmul.f32 %v42_v23, %v42_v23  ;;  %v272_v32 = vmul.f32 %v268_v28, %v268_v28  ;;  %v51_v33 = vmul.f32 %v43_v29, %v43_v29  ;;  %v1587_v37 = vld [vmem:[%s1816_s4] sm:$0xff]  ;;  %v1282_v40 = vld [vmem:[%s1812_s0 + $0x50] sm:$0xff]  ;;  %v1281_v44 = vld [vmem:[%s1812_s0 + $0x48] sm:$0xff] }
   0xa   :  { %v274_v25 = vsel %vm273_vm1, %v269_v21, 0.0  ;;  %v280_v30 = vsel %vm273_vm1, %v271_v26, 0.0  ;;  %vm167_vm2 = vcmask 64512   ;;  %vm326_vm3 = vcmask 31744   ;;  %v1280_v38 = vld [vmem:[%s1812_s0 + $0x40] sm:$0xff]  ;;  %v1283_v46 = vld [vmem:[%s1812_s0 + $0x58] sm:$0xff] }
   0xb   :  { %v71_v31 = vsel %vm52_vm0, %v50_v27, 0.0  ;;  %v283_v34 = vsel %vm273_vm1, %v272_v32, 0.0  ;;  %v74_v35 = vsel %vm52_vm0, %v51_v33, 0.0  ;;  %1353 = vmatprep.mubr.msk.f32.mxu0 %vm167_vm2, %v1582_v36  ;;  %1361 = vmatprep.mubr.msk.f32.mxu1 %vm326_vm3, %v1587_v37  ;;  %v668_v39 = vmul.f32 %v1280_v38, %v1280_v38  ;;  %v1284_v45 = vld [vmem:[%s1812_s0 + $0x60] sm:$0xff]  ;;  %v1292_v50 = vld [vmem:[%s1813_s1 + $0x10] sm:$0xf] }
   0xc   :  { %v670_v42 = vmul.f32 %v1282_v40, %v1282_v40  ;;  %v669_v47 = vmul.f32 %v1281_v44, %v1281_v44  ;;  %v672_v48 = vmul.f32 %v1284_v45, %v1284_v45  ;;  %v671_v49 = vmul.f32 %v1283_v46, %v1283_v46  ;;  %v1285_v51 = vld [vmem:[%s1812_s0 + $0x68] sm:$0xff]  ;;  %v1286_v57 = vld [vmem:[%s1812_s0 + $0x70] sm:$0xff]  ;;  %v1287_v63 = vld [vmem:[%s1812_s0 + $0x78] sm:$0xff] }
   0xd   :  { %69 = vadd.xlane.f32.xlu1 %v68_v18  ;;  %66 = vadd.xlane.f32.xlu0 %v65_v19  ;;  %v676_v41 = vsel %vm52_vm0, %v668_v39, 0.0  ;;  %v870_v54 = vmul.f32 %v1292_v50, %v1292_v50  ;;  %v673_v56 = vmul.f32 %v1285_v51, %v1285_v51  ;;  %v1293_v58 = vld [vmem:[%s1813_s1 + $0x14] sm:$0xf]  ;;  %v674_v60 = vmul.f32 %v1286_v57, %v1286_v57  ;;  %v1294_v0 = vld [vmem:[%s1813_s1 + $0x18] sm:$0xf] }
   0xe   :  { %v682_v43 = vsel %vm52_vm0, %v670_v42, 0.0  ;;  %v679_v52 = vsel %vm52_vm0, %v669_v47, 0.0  ;;  %v688_v53 = vsel %vm52_vm0, %v672_v48, 0.0  ;;  %v685_v55 = vsel %vm52_vm0, %v671_v49, 0.0  ;;  %v1295_v5 = vld [vmem:[%s1813_s1 + $0x1c] sm:$0xf] }
   0xf   :  { %v874_v59 = vsel %vm273_vm1, %v870_v54, 0.0  ;;  %v691_v61 = vsel %vm52_vm0, %v673_v56, 0.0  ;;  %v871_v62 = vmul.f32 %v1293_v58, %v1293_v58  ;;  %v694_v1 = vsel %vm52_vm0, %v674_v60, 0.0 }
  0x10   :  { %v675_v2 = vmul.f32 %v1287_v63, %v1287_v63  ;;  %v872_v4 = vmul.f32 %v1294_v0, %v1294_v0  ;;  %v873_v8 = vmul.f32 %v1295_v5, %v1295_v5  ;;  %vm152_vm4 = vcmask 1041409  }
  0x11   :  { %278 = vadd.xlane.f32.xlu1 %v277_v24  ;;  %275 = vadd.xlane.f32.xlu0 %v274_v25  ;;  %v877_v3 = vsel %vm273_vm1, %v871_v62, 0.0  ;;  %vm154_vm5 = vcmask 1042434   ;;  %vm156_vm6 = vcmask 1043459   ;;  %vm158_vm7 = vcmask 1044484  }
  0x12   :  { %v697_v6 = vsel %vm52_vm0, %v675_v2, 0.0  ;;  %v880_v7 = vsel %vm273_vm1, %v872_v4, 0.0  ;;  %v883_v9 = vsel %vm273_vm1, %v873_v8, 0.0  ;;  %vm160_vm8 = vcmask 1045509  }
  0x13   :  { %vm162_vm9 = vcmask 1046534   ;;  %vm164_vm10 = vcmask 1047559   ;;  %vm339_vm11 = vcmask 1043456   ;;  %vm632_vm12 = vcmask 261120  }
  0x15   :  { %281 = vadd.xlane.f32.xlu1 %v280_v30  ;;  %72 = vadd.xlane.f32.xlu0 %v71_v31 }
  0x19   :  { %284 = vadd.xlane.f32.xlu1 %v283_v34  ;;  %75 = vadd.xlane.f32.xlu0 %v74_v35 }
  0x1d   :  { %677 = vadd.xlane.f32.xlu0 %v676_v41  ;;  %680 = vadd.xlane.f32.xlu1 %v679_v52  ;;  %v118_v41 = vlaneseq }
  0x1f   :  { %v119_v50 = vand.u32 127, %v118_v41  ;;  %v121_v51 = vshrl.u32 %v118_v41, 7  ;;  %v1697_v41 = vld [vmem:[%s1815_s3] sm:$0xff] }
  0x21   :  { %683 = vadd.xlane.f32.xlu0 %v682_v43  ;;  %686 = vadd.xlane.f32.xlu1 %v685_v55  ;;  %v1641_v62 = vsub.s32 %v119_v50, %v121_v51 }
  0x25   :  { %689 = vadd.xlane.f32.xlu0 %v688_v53  ;;  %692 = vadd.xlane.f32.xlu1 %v691_v61 }
  0x29   :  { %875 = vadd.xlane.f32.xlu0 %v874_v59  ;;  %878 = vadd.xlane.f32.xlu1 %v877_v3 }
  0x2d   :  { %695 = vadd.xlane.f32.xlu0 %v694_v1  ;;  %881 = vadd.xlane.f32.xlu1 %v880_v7 }
  0x31   :  { %698 = vadd.xlane.f32.xlu0 %v697_v6  ;;  %884 = vadd.xlane.f32.xlu1 %v883_v9 }
  0x8e   :  { %v61_v10 = vpop.xlane.xlu1 %60  ;;  %v55_v11 = vpop.xlane.xlu0 %54 }
  0x8f   :  { %v78_v12 = vmul.f32 0.1, %v55_v11  ;;  %v80_v13 = vmul.f32 0.1, %v61_v10 }
  0x91   :  { %v86_v14 = vmul.f32 -0.5, %v78_v12  ;;  %v88_v19 = vmul.f32 -0.5, %v80_v13 }
  0x92   :  { %v64_v15 = vpop.xlane.xlu1 %63  ;;  %v58_v16 = vpop.xlane.xlu0 %57 }
  0x93   :  { %v81_v17 = vmul.f32 0.1, %v64_v15  ;;  %v79_v18 = vmul.f32 0.1, %v58_v16  ;;  %v94_v20 = vmul.f32 1.442695, %v86_v14 }
  0x94   :  { %v98_v28 = vmul.f32 1.442695, %v88_v19 }
  0x95   :  { %v87_v21 = vmul.f32 -0.5, %v79_v18  ;;  %v89_v25 = vmul.f32 -0.5, %v81_v17  ;;  %1418 = vpow2.f32 %v94_v20 }
  0x96   :  { %v70_v22 = vpop.xlane.xlu1 %69  ;;  %v67_v23 = vpop.xlane.xlu0 %66 }
  0x97   :  { %v82_v24 = vmul.f32 0.1, %v67_v23  ;;  %v96_v26 = vmul.f32 1.442695, %v87_v21  ;;  %v83_v27 = vmul.f32 0.1, %v70_v22 }
  0x98   :  { %v100_v34 = vmul.f32 1.442695, %v89_v25 }
  0x99   :  { %v90_v29 = vmul.f32 -0.5, %v82_v24  ;;  %1420 = vpow2.f32 %v96_v26  ;;  %v91_v35 = vmul.f32 -0.5, %v83_v27 }
  0x9a   :  { %v279_v30 = vpop.xlane.xlu1 %278  ;;  %v276_v31 = vpop.xlane.xlu0 %275  ;;  %1422 = vpow2.f32 %v98_v28 }
  0x9b   :  { %v288_v32 = vmul.f32 0.125, %v279_v30  ;;  %v287_v33 = vmul.f32 0.125, %v276_v31  ;;  %v102_v38 = vmul.f32 1.442695, %v90_v29  ;;  %1424 = vpow2.f32 %v100_v34 }
  0x9c   :  { %v104_v47 = vmul.f32 1.442695, %v91_v35  ;;  %v1674_v35 = vld [vmem:[%s1814_s2 + $0x8] sm:$0xff] }
  0x9d   :  { %v292_v39 = vmul.f32 -0.5, %v288_v32  ;;  %v291_v40 = vmul.f32 -0.5, %v287_v33  ;;  %1426 = vpow2.f32 %v102_v38  ;;  %v1667_v33 = vld [vmem:[%s1816_s4 + $0x8] sm:$0xff]  ;;  %v1679_v38 = vld [vmem:[%s1816_s4 + $0x10] sm:$0xff] }
  0x9e   :  { %v282_v42 = vpop.xlane.xlu1 %281  ;;  %v73_v43 = vpop.xlane.xlu0 %72 }
  0x9f   :  { %v297_v44 = vmul.f32 1.442695, %v292_v39  ;;  %v295_v45 = vmul.f32 1.442695, %v291_v40  ;;  %v289_v46 = vmul.f32 0.125, %v282_v42  ;;  %v1685_v39 = vld [vmem:[%s1814_s2 + $0x10] sm:$0xff] }
  0xa0   :  { %v84_v48 = vmul.f32 0.1, %v73_v43  ;;  %v1690_v40 = vld [vmem:[%s1817_s5] sm:$0xf]  ;;  %v1706_v42 = vld [vmem:[%s1816_s4 + $0x18] sm:$0xff]  ;;  %s1488_s4 = smov [#allocation2]  }
  0xa1   :  { %v293_v49 = vmul.f32 -0.5, %v289_v46  ;;  %1428 = vpow2.f32 %v297_v44  ;;  %v1713_v43 = vld [vmem:[%s1814_s2 + $0x18] sm:$0xff]  ;;  %s1247_s20 = sshll.u32 %s1488_s4, 4  ;;  %s1248_s20 = int_to_ptr.vmem [resolvable:$true] %s1247_s20 }
  0xa2   :  { %v92_v52 = vmul.f32 -0.5, %v84_v48  ;;  %v285_v53 = vpop.xlane.xlu1 %284  ;;  %v76_v54 = vpop.xlane.xlu0 %75  ;;  %1430 = vpow2.f32 %v295_v45  ;;  %s1466_s21 = scalar_lea.vmem %s1248_s20, 1024  ;;  %p1471_p1 = scmp.lt.s32.totalorder %s1248_s20, %s1248_s20 }
  0xa3   :  { %v299_v55 = vmul.f32 1.442695, %v293_v49  ;;  %v290_v56 = vmul.f32 0.125, %v285_v53  ;;  %v85_v57 = vmul.f32 0.1, %v76_v54  ;;  %1432 = vpow2.f32 %v104_v47  ;;  %v1419_v61 = vpop.eup %1418  ;;  %p1467_p0 = scmp.ne.s32.totalorder %s1248_s20, %s1466_s21  ;;  %p1472_p2 = scmp.lt.s32.totalorder %s1466_s21, %s1466_s21 }
  0xa4   :  { %v106_v58 = vmul.f32 1.442695, %v92_v52  ;;  %v123_v4 = vrot.slane %v1419_v61, %v1641_v62 }
  0xa5   :  { %1434 = vpow2.f32 %v299_v55  ;;  %v294_v59 = vmul.f32 -0.5, %v290_v56  ;;  %v93_v60 = vmul.f32 -0.5, %v85_v57  ;;  %p1473_p3 = por %p1472_p2, %p1471_p1 }
  0xa6   :  { %1436 = vpow2.f32 %v106_v58  ;;  %v1421_v63 = vpop.eup %1420  ;;  %v678_v44 = vpop.xlane.xlu0 %677 }
  0xa7   :  { %v301_v0 = vmul.f32 1.442695, %v294_v59  ;;  %v108_v1 = vmul.f32 1.442695, %v93_v60  ;;  %v127_v2 = vrot.slane %v1421_v63, %v1641_v62  ;;  %v1423_v3 = vpop.eup %1422  ;;  %v700_v45 = vmul.f32 0.1, %v678_v44  ;;  %v681_v50 = vpop.xlane.xlu1 %680  ;;  %p1474_p4 = pnand %p1473_p3, %p1467_p0 }
  0xa8   :  { %v1425_v6 = vpop.eup %1424  ;;  %v131_v7 = vrot.slane %v1423_v3, %v1641_v62  ;;  %v701_v51 = vmul.f32 0.1, %v681_v50 }
  0xa9   :  { %1438 = vpow2.f32 %v301_v0  ;;  %v153_v5 = vsel %vm152_vm4, %v127_v2, %v123_v4  ;;  %v135_v12 = vrot.slane %v1425_v6, %v1641_v62  ;;  %v708_v46 = vmul.f32 -0.5, %v700_v45 }
  0xaa   :  { %1440 = vpow2.f32 %v108_v1  ;;  %v1427_v8 = vpop.eup %1426  ;;  %v155_v10 = vsel %vm154_vm5, %v131_v7, %v153_v5  ;;  %v684_v47 = vpop.xlane.xlu0 %683  ;;  %v709_v53 = vmul.f32 -0.5, %v701_v51 }
  0xab   :  { %v139_v14 = vrot.slane %v1427_v8, %v1641_v62  ;;  %v157_v16 = vsel %vm156_vm6, %v135_v12, %v155_v10  ;;  %v716_v48 = vmul.f32 1.442695, %v708_v46  ;;  %v702_v49 = vmul.f32 0.1, %v684_v47  ;;  %v687_v57 = vpop.xlane.xlu1 %686 }
  0xac   :  { %v718_v58 = vmul.f32 1.442695, %v709_v53  ;;  %v703_v59 = vmul.f32 0.1, %v687_v57 }
  0xad   :  { %v159_v23 = vsel %vm158_vm7, %v139_v14, %v157_v16  ;;  %v710_v52 = vmul.f32 -0.5, %v702_v49  ;;  %1442 = vpow2.f32 %v716_v48 }
  0xae   :  { %v1429_v9 = vpop.eup %1428  ;;  %v690_v54 = vpop.xlane.xlu0 %689  ;;  %v711_v61 = vmul.f32 -0.5, %v703_v59 }
  0xaf   :  { %v1431_v11 = vpop.eup %1430  ;;  %v314_v19 = vrot.slane %v1429_v9, %v1641_v62  ;;  %v720_v55 = vmul.f32 1.442695, %v710_v52  ;;  %v704_v56 = vmul.f32 0.1, %v690_v54  ;;  %v693_v2 = vpop.xlane.xlu1 %692 }
  0xb0   :  { %v1433_v13 = vpop.eup %1432  ;;  %v310_v18 = vrot.slane %v1431_v11, %v1641_v62  ;;  %v722_v3 = vmul.f32 1.442695, %v711_v61  ;;  %v705_v4 = vmul.f32 0.1, %v693_v2 }
  0xb1   :  { %v143_v20 = vrot.slane %v1433_v13, %v1641_v62  ;;  %1444 = vpow2.f32 %v720_v55  ;;  %v712_v60 = vmul.f32 -0.5, %v704_v56 }
  0xb2   :  { %v1435_v15 = vpop.eup %1434  ;;  %v323_v27 = vsel %vm152_vm4, %v314_v19, %v310_v18  ;;  %1446 = vpow2.f32 %v718_v58  ;;  %v876_v63 = vpop.xlane.xlu0 %875  ;;  %v713_v6 = vmul.f32 -0.5, %v705_v4 }
  0xb3   :  { %v1437_v17 = vpop.eup %1436  ;;  %v318_v21 = vrot.slane %v1435_v15, %v1641_v62  ;;  %v161_v29 = vsel %vm160_vm8, %v143_v20, %v159_v23  ;;  %v724_v0 = vmul.f32 1.442695, %v712_v60  ;;  %v886_v1 = vmul.f32 0.125, %v876_v63  ;;  %v879_v9 = vpop.xlane.xlu1 %878 }
  0xb4   :  { %v147_v22 = vrot.slane %v1437_v17, %v1641_v62  ;;  %v726_v11 = vmul.f32 1.442695, %v713_v6  ;;  %v887_v12 = vmul.f32 0.125, %v879_v9 }
  0xb5   :  { %v324_v30 = vsel %vm154_vm5, %v318_v21, %v323_v27  ;;  %1448 = vpow2.f32 %v724_v0  ;;  %v890_v5 = vmul.f32 -0.5, %v886_v1 }
  0xb6   :  { %v1439_v24 = vpop.eup %1438  ;;  %v163_v31 = vsel %vm162_vm9, %v147_v22, %v161_v29  ;;  %1450 = vpow2.f32 %v722_v3  ;;  %v696_v7 = vpop.xlane.xlu0 %695  ;;  %v891_v14 = vmul.f32 -0.5, %v887_v12 }
  0xb7   :  { %v1441_v25 = vpop.eup %1440  ;;  %v322_v26 = vrot.slane %v1439_v24, %v1641_v62  ;;  %v706_v8 = vmul.f32 0.1, %v696_v7  ;;  %v894_v10 = vmul.f32 1.442695, %v890_v5  ;;  %1452 = vpow2.f32 %v726_v11  ;;  %v882_v19 = vpop.xlane.xlu1 %881 }
  0xb8   :  { %v151_v28 = vrot.slane %v1441_v25, %v1641_v62  ;;  %v896_v20 = vmul.f32 1.442695, %v891_v14  ;;  %v888_v21 = vmul.f32 0.125, %v882_v19 }
  0xb9   :  { %v325_v32 = vsel %vm156_vm6, %v322_v26, %v324_v30  ;;  %v714_v13 = vmul.f32 -0.5, %v706_v8  ;;  %1454 = vpow2.f32 %v894_v10 }
  0xba   :  { %v165_v34 = vsel %vm164_vm10, %v151_v28, %v163_v31  ;;  %1359 = vmatprep.subr.msk.mxu1 %vm339_vm11, %v325_v32  ;;  %v699_v15 = vpop.xlane.xlu0 %698  ;;  %v1443_v16 = vpop.eup %1442  ;;  %v892_v25 = vmul.f32 -0.5, %v888_v21 }
  0xbb   :  { %1351 = vmatprep.subr.mxu0 %v165_v34  ;;  %1360 = vmatpush3.msk.msra.mxu1 %vm339_vm11, %v325_v32  ;;  %v728_v17 = vmul.f32 1.442695, %v714_v13  ;;  %v707_v18 = vmul.f32 0.1, %v699_v15  ;;  %v743_v24 = vrot.slane %v1443_v16, %v1641_v62  ;;  %v885_v29 = vpop.xlane.xlu1 %884 }
  0xbc   :  { %1352 = vmatpush3.msra.mxu0 %v165_v34  ;;  %1362 = vmatmul.mubr.msk.f32.vlgmr.msra.gmra.mxu1 %vm326_vm3, %v1667_v33  ;;  %v898_v31 = vmul.f32 1.442695, %v892_v25  ;;  %v889_v32 = vmul.f32 0.125, %v885_v29 }
  0xbd   :  { %1354 = vmatmul.mubr.msk.f32.vlgmr.msra.gmra.mxu0 %vm167_vm2, %v1674_v35  ;;  %1364 = vmatprep.mubr.msk.f32.mxu1 %vm326_vm3, %v1679_v38  ;;  %1456 = vpow2.f32 %v728_v17  ;;  %v715_v22 = vmul.f32 -0.5, %v707_v18 }
  0xbe   :  { %1356 = vmatprep.mubr.msk.f32.mxu0 %vm167_vm2, %v1685_v39  ;;  %1367 = vmatprep.subr.msk.mxu0 %vm339_vm11, %v1690_v40  ;;  %v1445_v23 = vpop.eup %1444  ;;  %1458 = vpow2.f32 %v896_v20  ;;  %v893_v44 = vmul.f32 -0.5, %v889_v32 }
  0xbf   :  { %1368 = vmatpush3.msk.msra.mxu0 %vm339_vm11, %v1690_v40  ;;  %1375 = vmatprep.subr.mxu1 %v1697_v41  ;;  %v1447_v26 = vpop.eup %1446  ;;  %v751_v27 = vrot.slane %v1445_v23, %v1641_v62  ;;  %v730_v28 = vmul.f32 1.442695, %v715_v22 }
  0xc0   :  { %1365 = vmatmul.mubr.msk.f32.gmra.mxu1 %vm326_vm3, %v1706_v42  ;;  %v747_v30 = vrot.slane %v1447_v26, %v1641_v62  ;;  %v900_v48 = vmul.f32 1.442695, %v893_v44 }
  0xc1   :  { %1357 = vmatmul.mubr.msk.f32.gmra.mxu0 %vm167_vm2, %v1713_v43  ;;  %1376 = vmatpush3.msra.mxu1 %v1697_v41  ;;  %1460 = vpow2.f32 %v730_v28 }
  0xc2   :  { %v1449_v34 = vpop.eup %1448  ;;  %1462 = vpow2.f32 %v898_v31  ;;  %v772_v45 = vsel %vm152_vm4, %v747_v30, %v743_v24 }
  0xc3   :  { %v1451_v46 = vpop.eup %1450  ;;  %v773_v47 = vsel %vm154_vm5, %v751_v27, %v772_v45  ;;  %v759_v50 = vrot.slane %v1449_v34, %v1641_v62  ;;  %1464 = vpow2.f32 %v900_v48 }
  0xc4   :  { %v755_v49 = vrot.slane %v1451_v46, %v1641_v62  ;;  %v1453_v52 = vpop.eup %1452 }
  0xc5   :  { %v763_v53 = vrot.slane %v1453_v52, %v1641_v62 }
  0xc6   :  { %v774_v51 = vsel %vm156_vm6, %v755_v49, %v773_v47  ;;  %v1455_v55 = vpop.eup %1454 }
  0xc7   :  { %v775_v54 = vsel %vm158_vm7, %v759_v50, %v774_v51  ;;  %v909_v60 = vrot.slane %v1455_v55, %v1641_v62 }
  0xc8   :  { %v776_v59 = vsel %vm160_vm8, %v763_v53, %v775_v54 }
  0xca   :  { %v1457_v56 = vpop.eup %1456 }
  0xcb   :  { %v1459_v57 = vpop.eup %1458  ;;  %v767_v58 = vrot.slane %v1457_v56, %v1641_v62 }
  0xcc   :  { %v913_v61 = vrot.slane %v1459_v57, %v1641_v62 }
  0xcd   :  { %v777_v0 = vsel %vm162_vm9, %v767_v58, %v776_v59 }
  0xce   :  { %v1461_v63 = vpop.eup %1460  ;;  %v922_v4 = vsel %vm152_vm4, %v913_v61, %v909_v60 }
  0xcf   :  { %v1463_v1 = vpop.eup %1462  ;;  %v771_v2 = vrot.slane %v1461_v63, %v1641_v62 }
  0xd0   :  { %v917_v3 = vrot.slane %v1463_v1, %v1641_v62  ;;  %v1465_v6 = vpop.eup %1464 }
  0xd1   :  { %v778_v5 = vsel %vm164_vm10, %v771_v2, %v777_v0  ;;  %v921_v8 = vrot.slane %v1465_v6, %v1641_v62 }
  0xd2   :  { %1383 = vmatprep.subr.mxu0 %v778_v5  ;;  %v923_v7 = vsel %vm154_vm5, %v917_v3, %v922_v4 }
  0xd3   :  { %v924_v9 = vsel %vm156_vm6, %v921_v8, %v923_v7 }
  0xd4   :  { %1391 = vmatprep.subr.msk.mxu1 %vm339_vm11, %v924_v9 }
 0x17c   :  { %v1363_v10 = vpop.f32.mrf.mxu1 }
 0x17d   :  { %v1355_v11 = vpop.f32.mrf.mxu0 }
 0x17e   :  { %v408_v12 = vpop.f32.mrf.mxu1 }
 0x17f   :  { %v246_v13 = vpop.f32.mrf.mxu0  ;;  %1369 = vmatprep.mubr.msk.f32.mxu0 %vm326_vm3, %v408_v12 }
 0x180   :  { %1377 = vmatprep.mubr.msk.f32.mxu1 %vm167_vm2, %v246_v13  ;;  %v1366_v14 = vpop.f32.mrf.mxu1  ;;  %1370 = vmatmul.mubr.msk.f32.vlgmr.msra.gmra.mxu0 %vm326_vm3, %v1363_v10 }
 0x181   :  { %v1358_v15 = vpop.f32.mrf.mxu0  ;;  %1378 = vmatmul.mubr.msk.f32.vlgmr.msra.gmra.mxu1 %vm167_vm2, %v1355_v11  ;;  %1384 = vmatpush3.msra.mxu0 %v778_v5 }
 0x182   :  { %1392 = vmatpush3.msk.msra.mxu1 %vm339_vm11, %v924_v9  ;;  %v418_v62 = vpop.f32.mrf.mxu1  ;;  %1399 = vmatprep.subr.msk.mxu0 %vm339_vm11, %v1690_v40 }
 0x183   :  { %v256_v16 = vpop.f32.mrf.mxu0  ;;  %1372 = vmatprep.mubr.msk.f32.mxu0 %vm326_vm3, %v418_v62  ;;  %1407 = vmatprep.subr.mxu1 %v1697_v41 }
 0x184   :  { %1380 = vmatprep.mubr.msk.f32.mxu1 %vm167_vm2, %v256_v16  ;;  %1373 = vmatmul.mubr.msk.f32.gmra.mxu0 %vm326_vm3, %v1366_v14 }
 0x185   :  { %1381 = vmatmul.mubr.msk.f32.gmra.mxu1 %vm167_vm2, %v1358_v15  ;;  %1385 = vmatprep.mubr.msk.f32.mxu0 %vm167_vm2, %v1582_v36 }
 0x186   :  { %1393 = vmatprep.mubr.msk.f32.mxu1 %vm326_vm3, %v1587_v37 }
 0x188   :  { %1386 = vmatmul.mubr.msk.f32.vlgmr.msra.gmra.mxu0 %vm167_vm2, %v1674_v35 }
 0x189   :  { %1394 = vmatmul.mubr.msk.f32.vlgmr.msra.gmra.mxu1 %vm326_vm3, %v1667_v33  ;;  %1388 = vmatprep.mubr.msk.f32.mxu0 %vm167_vm2, %v1685_v39 }
 0x18a   :  { %1396 = vmatprep.mubr.msk.f32.mxu1 %vm326_vm3, %v1679_v38  ;;  %1400 = vmatpush3.msk.msra.mxu0 %vm339_vm11, %v1690_v40 }
 0x18b   :  { %1408 = vmatpush3.msra.mxu1 %v1697_v41 }
 0x18c   :  { %1389 = vmatmul.mubr.msk.f32.gmra.mxu0 %vm167_vm2, %v1713_v43 }
 0x18d   :  { %1397 = vmatmul.mubr.msk.f32.gmra.mxu1 %vm326_vm3, %v1706_v42 }
 0x240   :  { %v1371_v36 = vpop.f32.mrf.mxu0 }
 0x241   :  { %v1379_v37 = vpop.f32.mrf.mxu1 }
 0x242   :  { %v611_v33 = vadd.f32 %v1379_v37, %v1371_v36  ;;  %v508_v35 = vpop.f32.mrf.mxu0 }
 0x243   :  { %v605_v17 = vpop.f32.mrf.mxu1 }
 0x244   :  { %v625_v39 = vmul.f32 0.5, %v611_v33  ;;  %v606_v18 = vadd.f32 %v605_v17, %v508_v35  ;;  %v1374_v19 = vpop.f32.mrf.mxu0 }
 0x245   :  { %v1382_v38 = vpop.f32.mrf.mxu1 }
 0x246   :  { %v629_v20 = vsub.f32 1.0, %v625_v39  ;;  %v624_v40 = vmul.f32 0.5, %v606_v18  ;;  %v621_v21 = vadd.f32 %v1382_v38, %v1374_v19  ;;  %v518_v41 = vpop.f32.mrf.mxu0 }
 0x247   :  { %v615_v22 = vpop.f32.mrf.mxu1 }
 0x248   :  { %634 = vst.msk [vmem:[#allocation2 + $0x8] sm:$0xff] %vm632_vm12, %v629_v20  ;;  %v628_v43 = vsub.f32 1.0, %v624_v40  ;;  %v627_v23 = vmul.f32 0.5, %v621_v21  ;;  %v616_v42 = vadd.f32 %v615_v22, %v518_v41  ;;  %v640_v24 = vsel %vm632_vm12, %v629_v20, -inf  ;;  %v1387_v25 = vpop.f32.mrf.mxu0 }
 0x249   :  { %v1395_v26 = vpop.f32.mrf.mxu1  ;;  %641 = vmax.xlane.f32.xlu1 %v640_v24 }
 0x24a   :  { %633 = vst.msk [vmem:[#allocation2] sm:$0xff] %vm632_vm12, %v628_v43  ;;  %v631_v27 = vsub.f32 1.0, %v627_v23  ;;  %v626_v28 = vmul.f32 0.5, %v616_v42  ;;  %v637_v29 = vsel %vm632_vm12, %v628_v43, -inf  ;;  %v846_v30 = vpop.f32.mrf.mxu0 }
 0x24b   :  { %v993_v31 = vpop.f32.mrf.mxu1  ;;  %638 = vmax.xlane.f32.xlu0 %v637_v29  ;;  %1409 = vmatprep.mubr.msk.f32.mxu1 %vm167_vm2, %v846_v30 }
 0x24c   :  { %636 = vst.msk [vmem:[#allocation2 + $0x18] sm:$0xff] %vm632_vm12, %v631_v27  ;;  %v630_v32 = vsub.f32 1.0, %v626_v28  ;;  %1401 = vmatprep.mubr.msk.f32.mxu0 %vm326_vm3, %v993_v31  ;;  %v646_v34 = vsel %vm632_vm12, %v631_v27, -inf  ;;  %v1390_v44 = vpop.f32.mrf.mxu0  ;;  %1410 = vmatmul.mubr.msk.f32.vlgmr.msra.gmra.mxu1 %vm167_vm2, %v1387_v25 }
 0x24d   :  { %v1398_v45 = vpop.f32.mrf.mxu1  ;;  %1402 = vmatmul.mubr.msk.f32.vlgmr.msra.gmra.mxu0 %vm326_vm3, %v1395_v26  ;;  %647 = vmax.xlane.f32.xlu1 %v646_v34 }
 0x24e   :  { %635 = vst.msk [vmem:[#allocation2 + $0x10] sm:$0xff] %vm632_vm12, %v630_v32  ;;  %v856_v46 = vpop.f32.mrf.mxu0  ;;  %v643_v47 = vsel %vm632_vm12, %v630_v32, -inf }
 0x24f   :  { %v1003_v48 = vpop.f32.mrf.mxu1  ;;  %644 = vmax.xlane.f32.xlu0 %v643_v47  ;;  %1412 = vmatprep.mubr.msk.f32.mxu1 %vm167_vm2, %v856_v46 }
 0x250   :  { %1404 = vmatprep.mubr.msk.f32.mxu0 %vm326_vm3, %v1003_v48  ;;  %1413 = vmatmul.mubr.msk.f32.gmra.mxu1 %vm167_vm2, %v1390_v44 }
 0x251   :  { %1405 = vmatmul.mubr.msk.f32.gmra.mxu0 %vm326_vm3, %v1398_v45 }
 0x2d2   :  { %v642_v49 = vpop.xlane.xlu1 %641 }
 0x2d4   :  { %v639_v50 = vpop.xlane.xlu0 %638 }
 0x2d5   :  { %v649_v53 = vmax.f32 %v639_v50, %v642_v49 }
 0x2d6   :  { %v648_v51 = vpop.xlane.xlu1 %647 }
 0x2d8   :  { %v645_v52 = vpop.xlane.xlu0 %644 }
 0x2d9   :  { %v650_v54 = vmax.f32 %v645_v52, %v648_v51 }
 0x2db   :  { %v651_v55 = vmax.f32 %v649_v53, %v650_v54 }
 0x2dd   :  { %v652_v56 = vrot.slane %v651_v55, 4 }
 0x2df   :  { %v653_v57 = vmax.f32 %v651_v55, %v652_v56 }
 0x2e1   :  { %v654_v58 = vrot.slane %v653_v57, 2 }
 0x2e3   :  { %v655_v59 = vmax.f32 %v653_v57, %v654_v58 }
 0x2e5   :  { %v656_v60 = vrot.slane %v655_v59, 1 }
 0x2e7   :  { %v657_v61 = vmax.f32 %v655_v59, %v656_v60 }
 0x2e9   :  { %658 = vst [vmem:[%s1819_s7] sm:$0x1] %v657_v61 }
 0x30c   :  { %v1411_v63 = vpop.f32.mrf.mxu1 }
 0x30d   :  { %v1403_v0 = vpop.f32.mrf.mxu0 }
 0x30e   :  { %v1193_v1 = vadd.f32 %v1411_v63, %v1403_v0  ;;  %v1187_v2 = vpop.f32.mrf.mxu1 }
 0x30f   :  { %v1090_v3 = vpop.f32.mrf.mxu0 }
 0x310   :  { %v1207_v4 = vmul.f32 0.5, %v1193_v1  ;;  %v1188_v5 = vadd.f32 %v1187_v2, %v1090_v3  ;;  %v1414_v6 = vpop.f32.mrf.mxu1 }
 0x311   :  { %v1406_v7 = vpop.f32.mrf.mxu0 }
 0x312   :  { %v1211_v8 = vsub.f32 1.0, %v1207_v4  ;;  %v1206_v9 = vmul.f32 0.5, %v1188_v5  ;;  %v1203_v10 = vadd.f32 %v1414_v6, %v1406_v7  ;;  %v1197_v11 = vpop.f32.mrf.mxu1 }
 0x313   :  { %v1100_v12 = vpop.f32.mrf.mxu0 }
 0x314   :  { %1216 = vst.msk [vmem:[#allocation2 + $0x28] sm:$0xff] %vm632_vm12, %v1211_v8  ;;  %v1210_v13 = vsub.f32 1.0, %v1206_v9  ;;  %v1209_v14 = vmul.f32 0.5, %v1203_v10  ;;  %v1198_v15 = vadd.f32 %v1197_v11, %v1100_v12  ;;  %v1222_v62 = vsel %vm632_vm12, %v1211_v8, -inf }
 0x315   :  { %1223 = vmax.xlane.f32.xlu1 %v1222_v62 }
 0x316   :  { %1215 = vst.msk [vmem:[#allocation2 + $0x20] sm:$0xff] %vm632_vm12, %v1210_v13  ;;  %v1213_v16 = vsub.f32 1.0, %v1209_v14  ;;  %v1208_v36 = vmul.f32 0.5, %v1198_v15  ;;  %v1219_v37 = vsel %vm632_vm12, %v1210_v13, -inf }
 0x317   :  { %1220 = vmax.xlane.f32.xlu0 %v1219_v37 }
 0x318   :  { %1218 = vst.msk [vmem:[#allocation2 + $0x38] sm:$0xff] %vm632_vm12, %v1213_v16  ;;  %v1212_v33 = vsub.f32 1.0, %v1208_v36  ;;  %v1228_v35 = vsel %vm632_vm12, %v1213_v16, -inf }
 0x319   :  { %1229 = vmax.xlane.f32.xlu1 %v1228_v35 }
 0x31a   :  { %1217 = vst.msk [vmem:[#allocation2 + $0x30] sm:$0xff] %vm632_vm12, %v1212_v33  ;;  %v1225_v17 = vsel %vm632_vm12, %v1212_v33, -inf }
 0x31b   :  { %1226 = vmax.xlane.f32.xlu0 %v1225_v17 }
 0x31c   :  { %1477 = shalt.err (!%p1474_p4)
}
 0x31d   :  { %s1489_s22 = smov 128   ;;  %s1490_s23 = smov 8  }
 0x31e   :  { %1253 = dma.vmem_to_hbm [thread:$0]  %s1248_s20, 1024, %s1818_s6, [#allocation3], %s1489_s22, %s1489_s22, %s1490_s23  }
 0x39e   :  { %v1224_v39 = vpop.xlane.xlu1 %1223 }
 0x3a0   :  { %v1221_v18 = vpop.xlane.xlu0 %1220 }
 0x3a1   :  { %v1231_v20 = vmax.f32 %v1221_v18, %v1224_v39 }
 0x3a2   :  { %v1230_v19 = vpop.xlane.xlu1 %1229 }
 0x3a4   :  { %v1227_v38 = vpop.xlane.xlu0 %1226 }
 0x3a5   :  { %v1232_v40 = vmax.f32 %v1227_v38, %v1230_v19 }
 0x3a7   :  { %v1233_v21 = vmax.f32 %v1231_v20, %v1232_v40 }
 0x3a9   :  { %v1234_v41 = vrot.slane %v1233_v21, 4 }
 0x3ab   :  { %v1235_v22 = vmax.f32 %v1233_v21, %v1234_v41 }
 0x3ad   :  { %v1236_v43 = vrot.slane %v1235_v22, 2 }
 0x3af   :  { %v1237_v23 = vmax.f32 %v1235_v22, %v1236_v43 }
 0x3b1   :  { %v1238_v42 = vrot.slane %v1237_v23, 1 }
 0x3b3   :  { %v1239_v24 = vmax.f32 %v1237_v23, %v1238_v42 }
 0x3b5   :  { %1310 = vst [vmem:[%s1819_s7 + $0x1] sm:$0x1] %v1239_v24 }
 0x3b6   :  { %1486 = dma.done.wait [#allocation3], 1024  }
 0x3b7   :  { %1487 = vsyncadd [#allocation3], 4294966272 }
 0x3b8   :  { %1261 = vsyncpa [#allocation3], 1 }

// kernel: uflow_forward.9
= control target key start
LH: loop header
LB: loop body
LE: loop exit
PB: predicated region body
PF: predicated region fallthrough
CT: control target
= control target key end

     0   :  { %vm54_vm0 = vcmask 39936   ;;  %vm56_vm1 = vcmask 33792   ;;  %v3019_v0 = vmov 0.0   ;;  %s3020_s29 = smov 10   ;;  %s3021_s30 = smov 5   ;;  %vm960_vm2 = vcmask 1044480   ;;  %s4607_s0 = inlined_call_operand.vmem [shape: f32[128,10], index: 0, kind: input, shape index: {}]   ;;  %s4608_s1 = inlined_call_operand.vmem [shape: f32[45,5], index: 1, kind: input, shape index: {}]   ;;  %s4609_s2 = inlined_call_operand.vmem [shape: f32[1,5], index: 2, kind: input, shape index: {}]   ;;  %s4610_s3 = inlined_call_operand.vmem [shape: f32[45,10], index: 3, kind: input, shape index: {}]   ;;  %s4611_s4 = inlined_call_operand.vmem [shape: f32[1,10], index: 4, kind: input, shape index: {}]   ;;  %s4612_s7 = inlined_call_operand.vmem [shape: f32[10,10], index: 7, kind: input, shape index: {}]   ;;  %s4613_s5 = inlined_call_operand.vmem [shape: f32[1,10], index: 5, kind: input, shape index: {}]   ;;  %s4614_s6 = inlined_call_operand.vmem [shape: f32[1,10], index: 6, kind: input, shape index: {}]   ;;  %s4615_s8 = inlined_call_operand.vmem [shape: f32[128,10], index: 8, kind: output, shape index: {0}]   ;;  %s4616_s9 = inlined_call_operand.vmem [shape: f32[2,128], index: 9, kind: output, shape index: {1}]  }
   0x1   :  { %55 = vst.msk [vmem:[#allocation2] sm:$0xff] %vm54_vm0, %v3019_v0  ;;  %58 = vst.msk [vmem:[#allocation2 + $0x10] sm:$0xff] %vm54_vm0, %v3019_v0  ;;  %v3241_v1 = vld [vmem:[%s4607_s0] sm:$0xff]  ;;  %v3246_v2 = vld [vmem:[%s4607_s0 + $0x8] sm:$0xff]  ;;  %s3022_s10 = smov 15   ;;  %s3023_s13 = smov 20  }
   0x2   :  { %57 = vst.msk [vmem:[#allocation2 + $0x8] sm:$0x3] %vm56_vm1, %v3019_v0  ;;  %59 = vst.msk [vmem:[#allocation2 + $0x18] sm:$0x3] %vm56_vm1, %v3019_v0  ;;  %v3251_v3 = vld [vmem:[%s4607_s0 + $0x10] sm:$0xff]  ;;  %v3262_v4 = vld [vmem:[%s4607_s0 + $0x18] sm:$0xff] }
   0x3   :  { %60 = vst.msk [vmem:[#allocation2 + $0x20] sm:$0xff] %vm54_vm0, %v3019_v0  ;;  %62 = vst.msk [vmem:[#allocation2 + $0x30] sm:$0xff] %vm54_vm0, %v3019_v0  ;;  %v3267_v5 = vld [vmem:[%s4607_s0 + $0x20] sm:$0xff]  ;;  %v3272_v6 = vld [vmem:[%s4607_s0 + $0x28] sm:$0xff]  ;;  %s3024_s14 = smov 25   ;;  %s3025_s17 = smov 30  }
   0x4   :  { %61 = vst.msk [vmem:[#allocation2 + $0x28] sm:$0x3] %vm56_vm1, %v3019_v0  ;;  %63 = vst.msk [vmem:[#allocation2 + $0x38] sm:$0x3] %vm56_vm1, %v3019_v0  ;;  %v3283_v7 = vld [vmem:[%s4607_s0 + $0x30] sm:$0xff]  ;;  %v3288_v8 = vld [vmem:[%s4607_s0 + $0x38] sm:$0xff] }
   0x5   :  { %64 = vst.msk [vmem:[#allocation2 + $0x40] sm:$0xff] %vm54_vm0, %v3019_v0  ;;  %66 = vst.msk [vmem:[#allocation2 + $0x50] sm:$0xff] %vm54_vm0, %v3019_v0  ;;  %v3293_v9 = vld [vmem:[%s4607_s0 + $0x40] sm:$0xff]  ;;  %v3304_v10 = vld [vmem:[%s4607_s0 + $0x48] sm:$0xff]  ;;  %s3026_s26 = smov 35   ;;  %s3027_s15 = smov 40  }
   0x6   :  { %65 = vst.msk [vmem:[#allocation2 + $0x48] sm:$0x3] %vm56_vm1, %v3019_v0  ;;  %67 = vst.msk [vmem:[#allocation2 + $0x58] sm:$0x3] %vm56_vm1, %v3019_v0  ;;  %v3323_v18 = vld [vmem:[%s4607_s0 + $0x50] sm:$0xff]  ;;  %v51_v22 = vld [vmem:[%s4608_s1 + $0x20] sm:$0xff] }
   0x7   :  { %68 = vst.msk [vmem:[#allocation2 + $0x60] sm:$0xff] %vm54_vm0, %v3019_v0  ;;  %70 = vst.msk [vmem:[#allocation2 + $0x70] sm:$0xff] %vm54_vm0, %v3019_v0  ;;  %v52_v21 = vld [vmem:[%s4608_s1 + $0x28] sm:$0x1f]  ;;  %v50_v25 = vld [vmem:[%s4608_s1 + $0x18] sm:$0xff]  ;;  %vm786_vm3 = vcmask 80896  }
   0x8   :  { %69 = vst.msk [vmem:[#allocation2 + $0x68] sm:$0x3] %vm56_vm1, %v3019_v0  ;;  %71 = vst.msk [vmem:[#allocation2 + $0x78] sm:$0x3] %vm56_vm1, %v3019_v0  ;;  %2834 = vmatprep.subr.msk.mxu0 %vm960_vm2, %v52_v21  ;;  %2934 = vmatprep.subr.msk.mxu1 %vm960_vm2, %v52_v21  ;;  %v3357_v26 = vld [vmem:[%s4607_s0 + $0x58] sm:$0xff]  ;;  %v49_v27 = vld [vmem:[%s4608_s1 + $0x10] sm:$0xff] }
   0x9   :  { %72 = vst.msk [vmem:[#allocation2 + $0x80] sm:$0xff] %vm54_vm0, %v3019_v0  ;;  %74 = vst.msk [vmem:[#allocation2 + $0x90] sm:$0xff] %vm54_vm0, %v3019_v0  ;;  %v145_v11 = vld [vmem:[#allocation2 + $0x2] sm:$0xff]  ;;  %2835 = vmatpush3.msk.msra.mxu0 %vm960_vm2, %v52_v21  ;;  %2940 = vmatpush3.msk.msra.mxu1 %vm960_vm2, %v52_v21  ;;  %v3423_v40 = vld [vmem:[%s4607_s0 + $0x70] sm:$0xff]  ;;  %vm803_vm4 = vcmask 121856   ;;  %vm820_vm5 = vcmask 162816  }
   0xa   :  { %73 = vst.msk [vmem:[#allocation2 + $0x88] sm:$0x3] %vm56_vm1, %v3019_v0  ;;  %75 = vst.msk [vmem:[#allocation2 + $0x98] sm:$0x3] %vm56_vm1, %v3019_v0  ;;  %v129_v12 = vld [vmem:[#allocation2 + $0x1] sm:$0xff]  ;;  %338 = vrot.lane.b32.xlu1 %v145_v11, %s3020_s29  ;;  %2836 = vmatprep.subr.mxu0 %v51_v22  ;;  %v3442_v45 = vld [vmem:[%s4607_s0 + $0x78] sm:$0xff] }
   0xb   :  { %76 = vst.msk [vmem:[#allocation2 + $0xa0] sm:$0xff] %vm54_vm0, %v3019_v0  ;;  %78 = vst.msk [vmem:[#allocation2 + $0xb0] sm:$0xff] %vm54_vm0, %v3019_v0  ;;  %274 = vrot.lane.b32.xlu0 %v129_v12, %s3021_s30  ;;  %2935 = vmatprep.subr.mxu1 %v51_v22  ;;  %v48_v28 = vld [vmem:[%s4608_s1 + $0x8] sm:$0xff]  ;;  %v47_v30 = vld [vmem:[%s4608_s1] sm:$0xff]  ;;  %vm837_vm6 = vcmask 203776   ;;  %vm854_vm7 = vcmask 244736  }
   0xc   :  { %77 = vst.msk [vmem:[#allocation2 + $0xa8] sm:$0x3] %vm56_vm1, %v3019_v0  ;;  %79 = vst.msk [vmem:[#allocation2 + $0xb8] sm:$0x3] %vm56_vm1, %v3019_v0  ;;  %2837 = vmatpush3.msra.mxu0 %v51_v22  ;;  %2941 = vmatpush3.msra.mxu1 %v51_v22  ;;  %v3385_v32 = vld [vmem:[%s4607_s0 + $0x60] sm:$0xff]  ;;  %v3404_v37 = vld [vmem:[%s4607_s0 + $0x68] sm:$0xff] }
   0xd   :  { %80 = vst.msk [vmem:[#allocation2 + $0xc0] sm:$0xff] %vm54_vm0, %v3019_v0  ;;  %82 = vst.msk [vmem:[#allocation2 + $0xd0] sm:$0xff] %vm54_vm0, %v3019_v0  ;;  %2838 = vmatprep.subr.mxu0 %v50_v25  ;;  %2936 = vmatprep.subr.mxu1 %v50_v25  ;;  %vm871_vm8 = vcmask 285696   ;;  %vm888_vm9 = vcmask 326656   ;;  %vm911_vm10 = vcmask 367616   ;;  %vm2464_vm11 = vcmask 1041408  }
   0xe   :  { %81 = vst.msk [vmem:[#allocation2 + $0xc8] sm:$0x3] %vm56_vm1, %v3019_v0  ;;  %83 = vst.msk [vmem:[#allocation2 + $0xd8] sm:$0x3] %vm56_vm1, %v3019_v0  ;;  %2839 = vmatpush3.msra.mxu0 %v50_v25  ;;  %2942 = vmatpush3.msra.mxu1 %v50_v25  ;;  %v113_v25 = vld [vmem:[#allocation2] sm:$0xff]  ;;  %vm2705_vm12 = vcmask 1041409  }
   0xf   :  { %84 = vst.msk [vmem:[#allocation2 + $0xe0] sm:$0xff] %vm54_vm0, %v3019_v0  ;;  %86 = vst.msk [vmem:[#allocation2 + $0xf0] sm:$0xff] %vm54_vm0, %v3019_v0  ;;  %2840 = vmatprep.subr.mxu0 %v49_v27  ;;  %2937 = vmatprep.subr.mxu1 %v49_v27 }
  0x10   :  { %85 = vst.msk [vmem:[#allocation2 + $0xe8] sm:$0x3] %vm56_vm1, %v3019_v0  ;;  %87 = vst.msk [vmem:[#allocation2 + $0xf8] sm:$0x3] %vm56_vm1, %v3019_v0  ;;  %2841 = vmatpush3.msra.mxu0 %v49_v27  ;;  %2943 = vmatpush3.msra.mxu1 %v49_v27  ;;  %v217_v60 = vld [vmem:[#allocation2 + $0x90] sm:$0xff] }
  0x11   :  { %88 = vst.msk [vmem:[#allocation2 + $0x100] sm:$0xff] %vm54_vm0, %v3019_v0  ;;  %90 = vst.msk [vmem:[#allocation2 + $0x110] sm:$0xff] %vm54_vm0, %v3019_v0  ;;  %2842 = vmatprep.subr.mxu0 %v48_v28  ;;  %2938 = vmatprep.subr.mxu1 %v48_v28  ;;  %v233_v12 = vld [vmem:[#allocation2 + $0x91] sm:$0xff] }
  0x12   :  { %89 = vst.msk [vmem:[#allocation2 + $0x108] sm:$0x3] %vm56_vm1, %v3019_v0  ;;  %91 = vst.msk [vmem:[#allocation2 + $0x118] sm:$0x3] %vm56_vm1, %v3019_v0  ;;  %2843 = vmatpush3.msra.mxu0 %v48_v28  ;;  %2944 = vmatpush3.msra.mxu1 %v48_v28  ;;  %v249_v21 = vld [vmem:[#allocation2 + $0x92] sm:$0xff] }
  0x13   :  { %92 = vst.msk [vmem:[#allocation2 + $0x120] sm:$0xff] %vm54_vm0, %v3019_v0  ;;  %94 = vst.msk [vmem:[#allocation2 + $0x130] sm:$0xff] %vm54_vm0, %v3019_v0  ;;  %2844 = vmatprep.subr.mxu0 %v47_v30  ;;  %2939 = vmatprep.subr.mxu1 %v47_v30  ;;  %v137_v48 = vld [vmem:[#allocation2 + $0xa1] sm:$0xff] }
  0x14   :  { %93 = vst.msk [vmem:[#allocation2 + $0x128] sm:$0x3] %vm56_vm1, %v3019_v0  ;;  %95 = vst.msk [vmem:[#allocation2 + $0x138] sm:$0x3] %vm56_vm1, %v3019_v0  ;;  %2845 = vmatpush3.msra.mxu0 %v47_v30  ;;  %2945 = vmatpush3.msra.mxu1 %v47_v30  ;;  %v153_v49 = vld [vmem:[#allocation2 + $0xa2] sm:$0xff] }
  0x15   :  { %1132 = vst.msk [vmem:[#allocation3] sm:$0xff] %vm54_vm0, %v3019_v0  ;;  %1134 = vst.msk [vmem:[#allocation3 + $0x10] sm:$0xff] %vm54_vm0, %v3019_v0 }
  0x16   :  { %1133 = vst.msk [vmem:[#allocation3 + $0x8] sm:$0x3] %vm56_vm1, %v3019_v0  ;;  %1135 = vst.msk [vmem:[#allocation3 + $0x18] sm:$0x3] %vm56_vm1, %v3019_v0 }
  0x17   :  { %1136 = vst.msk [vmem:[#allocation3 + $0x20] sm:$0xff] %vm54_vm0, %v3019_v0  ;;  %1138 = vst.msk [vmem:[#allocation3 + $0x30] sm:$0xff] %vm54_vm0, %v3019_v0 }
  0x18   :  { %1137 = vst.msk [vmem:[#allocation3 + $0x28] sm:$0x3] %vm56_vm1, %v3019_v0  ;;  %1139 = vst.msk [vmem:[#allocation3 + $0x38] sm:$0x3] %vm56_vm1, %v3019_v0 }
  0x19   :  { %1140 = vst.msk [vmem:[#allocation3 + $0x40] sm:$0xff] %vm54_vm0, %v3019_v0  ;;  %1142 = vst.msk [vmem:[#allocation3 + $0x50] sm:$0xff] %vm54_vm0, %v3019_v0 }
  0x1a   :  { %1141 = vst.msk [vmem:[#allocation3 + $0x48] sm:$0x3] %vm56_vm1, %v3019_v0  ;;  %1143 = vst.msk [vmem:[#allocation3 + $0x58] sm:$0x3] %vm56_vm1, %v3019_v0 }
  0x1b   :  { %1144 = vst.msk [vmem:[#allocation3 + $0x60] sm:$0xff] %vm54_vm0, %v3019_v0  ;;  %1146 = vst.msk [vmem:[#allocation3 + $0x70] sm:$0xff] %vm54_vm0, %v3019_v0 }
  0x1c   :  { %1145 = vst.msk [vmem:[#allocation3 + $0x68] sm:$0x3] %vm56_vm1, %v3019_v0  ;;  %1147 = vst.msk [vmem:[#allocation3 + $0x78] sm:$0x3] %vm56_vm1, %v3019_v0 }
  0x1d   :  { %1148 = vst.msk [vmem:[#allocation3 + $0x80] sm:$0xff] %vm54_vm0, %v3019_v0  ;;  %1150 = vst.msk [vmem:[#allocation3 + $0x90] sm:$0xff] %vm54_vm0, %v3019_v0 }
  0x1e   :  { %1149 = vst.msk [vmem:[#allocation3 + $0x88] sm:$0x3] %vm56_vm1, %v3019_v0  ;;  %1151 = vst.msk [vmem:[#allocation3 + $0x98] sm:$0x3] %vm56_vm1, %v3019_v0 }
  0x1f   :  { %1152 = vst.msk [vmem:[#allocation3 + $0xa0] sm:$0xff] %vm54_vm0, %v3019_v0  ;;  %1154 = vst.msk [vmem:[#allocation3 + $0xb0] sm:$0xff] %vm54_vm0, %v3019_v0 }
  0x20   :  { %1153 = vst.msk [vmem:[#allocation3 + $0xa8] sm:$0x3] %vm56_vm1, %v3019_v0  ;;  %1155 = vst.msk [vmem:[#allocation3 + $0xb8] sm:$0x3] %vm56_vm1, %v3019_v0 }
  0x21   :  { %1156 = vst.msk [vmem:[#allocation3 + $0xc0] sm:$0xff] %vm54_vm0, %v3019_v0  ;;  %1158 = vst.msk [vmem:[#allocation3 + $0xd0] sm:$0xff] %vm54_vm0, %v3019_v0 }
  0x22   :  { %1157 = vst.msk [vmem:[#allocation3 + $0xc8] sm:$0x3] %vm56_vm1, %v3019_v0  ;;  %1159 = vst.msk [vmem:[#allocation3 + $0xd8] sm:$0x3] %vm56_vm1, %v3019_v0 }
  0x23   :  { %1160 = vst.msk [vmem:[#allocation3 + $0xe0] sm:$0xff] %vm54_vm0, %v3019_v0  ;;  %1162 = vst.msk [vmem:[#allocation3 + $0xf0] sm:$0xff] %vm54_vm0, %v3019_v0 }
  0x24   :  { %1161 = vst.msk [vmem:[#allocation3 + $0xe8] sm:$0x3] %vm56_vm1, %v3019_v0  ;;  %1163 = vst.msk [vmem:[#allocation3 + $0xf8] sm:$0x3] %vm56_vm1, %v3019_v0 }
  0x25   :  { %1164 = vst.msk [vmem:[#allocation3 + $0x100] sm:$0xff] %vm54_vm0, %v3019_v0  ;;  %1166 = vst.msk [vmem:[#allocation3 + $0x110] sm:$0xff] %vm54_vm0, %v3019_v0 }
  0x26   :  { %1165 = vst.msk [vmem:[#allocation3 + $0x108] sm:$0x3] %vm56_vm1, %v3019_v0  ;;  %1167 = vst.msk [vmem:[#allocation3 + $0x118] sm:$0x3] %vm56_vm1, %v3019_v0 }
  0x27   :  { %1168 = vst.msk [vmem:[#allocation3 + $0x120] sm:$0xff] %vm54_vm0, %v3019_v0  ;;  %1170 = vst.msk [vmem:[#allocation3 + $0x130] sm:$0xff] %vm54_vm0, %v3019_v0 }
  0x28   :  { %1169 = vst.msk [vmem:[#allocation3 + $0x128] sm:$0x3] %vm56_vm1, %v3019_v0  ;;  %1171 = vst.msk [vmem:[#allocation3 + $0x138] sm:$0x3] %vm56_vm1, %v3019_v0 }
  0x29   :  { %97 = vst.msk [vmem:[#allocation2 + $0x11] sm:$0xff] %vm54_vm0, %v3241_v1  ;;  %98 = vst.msk [vmem:[#allocation2 + $0x21] sm:$0xff] %vm54_vm0, %v3246_v2 }
  0x2a   :  { %99 = vst.msk [vmem:[#allocation2 + $0x31] sm:$0xff] %vm54_vm0, %v3251_v3  ;;  %100 = vst.msk [vmem:[#allocation2 + $0x41] sm:$0xff] %vm54_vm0, %v3262_v4 }
  0x2b   :  { %101 = vst.msk [vmem:[#allocation2 + $0x51] sm:$0xff] %vm54_vm0, %v3267_v5  ;;  %102 = vst.msk [vmem:[#allocation2 + $0x61] sm:$0xff] %vm54_vm0, %v3272_v6 }
  0x2c   :  { %103 = vst.msk [vmem:[#allocation2 + $0x71] sm:$0xff] %vm54_vm0, %v3283_v7  ;;  %104 = vst.msk [vmem:[#allocation2 + $0x81] sm:$0xff] %vm54_vm0, %v3288_v8 }
  0x2d   :  { %105 = vst.msk [vmem:[#allocation2 + $0xb1] sm:$0xff] %vm54_vm0, %v3293_v9  ;;  %106 = vst.msk [vmem:[#allocation2 + $0xc1] sm:$0xff] %vm54_vm0, %v3304_v10 }
  0x2e   :  { %107 = vst.msk [vmem:[#allocation2 + $0xd1] sm:$0xff] %vm54_vm0, %v3323_v18  ;;  %108 = vst.msk [vmem:[#allocation2 + $0xe1] sm:$0xff] %vm54_vm0, %v3357_v26 }
  0x2f   :  { %109 = vst.msk [vmem:[#allocation2 + $0xf1] sm:$0xff] %vm54_vm0, %v3385_v32  ;;  %110 = vst.msk [vmem:[#allocation2 + $0x101] sm:$0xff] %vm54_vm0, %v3404_v37 }
  0x30   :  { %v146_v13 = vld [vmem:[#allocation2 + $0x12] sm:$0xff]  ;;  %v3312_v15 = vld [vmem:[#allocation2 + $0x20] sm:$0xff]  ;;  %111 = vst.msk [vmem:[#allocation2 + $0x111] sm:$0xff] %vm54_vm0, %v3423_v40  ;;  %112 = vst.msk [vmem:[#allocation2 + $0x121] sm:$0xff] %vm54_vm0, %v3442_v45 }
  0x31   :  { %v130_v14 = vld [vmem:[#allocation2 + $0x11] sm:$0xff]  ;;  %340 = vrot.lane.b32.xlu1 %v146_v13, %s3020_s29  ;;  %v131_v17 = vld [vmem:[#allocation2 + $0x21] sm:$0xff] }
  0x32   :  { %276 = vrot.lane.b32.xlu0 %v130_v14, %s3021_s30  ;;  %v3314_v16 = vld [vmem:[#allocation2 + $0x10] sm:$0xff]  ;;  %v147_v19 = vld [vmem:[#allocation2 + $0x22] sm:$0xff] }
  0x33   :  { %v132_v20 = vld [vmem:[#allocation2 + $0x31] sm:$0xff]  ;;  %v3370_v29 = vld [vmem:[#allocation2 + $0x40] sm:$0xff] }
  0x34   :  { %v3342_v23 = vld [vmem:[#allocation2 + $0x30] sm:$0xff]  ;;  %v180_v31 = vld [vmem:[#allocation2 + $0x41] sm:$0xff] }
  0x35   :  { %404 = vrot.lane.b32.xlu1 %v3312_v15, %s3022_s10  ;;  %v148_v24 = vld [vmem:[#allocation2 + $0x32] sm:$0xff]  ;;  %v149_v33 = vld [vmem:[#allocation2 + $0x42] sm:$0xff] }
  0x36   :  { %402 = vrot.lane.b32.xlu0 %v3314_v16, %s3022_s10  ;;  %v134_v34 = vld [vmem:[#allocation2 + $0x51] sm:$0xff]  ;;  %v3411_v38 = vld [vmem:[#allocation2 + $0x60] sm:$0xff] }
  0x37   :  { %v3396_v35 = vld [vmem:[#allocation2 + $0x50] sm:$0xff]  ;;  %v182_v39 = vld [vmem:[#allocation2 + $0x61] sm:$0xff] }
  0x38   :  { %v150_v36 = vld [vmem:[#allocation2 + $0x52] sm:$0xff]  ;;  %v151_v41 = vld [vmem:[#allocation2 + $0x62] sm:$0xff] }
  0x39   :  { %278 = vrot.lane.b32.xlu1 %v131_v17, %s3021_s30  ;;  %v136_v42 = vld [vmem:[#allocation2 + $0x71] sm:$0xff]  ;;  %v168_v46 = vld [vmem:[#allocation2 + $0x80] sm:$0xff] }
  0x3a   :  { %466 = vrot.lane.b32.xlu0 %v130_v14, %s3023_s13  ;;  %v3434_v43 = vld [vmem:[#allocation2 + $0x70] sm:$0xff]  ;;  %v184_v47 = vld [vmem:[#allocation2 + $0x81] sm:$0xff] }
  0x3b   :  { %v152_v44 = vld [vmem:[#allocation2 + $0x72] sm:$0xff]  ;;  %v200_v53 = vld [vmem:[#allocation2 + $0x82] sm:$0xff] }
  0x3c   :  { %v138_v50 = vld [vmem:[#allocation2 + $0xb1] sm:$0xff]  ;;  %v3474_v63 = vld [vmem:[#allocation2 + $0xc0] sm:$0xff] }
  0x3d   :  { %530 = vrot.lane.b32.xlu1 %v146_v13, %s3024_s14  ;;  %v3463_v56 = vld [vmem:[#allocation2 + $0xb0] sm:$0xff]  ;;  %v155_v27 = vld [vmem:[#allocation2 + $0xc2] sm:$0xff] }
  0x3e   :  { %468 = vrot.lane.b32.xlu0 %v131_v17, %s3023_s13  ;;  %v154_v57 = vld [vmem:[#allocation2 + $0xb2] sm:$0xff] }
  0x3f   :  { %v140_v28 = vld [vmem:[#allocation2 + $0xd1] sm:$0xff] }
  0x41   :  { %342 = vrot.lane.b32.xlu1 %v147_v19, %s3020_s29 }
  0x42   :  { %280 = vrot.lane.b32.xlu0 %v132_v20, %s3021_s30 }
  0x45   :  { %594 = vrot.lane.b32.xlu1 %v3312_v15, %s3025_s17 }
  0x46   :  { %532 = vrot.lane.b32.xlu0 %v147_v19, %s3024_s14 }
  0x49   :  { %406 = vrot.lane.b32.xlu1 %v3342_v23, %s3022_s10 }
  0x4a   :  { %344 = vrot.lane.b32.xlu0 %v148_v24, %s3020_s29 }
  0x4d   :  { %658 = vrot.lane.b32.xlu1 %v131_v17, %s3026_s26  ;;  %v186_v17 = vld [vmem:[#allocation2 + $0xc1] sm:$0xff] }
  0x4e   :  { %596 = vrot.lane.b32.xlu0 %v3342_v23, %s3025_s17 }
  0x51   :  { %470 = vrot.lane.b32.xlu1 %v132_v20, %s3023_s13 }
  0x52   :  { %408 = vrot.lane.b32.xlu0 %v3370_v29, %s3022_s10 }
  0x55   :  { %722 = vrot.lane.b32.xlu1 %v147_v19, %s3027_s15 }
  0x56   :  { %660 = vrot.lane.b32.xlu0 %v132_v20, %s3026_s26 }
  0x59   :  { %472 = vrot.lane.b32.xlu1 %v180_v31, %s3023_s13 }
  0x5a   :  { %282 = vrot.lane.b32.xlu0 %v180_v31, %s3021_s30 }
  0x5d   :  { %724 = vrot.lane.b32.xlu1 %v148_v24, %s3027_s15 }
  0x5e   :  { %534 = vrot.lane.b32.xlu0 %v148_v24, %s3024_s14 }
  0x61   :  { %346 = vrot.lane.b32.xlu1 %v149_v33, %s3020_s29 }
  0x62   :  { %284 = vrot.lane.b32.xlu0 %v134_v34, %s3021_s30 }
  0x65   :  { %598 = vrot.lane.b32.xlu1 %v3370_v29, %s3025_s17 }
  0x66   :  { %536 = vrot.lane.b32.xlu0 %v149_v33, %s3024_s14 }
  0x69   :  { %410 = vrot.lane.b32.xlu1 %v3396_v35, %s3022_s10 }
  0x6a   :  { %348 = vrot.lane.b32.xlu0 %v150_v36, %s3020_s29 }
  0x6d   :  { %662 = vrot.lane.b32.xlu1 %v180_v31, %s3026_s26 }
  0x6e   :  { %600 = vrot.lane.b32.xlu0 %v3396_v35, %s3025_s17 }
  0x71   :  { %474 = vrot.lane.b32.xlu1 %v134_v34, %s3023_s13 }
  0x72   :  { %412 = vrot.lane.b32.xlu0 %v3411_v38, %s3022_s10 }
  0x75   :  { %726 = vrot.lane.b32.xlu1 %v149_v33, %s3027_s15 }
  0x76   :  { %664 = vrot.lane.b32.xlu0 %v134_v34, %s3026_s26 }
  0x79   :  { %476 = vrot.lane.b32.xlu1 %v182_v39, %s3023_s13 }
  0x7a   :  { %286 = vrot.lane.b32.xlu0 %v182_v39, %s3021_s30 }
  0x7c   :  { %v339_v51 = vpop.permute.xlu1 %338 }
  0x7d   :  { %728 = vrot.lane.b32.xlu1 %v150_v36, %s3027_s15  ;;  %v275_v52 = vpop.permute.xlu0 %274 }
  0x7e   :  { %538 = vrot.lane.b32.xlu0 %v150_v36, %s3024_s14  ;;  %v770_v30 = vsel %vm54_vm0, %v113_v25, %v275_v52 }
  0x7f   :  { %v787_v34 = vsel %vm786_vm3, %v770_v30, %v339_v51 }
  0x81   :  { %350 = vrot.lane.b32.xlu1 %v151_v41, %s3020_s29 }
  0x82   :  { %288 = vrot.lane.b32.xlu0 %v136_v42, %s3021_s30 }
  0x85   :  { %602 = vrot.lane.b32.xlu1 %v3411_v38, %s3025_s17 }
  0x86   :  { %540 = vrot.lane.b32.xlu0 %v151_v41, %s3024_s14 }
  0x89   :  { %414 = vrot.lane.b32.xlu1 %v3434_v43, %s3022_s10 }
  0x8a   :  { %352 = vrot.lane.b32.xlu0 %v152_v44, %s3020_s29 }
  0x8d   :  { %666 = vrot.lane.b32.xlu1 %v182_v39, %s3026_s26 }
  0x8e   :  { %604 = vrot.lane.b32.xlu0 %v3434_v43, %s3025_s17 }
  0x91   :  { %478 = vrot.lane.b32.xlu1 %v136_v42, %s3023_s13 }
  0x92   :  { %416 = vrot.lane.b32.xlu0 %v168_v46, %s3022_s10 }
  0x95   :  { %730 = vrot.lane.b32.xlu1 %v151_v41, %s3027_s15 }
  0x96   :  { %668 = vrot.lane.b32.xlu0 %v136_v42, %s3026_s26 }
  0x99   :  { %480 = vrot.lane.b32.xlu1 %v184_v47, %s3023_s13 }
  0x9a   :  { %290 = vrot.lane.b32.xlu0 %v137_v48, %s3021_s30  ;;  %v156_v48 = vld [vmem:[#allocation2 + $0xd2] sm:$0xff] }
  0x9d   :  { %732 = vrot.lane.b32.xlu1 %v152_v44, %s3027_s15 }
  0x9e   :  { %542 = vrot.lane.b32.xlu0 %v152_v44, %s3024_s14 }
  0xa1   :  { %354 = vrot.lane.b32.xlu1 %v153_v49, %s3020_s29 }
  0xa2   :  { %292 = vrot.lane.b32.xlu0 %v138_v50, %s3021_s30 }
  0xa3   :  { %v3459_v54 = vpop.permute.xlu1 %340 }
  0xa4   :  { %v277_v55 = vpop.permute.xlu0 %276 }
  0xa5   :  { %606 = vrot.lane.b32.xlu1 %v168_v46, %s3025_s17  ;;  %v771_v49 = vsel %vm54_vm0, %v3314_v16, %v277_v55 }
  0xa6   :  { %544 = vrot.lane.b32.xlu0 %v200_v53, %s3024_s14 }
  0xa7   :  { %v3465_v58 = vpop.permute.xlu1 %404 }
  0xa8   :  { %v403_v59 = vpop.permute.xlu0 %402 }
  0xa9   :  { %418 = vrot.lane.b32.xlu1 %v3463_v56, %s3022_s10  ;;  %v804_v36 = vsel %vm803_vm4, %v787_v34, %v403_v59  ;;  %v157_v34 = vld [vmem:[#allocation2 + $0xe2] sm:$0xff] }
  0xaa   :  { %356 = vrot.lane.b32.xlu0 %v154_v57, %s3020_s29 }
  0xab   :  { %v3470_v61 = vpop.permute.xlu1 %278 }
  0xac   :  { %v467_v62 = vpop.permute.xlu0 %466 }
  0xad   :  { %670 = vrot.lane.b32.xlu1 %v184_v47, %s3026_s26  ;;  %v821_v42 = vsel %vm820_vm5, %v804_v36, %v467_v62  ;;  %v3506_v47 = vld [vmem:[#allocation2 + $0xd0] sm:$0xff] }
  0xae   :  { %608 = vrot.lane.b32.xlu0 %v217_v60, %s3025_s17  ;;  %v142_v36 = vld [vmem:[#allocation2 + $0xf1] sm:$0xff] }
  0xaf   :  { %v531_v0 = vpop.permute.xlu1 %530 }
  0xb0   :  { %v469_v11 = vpop.permute.xlu0 %468  ;;  %v838_v44 = vsel %vm837_vm6, %v821_v42, %v531_v0 }
  0xb1   :  { %482 = vrot.lane.b32.xlu1 %v138_v50, %s3023_s13 }
  0xb2   :  { %420 = vrot.lane.b32.xlu0 %v3474_v63, %s3022_s10 }
  0xb3   :  { %v3479_v13 = vpop.permute.xlu1 %342 }
  0xb4   :  { %v3481_v14 = vpop.permute.xlu0 %280 }
  0xb5   :  { %734 = vrot.lane.b32.xlu1 %v200_v53, %s3027_s15 }
  0xb6   :  { %672 = vrot.lane.b32.xlu0 %v233_v12, %s3026_s26 }
  0xb7   :  { %v595_v19 = vpop.permute.xlu1 %594 }
  0xb8   :  { %v533_v20 = vpop.permute.xlu0 %532  ;;  %v855_v46 = vsel %vm854_vm7, %v838_v44, %v595_v19 }
  0xb9   :  { %484 = vrot.lane.b32.xlu1 %v186_v17, %s3023_s13 }
  0xba   :  { %294 = vrot.lane.b32.xlu0 %v186_v17, %s3021_s30 }
  0xbb   :  { %v3487_v22 = vpop.permute.xlu1 %406 }
  0xbc   :  { %v3489_v24 = vpop.permute.xlu0 %344 }
  0xbd   :  { %736 = vrot.lane.b32.xlu1 %v249_v21, %s3027_s15 }
  0xbe   :  { %546 = vrot.lane.b32.xlu0 %v154_v57, %s3024_s14  ;;  %v788_v57 = vsel %vm786_vm3, %v771_v49, %v3459_v54  ;;  %v3528_v54 = vld [vmem:[#allocation2 + $0xe0] sm:$0xff] }
  0xbf   :  { %v659_v31 = vpop.permute.xlu1 %658  ;;  %v805_v16 = vsel %vm803_vm4, %v788_v57, %v3465_v58 }
  0xc0   :  { %v597_v33 = vpop.permute.xlu0 %596  ;;  %v872_v50 = vsel %vm871_vm8, %v855_v46, %v659_v31  ;;  %v822_v60 = vsel %vm820_vm5, %v805_v16, %v469_v11 }
  0xc1   :  { %358 = vrot.lane.b32.xlu1 %v155_v27, %s3020_s29  ;;  %v839_v62 = vsel %vm837_vm6, %v822_v60, %v533_v20  ;;  %v188_v20 = vld [vmem:[#allocation2 + $0xe1] sm:$0xff] }
  0xc2   :  { %296 = vrot.lane.b32.xlu0 %v140_v28, %s3021_s30  ;;  %v856_v0 = vsel %vm854_vm7, %v839_v62, %v597_v33 }
  0xc3   :  { %v471_v39 = vpop.permute.xlu1 %470 }
  0xc4   :  { %v3498_v41 = vpop.permute.xlu0 %408 }
  0xc5   :  { %610 = vrot.lane.b32.xlu1 %v3474_v63, %s3025_s17 }
  0xc6   :  { %548 = vrot.lane.b32.xlu0 %v155_v27, %s3024_s14 }
  0xc7   :  { %v723_v51 = vpop.permute.xlu1 %722 }
  0xc8   :  { %v661_v52 = vpop.permute.xlu0 %660  ;;  %v889_v53 = vsel %vm888_vm9, %v872_v50, %v723_v51 }
  0xc9   :  { %422 = vrot.lane.b32.xlu1 %v3506_v47, %s3022_s10  ;;  %2846 = vmatprep.mubr.msk.f32.mxu0 %vm911_vm10, %v889_v53  ;;  %v873_v12 = vsel %vm871_vm8, %v856_v0, %v661_v52 }
  0xca   :  { %360 = vrot.lane.b32.xlu0 %v156_v48, %s3020_s29 }
  0xcb   :  { %v473_v55 = vpop.permute.xlu1 %472 }
  0xcc   :  { %v3520_v59 = vpop.permute.xlu0 %282 }
  0xcd   :  { %674 = vrot.lane.b32.xlu1 %v186_v17, %s3026_s26 }
  0xce   :  { %612 = vrot.lane.b32.xlu0 %v3506_v47, %s3025_s17 }
  0xcf   :  { %v725_v19 = vpop.permute.xlu1 %724 }
  0xd0   :  { %v535_v58 = vpop.permute.xlu0 %534  ;;  %v890_v21 = vsel %vm888_vm9, %v873_v12, %v725_v19 }
  0xd1   :  { %486 = vrot.lane.b32.xlu1 %v140_v28, %s3023_s13  ;;  %2847 = vmatmul.mubr.msk.f32.vlgmr.msra.gmra.mxu0 %vm911_vm10, %v890_v21 }
  0xd2   :  { %424 = vrot.lane.b32.xlu0 %v3528_v54, %s3022_s10 }
  0xd3   :  { %v3536_v11 = vpop.permute.xlu1 %346 }
  0xd4   :  { %v3538_v17 = vpop.permute.xlu0 %284 }
  0xd5   :  { %738 = vrot.lane.b32.xlu1 %v155_v27, %s3027_s15 }
  0xd6   :  { %676 = vrot.lane.b32.xlu0 %v140_v28, %s3026_s26  ;;  %v772_v28 = vsel %vm54_vm0, %v3312_v15, %v3470_v61  ;;  %v3567_v61 = vld [vmem:[#allocation2 + $0xf0] sm:$0xff] }
  0xd7   :  { %v599_v25 = vpop.permute.xlu1 %598  ;;  %v789_v44 = vsel %vm786_vm3, %v772_v28, %v3479_v13  ;;  %v158_v13 = vld [vmem:[#allocation2 + $0xf2] sm:$0xff] }
  0xd8   :  { %v537_v30 = vpop.permute.xlu0 %536  ;;  %v806_v46 = vsel %vm803_vm4, %v789_v44, %v3487_v22  ;;  %v159_v44 = vld [vmem:[#allocation2 + $0x102] sm:$0xff] }
  0xd9   :  { %488 = vrot.lane.b32.xlu1 %v188_v20, %s3023_s13  ;;  %v823_v50 = vsel %vm820_vm5, %v806_v46, %v471_v39  ;;  %v773_v39 = vsel %vm54_vm0, %v3342_v23, %v3481_v14  ;;  %v144_v46 = vld [vmem:[#allocation2 + $0x111] sm:$0xff] }
  0xda   :  { %298 = vrot.lane.b32.xlu0 %v188_v20, %s3021_s30  ;;  %v840_v51 = vsel %vm837_vm6, %v823_v50, %v535_v58  ;;  %v790_v16 = vsel %vm786_vm3, %v773_v39, %v3489_v24  ;;  %v3590_v24 = vld [vmem:[#allocation2 + $0x100] sm:$0xff] }
  0xdb   :  { %v3544_v31 = vpop.permute.xlu1 %410  ;;  %v857_v15 = vsel %vm854_vm7, %v840_v51, %v599_v25  ;;  %v807_v60 = vsel %vm803_vm4, %v790_v16, %v3498_v41  ;;  %v190_v25 = vld [vmem:[#allocation2 + $0x101] sm:$0xff] }
  0xdc   :  { %v3546_v33 = vpop.permute.xlu0 %348  ;;  %v824_v12 = vsel %vm820_vm5, %v807_v60, %v473_v55 }
  0xdd   :  { %740 = vrot.lane.b32.xlu1 %v156_v48, %s3027_s15  ;;  %v841_v23 = vsel %vm837_vm6, %v824_v12, %v537_v30 }
  0xde   :  { %550 = vrot.lane.b32.xlu0 %v156_v48, %s3024_s14 }
  0xdf   :  { %v663_v27 = vpop.permute.xlu1 %662 }
  0xe0   :  { %v601_v42 = vpop.permute.xlu0 %600  ;;  %v874_v52 = vsel %vm871_vm8, %v857_v15, %v663_v27 }
  0xe1   :  { %362 = vrot.lane.b32.xlu1 %v157_v34, %s3020_s29  ;;  %v858_v14 = vsel %vm854_vm7, %v841_v23, %v601_v42 }
  0xe2   :  { %300 = vrot.lane.b32.xlu0 %v142_v36, %s3021_s30 }
  0xe3   :  { %v475_v49 = vpop.permute.xlu1 %474 }
  0xe4   :  { %v3559_v48 = vpop.permute.xlu0 %412 }
  0xe5   :  { %614 = vrot.lane.b32.xlu1 %v3528_v54, %s3025_s17 }
  0xe6   :  { %552 = vrot.lane.b32.xlu0 %v157_v34, %s3024_s14 }
  0xe7   :  { %v727_v22 = vpop.permute.xlu1 %726 }
  0xe8   :  { %v665_v53 = vpop.permute.xlu0 %664  ;;  %v891_v57 = vsel %vm888_vm9, %v874_v52, %v727_v22 }
  0xe9   :  { %426 = vrot.lane.b32.xlu1 %v3567_v61, %s3022_s10  ;;  %2849 = vmatprep.mubr.msk.f32.mxu0 %vm911_vm10, %v891_v57  ;;  %v875_v19 = vsel %vm871_vm8, %v858_v14, %v665_v53 }
  0xea   :  { %364 = vrot.lane.b32.xlu0 %v158_v13, %s3020_s29 }
  0xeb   :  { %v477_v62 = vpop.permute.xlu1 %476 }
  0xec   :  { %v3582_v0 = vpop.permute.xlu0 %286 }
  0xed   :  { %678 = vrot.lane.b32.xlu1 %v188_v20, %s3026_s26 }
  0xee   :  { %616 = vrot.lane.b32.xlu0 %v3567_v61, %s3025_s17 }
  0xef   :  { %v729_v58 = vpop.permute.xlu1 %728 }
  0xf0   :  { %v539_v41 = vpop.permute.xlu0 %538  ;;  %v892_v21 = vsel %vm888_vm9, %v875_v19, %v729_v58 }
  0xf1   :  { %490 = vrot.lane.b32.xlu1 %v142_v36, %s3023_s13  ;;  %2850 = vmatmul.mubr.msk.f32.gmra.mxu0 %vm911_vm10, %v892_v21 }
  0xf2   :  { %428 = vrot.lane.b32.xlu0 %v3590_v24, %s3022_s10 }
  0xf3   :  { %v3598_v55 = vpop.permute.xlu1 %350 }
  0xf4   :  { %v3600_v20 = vpop.permute.xlu0 %288 }
  0xf5   :  { %742 = vrot.lane.b32.xlu1 %v157_v34, %s3027_s15 }
  0xf6   :  { %680 = vrot.lane.b32.xlu0 %v142_v36, %s3026_s26  ;;  %v774_v36 = vsel %vm54_vm0, %v3370_v29, %v3520_v59  ;;  %v3629_v59 = vld [vmem:[#allocation2 + $0x110] sm:$0xff] }
  0xf7   :  { %v603_v30 = vpop.permute.xlu1 %602  ;;  %v791_v51 = vsel %vm786_vm3, %v774_v36, %v3536_v11  ;;  %v160_v11 = vld [vmem:[#allocation2 + $0x112] sm:$0xff] }
  0xf8   :  { %v541_v27 = vpop.permute.xlu0 %540  ;;  %v808_v15 = vsel %vm803_vm4, %v791_v51, %v3544_v31 }
  0xf9   :  { %492 = vrot.lane.b32.xlu1 %v190_v25, %s3023_s13  ;;  %v825_v22 = vsel %vm820_vm5, %v808_v15, %v475_v49  ;;  %v775_v49 = vsel %vm54_vm0, %v3396_v35, %v3538_v17  ;;  %v225_v15 = vld [vmem:[#allocation2 + $0x130] sm:$0xff] }
  0xfa   :  { %302 = vrot.lane.b32.xlu0 %v190_v25, %s3021_s30  ;;  %v842_v53 = vsel %vm837_vm6, %v825_v22, %v539_v41  ;;  %v792_v60 = vsel %vm786_vm3, %v775_v49, %v3546_v33  ;;  %v176_v33 = vld [vmem:[#allocation2 + $0x120] sm:$0xff] }
  0xfb   :  { %v3606_v42 = vpop.permute.xlu1 %414  ;;  %v859_v29 = vsel %vm854_vm7, %v842_v53, %v603_v30  ;;  %v809_v12 = vsel %vm803_vm4, %v792_v60, %v3559_v48  ;;  %v192_v30 = vld [vmem:[#allocation2 + $0x121] sm:$0xff] }
  0xfc   :  { %v3608_v28 = vpop.permute.xlu0 %352  ;;  %v826_v19 = vsel %vm820_vm5, %v809_v12, %v477_v62 }
  0xfd   :  { %744 = vrot.lane.b32.xlu1 %v158_v13, %s3027_s15  ;;  %v843_v35 = vsel %vm837_vm6, %v826_v19, %v541_v27  ;;  %v1205_v19 = vld [vmem:[#allocation3 + $0x1] sm:$0xff] }
  0xfe   :  { %554 = vrot.lane.b32.xlu0 %v158_v13, %s3024_s14 }
  0xff   :  { %v667_v34 = vpop.permute.xlu1 %666 }
 0x100   :  { %v605_v50 = vpop.permute.xlu0 %604  ;;  %v876_v57 = vsel %vm871_vm8, %v859_v29, %v667_v34  ;;  %v241_v29 = vld [vmem:[#allocation2 + $0x131] sm:$0xff] }
 0x101   :  { %366 = vrot.lane.b32.xlu1 %v159_v44, %s3020_s29  ;;  %v860_v17 = vsel %vm854_vm7, %v843_v35, %v605_v50  ;;  %v208_v50 = vld [vmem:[#allocation2 + $0x122] sm:$0xff] }
 0x102   :  { %304 = vrot.lane.b32.xlu0 %v144_v46, %s3021_s30 }
 0x103   :  { %v479_v52 = vpop.permute.xlu1 %478 }
 0x104   :  { %v3621_v13 = vpop.permute.xlu0 %416 }
 0x105   :  { %618 = vrot.lane.b32.xlu1 %v3590_v24, %s3025_s17 }
 0x106   :  { %556 = vrot.lane.b32.xlu0 %v159_v44, %s3024_s14 }
 0x107   :  { %v731_v31 = vpop.permute.xlu1 %730 }
 0x108   :  { %v669_v39 = vpop.permute.xlu0 %668  ;;  %v893_v16 = vsel %vm888_vm9, %v876_v57, %v731_v31 }
 0x109   :  { %430 = vrot.lane.b32.xlu1 %v3629_v59, %s3022_s10  ;;  %2852 = vmatprep.mubr.msk.f32.mxu0 %vm911_vm10, %v893_v16  ;;  %v877_v58 = vsel %vm871_vm8, %v860_v17, %v669_v39 }
 0x10a   :  { %368 = vrot.lane.b32.xlu0 %v160_v11, %s3020_s29 }
 0x10b   :  { %v481_v23 = vpop.permute.xlu1 %480 }
 0x10c   :  { %v3644_v14 = vpop.permute.xlu0 %290 }
 0x10d   :  { %682 = vrot.lane.b32.xlu1 %v190_v25, %s3026_s26 }
 0x10e   :  { %620 = vrot.lane.b32.xlu0 %v3629_v59, %s3025_s17 }
 0x10f   :  { %v733_v41 = vpop.permute.xlu1 %732 }
 0x110   :  { %v543_v21 = vpop.permute.xlu0 %542  ;;  %v894_v48 = vsel %vm888_vm9, %v877_v58, %v733_v41 }
 0x111   :  { %494 = vrot.lane.b32.xlu1 %v144_v46, %s3023_s13  ;;  %2853 = vmatmul.mubr.msk.f32.gmra.mxu0 %vm911_vm10, %v894_v48 }
 0x112   :  { %432 = vrot.lane.b32.xlu0 %v176_v33, %s3022_s10 }
 0x113   :  { %v3657_v62 = vpop.permute.xlu1 %354 }
 0x114   :  { %v3659_v25 = vpop.permute.xlu0 %292 }
 0x115   :  { %746 = vrot.lane.b32.xlu1 %v159_v44, %s3027_s15 }
 0x116   :  { %684 = vrot.lane.b32.xlu0 %v144_v46, %s3026_s26  ;;  %v776_v46 = vsel %vm54_vm0, %v3411_v38, %v3582_v0  ;;  %v257_v0 = vld [vmem:[#allocation2 + $0x132] sm:$0xff] }
 0x117   :  { %v607_v27 = vpop.permute.xlu1 %606  ;;  %v793_v53 = vsel %vm786_vm3, %v776_v46, %v3598_v55 }
 0x118   :  { %v545_v34 = vpop.permute.xlu0 %544  ;;  %v810_v57 = vsel %vm803_vm4, %v793_v53, %v3606_v42  ;;  %v777_v42 = vsel %vm54_vm0, %v3434_v43, %v3600_v20  ;;  %v1221_v20 = vld [vmem:[#allocation3 + $0x2] sm:$0xff] }
 0x119   :  { %558 = vrot.lane.b32.xlu1 %v160_v11, %s3024_s14  ;;  %v827_v39 = vsel %vm820_vm5, %v810_v57, %v479_v52  ;;  %v794_v52 = vsel %vm786_vm3, %v777_v42, %v3608_v28 }
 0x11a   :  { %496 = vrot.lane.b32.xlu0 %v192_v30, %s3023_s13  ;;  %v844_v16 = vsel %vm837_vm6, %v827_v39, %v543_v21  ;;  %v811_v35 = vsel %vm803_vm4, %v794_v52, %v3621_v13 }
 0x11b   :  { %v419_v36 = vpop.permute.xlu1 %418  ;;  %v861_v38 = vsel %vm854_vm7, %v844_v16, %v607_v27  ;;  %v828_v58 = vsel %vm820_vm5, %v811_v35, %v481_v23 }
 0x11c   :  { %v3665_v51 = vpop.permute.xlu0 %356  ;;  %v845_v41 = vsel %vm837_vm6, %v828_v58, %v545_v34 }
 0x11d   :  { %560 = vrot.lane.b32.xlu1 %v208_v50, %s3024_s14 }
 0x11e   :  { %748 = vrot.lane.b32.xlu0 %v160_v11, %s3027_s15 }
 0x11f   :  { %v671_v22 = vpop.permute.xlu1 %670 }
 0x120   :  { %v609_v44 = vpop.permute.xlu0 %608  ;;  %v878_v49 = vsel %vm871_vm8, %v861_v38, %v671_v22  ;;  %v121_v22 = vld [vmem:[#allocation2 + $0xa0] sm:$0xff] }
 0x121   :  { %624 = vrot.lane.b32.xlu1 %v225_v15, %s3025_s17  ;;  %v862_v43 = vsel %vm854_vm7, %v845_v41, %v609_v44  ;;  %v778_v53 = vsel %vm54_vm0, %v121_v22, %v3644_v14  ;;  %v779_v14 = vsel %vm54_vm0, %v3463_v56, %v3659_v25 }
 0x122   :  { %622 = vrot.lane.b32.xlu0 %v176_v33, %s3025_s17 }
 0x123   :  { %v483_v31 = vpop.permute.xlu1 %482 }
 0x124   :  { %v421_v11 = vpop.permute.xlu0 %420 }
 0x125   :  { %688 = vrot.lane.b32.xlu1 %v241_v29, %s3026_s26  ;;  %v795_v29 = vsel %vm786_vm3, %v778_v53, %v3657_v62  ;;  %v796_v62 = vsel %vm786_vm3, %v779_v14, %v3665_v51 }
 0x126   :  { %686 = vrot.lane.b32.xlu0 %v192_v30, %s3026_s26  ;;  %v812_v57 = vsel %vm803_vm4, %v795_v29, %v419_v36  ;;  %v813_v36 = vsel %vm803_vm4, %v796_v62, %v421_v11 }
 0x127   :  { %v735_v55 = vpop.permute.xlu1 %734  ;;  %v829_v38 = vsel %vm820_vm5, %v812_v57, %v483_v31 }
 0x128   :  { %v673_v60 = vpop.permute.xlu0 %672  ;;  %v895_v12 = vsel %vm888_vm9, %v878_v49, %v735_v55 }
 0x129   :  { %752 = vrot.lane.b32.xlu1 %v257_v0, %s3027_s15  ;;  %2855 = vmatprep.mubr.msk.f32.mxu0 %vm911_vm10, %v895_v12  ;;  %v879_v21 = vsel %vm871_vm8, %v862_v43, %v673_v60 }
 0x12a   :  { %750 = vrot.lane.b32.xlu0 %v208_v50, %s3027_s15 }
 0x12b   :  { %v485_v17 = vpop.permute.xlu1 %484 }
 0x12c   :  { %v295_v33 = vpop.permute.xlu0 %294 }
 0x12e   :  { %1350 = vrot.lane.b32.xlu0 %v1205_v19, %s3021_s30  ;;  %v830_v19 = vsel %vm820_vm5, %v813_v36, %v485_v17 }
 0x12f   :  { %v737_v28 = vpop.permute.xlu1 %736 }
 0x130   :  { %v547_v48 = vpop.permute.xlu0 %546  ;;  %v896_v30 = vsel %vm888_vm9, %v879_v21, %v737_v28 }
 0x131   :  { %2856 = vmatmul.mubr.msk.f32.gmra.mxu0 %vm911_vm10, %v896_v30  ;;  %v846_v0 = vsel %vm837_vm6, %v829_v38, %v547_v48 }
 0x132   :  { %1414 = vrot.lane.b32.xlu0 %v1221_v20, %s3020_s29 }
 0x133   :  { %v359_v13 = vpop.permute.xlu1 %358 }
 0x134   :  { %v297_v27 = vpop.permute.xlu0 %296 }
 0x137   :  { %v611_v23 = vpop.permute.xlu1 %610 }
 0x138   :  { %v549_v50 = vpop.permute.xlu0 %548  ;;  %v863_v49 = vsel %vm854_vm7, %v846_v0, %v611_v23  ;;  %v780_v23 = vsel %vm54_vm0, %v3474_v63, %v295_v33  ;;  %v781_v63 = vsel %vm54_vm0, %v3506_v47, %v297_v27 }
 0x139   :  { %v847_v35 = vsel %vm837_vm6, %v830_v19, %v549_v50  ;;  %v797_v50 = vsel %vm786_vm3, %v780_v23, %v359_v13 }
 0x13b   :  { %v423_v34 = vpop.permute.xlu1 %422 }
 0x13c   :  { %v361_v15 = vpop.permute.xlu0 %360  ;;  %v814_v22 = vsel %vm803_vm4, %v797_v50, %v423_v34 }
 0x13d   :  { %v798_v33 = vsel %vm786_vm3, %v781_v63, %v361_v15 }
 0x13f   :  { %v675_v46 = vpop.permute.xlu1 %674 }
 0x140   :  { %v613_v44 = vpop.permute.xlu0 %612  ;;  %v880_v55 = vsel %vm871_vm8, %v863_v49, %v675_v46 }
 0x141   :  { %v864_v58 = vsel %vm854_vm7, %v847_v35, %v613_v44 }
 0x143   :  { %v487_v39 = vpop.permute.xlu1 %486 }
 0x144   :  { %v425_v16 = vpop.permute.xlu0 %424  ;;  %v831_v53 = vsel %vm820_vm5, %v814_v22, %v487_v39 }
 0x145   :  { %v815_v13 = vsel %vm803_vm4, %v798_v33, %v425_v16 }
 0x147   :  { %v739_v60 = vpop.permute.xlu1 %738 }
 0x148   :  { %v677_v12 = vpop.permute.xlu0 %676  ;;  %v897_v42 = vsel %vm888_vm9, %v880_v55, %v739_v60 }
 0x149   :  { %2858 = vmatprep.mubr.msk.f32.mxu1 %vm911_vm10, %v897_v42  ;;  %v881_v41 = vsel %vm871_vm8, %v864_v58, %v677_v12 }
 0x14b   :  { %v489_v31 = vpop.permute.xlu1 %488 }
 0x14c   :  { %v299_v52 = vpop.permute.xlu0 %298  ;;  %v832_v60 = vsel %vm820_vm5, %v815_v13, %v489_v31 }
 0x14f   :  { %v741_v43 = vpop.permute.xlu1 %740 }
 0x150   :  { %v551_v20 = vpop.permute.xlu0 %550  ;;  %v898_v56 = vsel %vm888_vm9, %v881_v41, %v741_v43  ;;  %v782_v43 = vsel %vm54_vm0, %v3528_v54, %v299_v52 }
 0x151   :  { %2859 = vmatmul.mubr.msk.f32.vlgmr.msra.gmra.mxu1 %vm911_vm10, %v898_v56  ;;  %v848_v29 = vsel %vm837_vm6, %v831_v53, %v551_v20 }
 0x153   :  { %v363_v25 = vpop.permute.xlu1 %362 }
 0x154   :  { %v301_v51 = vpop.permute.xlu0 %300  ;;  %v799_v20 = vsel %vm786_vm3, %v782_v43, %v363_v25 }
 0x155   :  { %v783_v54 = vsel %vm54_vm0, %v3567_v61, %v301_v51  ;;  %v3768_v51 = vld [vmem:[%s4609_s2] ss:$0 sm:$0xff] }
 0x157   :  { %v615_v21 = vpop.permute.xlu1 %614 }
 0x158   :  { %v553_v11 = vpop.permute.xlu0 %552  ;;  %v865_v57 = vsel %vm854_vm7, %v848_v29, %v615_v21 }
 0x159   :  { %v849_v12 = vsel %vm837_vm6, %v832_v60, %v553_v11 }
 0x15b   :  { %v427_v28 = vpop.permute.xlu1 %426 }
 0x15c   :  { %v365_v48 = vpop.permute.xlu0 %364  ;;  %v816_v56 = vsel %vm803_vm4, %v799_v20, %v427_v28 }
 0x15d   :  { %v800_v52 = vsel %vm786_vm3, %v783_v54, %v365_v48 }
 0x15f   :  { %v679_v30 = vpop.permute.xlu1 %678 }
 0x160   :  { %v617_v17 = vpop.permute.xlu0 %616  ;;  %v882_v38 = vsel %vm871_vm8, %v865_v57, %v679_v30 }
 0x161   :  { %v866_v42 = vsel %vm854_vm7, %v849_v12, %v617_v17 }
 0x163   :  { %v491_v46 = vpop.permute.xlu1 %490 }
 0x164   :  { %v429_v44 = vpop.permute.xlu0 %428  ;;  %v833_v30 = vsel %vm820_vm5, %v816_v56, %v491_v46 }
 0x165   :  { %v817_v25 = vsel %vm803_vm4, %v800_v52, %v429_v44 }
 0x167   :  { %v743_v0 = vpop.permute.xlu1 %742 }
 0x168   :  { %v681_v49 = vpop.permute.xlu0 %680  ;;  %v899_v55 = vsel %vm888_vm9, %v882_v38, %v743_v0 }
 0x169   :  { %2861 = vmatprep.mubr.msk.f32.mxu1 %vm911_vm10, %v899_v55  ;;  %v883_v14 = vsel %vm871_vm8, %v866_v42, %v681_v49 }
 0x16b   :  { %v493_v34 = vpop.permute.xlu1 %492 }
 0x16c   :  { %v303_v39 = vpop.permute.xlu0 %302  ;;  %v834_v57 = vsel %vm820_vm5, %v817_v25, %v493_v34 }
 0x16d   :  { %v784_v60 = vsel %vm54_vm0, %v3590_v24, %v303_v39 }
 0x16f   :  { %v745_v62 = vpop.permute.xlu1 %744 }
 0x170   :  { %v555_v36 = vpop.permute.xlu0 %554  ;;  %v900_v47 = vsel %vm888_vm9, %v883_v14, %v745_v62 }
 0x171   :  { %2862 = vmatmul.mubr.msk.f32.gmra.mxu1 %vm911_vm10, %v900_v47  ;;  %v850_v17 = vsel %vm837_vm6, %v833_v30, %v555_v36 }
 0x173   :  { %v367_v27 = vpop.permute.xlu1 %366 }
 0x174   :  { %v305_v15 = vpop.permute.xlu0 %304  ;;  %v801_v62 = vsel %vm786_vm3, %v784_v60, %v367_v27  ;;  %v1125_v60 = vld [vmem:[%s4610_s3] sm:$0xff] }
 0x175   :  { %v785_v12 = vsel %vm54_vm0, %v3629_v59, %v305_v15 }
 0x177   :  { %v619_v19 = vpop.permute.xlu1 %618 }
 0x178   :  { %v557_v16 = vpop.permute.xlu0 %556  ;;  %v867_v23 = vsel %vm854_vm7, %v850_v17, %v619_v19 }
 0x179   :  { %v851_v38 = vsel %vm837_vm6, %v834_v57, %v557_v16 }
 0x17b   :  { %v431_v35 = vpop.permute.xlu1 %430 }
 0x17c   :  { %v369_v58 = vpop.permute.xlu0 %368  ;;  %v818_v47 = vsel %vm803_vm4, %v801_v62, %v431_v35 }
 0x17d   :  { %v802_v36 = vsel %vm786_vm3, %v785_v12, %v369_v58 }
 0x17f   :  { %v683_v41 = vpop.permute.xlu1 %682 }
 0x180   :  { %v621_v31 = vpop.permute.xlu0 %620  ;;  %v884_v50 = vsel %vm871_vm8, %v867_v23, %v683_v41 }
 0x181   :  { %v868_v0 = vsel %vm854_vm7, %v851_v38, %v621_v31 }
 0x183   :  { %v495_v21 = vpop.permute.xlu1 %494 }
 0x184   :  { %v433_v11 = vpop.permute.xlu0 %432  ;;  %v835_v24 = vsel %vm820_vm5, %v818_v47, %v495_v21 }
 0x185   :  { %v819_v19 = vsel %vm803_vm4, %v802_v36, %v433_v11 }
 0x187   :  { %v747_v22 = vpop.permute.xlu1 %746 }
 0x188   :  { %v685_v53 = vpop.permute.xlu0 %684  ;;  %v901_v29 = vsel %vm888_vm9, %v884_v50, %v747_v22 }
 0x189   :  { %2864 = vmatprep.mubr.msk.f32.mxu1 %vm911_vm10, %v901_v29  ;;  %v885_v49 = vsel %vm871_vm8, %v868_v0, %v685_v53 }
 0x18b   :  { %v559_v28 = vpop.permute.xlu1 %558 }
 0x18c   :  { %v497_v46 = vpop.permute.xlu0 %496  ;;  %v852_v39 = vsel %vm837_vm6, %v835_v24, %v559_v28 }
 0x18d   :  { %v836_v59 = vsel %vm820_vm5, %v819_v19, %v497_v46 }
 0x18f   :  { %v561_v55 = vpop.permute.xlu1 %560 }
 0x190   :  { %v749_v63 = vpop.permute.xlu0 %748  ;;  %v853_v15 = vsel %vm837_vm6, %v836_v59, %v561_v55  ;;  %v1129_v55 = vld [vmem:[%s4610_s3 + $0x20] sm:$0xff] }
 0x191   :  { %v902_v61 = vsel %vm888_vm9, %v885_v49, %v749_v63  ;;  %v2848_v48 = vpop.f32.mrf.mxu0  ;;  %v1130_v49 = vld [vmem:[%s4610_s3 + $0x28] sm:$0x1f] }
 0x192   :  { %2865 = vmatmul.mubr.msk.f32.gmra.mxu1 %vm911_vm10, %v902_v61  ;;  %v1036_v44 = vadd.f32 %v2848_v48, %v3768_v51  ;;  %2870 = vmatprep.subr.msk.mxu1 %vm960_vm2, %v1130_v49  ;;  %v1128_v61 = vld [vmem:[%s4610_s3 + $0x18] sm:$0xff]  ;;  %v1127_v48 = vld [vmem:[%s4610_s3 + $0x10] sm:$0xff] }
 0x193   :  { %v625_v33 = vpop.permute.xlu1 %624  ;;  %v1030_v34 = vpop.f32.mrf.mxu0  ;;  %2871 = vmatpush3.msk.msra.mxu1 %vm960_vm2, %v1130_v49 }
 0x194   :  { %v623_v13 = vpop.permute.xlu0 %622  ;;  %v1110_v42 = vmax.f32 %v1036_v44, 0.0  ;;  %v1031_v14 = vadd.f32 %v3768_v51, %v1030_v34  ;;  %v870_v27 = vsel %vm854_vm7, %v853_v15, %v625_v33  ;;  %2872 = vmatprep.subr.mxu1 %v1129_v55  ;;  %v1126_v33 = vld [vmem:[%s4610_s3 + $0x8] sm:$0xff] }
 0x195   :  { %v869_v35 = vsel %vm854_vm7, %v852_v39, %v623_v13  ;;  %2873 = vmatpush3.msra.mxu1 %v1129_v55 }
 0x196   :  { %1174 = vst.msk [vmem:[#allocation3 + $0x21] sm:$0xff] %vm54_vm0, %v1110_v42  ;;  %v1109_v16 = vmax.f32 %v1031_v14, 0.0  ;;  %2874 = vmatprep.subr.mxu1 %v1128_v61 }
 0x197   :  { %v689_v41 = vpop.permute.xlu1 %688  ;;  %2875 = vmatpush3.msra.mxu1 %v1128_v61 }
 0x198   :  { %v687_v31 = vpop.permute.xlu0 %686  ;;  %1173 = vst.msk [vmem:[#allocation3 + $0x11] sm:$0xff] %vm54_vm0, %v1109_v16  ;;  %v887_v58 = vsel %vm871_vm8, %v870_v27, %v689_v41  ;;  %2876 = vmatprep.subr.mxu1 %v1127_v48 }
 0x199   :  { %v886_v43 = vsel %vm871_vm8, %v869_v35, %v687_v31  ;;  %2877 = vmatpush3.msra.mxu1 %v1127_v48 }
 0x19a   :  { %2878 = vmatprep.subr.mxu1 %v1126_v33 }
 0x19b   :  { %v753_v20 = vpop.permute.xlu1 %752  ;;  %2879 = vmatpush3.msra.mxu1 %v1126_v33 }
 0x19c   :  { %v751_v56 = vpop.permute.xlu0 %750  ;;  %v904_v21 = vsel %vm888_vm9, %v887_v58, %v753_v20  ;;  %2880 = vmatprep.subr.mxu1 %v1125_v60 }
 0x19d   :  { %v903_v11 = vsel %vm888_vm9, %v886_v43, %v751_v56  ;;  %v1254_v30 = vld [vmem:[#allocation3 + $0x21] sm:$0xff]  ;;  %2881 = vmatpush3.msra.mxu1 %v1125_v60 }
 0x19e   :  { %2867 = vmatprep.mubr.msk.f32.mxu1 %vm911_vm10, %v903_v11  ;;  %v3795_v17 = vld [vmem:[#allocation3 + $0x20] sm:$0xff]  ;;  %1544 = vrot.lane.b32.xlu0 %v1254_v30, %s3023_s13 }
 0x19f   :  { %2868 = vmatmul.mubr.msk.f32.gmra.mxu1 %vm911_vm10, %v904_v21  ;;  %1480 = vrot.lane.b32.xlu1 %v3795_v17, %s3022_s10  ;;  %v1270_v23 = vld [vmem:[#allocation3 + $0x22] sm:$0xff]  ;;  %v3802_v50 = vld [vmem:[#allocation3 + $0x10] sm:$0xff] }
 0x1a0   :  { %v1253_v22 = vld [vmem:[#allocation3 + $0x11] sm:$0xff] }
 0x1a1   :  { %v1222_v46 = vld [vmem:[#allocation3 + $0x12] sm:$0xff] }
 0x1a2   :  { %1608 = vrot.lane.b32.xlu0 %v1270_v23, %s3024_s14 }
 0x1a3   :  { %1354 = vrot.lane.b32.xlu1 %v1254_v30, %s3021_s30 }
 0x1a6   :  { %1478 = vrot.lane.b32.xlu0 %v3802_v50, %s3022_s10 }
 0x1a7   :  { %1418 = vrot.lane.b32.xlu1 %v1270_v23, %s3020_s29 }
 0x1aa   :  { %1542 = vrot.lane.b32.xlu0 %v1253_v22, %s3023_s13 }
 0x1ab   :  { %1670 = vrot.lane.b32.xlu1 %v3795_v17, %s3025_s17 }
 0x1af   :  { %1734 = vrot.lane.b32.xlu1 %v1254_v30, %s3026_s26  ;;  %v1351_v30 = vpop.permute.xlu0 %1350 }
 0x1b1   :  { %v2851_v53 = vpop.f32.mrf.mxu0 }
 0x1b2   :  { %v1046_v29 = vadd.f32 %v2851_v53, %v3768_v51  ;;  %v1229_v53 = vld [vmem:[#allocation3 + $0xa2] sm:$0xff] }
 0x1b3   :  { %1798 = vrot.lane.b32.xlu1 %v1270_v23, %s3027_s15  ;;  %v1040_v54 = vpop.f32.mrf.mxu0 }
 0x1b4   :  { %v1112_v52 = vmax.f32 %v1046_v29, 0.0  ;;  %v1041_v25 = vadd.f32 %v3768_v51, %v1040_v54 }
 0x1b6   :  { %1176 = vst.msk [vmem:[#allocation3 + $0x41] sm:$0xff] %vm54_vm0, %v1112_v52  ;;  %v1111_v28 = vmax.f32 %v1041_v25, 0.0  ;;  %v1415_v25 = vpop.permute.xlu0 %1414 }
 0x1b7   :  { %1352 = vrot.lane.b32.xlu1 %v1253_v22, %s3021_s30  ;;  %v1213_v22 = vld [vmem:[#allocation3 + $0xa1] sm:$0xff] }
 0x1b8   :  { %1175 = vst.msk [vmem:[#allocation3 + $0x31] sm:$0xff] %vm54_vm0, %v1111_v28 }
 0x1bb   :  { %1416 = vrot.lane.b32.xlu1 %v1222_v46, %s3020_s29 }
 0x1bd   :  { %v3818_v57 = vld [vmem:[#allocation3 + $0x40] sm:$0xff] }
 0x1be   :  { %1484 = vrot.lane.b32.xlu0 %v3818_v57, %s3022_s10  ;;  %v1209_v38 = vld [vmem:[#allocation3 + $0x41] sm:$0xff] }
 0x1bf   :  { %1606 = vrot.lane.b32.xlu1 %v1222_v46, %s3024_s14  ;;  %v1272_v0 = vld [vmem:[#allocation3 + $0x42] sm:$0xff]  ;;  %v1208_v63 = vld [vmem:[#allocation3 + $0x31] sm:$0xff] }
 0x1c0   :  { %v1224_v44 = vld [vmem:[#allocation3 + $0x32] sm:$0xff] }
 0x1c1   :  { %v3849_v34 = vld [vmem:[#allocation3 + $0x30] sm:$0xff] }
 0x1c2   :  { %1358 = vrot.lane.b32.xlu0 %v1209_v38, %s3021_s30 }
 0x1c3   :  { %1548 = vrot.lane.b32.xlu1 %v1209_v38, %s3023_s13 }
 0x1c6   :  { %1612 = vrot.lane.b32.xlu0 %v1272_v0, %s3024_s14 }
 0x1c7   :  { %1422 = vrot.lane.b32.xlu1 %v1272_v0, %s3020_s29 }
 0x1ca   :  { %1356 = vrot.lane.b32.xlu0 %v1208_v63, %s3021_s30 }
 0x1cb   :  { %1674 = vrot.lane.b32.xlu1 %v3818_v57, %s3025_s17 }
 0x1ce   :  { %1420 = vrot.lane.b32.xlu0 %v1224_v44, %s3020_s29 }
 0x1cf   :  { %1738 = vrot.lane.b32.xlu1 %v1209_v38, %s3026_s26 }
 0x1d1   :  { %v2854_v13 = vpop.f32.mrf.mxu0 }
 0x1d2   :  { %v1056_v12 = vadd.f32 %v2854_v13, %v3768_v51  ;;  %1672 = vrot.lane.b32.xlu0 %v3849_v34, %s3025_s17 }
 0x1d3   :  { %1802 = vrot.lane.b32.xlu1 %v1272_v0, %s3027_s15  ;;  %v1050_v42 = vpop.f32.mrf.mxu0 }
 0x1d4   :  { %v1114_v14 = vmax.f32 %v1056_v12, 0.0  ;;  %v1051_v62 = vadd.f32 %v3768_v51, %v1050_v42  ;;  %v1189_v12 = vld [vmem:[#allocation3] sm:$0xff] }
 0x1d6   :  { %1178 = vst.msk [vmem:[#allocation3 + $0x61] sm:$0xff] %vm54_vm0, %v1114_v14  ;;  %v1113_v36 = vmax.f32 %v1051_v62, 0.0  ;;  %1736 = vrot.lane.b32.xlu0 %v1208_v63, %s3026_s26 }
 0x1d7   :  { %1482 = vrot.lane.b32.xlu1 %v3849_v34, %s3022_s10 }
 0x1d8   :  { %1177 = vst.msk [vmem:[#allocation3 + $0x51] sm:$0xff] %vm54_vm0, %v1113_v36  ;;  %v1846_v36 = vsel %vm54_vm0, %v1189_v12, %v1351_v30 }
 0x1da   :  { %1610 = vrot.lane.b32.xlu0 %v1224_v44, %s3024_s14 }
 0x1db   :  { %1546 = vrot.lane.b32.xlu1 %v1208_v63, %s3023_s13 }
 0x1dd   :  { %v3866_v47 = vld [vmem:[#allocation3 + $0x60] sm:$0xff] }
 0x1de   :  { %1488 = vrot.lane.b32.xlu0 %v3866_v47, %s3022_s10  ;;  %v1211_v19 = vld [vmem:[#allocation3 + $0x61] sm:$0xff] }
 0x1df   :  { %1800 = vrot.lane.b32.xlu1 %v1224_v44, %s3027_s15  ;;  %v1274_v16 = vld [vmem:[#allocation3 + $0x62] sm:$0xff]  ;;  %v1210_v41 = vld [vmem:[#allocation3 + $0x51] sm:$0xff] }
 0x1e0   :  { %v1226_v31 = vld [vmem:[#allocation3 + $0x52] sm:$0xff] }
 0x1e1   :  { %v3881_v39 = vld [vmem:[#allocation3 + $0x50] sm:$0xff] }
 0x1e2   :  { %1362 = vrot.lane.b32.xlu0 %v1211_v19, %s3021_s30 }
 0x1e3   :  { %1552 = vrot.lane.b32.xlu1 %v1211_v19, %s3023_s13 }
 0x1e6   :  { %1616 = vrot.lane.b32.xlu0 %v1274_v16, %s3024_s14 }
 0x1e7   :  { %1426 = vrot.lane.b32.xlu1 %v1274_v16, %s3020_s29 }
 0x1ea   :  { %1360 = vrot.lane.b32.xlu0 %v1210_v41, %s3021_s30 }
 0x1eb   :  { %1678 = vrot.lane.b32.xlu1 %v3866_v47, %s3025_s17 }
 0x1ee   :  { %1424 = vrot.lane.b32.xlu0 %v1226_v31, %s3020_s29 }
 0x1ef   :  { %1742 = vrot.lane.b32.xlu1 %v1211_v19, %s3026_s26  ;;  %v1293_v19 = vld [vmem:[#allocation3 + $0x90] sm:$0xff] }
 0x1f1   :  { %v2857_v24 = vpop.f32.mrf.mxu0 }
 0x1f2   :  { %v1066_v59 = vadd.f32 %v2857_v24, %v3768_v51  ;;  %1676 = vrot.lane.b32.xlu0 %v3881_v39, %s3025_s17 }
 0x1f3   :  { %1486 = vrot.lane.b32.xlu1 %v3881_v39, %s3022_s10  ;;  %v1060_v15 = vpop.f32.mrf.mxu0 }
 0x1f4   :  { %v1116_v27 = vmax.f32 %v1066_v59, 0.0  ;;  %v1061_v35 = vadd.f32 %v3768_v51, %v1060_v15 }
 0x1f6   :  { %1180 = vst.msk [vmem:[#allocation3 + $0x81] sm:$0xff] %vm54_vm0, %v1116_v27  ;;  %v1115_v58 = vmax.f32 %v1061_v35, 0.0  ;;  %1740 = vrot.lane.b32.xlu0 %v1210_v41, %s3026_s26 }
 0x1f7   :  { %1550 = vrot.lane.b32.xlu1 %v1210_v41, %s3023_s13 }
 0x1f8   :  { %1179 = vst.msk [vmem:[#allocation3 + $0x71] sm:$0xff] %vm54_vm0, %v1115_v58 }
 0x1fa   :  { %1614 = vrot.lane.b32.xlu0 %v1226_v31, %s3024_s14 }
 0x1fb   :  { %1804 = vrot.lane.b32.xlu1 %v1226_v31, %s3027_s15 }
 0x1fd   :  { %v1244_v21 = vld [vmem:[#allocation3 + $0x80] sm:$0xff] }
 0x1fe   :  { %v1260_v11 = vld [vmem:[#allocation3 + $0x81] sm:$0xff] }
 0x1ff   :  { %v1212_v43 = vld [vmem:[#allocation3 + $0x71] sm:$0xff]  ;;  %v1276_v13 = vld [vmem:[#allocation3 + $0x82] sm:$0xff] }
 0x200   :  { %v3894_v20 = vld [vmem:[#allocation3 + $0x70] sm:$0xff]  ;;  %1364 = vrot.lane.b32.xlu0 %v1212_v43, %s3021_s30 }
 0x201   :  { %1490 = vrot.lane.b32.xlu1 %v3894_v20, %s3022_s10  ;;  %v1228_v56 = vld [vmem:[#allocation3 + $0x72] sm:$0xff] }
 0x204   :  { %1428 = vrot.lane.b32.xlu0 %v1228_v56, %s3020_s29 }
 0x205   :  { %1554 = vrot.lane.b32.xlu1 %v1212_v43, %s3023_s13 }
 0x208   :  { %1680 = vrot.lane.b32.xlu0 %v3894_v20, %s3025_s17 }
 0x209   :  { %1806 = vrot.lane.b32.xlu1 %v1274_v16, %s3027_s15  ;;  %v1862_v16 = vsel %vm786_vm3, %v1846_v36, %v1415_v25 }
 0x20c   :  { %1492 = vrot.lane.b32.xlu0 %v1244_v21, %s3022_s10 }
 0x20d   :  { %1556 = vrot.lane.b32.xlu1 %v1260_v11, %s3023_s13 }
 0x210   :  { %1744 = vrot.lane.b32.xlu0 %v1212_v43, %s3026_s26  ;;  %v3922_v55 = vpop.permute.xlu0 %1544 }
 0x211   :  { %1808 = vrot.lane.b32.xlu1 %v1228_v56, %s3027_s15  ;;  %v3908_v23 = vpop.permute.xlu1 %1480  ;;  %v2860_v29 = vpop.f32.mrf.mxu1 }
 0x212   :  { %v1076_v54 = vadd.f32 %v2860_v29, %v3768_v51 }
 0x213   :  { %v1070_v52 = vpop.f32.mrf.mxu1 }
 0x214   :  { %1366 = vrot.lane.b32.xlu0 %v1213_v22, %s3021_s30  ;;  %v1118_v28 = vmax.f32 %v1076_v54, 0.0  ;;  %v1071_v46 = vadd.f32 %v3768_v51, %v1070_v52  ;;  %v3926_v44 = vpop.permute.xlu0 %1608 }
 0x215   :  { %1430 = vrot.lane.b32.xlu1 %v1229_v53, %s3020_s29  ;;  %v3914_v38 = vpop.permute.xlu1 %1354 }
 0x216   :  { %1182 = vst.msk [vmem:[#allocation3 + $0xc1] sm:$0xff] %vm54_vm0, %v1118_v28  ;;  %v1117_v0 = vmax.f32 %v1071_v46, 0.0 }
 0x218   :  { %1618 = vrot.lane.b32.xlu0 %v1228_v56, %s3024_s14  ;;  %1181 = vst.msk [vmem:[#allocation3 + $0xb1] sm:$0xff] %vm54_vm0, %v1117_v0  ;;  %v1479_v42 = vpop.permute.xlu0 %1478 }
 0x219   :  { %1682 = vrot.lane.b32.xlu1 %v1244_v21, %s3025_s17  ;;  %v3920_v49 = vpop.permute.xlu1 %1418  ;;  %v1878_v24 = vsel %vm803_vm4, %v1862_v16, %v1479_v42  ;;  %v1309_v21 = vld [vmem:[#allocation3 + $0x91] sm:$0xff] }
 0x21c   :  { %v1543_v41 = vpop.permute.xlu0 %1542 }
 0x21d   :  { %v1671_v63 = vpop.permute.xlu1 %1670  ;;  %v3940_v59 = vld [vmem:[#allocation3 + $0xc0] sm:$0xff]  ;;  %v1894_v27 = vsel %vm820_vm5, %v1878_v24, %v1543_v41 }
 0x21e   :  { %v1262_v15 = vld [vmem:[#allocation3 + $0xc1] sm:$0xff] }
 0x21f   :  { %v1214_v61 = vld [vmem:[#allocation3 + $0xb1] sm:$0xff] }
 0x220   :  { %v3924_v48 = vld [vmem:[#allocation3 + $0xb0] sm:$0xff]  ;;  %1368 = vrot.lane.b32.xlu0 %v1214_v61, %s3021_s30 }
 0x221   :  { %v1735_v33 = vpop.permute.xlu1 %1734  ;;  %1494 = vrot.lane.b32.xlu1 %v3924_v48, %s3022_s10  ;;  %v1230_v14 = vld [vmem:[#allocation3 + $0xb2] sm:$0xff] }
 0x224   :  { %1620 = vrot.lane.b32.xlu0 %v1276_v13, %s3024_s14 }
 0x225   :  { %v1799_v60 = vpop.permute.xlu1 %1798  ;;  %1746 = vrot.lane.b32.xlu1 %v1260_v11, %s3026_s26  ;;  %v1325_v11 = vld [vmem:[#allocation3 + $0x92] sm:$0xff] }
 0x228   :  { %1432 = vrot.lane.b32.xlu0 %v1230_v14, %s3020_s29 }
 0x229   :  { %1558 = vrot.lane.b32.xlu1 %v1214_v61, %s3023_s13  ;;  %v1353_v62 = vpop.permute.xlu1 %1352 }
 0x22c   :  { %1684 = vrot.lane.b32.xlu0 %v1293_v19, %s3025_s17 }
 0x22d   :  { %1810 = vrot.lane.b32.xlu1 %v1276_v13, %s3027_s15  ;;  %v1417_v31 = vpop.permute.xlu1 %1416 }
 0x230   :  { %1496 = vrot.lane.b32.xlu0 %v3940_v59, %s3022_s10  ;;  %v3945_v35 = vpop.permute.xlu0 %1484 }
 0x231   :  { %1560 = vrot.lane.b32.xlu1 %v1262_v15, %s3023_s13  ;;  %v1607_v58 = vpop.permute.xlu1 %1606  ;;  %v2863_v56 = vpop.f32.mrf.mxu1 }
 0x232   :  { %v1910_v43 = vsel %vm837_vm6, %v1894_v27, %v1607_v58  ;;  %v1086_v22 = vadd.f32 %v2863_v56, %v3768_v51 }
 0x233   :  { %v1926_v30 = vsel %vm854_vm7, %v1910_v43, %v1671_v63  ;;  %v1080_v53 = vpop.f32.mrf.mxu1  ;;  %v1231_v63 = vld [vmem:[#allocation3 + $0xc2] sm:$0xff] }
 0x234   :  { %v1942_v29 = vsel %vm871_vm8, %v1926_v30, %v1735_v33  ;;  %v1120_v54 = vmax.f32 %v1086_v22, 0.0  ;;  %v1081_v52 = vadd.f32 %v3768_v51, %v1080_v53  ;;  %1748 = vrot.lane.b32.xlu0 %v1309_v21, %s3026_s26  ;;  %v3954_v25 = vpop.permute.xlu0 %1358 }
 0x235   :  { %1812 = vrot.lane.b32.xlu1 %v1325_v11, %s3027_s15  ;;  %v3957_v28 = vpop.permute.xlu1 %1548  ;;  %v1958_v46 = vsel %vm888_vm9, %v1942_v29, %v1799_v60 }
 0x236   :  { %2882 = vmatprep.mubr.msk.f32.mxu1 %vm911_vm10, %v1958_v46  ;;  %1184 = vst.msk [vmem:[#allocation3 + $0xe1] sm:$0xff] %vm54_vm0, %v1120_v54  ;;  %v1119_v0 = vmax.f32 %v1081_v52, 0.0 }
 0x238   :  { %1183 = vst.msk [vmem:[#allocation3 + $0xd1] sm:$0xff] %vm54_vm0, %v1119_v0  ;;  %1370 = vrot.lane.b32.xlu0 %v1262_v15, %s3021_s30  ;;  %v3964_v61 = vpop.permute.xlu0 %1612 }
 0x239   :  { %1434 = vrot.lane.b32.xlu1 %v1231_v63, %s3020_s29  ;;  %v3967_v33 = vpop.permute.xlu1 %1422 }
 0x23c   :  { %1622 = vrot.lane.b32.xlu0 %v1230_v14, %s3024_s14  ;;  %v3970_v13 = vpop.permute.xlu0 %1356  ;;  %v1847_v14 = vsel %vm54_vm0, %v3802_v50, %v1353_v62  ;;  %v1848_v50 = vsel %vm54_vm0, %v3795_v17, %v3914_v38 }
 0x23d   :  { %1686 = vrot.lane.b32.xlu1 %v3940_v59, %s3025_s17  ;;  %v1675_v60 = vpop.permute.xlu1 %1674  ;;  %v1863_v24 = vsel %vm786_vm3, %v1847_v14, %v1417_v31  ;;  %v1864_v62 = vsel %vm786_vm3, %v1848_v50, %v3920_v49  ;;  %v4007_v30 = vld [vmem:[#allocation3 + $0xe0] sm:$0xff] }
 0x23e   :  { %v1879_v58 = vsel %vm803_vm4, %v1863_v24, %v3908_v23  ;;  %v1264_v22 = vld [vmem:[#allocation3 + $0xe1] sm:$0xff] }
 0x23f   :  { %v1216_v12 = vld [vmem:[#allocation3 + $0xd1] sm:$0xff]  ;;  %v1895_v31 = vsel %vm820_vm5, %v1879_v58, %v3922_v55  ;;  %v1233_v58 = vld [vmem:[#allocation3 + $0xe2] sm:$0xff] }
 0x240   :  { %v3974_v42 = vld [vmem:[#allocation3 + $0xd0] sm:$0xff]  ;;  %1372 = vrot.lane.b32.xlu0 %v1216_v12, %s3021_s30  ;;  %v3977_v36 = vpop.permute.xlu0 %1420  ;;  %v1911_v17 = vsel %vm837_vm6, %v1895_v31, %v3926_v44 }
 0x241   :  { %1498 = vrot.lane.b32.xlu1 %v3974_v42, %s3022_s10  ;;  %v1739_v19 = vpop.permute.xlu1 %1738  ;;  %v1232_v27 = vld [vmem:[#allocation3 + $0xd2] sm:$0xff] }
 0x244   :  { %1624 = vrot.lane.b32.xlu0 %v1231_v63, %s3024_s14  ;;  %v1673_v16 = vpop.permute.xlu0 %1672 }
 0x245   :  { %1750 = vrot.lane.b32.xlu1 %v1262_v15, %s3026_s26  ;;  %v1803_v41 = vpop.permute.xlu1 %1802  ;;  %v1927_v49 = vsel %vm854_vm7, %v1911_v17, %v1673_v16 }
 0x248   :  { %1436 = vrot.lane.b32.xlu0 %v1232_v27, %s3020_s29  ;;  %v1737_v43 = vpop.permute.xlu0 %1736 }
 0x249   :  { %1562 = vrot.lane.b32.xlu1 %v1216_v12, %s3023_s13  ;;  %v1483_v56 = vpop.permute.xlu1 %1482  ;;  %v1943_v53 = vsel %vm871_vm8, %v1927_v49, %v1737_v43 }
 0x24a   :  { %v1880_v15 = vsel %vm803_vm4, %v1864_v62, %v1483_v56 }
 0x24c   :  { %1688 = vrot.lane.b32.xlu0 %v3974_v42, %s3025_s17  ;;  %v1611_v23 = vpop.permute.xlu0 %1610 }
 0x24d   :  { %1814 = vrot.lane.b32.xlu1 %v1231_v63, %s3027_s15  ;;  %v1547_v21 = vpop.permute.xlu1 %1546 }
 0x24e   :  { %v1896_v11 = vsel %vm820_vm5, %v1880_v15, %v1547_v21 }
 0x24f   :  { %v1912_v38 = vsel %vm837_vm6, %v1896_v11, %v1611_v23  ;;  %v1849_v11 = vsel %vm54_vm0, %v3849_v34, %v3970_v13 }
 0x250   :  { %v1928_v55 = vsel %vm854_vm7, %v1912_v38, %v1675_v60  ;;  %1500 = vrot.lane.b32.xlu0 %v4007_v30, %s3022_s10  ;;  %v4012_v29 = vpop.permute.xlu0 %1488 }
 0x251   :  { %1564 = vrot.lane.b32.xlu1 %v1264_v22, %s3023_s13  ;;  %v1801_v54 = vpop.permute.xlu1 %1800  ;;  %v1944_v44 = vsel %vm871_vm8, %v1928_v55, %v1739_v19  ;;  %v1865_v55 = vsel %vm786_vm3, %v1849_v11, %v3977_v36 }
 0x252   :  { %v1959_v52 = vsel %vm888_vm9, %v1943_v53, %v1801_v54  ;;  %v2866_v46 = vpop.f32.mrf.mxu1  ;;  %v1960_v0 = vsel %vm888_vm9, %v1944_v44, %v1803_v41  ;;  %v1881_v54 = vsel %vm803_vm4, %v1865_v55, %v3945_v35 }
 0x253   :  { %v1096_v63 = vadd.f32 %v2866_v46, %v3768_v51  ;;  %2883 = vmatmul.mubr.msk.f32.vlgmr.msra.gmra.mxu1 %vm911_vm10, %v1959_v52  ;;  %v1897_v13 = vsel %vm820_vm5, %v1881_v54, %v3957_v28 }
 0x254   :  { %v1090_v60 = vpop.f32.mrf.mxu1  ;;  %2885 = vmatprep.mubr.msk.f32.mxu1 %vm911_vm10, %v1960_v0  ;;  %1752 = vrot.lane.b32.xlu0 %v1216_v12, %s3026_s26  ;;  %v4023_v24 = vpop.permute.xlu0 %1362  ;;  %v1913_v35 = vsel %vm837_vm6, %v1897_v13, %v3964_v61 }
 0x255   :  { %v1122_v14 = vmax.f32 %v1096_v63, 0.0  ;;  %v1091_v16 = vadd.f32 %v3768_v51, %v1090_v60  ;;  %1816 = vrot.lane.b32.xlu1 %v1232_v27, %s3027_s15  ;;  %v4026_v19 = vpop.permute.xlu1 %1552  ;;  %v1850_v60 = vsel %vm54_vm0, %v3818_v57, %v3954_v25 }
 0x257   :  { %1186 = vst.msk [vmem:[#allocation3 + $0x101] sm:$0xff] %vm54_vm0, %v1122_v14  ;;  %v1121_v41 = vmax.f32 %v1091_v16, 0.0  ;;  %v1866_v16 = vsel %vm786_vm3, %v1850_v60, %v3967_v33 }
 0x258   :  { %1374 = vrot.lane.b32.xlu0 %v1264_v22, %s3021_s30  ;;  %v4031_v43 = vpop.permute.xlu0 %1616 }
 0x259   :  { %1185 = vst.msk [vmem:[#allocation3 + $0xf1] sm:$0xff] %vm54_vm0, %v1121_v41  ;;  %1438 = vrot.lane.b32.xlu1 %v1233_v58, %s3020_s29  ;;  %v4034_v56 = vpop.permute.xlu1 %1426 }
 0x25c   :  { %1626 = vrot.lane.b32.xlu0 %v1232_v27, %s3024_s14  ;;  %v1361_v12 = vpop.permute.xlu0 %1360 }
 0x25d   :  { %1690 = vrot.lane.b32.xlu1 %v4007_v30, %s3025_s17  ;;  %v1679_v50 = vpop.permute.xlu1 %1678 }
 0x25e   :  { %v4073_v61 = vld [vmem:[#allocation3 + $0x100] sm:$0xff] }
 0x25f   :  { %v2869_v62 = vpop.f32.mrf.mxu1  ;;  %v1266_v14 = vld [vmem:[#allocation3 + $0x101] sm:$0xff] }
 0x260   :  { %v1106_v31 = vadd.f32 %v2869_v62, %v3768_v51  ;;  %v1218_v23 = vld [vmem:[#allocation3 + $0xf1] sm:$0xff]  ;;  %v1425_v27 = vpop.permute.xlu0 %1424 }
 0x261   :  { %v1100_v15 = vpop.f32.mrf.mxu1  ;;  %v4040_v21 = vld [vmem:[#allocation3 + $0xf0] sm:$0xff]  ;;  %1376 = vrot.lane.b32.xlu0 %v1218_v23, %s3021_s30  ;;  %v1743_v49 = vpop.permute.xlu1 %1742 }
 0x262   :  { %v1124_v17 = vmax.f32 %v1106_v31, 0.0  ;;  %v1101_v38 = vadd.f32 %v3768_v51, %v1100_v15  ;;  %1502 = vrot.lane.b32.xlu1 %v4040_v21, %s3022_s10  ;;  %v1234_v44 = vld [vmem:[#allocation3 + $0xf2] sm:$0xff]  ;;  %v1851_v15 = vsel %vm54_vm0, %v3881_v39, %v1361_v12 }
 0x264   :  { %1188 = vst.msk [vmem:[#allocation3 + $0x121] sm:$0xff] %vm54_vm0, %v1124_v17  ;;  %v1123_v53 = vmax.f32 %v1101_v38, 0.0  ;;  %v1677_v51 = vpop.permute.xlu0 %1676  ;;  %v1867_v17 = vsel %vm786_vm3, %v1851_v15, %v1425_v27  ;;  %v1235_v38 = vld [vmem:[#allocation3 + $0x102] sm:$0xff] }
 0x265   :  { %1628 = vrot.lane.b32.xlu0 %v1233_v58, %s3024_s14  ;;  %v1487_v34 = vpop.permute.xlu1 %1486  ;;  %v1929_v46 = vsel %vm854_vm7, %v1913_v35, %v1677_v51  ;;  %v1883_v54 = vsel %vm803_vm4, %v1867_v17, %v4012_v29 }
 0x266   :  { %1187 = vst.msk [vmem:[#allocation3 + $0x111] sm:$0xff] %vm54_vm0, %v1123_v53  ;;  %1754 = vrot.lane.b32.xlu1 %v1264_v22, %s3026_s26  ;;  %v1882_v41 = vsel %vm803_vm4, %v1866_v16, %v1487_v34  ;;  %v1899_v39 = vsel %vm820_vm5, %v1883_v54, %v4026_v19  ;;  %v1852_v16 = vsel %vm54_vm0, %v3866_v47, %v4023_v24  ;;  %v1333_v24 = vld [vmem:[#allocation3 + $0x132] sm:$0xff] }
 0x267   :  { %v1915_v29 = vsel %vm837_vm6, %v1899_v39, %v4031_v43 }
 0x268   :  { %v1741_v36 = vpop.permute.xlu0 %1740 }
 0x269   :  { %1440 = vrot.lane.b32.xlu0 %v1234_v44, %s3020_s29  ;;  %v1551_v52 = vpop.permute.xlu1 %1550  ;;  %v1945_v0 = vsel %vm871_vm8, %v1929_v46, %v1741_v36 }
 0x26a   :  { %1566 = vrot.lane.b32.xlu1 %v1218_v23, %s3023_s13  ;;  %v1898_v31 = vsel %vm820_vm5, %v1882_v41, %v1551_v52 }
 0x26b   :  { %v1284_v60 = vld [vmem:[#allocation3 + $0x122] sm:$0xff] }
 0x26c   :  { %v1615_v22 = vpop.permute.xlu0 %1614  ;;  %v1268_v15 = vld [vmem:[#allocation3 + $0x121] sm:$0xff] }
 0x26d   :  { %1692 = vrot.lane.b32.xlu0 %v4040_v21, %s3025_s17  ;;  %v1805_v28 = vpop.permute.xlu1 %1804  ;;  %v1914_v57 = vsel %vm837_vm6, %v1898_v31, %v1615_v22  ;;  %v1220_v27 = vld [vmem:[#allocation3 + $0x111] sm:$0xff] }
 0x26e   :  { %1818 = vrot.lane.b32.xlu1 %v1233_v58, %s3027_s15  ;;  %v1961_v63 = vsel %vm888_vm9, %v1945_v0, %v1805_v28  ;;  %v1930_v11 = vsel %vm854_vm7, %v1914_v57, %v1679_v50  ;;  %v1236_v43 = vld [vmem:[#allocation3 + $0x112] sm:$0xff]  ;;  %v1252_v28 = vld [vmem:[#allocation3 + $0x120] sm:$0xff]  ;;  %v1868_v57 = vsel %vm786_vm3, %v1852_v16, %v4034_v56 }
 0x26f   :  { %2886 = vmatmul.mubr.msk.f32.gmra.mxu1 %vm911_vm10, %v1961_v63 }
 0x271   :  { %1504 = vrot.lane.b32.xlu0 %v4073_v61, %s3022_s10 }
 0x272   :  { %1568 = vrot.lane.b32.xlu1 %v1266_v14, %s3023_s13  ;;  %v4081_v58 = vpop.permute.xlu0 %1364 }
 0x273   :  { %v1491_v62 = vpop.permute.xlu1 %1490 }
 0x275   :  { %1756 = vrot.lane.b32.xlu0 %v1218_v23, %s3026_s26  ;;  %v1946_v23 = vsel %vm871_vm8, %v1930_v11, %v1743_v49  ;;  %v4105_v49 = vld [vmem:[#allocation3 + $0x110] sm:$0xff]  ;;  %v1884_v11 = vsel %vm803_vm4, %v1868_v57, %v1491_v62 }
 0x276   :  { %1820 = vrot.lane.b32.xlu1 %v1234_v44, %s3027_s15  ;;  %v4087_v25 = vpop.permute.xlu0 %1428 }
 0x277   :  { %v1555_v33 = vpop.permute.xlu1 %1554 }
 0x278   :  { %v1900_v17 = vsel %vm820_vm5, %v1884_v11, %v1555_v33  ;;  %v1853_v33 = vsel %vm54_vm0, %v3894_v20, %v4081_v58 }
 0x279   :  { %1378 = vrot.lane.b32.xlu0 %v1266_v14, %s3021_s30  ;;  %v1869_v39 = vsel %vm786_vm3, %v1853_v33, %v4087_v25 }
 0x27a   :  { %1442 = vrot.lane.b32.xlu1 %v1235_v38, %s3020_s29  ;;  %v1681_v55 = vpop.permute.xlu0 %1680 }
 0x27b   :  { %v1807_v53 = vpop.permute.xlu1 %1806  ;;  %v1931_v34 = vsel %vm854_vm7, %v1915_v29, %v1681_v55 }
 0x27c   :  { %v1962_v51 = vsel %vm888_vm9, %v1946_v23, %v1807_v53 }
 0x27d   :  { %2888 = vmatprep.mubr.msk.f32.mxu1 %vm911_vm10, %v1962_v51  ;;  %1630 = vrot.lane.b32.xlu0 %v1234_v44, %s3024_s14 }
 0x27e   :  { %1694 = vrot.lane.b32.xlu1 %v4073_v61, %s3025_s17  ;;  %v1493_v12 = vpop.permute.xlu0 %1492 }
 0x27f   :  { %v1557_v50 = vpop.permute.xlu1 %1556 }
 0x281   :  { %1380 = vrot.lane.b32.xlu0 %v1220_v27, %s3021_s30 }
 0x282   :  { %1506 = vrot.lane.b32.xlu1 %v4105_v49, %s3022_s10  ;;  %v1745_v13 = vpop.permute.xlu0 %1744 }
 0x283   :  { %v1809_v44 = vpop.permute.xlu1 %1808  ;;  %v1947_v36 = vsel %vm871_vm8, %v1931_v34, %v1745_v13 }
 0x284   :  { %v1963_v19 = vsel %vm888_vm9, %v1947_v36, %v1809_v44 }
 0x285   :  { %1632 = vrot.lane.b32.xlu0 %v1235_v38, %s3024_s14  ;;  %2889 = vmatmul.mubr.msk.f32.gmra.mxu1 %vm911_vm10, %v1963_v19 }
 0x286   :  { %1758 = vrot.lane.b32.xlu1 %v1266_v14, %s3026_s26  ;;  %v4118_v52 = vpop.permute.xlu0 %1366  ;;  %v1301_v14 = vld [vmem:[#allocation3 + $0x130] sm:$0xff] }
 0x287   :  { %v4120_v35 = vpop.permute.xlu1 %1430 }
 0x289   :  { %1444 = vrot.lane.b32.xlu0 %v1236_v43, %s3020_s29 }
 0x28a   :  { %1570 = vrot.lane.b32.xlu1 %v1220_v27, %s3023_s13  ;;  %v1619_v46 = vpop.permute.xlu0 %1618 }
 0x28b   :  { %v1683_v0 = vpop.permute.xlu1 %1682  ;;  %v1916_v55 = vsel %vm837_vm6, %v1900_v17, %v1619_v46 }
 0x28c   :  { %v1932_v47 = vsel %vm854_vm7, %v1916_v55, %v1683_v0  ;;  %v1197_v0 = vld [vmem:[#allocation3 + $0xa0] sm:$0xff] }
 0x28d   :  { %1696 = vrot.lane.b32.xlu0 %v4105_v49, %s3025_s17  ;;  %v1854_v16 = vsel %vm54_vm0, %v1197_v0, %v4118_v52 }
 0x28e   :  { %1822 = vrot.lane.b32.xlu1 %v1235_v38, %s3027_s15  ;;  %v1317_v38 = vld [vmem:[#allocation3 + $0x131] sm:$0xff]  ;;  %v1870_v57 = vsel %vm786_vm3, %v1854_v16, %v4120_v35 }
 0x291   :  { %1508 = vrot.lane.b32.xlu0 %v1252_v28, %s3022_s10 }
 0x292   :  { %1634 = vrot.lane.b32.xlu1 %v1236_v43, %s3024_s14  ;;  %v4129_v22 = vpop.permute.xlu0 %1368 }
 0x293   :  { %v1495_v63 = vpop.permute.xlu1 %1494  ;;  %v1855_v52 = vsel %vm54_vm0, %v3924_v48, %v4129_v22 }
 0x295   :  { %1760 = vrot.lane.b32.xlu0 %v1220_v27, %s3026_s26  ;;  %v1885_v27 = vsel %vm803_vm4, %v1869_v39, %v1493_v12 }
 0x296   :  { %1636 = vrot.lane.b32.xlu1 %v1284_v60, %s3024_s14  ;;  %v1621_v41 = vpop.permute.xlu0 %1620  ;;  %v1901_v13 = vsel %vm820_vm5, %v1885_v27, %v1557_v50 }
 0x297   :  { %v1747_v31 = vpop.permute.xlu1 %1746  ;;  %v1917_v20 = vsel %vm837_vm6, %v1901_v13, %v1621_v41 }
 0x298   :  { %v1948_v56 = vsel %vm871_vm8, %v1932_v47, %v1747_v31 }
 0x299   :  { %1572 = vrot.lane.b32.xlu0 %v1268_v15, %s3023_s13 }
 0x29a   :  { %1700 = vrot.lane.b32.xlu1 %v1301_v14, %s3025_s17  ;;  %v1433_v23 = vpop.permute.xlu0 %1432 }
 0x29b   :  { %v1559_v53 = vpop.permute.xlu1 %1558 }
 0x29d   :  { %1824 = vrot.lane.b32.xlu0 %v1236_v43, %s3027_s15 }
 0x29e   :  { %1764 = vrot.lane.b32.xlu1 %v1317_v38, %s3026_s26  ;;  %v1685_v62 = vpop.permute.xlu0 %1684 }
 0x29f   :  { %v1811_v54 = vpop.permute.xlu1 %1810  ;;  %v1933_v58 = vsel %vm854_vm7, %v1917_v20, %v1685_v62 }
 0x2a0   :  { %v1964_v51 = vsel %vm888_vm9, %v1948_v56, %v1811_v54 }
 0x2a1   :  { %1698 = vrot.lane.b32.xlu0 %v1252_v28, %s3025_s17  ;;  %2891 = vmatprep.mubr.msk.f32.mxu1 %vm911_vm10, %v1964_v51 }
 0x2a2   :  { %1828 = vrot.lane.b32.xlu1 %v1333_v24, %s3027_s15  ;;  %v1497_v29 = vpop.permute.xlu0 %1496 }
 0x2a3   :  { %v1561_v34 = vpop.permute.xlu1 %1560 }
 0x2a5   :  { %1762 = vrot.lane.b32.xlu0 %v1268_v15, %s3026_s26  ;;  %v1886_v15 = vsel %vm803_vm4, %v1870_v57, %v1495_v63  ;;  %v1871_v63 = vsel %vm786_vm3, %v1855_v52, %v1433_v23 }
 0x2a6   :  { %v1749_v44 = vpop.permute.xlu0 %1748 }
 0x2a7   :  { %v1813_v25 = vpop.permute.xlu1 %1812  ;;  %v1949_v36 = vsel %vm871_vm8, %v1933_v58, %v1749_v44 }
 0x2a8   :  { %v1965_v19 = vsel %vm888_vm9, %v1949_v36, %v1813_v25 }
 0x2a9   :  { %1826 = vrot.lane.b32.xlu0 %v1284_v60, %s3027_s15  ;;  %2892 = vmatmul.mubr.msk.f32.gmra.mxu1 %vm911_vm10, %v1965_v19  ;;  %v1902_v60 = vsel %vm820_vm5, %v1886_v15, %v1559_v53  ;;  %v1887_v53 = vsel %vm803_vm4, %v1871_v63, %v1497_v29 }
 0x2aa   :  { %v1371_v12 = vpop.permute.xlu0 %1370  ;;  %v1903_v33 = vsel %vm820_vm5, %v1887_v53, %v1561_v34 }
 0x2ab   :  { %v1435_v43 = vpop.permute.xlu1 %1434  ;;  %v1856_v34 = vsel %vm54_vm0, %v3940_v59, %v1371_v12 }
 0x2ae   :  { %v1623_v46 = vpop.permute.xlu0 %1622 }
 0x2af   :  { %v1687_v50 = vpop.permute.xlu1 %1686  ;;  %v1918_v11 = vsel %vm837_vm6, %v1902_v60, %v1623_v46  ;;  %v1872_v46 = vsel %vm786_vm3, %v1856_v34, %v1435_v43 }
 0x2b0   :  { %v1934_v55 = vsel %vm854_vm7, %v1918_v11, %v1687_v50 }
 0x2b2   :  { %v1373_v28 = vpop.permute.xlu0 %1372 }
 0x2b3   :  { %v1499_v14 = vpop.permute.xlu1 %1498  ;;  %v1857_v59 = vsel %vm54_vm0, %v3974_v42, %v1373_v28 }
 0x2b4   :  { %v1888_v50 = vsel %vm803_vm4, %v1872_v46, %v1499_v14 }
 0x2b6   :  { %v1625_v41 = vpop.permute.xlu0 %1624 }
 0x2b7   :  { %v1751_v31 = vpop.permute.xlu1 %1750  ;;  %v1919_v51 = vsel %vm837_vm6, %v1903_v33, %v1625_v41 }
 0x2b8   :  { %v1950_v47 = vsel %vm871_vm8, %v1934_v55, %v1751_v31 }
 0x2ba   :  { %v1437_v17 = vpop.permute.xlu0 %1436 }
 0x2bb   :  { %v1563_v38 = vpop.permute.xlu1 %1562  ;;  %v1873_v43 = vsel %vm786_vm3, %v1857_v59, %v1437_v17 }
 0x2bc   :  { %v1904_v0 = vsel %vm820_vm5, %v1888_v50, %v1563_v38 }
 0x2be   :  { %v1689_v24 = vpop.permute.xlu0 %1688 }
 0x2bf   :  { %v1815_v56 = vpop.permute.xlu1 %1814  ;;  %v1935_v39 = vsel %vm854_vm7, %v1919_v51, %v1689_v24 }
 0x2c0   :  { %v1966_v35 = vsel %vm888_vm9, %v1950_v47, %v1815_v56 }
 0x2c1   :  { %2894 = vmatprep.mubr.msk.f32.mxu1 %vm911_vm10, %v1966_v35 }
 0x2c2   :  { %v1501_v62 = vpop.permute.xlu0 %1500 }
 0x2c3   :  { %v1565_v54 = vpop.permute.xlu1 %1564  ;;  %v1889_v14 = vsel %vm803_vm4, %v1873_v43, %v1501_v62 }
 0x2c4   :  { %v1905_v47 = vsel %vm820_vm5, %v1889_v14, %v1565_v54 }
 0x2c6   :  { %v1753_v27 = vpop.permute.xlu0 %1752 }
 0x2c7   :  { %v1817_v13 = vpop.permute.xlu1 %1816  ;;  %v1951_v48 = vsel %vm871_vm8, %v1935_v39, %v1753_v27 }
 0x2c8   :  { %v1967_v22 = vsel %vm888_vm9, %v1951_v48, %v1817_v13 }
 0x2c9   :  { %2895 = vmatmul.mubr.msk.f32.gmra.mxu1 %vm911_vm10, %v1967_v22 }
 0x2ca   :  { %v1375_v23 = vpop.permute.xlu0 %1374 }
 0x2cb   :  { %v1439_v20 = vpop.permute.xlu1 %1438  ;;  %v1858_v54 = vsel %vm54_vm0, %v4007_v30, %v1375_v23 }
 0x2cc   :  { %v1874_v13 = vsel %vm786_vm3, %v1858_v54, %v1439_v20 }
 0x2ce   :  { %v1627_v58 = vpop.permute.xlu0 %1626 }
 0x2cf   :  { %v1691_v29 = vpop.permute.xlu1 %1690  ;;  %v1920_v16 = vsel %vm837_vm6, %v1904_v0, %v1627_v58 }
 0x2d0   :  { %v1936_v57 = vsel %vm854_vm7, %v1920_v16, %v1691_v29 }
 0x2d3   :  { %v1377_v44 = vpop.permute.xlu0 %1376 }
 0x2d4   :  { %v1503_v25 = vpop.permute.xlu1 %1502 }
 0x2d5   :  { %v1890_v48 = vsel %vm803_vm4, %v1874_v13, %v1503_v25  ;;  %v1859_v25 = vsel %vm54_vm0, %v4040_v21, %v1377_v44 }
 0x2d7   :  { %v1629_v36 = vpop.permute.xlu0 %1628 }
 0x2d8   :  { %v1755_v19 = vpop.permute.xlu1 %1754  ;;  %v1921_v24 = vsel %vm837_vm6, %v1905_v47, %v1629_v36 }
 0x2d9   :  { %v1952_v15 = vsel %vm871_vm8, %v1936_v57, %v1755_v19 }
 0x2db   :  { %v1441_v41 = vpop.permute.xlu0 %1440 }
 0x2dc   :  { %v1567_v31 = vpop.permute.xlu1 %1566  ;;  %v1875_v16 = vsel %vm786_vm3, %v1859_v25, %v1441_v41 }
 0x2dd   :  { %v1906_v22 = vsel %vm820_vm5, %v1890_v48, %v1567_v31 }
 0x2df   :  { %v1693_v60 = vpop.permute.xlu0 %1692 }
 0x2e0   :  { %v1819_v11 = vpop.permute.xlu1 %1818  ;;  %v1937_v56 = vsel %vm854_vm7, %v1921_v24, %v1693_v60 }
 0x2e1   :  { %v1968_v12 = vsel %vm888_vm9, %v1952_v15, %v1819_v11 }
 0x2e2   :  { %2897 = vmatprep.mubr.msk.f32.mxu1 %vm911_vm10, %v1968_v12 }
 0x2e3   :  { %v1505_v38 = vpop.permute.xlu0 %1504 }
 0x2e4   :  { %v1569_v55 = vpop.permute.xlu1 %1568  ;;  %v1891_v57 = vsel %vm803_vm4, %v1875_v16, %v1505_v38 }
 0x2e5   :  { %v1907_v60 = vsel %vm820_vm5, %v1891_v57, %v1569_v55  ;;  %v4234_v55 = vld [vmem:[%s4611_s4] ss:$0 sm:$0xff]  ;;  %v2415_v57 = vld [vmem:[%s4612_s7 + $0x8] sm:$0x3] }
 0x2e6   :  { %2906 = vmatprep.subr.msk.mxu0 %vm2464_vm11, %v2415_v57 }
 0x2e7   :  { %v1757_v52 = vpop.permute.xlu0 %1756  ;;  %2907 = vmatpush3.msk.msra.mxu0 %vm2464_vm11, %v2415_v57 }
 0x2e8   :  { %v1821_v35 = vpop.permute.xlu1 %1820  ;;  %v1953_v42 = vsel %vm871_vm8, %v1937_v56, %v1757_v52 }
 0x2e9   :  { %v1969_v28 = vsel %vm888_vm9, %v1953_v42, %v1821_v35 }
 0x2ea   :  { %2898 = vmatmul.mubr.msk.f32.gmra.mxu1 %vm911_vm10, %v1969_v28 }
 0x2eb   :  { %v1379_v17 = vpop.permute.xlu0 %1378 }
 0x2ec   :  { %v1443_v63 = vpop.permute.xlu1 %1442  ;;  %v1860_v47 = vsel %vm54_vm0, %v4073_v61, %v1379_v17 }
 0x2ed   :  { %v1876_v42 = vsel %vm786_vm3, %v1860_v47, %v1443_v63 }
 0x2ef   :  { %v1631_v53 = vpop.permute.xlu0 %1630 }
 0x2f0   :  { %v1695_v62 = vpop.permute.xlu1 %1694  ;;  %v1922_v58 = vsel %vm837_vm6, %v1906_v22, %v1631_v53 }
 0x2f1   :  { %v1938_v36 = vsel %vm854_vm7, %v1922_v58, %v1695_v62 }
 0x2f3   :  { %v1381_v33 = vpop.permute.xlu0 %1380 }
 0x2f4   :  { %v1507_v51 = vpop.permute.xlu1 %1506  ;;  %v1861_v21 = vsel %vm54_vm0, %v4105_v49, %v1381_v33 }
 0x2f5   :  { %v1892_v62 = vsel %vm803_vm4, %v1876_v42, %v1507_v51 }
 0x2f7   :  { %v1633_v39 = vpop.permute.xlu0 %1632 }
 0x2f8   :  { %v1759_v27 = vpop.permute.xlu1 %1758  ;;  %v1923_v11 = vsel %vm837_vm6, %v1907_v60, %v1633_v39  ;;  %v2414_v60 = vld [vmem:[%s4612_s7] sm:$0xff] }
 0x2f9   :  { %v1954_v19 = vsel %vm871_vm8, %v1938_v36, %v1759_v27  ;;  %2908 = vmatprep.subr.mxu0 %v2414_v60 }
 0x2fa   :  { %2909 = vmatpush3.msra.mxu0 %v2414_v60 }
 0x2fb   :  { %v1445_v29 = vpop.permute.xlu0 %1444 }
 0x2fc   :  { %v1571_v34 = vpop.permute.xlu1 %1570  ;;  %v1877_v41 = vsel %vm786_vm3, %v1861_v21, %v1445_v29 }
 0x2fd   :  { %v1908_v61 = vsel %vm820_vm5, %v1892_v62, %v1571_v34 }
 0x2ff   :  { %v1697_v46 = vpop.permute.xlu0 %1696 }
 0x300   :  { %v1823_v50 = vpop.permute.xlu1 %1822  ;;  %v1939_v59 = vsel %vm854_vm7, %v1923_v11, %v1697_v46 }
 0x301   :  { %v1970_v30 = vsel %vm888_vm9, %v1954_v19, %v1823_v50 }
 0x302   :  { %2900 = vmatprep.mubr.msk.f32.mxu1 %vm911_vm10, %v1970_v30 }
 0x303   :  { %v1509_v23 = vpop.permute.xlu0 %1508 }
 0x304   :  { %v1635_v20 = vpop.permute.xlu1 %1634  ;;  %v1893_v38 = vsel %vm803_vm4, %v1877_v41, %v1509_v23 }
 0x305   :  { %v1924_v17 = vsel %vm837_vm6, %v1908_v61, %v1635_v20 }
 0x307   :  { %v1761_v0 = vpop.permute.xlu0 %1760 }
 0x308   :  { %v1637_v31 = vpop.permute.xlu1 %1636  ;;  %v1955_v43 = vsel %vm871_vm8, %v1939_v59, %v1761_v0 }
 0x30b   :  { %v1573_v15 = vpop.permute.xlu0 %1572 }
 0x30c   :  { %v1701_v12 = vpop.permute.xlu1 %1700  ;;  %v1909_v24 = vsel %vm820_vm5, %v1893_v38, %v1573_v15 }
 0x30d   :  { %v1925_v28 = vsel %vm837_vm6, %v1909_v24, %v1637_v31 }
 0x30e   :  { %v1941_v27 = vsel %vm854_vm7, %v1925_v28, %v1701_v12 }
 0x30f   :  { %v1825_v14 = vpop.permute.xlu0 %1824 }
 0x310   :  { %v1971_v44 = vsel %vm888_vm9, %v1955_v43, %v1825_v14  ;;  %v1765_v49 = vpop.permute.xlu1 %1764 }
 0x311   :  { %2901 = vmatmul.mubr.msk.f32.gmra.mxu1 %vm911_vm10, %v1971_v44  ;;  %v1957_v58 = vsel %vm871_vm8, %v1941_v27, %v1765_v49 }
 0x313   :  { %v1699_v56 = vpop.permute.xlu0 %1698  ;;  %v2884_v52 = vpop.f32.mrf.mxu1 }
 0x314   :  { %v2103_v35 = vadd.f32 %v2884_v52, %v4234_v55  ;;  %v1940_v63 = vsel %vm854_vm7, %v1924_v17, %v1699_v56  ;;  %v1829_v48 = vpop.permute.xlu1 %1828 }
 0x315   :  { %v2097_v53 = vpop.f32.mrf.mxu1  ;;  %v1973_v34 = vsel %vm888_vm9, %v1957_v58, %v1829_v48 }
 0x316   :  { %v4243_v33 = vmul.f32 0.1, %v2103_v35  ;;  %v2098_v54 = vadd.f32 %v4234_v55, %v2097_v53 }
 0x317   :  { %v1763_v39 = vpop.permute.xlu0 %1762 }
 0x318   :  { %2955 = vtanh.f32 %v4243_v33  ;;  %v4250_v13 = vmul.f32 0.1, %v2098_v54  ;;  %v1956_v51 = vsel %vm871_vm8, %v1940_v63, %v1763_v39 }
 0x31a   :  { %2957 = vtanh.f32 %v4250_v13 }
 0x31b   :  { %v1827_v22 = vpop.permute.xlu0 %1826 }
 0x31c   :  { %v1972_v29 = vsel %vm888_vm9, %v1956_v51, %v1827_v22 }
 0x31d   :  { %2903 = vmatprep.mubr.msk.f32.mxu1 %vm911_vm10, %v1972_v29 }
 0x31e   :  { %2904 = vmatmul.mubr.msk.f32.gmra.mxu1 %vm911_vm10, %v1973_v34 }
 0x325   :  { %v2956_v36 = vpop.eup %2955 }
 0x326   :  { %v4260_v19 = vmul.f32 2.0, %v2956_v36 }
 0x327   :  { %v2958_v46 = vpop.eup %2957 }
 0x328   :  { %v2226_v50 = vmul.f32 1.442695, %v4260_v19  ;;  %v4263_v30 = vmul.f32 2.0, %v2958_v46 }
 0x32a   :  { %2959 = vpow2.f32 %v2226_v50  ;;  %v2224_v23 = vmul.f32 1.442695, %v4263_v30 }
 0x32c   :  { %2961 = vpow2.f32 %v2224_v23 }
 0x32f   :  { %v2887_v20 = vpop.f32.mrf.mxu1 }
 0x330   :  { %v2113_v25 = vadd.f32 %v2887_v20, %v4234_v55 }
 0x331   :  { %v2107_v0 = vpop.f32.mrf.mxu1 }
 0x332   :  { %v4267_v16 = vmul.f32 0.1, %v2113_v25  ;;  %v2108_v31 = vadd.f32 %v4234_v55, %v2107_v0 }
 0x334   :  { %2963 = vtanh.f32 %v4267_v16  ;;  %v4274_v15 = vmul.f32 0.1, %v2108_v31 }
 0x336   :  { %2965 = vtanh.f32 %v4274_v15 }
 0x337   :  { %v2960_v11 = vpop.eup %2959 }
 0x338   :  { %2274 = vrot.lane.b32.xlu1 %v2960_v11, %s3021_s30 }
 0x339   :  { %v2962_v59 = vpop.eup %2961 }
 0x33a   :  { %2272 = vrot.lane.b32.xlu0 %v2962_v59, %s3021_s30 }
 0x341   :  { %v2964_v12 = vpop.eup %2963 }
 0x342   :  { %v4282_v43 = vmul.f32 2.0, %v2964_v12 }
 0x343   :  { %v2966_v14 = vpop.eup %2965 }
 0x344   :  { %v2230_v21 = vmul.f32 1.442695, %v4282_v43  ;;  %v4285_v44 = vmul.f32 2.0, %v2966_v14 }
 0x345   :  { %v2890_v38 = vpop.f32.mrf.mxu1 }
 0x346   :  { %2967 = vpow2.f32 %v2230_v21  ;;  %v2228_v41 = vmul.f32 1.442695, %v4285_v44  ;;  %v2123_v47 = vadd.f32 %v2890_v38, %v4234_v55 }
 0x347   :  { %v2117_v24 = vpop.f32.mrf.mxu1 }
 0x348   :  { %2969 = vpow2.f32 %v2228_v41  ;;  %v4289_v56 = vmul.f32 0.1, %v2123_v47  ;;  %v2118_v49 = vadd.f32 %v4234_v55, %v2117_v24 }
 0x34a   :  { %2971 = vtanh.f32 %v4289_v56  ;;  %v4293_v52 = vmul.f32 0.1, %v2118_v49 }
 0x34c   :  { %2973 = vtanh.f32 %v4293_v52 }
 0x353   :  { %v2968_v35 = vpop.eup %2967 }
 0x354   :  { %2278 = vrot.lane.b32.xlu1 %v2968_v35, %s3021_s30 }
 0x355   :  { %v2970_v42 = vpop.eup %2969 }
 0x356   :  { %2276 = vrot.lane.b32.xlu0 %v2970_v42, %s3021_s30 }
 0x357   :  { %v2972_v28 = vpop.eup %2971 }
 0x358   :  { %v4298_v53 = vmul.f32 2.0, %v2972_v28 }
 0x359   :  { %v2974_v62 = vpop.eup %2973 }
 0x35a   :  { %v2234_v54 = vmul.f32 1.442695, %v4298_v53  ;;  %v4301_v39 = vmul.f32 2.0, %v2974_v62 }
 0x35c   :  { %2975 = vpow2.f32 %v2234_v54  ;;  %v2232_v61 = vmul.f32 1.442695, %v4301_v39 }
 0x35e   :  { %2977 = vpow2.f32 %v2232_v61 }
 0x369   :  { %v2976_v17 = vpop.eup %2975  ;;  %v2893_v27 = vpop.f32.mrf.mxu1 }
 0x36a   :  { %v2133_v63 = vadd.f32 %v2893_v27, %v4234_v55  ;;  %2282 = vrot.lane.b32.xlu1 %v2976_v17, %s3021_s30 }
 0x36b   :  { %v2978_v48 = vpop.eup %2977  ;;  %v2127_v51 = vpop.f32.mrf.mxu1 }
 0x36c   :  { %v4306_v22 = vmul.f32 0.1, %v2133_v63  ;;  %v2128_v58 = vadd.f32 %v4234_v55, %v2127_v51  ;;  %2280 = vrot.lane.b32.xlu0 %v2978_v48, %s3021_s30  ;;  %v4346_v51 = vld [vmem:[%s4613_s5] ss:$0 sm:$0xff] }
 0x36e   :  { %2979 = vtanh.f32 %v4306_v22  ;;  %v4311_v29 = vmul.f32 0.1, %v2128_v58 }
 0x370   :  { %2981 = vtanh.f32 %v4311_v29 }
 0x37b   :  { %v2980_v34 = vpop.eup %2979 }
 0x37c   :  { %v4314_v36 = vmul.f32 2.0, %v2980_v34 }
 0x37d   :  { %v2982_v46 = vpop.eup %2981 }
 0x37e   :  { %v2238_v50 = vmul.f32 1.442695, %v4314_v36  ;;  %v4317_v23 = vmul.f32 2.0, %v2982_v46 }
 0x380   :  { %2983 = vpow2.f32 %v2238_v50  ;;  %v2236_v20 = vmul.f32 1.442695, %v4317_v23 }
 0x382   :  { %2985 = vpow2.f32 %v2236_v20 }
 0x389   :  { %v2896_v25 = vpop.f32.mrf.mxu1 }
 0x38a   :  { %v2143_v0 = vadd.f32 %v2896_v25, %v4234_v55  ;;  %v4363_v25 = vld [vmem:[%s4614_s6] ss:$0 sm:$0xff] }
 0x38b   :  { %v2137_v31 = vpop.f32.mrf.mxu1 }
 0x38c   :  { %v4321_v57 = vmul.f32 0.1, %v2143_v0  ;;  %v2138_v60 = vadd.f32 %v4234_v55, %v2137_v31 }
 0x38d   :  { %v2984_v11 = vpop.eup %2983 }
 0x38e   :  { %2987 = vtanh.f32 %v4321_v57  ;;  %v4325_v59 = vmul.f32 0.1, %v2138_v60  ;;  %2286 = vrot.lane.b32.xlu1 %v2984_v11, %s3021_s30 }
 0x38f   :  { %v2986_v12 = vpop.eup %2985 }
 0x390   :  { %2989 = vtanh.f32 %v4325_v59  ;;  %2284 = vrot.lane.b32.xlu0 %v2986_v12, %s3021_s30 }
 0x39b   :  { %v2988_v14 = vpop.eup %2987 }
 0x39c   :  { %v4330_v21 = vmul.f32 2.0, %v2988_v14 }
 0x39d   :  { %v2990_v41 = vpop.eup %2989 }
 0x39e   :  { %v2242_v38 = vmul.f32 1.442695, %v4330_v21  ;;  %v4333_v47 = vmul.f32 2.0, %v2990_v41 }
 0x3a0   :  { %2991 = vpow2.f32 %v2242_v38  ;;  %v2240_v24 = vmul.f32 1.442695, %v4333_v47 }
 0x3a2   :  { %2993 = vpow2.f32 %v2240_v24 }
 0x3aa   :  { %v2899_v49 = vpop.f32.mrf.mxu1  ;;  %v2275_v35 = vpop.permute.xlu1 %2274 }
 0x3ab   :  { %v2153_v42 = vadd.f32 %v2899_v49, %v4234_v55  ;;  %v2321_v28 = vmul.f32 %v2275_v35, %v3246_v2 }
 0x3ac   :  { %v2147_v62 = vpop.f32.mrf.mxu1  ;;  %v2273_v17 = vpop.permute.xlu0 %2272 }
 0x3ad   :  { %v4338_v54 = vmul.f32 0.1, %v2153_v42  ;;  %v2148_v61 = vadd.f32 %v4234_v55, %v2147_v62  ;;  %v2992_v27 = vpop.eup %2991  ;;  %v2337_v63 = vadd.f32 %v2321_v28, %v4243_v33  ;;  %v2320_v48 = vmul.f32 %v2273_v17, %v3241_v1 }
 0x3ae   :  { %2290 = vrot.lane.b32.xlu1 %v2992_v27, %s3021_s30 }
 0x3af   :  { %2995 = vtanh.f32 %v4338_v54  ;;  %v4349_v58 = vmul.f32 0.1, %v2148_v61  ;;  %v2994_v34 = vpop.eup %2993  ;;  %v2353_v46 = vsel %vm54_vm0, %v3246_v2, %v2337_v63  ;;  %v2336_v50 = vadd.f32 %v2320_v48, %v4250_v13 }
 0x3b0   :  { %2288 = vrot.lane.b32.xlu0 %v2994_v34, %s3021_s30  ;;  %v2376_v33 = vmul.f32 %v4346_v51, %v2353_v46 }
 0x3b1   :  { %2997 = vtanh.f32 %v4349_v58  ;;  %v2352_v20 = vsel %vm54_vm0, %v3241_v1, %v2336_v50 }
 0x3b2   :  { %v2375_v0 = vmul.f32 %v4346_v51, %v2352_v20  ;;  %v2399_v13 = vadd.f32 %v4363_v25, %v2376_v33 }
 0x3b4   :  { %v2398_v2 = vadd.f32 %v4363_v25, %v2375_v0 }
 0x3b6   :  { %2910 = vmatprep.mubr.msk.f32.mxu0 %vm786_vm3, %v2398_v2 }
 0x3b7   :  { %2911 = vmatmul.mubr.msk.f32.vlgmr.msra.gmra.mxu0 %vm786_vm3, %v2399_v13 }
 0x3bc   :  { %v2996_v31 = vpop.eup %2995 }
 0x3bd   :  { %v4370_v60 = vmul.f32 2.0, %v2996_v31 }
 0x3be   :  { %v2998_v11 = vpop.eup %2997 }
 0x3bf   :  { %v2246_v1 = vmul.f32 1.442695, %v4370_v60  ;;  %v4373_v12 = vmul.f32 2.0, %v2998_v11 }
 0x3c1   :  { %2999 = vpow2.f32 %v2246_v1  ;;  %v2244_v14 = vmul.f32 1.442695, %v4373_v12 }
 0x3c3   :  { %3001 = vpow2.f32 %v2244_v14 }
 0x3c6   :  { %v2279_v41 = vpop.permute.xlu1 %2278 }
 0x3c7   :  { %v2323_v38 = vmul.f32 %v2279_v41, %v3262_v4 }
 0x3c8   :  { %v2277_v24 = vpop.permute.xlu0 %2276 }
 0x3c9   :  { %v2339_v49 = vadd.f32 %v2323_v38, %v4267_v16  ;;  %v2322_v35 = vmul.f32 %v2277_v24, %v3251_v3 }
 0x3cb   :  { %v2355_v42 = vsel %vm54_vm0, %v3262_v4, %v2339_v49  ;;  %v2338_v28 = vadd.f32 %v2322_v35, %v4274_v15 }
 0x3cc   :  { %v2378_v62 = vmul.f32 %v4346_v51, %v2355_v42 }
 0x3cd   :  { %v2354_v61 = vsel %vm54_vm0, %v3251_v3, %v2338_v28 }
 0x3ce   :  { %v3000_v17 = vpop.eup %2999  ;;  %v2377_v27 = vmul.f32 %v4346_v51, %v2354_v61  ;;  %v2401_v4 = vadd.f32 %v4363_v25, %v2378_v62 }
 0x3cf   :  { %2294 = vrot.lane.b32.xlu1 %v3000_v17, %s3021_s30 }
 0x3d0   :  { %v3002_v63 = vpop.eup %3001  ;;  %v2400_v16 = vadd.f32 %v4363_v25, %v2377_v27 }
 0x3d1   :  { %v2902_v48 = vpop.f32.mrf.mxu1  ;;  %2292 = vrot.lane.b32.xlu0 %v3002_v63, %s3021_s30 }
 0x3d2   :  { %v2163_v15 = vadd.f32 %v2902_v48, %v4234_v55  ;;  %2913 = vmatprep.mubr.msk.f32.mxu0 %vm786_vm3, %v2400_v16 }
 0x3d3   :  { %v2157_v34 = vpop.f32.mrf.mxu1  ;;  %2914 = vmatmul.mubr.msk.f32.gmra.mxu0 %vm786_vm3, %v2401_v4 }
 0x3d4   :  { %v4393_v3 = vmul.f32 0.1, %v2163_v15  ;;  %v2158_v46 = vadd.f32 %v4234_v55, %v2157_v34 }
 0x3d6   :  { %3003 = vtanh.f32 %v4393_v3  ;;  %v4397_v50 = vmul.f32 0.1, %v2158_v46 }
 0x3d8   :  { %3005 = vtanh.f32 %v4397_v50 }
 0x3dc   :  { %v2283_v33 = vpop.permute.xlu1 %2282 }
 0x3dd   :  { %v2325_v20 = vmul.f32 %v2283_v33, %v3272_v6 }
 0x3de   :  { %v2905_v0 = vpop.f32.mrf.mxu1  ;;  %v2281_v13 = vpop.permute.xlu0 %2280 }
 0x3df   :  { %v2173_v2 = vadd.f32 %v2905_v0, %v4234_v55  ;;  %v2341_v31 = vadd.f32 %v2325_v20, %v4289_v56  ;;  %v2324_v11 = vmul.f32 %v2281_v13, %v3267_v5 }
 0x3e0   :  { %v2167_v1 = vpop.f32.mrf.mxu1 }
 0x3e1   :  { %v4404_v14 = vmul.f32 0.1, %v2173_v2  ;;  %v2168_v41 = vadd.f32 %v4234_v55, %v2167_v1  ;;  %v2357_v38 = vsel %vm54_vm0, %v3272_v6, %v2341_v31  ;;  %v2340_v24 = vadd.f32 %v2324_v11, %v4293_v52 }
 0x3e2   :  { %v2380_v56 = vmul.f32 %v4346_v51, %v2357_v38 }
 0x3e3   :  { %v3004_v49 = vpop.eup %3003  ;;  %3007 = vtanh.f32 %v4404_v14  ;;  %v4411_v35 = vmul.f32 0.1, %v2168_v41  ;;  %v2356_v28 = vsel %vm54_vm0, %v3267_v5, %v2340_v24 }
 0x3e4   :  { %v4413_v42 = vmul.f32 2.0, %v3004_v49  ;;  %v2379_v55 = vmul.f32 %v4346_v51, %v2356_v28  ;;  %v2403_v27 = vadd.f32 %v4363_v25, %v2380_v56 }
 0x3e5   :  { %v3006_v62 = vpop.eup %3005  ;;  %3009 = vtanh.f32 %v4411_v35 }
 0x3e6   :  { %v2250_v6 = vmul.f32 1.442695, %v4413_v42  ;;  %v4421_v52 = vmul.f32 2.0, %v3006_v62  ;;  %v2402_v61 = vadd.f32 %v4363_v25, %v2379_v55 }
 0x3e8   :  { %3011 = vpow2.f32 %v2250_v6  ;;  %v2248_v17 = vmul.f32 1.442695, %v4421_v52  ;;  %2916 = vmatprep.mubr.msk.f32.mxu0 %vm786_vm3, %v2402_v61 }
 0x3e9   :  { %2917 = vmatmul.mubr.msk.f32.gmra.mxu0 %vm786_vm3, %v2403_v27  ;;  %v2653_v27 = vsel %vm54_vm0, %v4333_v47, 0.0 }
 0x3ea   :  { %3013 = vpow2.f32 %v2248_v17  ;;  %v2632_v17 = vsel %vm54_vm0, %v4260_v19, 0.0 }
 0x3f0   :  { %v3008_v5 = vpop.eup %3007 }
 0x3f1   :  { %v4428_v63 = vmul.f32 2.0, %v3008_v5 }
 0x3f2   :  { %v3010_v16 = vpop.eup %3009 }
 0x3f3   :  { %v2254_v48 = vmul.f32 1.442695, %v4428_v63  ;;  %v4431_v4 = vmul.f32 2.0, %v3010_v16  ;;  %v2662_v16 = vsel %vm54_vm0, %v4370_v60, 0.0  ;;  %v2650_v60 = vsel %vm54_vm0, %v4314_v36, 0.0 }
 0x3f5   :  { %v3012_v15 = vpop.eup %3011  ;;  %3015 = vpow2.f32 %v2254_v48  ;;  %v2252_v34 = vmul.f32 1.442695, %v4431_v4  ;;  %v2644_v48 = vsel %vm54_vm0, %v4298_v53, 0.0  ;;  %v2671_v53 = vsel %vm54_vm0, %v4431_v4, 0.0 }
 0x3f6   :  { %2298 = vrot.lane.b32.xlu1 %v3012_v15, %s3021_s30 }
 0x3f7   :  { %v3014_v46 = vpop.eup %3013  ;;  %3017 = vpow2.f32 %v2252_v34 }
 0x3f8   :  { %2296 = vrot.lane.b32.xlu0 %v3014_v46, %s3021_s30 }
 0x400   :  { %v2287_v33 = vpop.permute.xlu1 %2286 }
 0x401   :  { %v2327_v0 = vmul.f32 %v2287_v33, %v3288_v8 }
 0x402   :  { %v3016_v20 = vpop.eup %3015  ;;  %v2285_v2 = vpop.permute.xlu0 %2284 }
 0x403   :  { %2302 = vrot.lane.b32.xlu1 %v3016_v20, %s3021_s30  ;;  %v2343_v31 = vadd.f32 %v2327_v0, %v4306_v22  ;;  %v2326_v11 = vmul.f32 %v2285_v2, %v3283_v7 }
 0x404   :  { %v3018_v13 = vpop.eup %3017 }
 0x405   :  { %2300 = vrot.lane.b32.xlu0 %v3018_v13, %s3021_s30  ;;  %v2359_v1 = vsel %vm54_vm0, %v3288_v8, %v2343_v31  ;;  %v2342_v41 = vadd.f32 %v2326_v11, %v4311_v29  ;;  %v2629_v29 = vsel %vm54_vm0, %v4263_v30, 0.0 }
 0x406   :  { %v2382_v38 = vmul.f32 %v4346_v51, %v2359_v1 }
 0x407   :  { %v2358_v24 = vsel %vm54_vm0, %v3283_v7, %v2342_v41 }
 0x408   :  { %v2381_v49 = vmul.f32 %v4346_v51, %v2358_v24  ;;  %v2405_v22 = vadd.f32 %v4363_v25, %v2382_v38 }
 0x40a   :  { %v2404_v56 = vadd.f32 %v4363_v25, %v2381_v49 }
 0x40c   :  { %2919 = vmatprep.mubr.msk.f32.mxu0 %vm786_vm3, %v2404_v56 }
 0x40d   :  { %2920 = vmatmul.mubr.msk.f32.gmra.mxu0 %vm786_vm3, %v2405_v22 }
 0x420   :  { %v2291_v28 = vpop.permute.xlu1 %2290 }
 0x421   :  { %v2329_v8 = vmul.f32 %v2291_v28, %v3304_v10 }
 0x422   :  { %v2289_v62 = vpop.permute.xlu0 %2288 }
 0x423   :  { %v2345_v55 = vadd.f32 %v2329_v8, %v4321_v57  ;;  %v2328_v7 = vmul.f32 %v2289_v62, %v3293_v9 }
 0x424   :  { %2630 = vadd.xlane.f32.xlu0 %v2629_v29 }
 0x425   :  { %v2361_v6 = vsel %vm54_vm0, %v3304_v10, %v2345_v55  ;;  %v2344_v61 = vadd.f32 %v2328_v7, %v4325_v59  ;;  %v2635_v10 = vsel %vm54_vm0, %v4285_v44, 0.0  ;;  %v2656_v59 = vsel %vm54_vm0, %v4330_v21, 0.0 }
 0x426   :  { %v2384_v5 = vmul.f32 %v4346_v51, %v2361_v6  ;;  %v2659_v44 = vsel %vm54_vm0, %v4373_v12, 0.0  ;;  %v2641_v21 = vsel %vm54_vm0, %v4301_v39, 0.0  ;;  %v2647_v12 = vsel %vm54_vm0, %v4317_v23, 0.0 }
 0x427   :  { %2633 = vadd.xlane.f32.xlu1 %v2632_v17  ;;  %v2360_v30 = vsel %vm54_vm0, %v3293_v9, %v2344_v61  ;;  %v2638_v9 = vsel %vm54_vm0, %v4282_v43, 0.0  ;;  %v2665_v43 = vsel %vm54_vm0, %v4421_v52, 0.0  ;;  %v2668_v39 = vsel %vm54_vm0, %v4413_v42, 0.0 }
 0x428   :  { %2654 = vadd.xlane.f32.xlu0 %v2653_v27  ;;  %v2383_v57 = vmul.f32 %v4346_v51, %v2360_v30  ;;  %v2407_v47 = vadd.f32 %v4363_v25, %v2384_v5  ;;  %v2674_v23 = vsel %vm54_vm0, %v4428_v63, 0.0 }
 0x42a   :  { %v2406_v19 = vadd.f32 %v4363_v25, %v2383_v57 }
 0x42b   :  { %2636 = vadd.xlane.f32.xlu1 %v2635_v10 }
 0x42c   :  { %2657 = vadd.xlane.f32.xlu0 %v2656_v59  ;;  %2922 = vmatprep.mubr.msk.f32.mxu0 %vm786_vm3, %v2406_v19 }
 0x42d   :  { %2923 = vmatmul.mubr.msk.f32.gmra.mxu0 %vm786_vm3, %v2407_v47 }
 0x42f   :  { %2639 = vadd.xlane.f32.xlu1 %v2638_v9 }
 0x430   :  { %2660 = vadd.xlane.f32.xlu0 %v2659_v44 }
 0x433   :  { %2642 = vadd.xlane.f32.xlu1 %v2641_v21 }
 0x434   :  { %2663 = vadd.xlane.f32.xlu0 %v2662_v16 }
 0x437   :  { %2645 = vadd.xlane.f32.xlu1 %v2644_v48 }
 0x438   :  { %2666 = vadd.xlane.f32.xlu0 %v2665_v43 }
 0x43b   :  { %2648 = vadd.xlane.f32.xlu1 %v2647_v12 }
 0x43c   :  { %2669 = vadd.xlane.f32.xlu0 %v2668_v39 }
 0x43f   :  { %2651 = vadd.xlane.f32.xlu1 %v2650_v60 }
 0x440   :  { %2672 = vadd.xlane.f32.xlu0 %v2671_v53 }
 0x441   :  { %v2295_v15 = vpop.permute.xlu1 %2294 }
 0x442   :  { %v2331_v52 = vmul.f32 %v2295_v15, %v3357_v26 }
 0x443   :  { %v2293_v34 = vpop.permute.xlu0 %2292 }
 0x444   :  { %v2347_v46 = vadd.f32 %v2331_v52, %v4338_v54  ;;  %v2330_v42 = vmul.f32 %v2293_v34, %v3323_v18  ;;  %2675 = vadd.xlane.f32.xlu0 %v2674_v23 }
 0x446   :  { %v2363_v36 = vsel %vm54_vm0, %v3357_v26, %v2347_v46  ;;  %v2346_v33 = vadd.f32 %v2330_v42, %v4349_v58 }
 0x447   :  { %v2386_v4 = vmul.f32 %v4346_v51, %v2363_v36 }
 0x448   :  { %v2362_v20 = vsel %vm54_vm0, %v3323_v18, %v2346_v33 }
 0x449   :  { %v2385_v0 = vmul.f32 %v4346_v51, %v2362_v20  ;;  %v2409_v63 = vadd.f32 %v4363_v25, %v2386_v4 }
 0x44b   :  { %v2408_v2 = vadd.f32 %v4363_v25, %v2385_v0 }
 0x44d   :  { %2925 = vmatprep.mubr.msk.f32.mxu0 %vm786_vm3, %v2408_v2 }
 0x44e   :  { %2926 = vmatmul.mubr.msk.f32.gmra.mxu0 %vm786_vm3, %v2409_v63 }
 0x468   :  { %v2299_v54 = vpop.permute.xlu1 %2298 }
 0x469   :  { %v2333_v26 = vmul.f32 %v2299_v54, %v3404_v37 }
 0x46a   :  { %v2297_v13 = vpop.permute.xlu0 %2296 }
 0x46b   :  { %v2349_v58 = vadd.f32 %v2333_v26, %v4393_v3  ;;  %v2332_v31 = vmul.f32 %v2297_v13, %v3385_v32 }
 0x46d   :  { %v2365_v18 = vsel %vm54_vm0, %v3404_v37, %v2349_v58  ;;  %v2348_v11 = vadd.f32 %v2332_v31, %v4397_v50 }
 0x46e   :  { %v2388_v1 = vmul.f32 %v4346_v51, %v2365_v18 }
 0x46f   :  { %v2364_v41 = vsel %vm54_vm0, %v3385_v32, %v2348_v11 }
 0x470   :  { %v2387_v38 = vmul.f32 %v4346_v51, %v2364_v41  ;;  %v2411_v49 = vadd.f32 %v4363_v25, %v2388_v1 }
 0x472   :  { %v2410_v24 = vadd.f32 %v4363_v25, %v2387_v38 }
 0x474   :  { %2928 = vmatprep.mubr.msk.f32.mxu0 %vm786_vm3, %v2410_v24 }
 0x475   :  { %v2303_v3 = vpop.permute.xlu1 %2302  ;;  %2929 = vmatmul.mubr.msk.f32.gmra.mxu0 %vm786_vm3, %v2411_v49 }
 0x476   :  { %v2335_v37 = vmul.f32 %v2303_v3, %v3442_v45 }
 0x477   :  { %v2301_v56 = vpop.permute.xlu0 %2300  ;;  %v2912_v22 = vpop.f32.mrf.mxu0 }
 0x478   :  { %v2351_v50 = vadd.f32 %v2335_v37, %v4404_v14  ;;  %v2334_v28 = vmul.f32 %v2301_v56, %v3423_v40  ;;  %2614 = vst.msk [vmem:[%s4615_s8 + $0x8] sm:$0xff] %vm786_vm3, %v2912_v22 }
 0x479   :  { %v2534_v62 = vpop.f32.mrf.mxu0 }
 0x47a   :  { %v2367_v32 = vsel %vm54_vm0, %v3442_v45, %v2351_v50  ;;  %v2350_v8 = vadd.f32 %v2334_v28, %v4411_v35  ;;  %2613 = vst.msk [vmem:[%s4615_s8] sm:$0xff] %vm786_vm3, %v2534_v62 }
 0x47b   :  { %v2390_v14 = vmul.f32 %v4346_v51, %v2367_v32 }
 0x47c   :  { %v2366_v29 = vsel %vm54_vm0, %v3423_v40, %v2350_v8 }
 0x47d   :  { %v2389_v55 = vmul.f32 %v4346_v51, %v2366_v29  ;;  %v2413_v6 = vadd.f32 %v4363_v25, %v2390_v14 }
 0x47f   :  { %v2412_v7 = vadd.f32 %v4363_v25, %v2389_v55 }
 0x481   :  { %2931 = vmatprep.mubr.msk.f32.mxu0 %vm786_vm3, %v2412_v7 }
 0x482   :  { %2932 = vmatmul.mubr.msk.f32.gmra.mxu0 %vm786_vm3, %v2413_v6 }
 0x493   :  { %v2915_v45 = vpop.f32.mrf.mxu0 }
 0x494   :  { %2616 = vst.msk [vmem:[%s4615_s8 + $0x18] sm:$0xff] %vm786_vm3, %v2915_v45 }
 0x495   :  { %v2544_v35 = vpop.f32.mrf.mxu0 }
 0x496   :  { %2615 = vst.msk [vmem:[%s4615_s8 + $0x10] sm:$0xff] %vm786_vm3, %v2544_v35 }
 0x4a9   :  { %v2918_v40 = vpop.f32.mrf.mxu0 }
 0x4aa   :  { %2618 = vst.msk [vmem:[%s4615_s8 + $0x28] sm:$0xff] %vm786_vm3, %v2918_v40 }
 0x4ab   :  { %v2554_v51 = vpop.f32.mrf.mxu0 }
 0x4ac   :  { %2617 = vst.msk [vmem:[%s4615_s8 + $0x20] sm:$0xff] %vm786_vm3, %v2554_v51 }
 0x4ad   :  { %v2631_v25 = vpop.xlane.xlu0 %2630 }
 0x4b0   :  { %v2634_v61 = vpop.xlane.xlu1 %2633 }
 0x4b1   :  { %v2655_v17 = vpop.xlane.xlu0 %2654  ;;  %v2677_v59 = vadd.f32 %v2634_v61, %v2631_v25 }
 0x4b4   :  { %v2637_v27 = vpop.xlane.xlu1 %2636 }
 0x4b5   :  { %v2658_v5 = vpop.xlane.xlu0 %2657  ;;  %v2678_v47 = vadd.f32 %v2677_v59, %v2637_v27 }
 0x4b6   :  { %v2690_v16 = vadd.f32 %v2658_v5, %v2655_v17 }
 0x4b8   :  { %v2640_v30 = vpop.xlane.xlu1 %2639 }
 0x4b9   :  { %v2661_v57 = vpop.xlane.xlu0 %2660  ;;  %v2679_v44 = vadd.f32 %v2678_v47, %v2640_v30 }
 0x4ba   :  { %v2691_v43 = vadd.f32 %v2690_v16, %v2661_v57 }
 0x4bc   :  { %v2643_v10 = vpop.xlane.xlu1 %2642 }
 0x4bd   :  { %v2664_v19 = vpop.xlane.xlu0 %2663  ;;  %v2680_v48 = vadd.f32 %v2679_v44, %v2643_v10 }
 0x4be   :  { %v2692_v53 = vadd.f32 %v2691_v43, %v2664_v19 }
 0x4c0   :  { %v2646_v9 = vpop.xlane.xlu1 %2645 }
 0x4c1   :  { %v2667_v21 = vpop.xlane.xlu0 %2666  ;;  %v2681_v39 = vadd.f32 %v2680_v48, %v2646_v9 }
 0x4c2   :  { %v2693_v52 = vadd.f32 %v2692_v53, %v2667_v21 }
 0x4c4   :  { %v2649_v12 = vpop.xlane.xlu1 %2648 }
 0x4c5   :  { %v2670_v60 = vpop.xlane.xlu0 %2669  ;;  %v2682_v15 = vadd.f32 %v2681_v39, %v2649_v12 }
 0x4c6   :  { %v2694_v42 = vadd.f32 %v2693_v52, %v2670_v60 }
 0x4c8   :  { %v2652_v34 = vpop.xlane.xlu1 %2651 }
 0x4c9   :  { %v2683_v23 = vadd.f32 %v2682_v15, %v2652_v34  ;;  %v2673_v46 = vpop.xlane.xlu0 %2672 }
 0x4ca   :  { %v2695_v33 = vadd.f32 %v2694_v42, %v2673_v46 }
 0x4cb   :  { %v2684_v36 = vrot.slane %v2683_v23, 4 }
 0x4cd   :  { %v2685_v4 = vadd.f32 %v2684_v36, %v2683_v23  ;;  %v2676_v20 = vpop.xlane.xlu0 %2675  ;;  %v2921_v2 = vpop.f32.mrf.mxu0 }
 0x4ce   :  { %v2696_v0 = vadd.f32 %v2695_v33, %v2676_v20  ;;  %2620 = vst.msk [vmem:[%s4615_s8 + $0x38] sm:$0xff] %vm786_vm3, %v2921_v2 }
 0x4cf   :  { %v2686_v63 = vrot.slane %v2685_v4, 2  ;;  %v2564_v26 = vpop.f32.mrf.mxu0 }
 0x4d0   :  { %v2697_v54 = vrot.slane %v2696_v0, 4  ;;  %2619 = vst.msk [vmem:[%s4615_s8 + $0x30] sm:$0xff] %vm786_vm3, %v2564_v26 }
 0x4d1   :  { %v2687_v13 = vadd.f32 %v2686_v63, %v2685_v4 }
 0x4d2   :  { %v2698_v58 = vadd.f32 %v2697_v54, %v2696_v0 }
 0x4d3   :  { %v2688_v18 = vrot.slane %v2687_v13, 1 }
 0x4d4   :  { %v2699_v31 = vrot.slane %v2698_v58, 2 }
 0x4d5   :  { %v2689_v41 = vadd.f32 %v2688_v18, %v2687_v13 }
 0x4d6   :  { %v2700_v11 = vadd.f32 %v2699_v31, %v2698_v58 }
 0x4d8   :  { %v2701_v1 = vrot.slane %v2700_v11, 1 }
 0x4da   :  { %v2702_v38 = vadd.f32 %v2701_v1, %v2700_v11 }
 0x4dc   :  { %v2706_v24 = vsel %vm2705_vm12, %v2702_v38, %v2689_v41 }
 0x4dd   :  { %2708 = vst [vmem:[%s4616_s9] sm:$0x3] %v2706_v24 }
 0x4ed   :  { %v2924_v49 = vpop.f32.mrf.mxu0 }
 0x4ee   :  { %2622 = vst.msk [vmem:[%s4615_s8 + $0x48] sm:$0xff] %vm786_vm3, %v2924_v49 }
 0x4ef   :  { %v2574_v3 = vpop.f32.mrf.mxu0 }
 0x4f0   :  { %2621 = vst.msk [vmem:[%s4615_s8 + $0x40] sm:$0xff] %vm786_vm3, %v2574_v3 }
 0x50e   :  { %v2927_v37 = vpop.f32.mrf.mxu0 }
 0x50f   :  { %2624 = vst.msk [vmem:[%s4615_s8 + $0x58] sm:$0xff] %vm786_vm3, %v2927_v37 }
 0x510   :  { %v2584_v56 = vpop.f32.mrf.mxu0 }
 0x511   :  { %2623 = vst.msk [vmem:[%s4615_s8 + $0x50] sm:$0xff] %vm786_vm3, %v2584_v56 }
 0x535   :  { %v2930_v50 = vpop.f32.mrf.mxu0 }
 0x536   :  { %2626 = vst.msk [vmem:[%s4615_s8 + $0x68] sm:$0xff] %vm786_vm3, %v2930_v50 }
 0x537   :  { %v2594_v22 = vpop.f32.mrf.mxu0 }
 0x538   :  { %2625 = vst.msk [vmem:[%s4615_s8 + $0x60] sm:$0xff] %vm786_vm3, %v2594_v22 }
 0x542   :  { %v2933_v28 = vpop.f32.mrf.mxu0 }
 0x543   :  { %2628 = vst.msk [vmem:[%s4615_s8 + $0x78] sm:$0xff] %vm786_vm3, %v2933_v28 }
 0x544   :  { %v2604_v32 = vpop.f32.mrf.mxu0 }
 0x545   :  { %2627 = vst.msk [vmem:[%s4615_s8 + $0x70] sm:$0xff] %vm786_vm3, %v2604_v32 }

</bundles_post_ra>
